<compile_context>
chip_gen: v7x
topology: tpu7x:2x2x1
jax: 0.10.0
libtpu: 0.0.40
codegen_flags: <defaults>
</compile_context>

<pallas_src>
import jax
import jax.numpy as jnp
from jax import lax
from jax.experimental import pallas as pl
from jax.experimental.pallas import tpu as pltpu


# --------------------------------------------------------------------------
# constant-matrix builders (wrapper-side, one-time)
# --------------------------------------------------------------------------
def _band_matrix(w_hwio, W):
    """Fused banded 3x3 conv weights: (3*W*Cin, W*Cout).

    Row order is [ky, p, cin] (ky-major), matching an LHS built as the
    lane-concat of the three shifted row windows of an UNPADDED (H, W*Cin)
    slab.  W-direction zero padding is folded in by clipping the band.
    """
    _, _, cin, cout = w_hwio.shape
    p = jnp.arange(W)[:, None]                    # input pixel column
    x = jnp.arange(W)[None, :]                    # output pixel column
    kx = p - x + 1                                # kernel tap (padding=1)
    valid = ((kx >= 0) & (kx < 3)).astype(w_hwio.dtype)[:, :, None, None]
    kxc = jnp.clip(kx, 0, 2)
    bands = []
    for ky in range(3):
        blocks = w_hwio[ky][kxc] * valid          # (W, W, Cin, Cout)
        bands.append(jnp.transpose(blocks, (0, 2, 1, 3)).reshape(W * cin, W * cout))
    return jnp.concatenate(bands, axis=0)         # (3*W*Cin, W*Cout)


def _gn_proj(C, W, H, groups):
    """Combined group reduce+expand projection (W*C, W*C): row-sum @ proj = group mean."""
    cg = C // groups
    lane_g = (jnp.arange(W * C) % C) // cg
    onehot = (lane_g[:, None] == jnp.arange(groups)[None, :]).astype(jnp.float32)
    return (onehot / float(H * W * cg)) @ onehot.T


def _row(v, W):
    """Per-channel vector (C,) -> (1, W*C) row in channel-fastest lane order."""
    return jnp.tile(v, (W,)).reshape(1, -1)


def _lin_interp_matrix(n_in, n_out):
    """(n_out, n_in) bilinear (align_corners=True) interpolation matrix."""
    if n_in == 1:
        return jnp.ones((n_out, 1), jnp.float32)
    s = jnp.arange(n_out, dtype=jnp.float32) * (n_in - 1) / (n_out - 1)
    lo = jnp.minimum(jnp.floor(s).astype(jnp.int32), n_in - 1)
    hi = jnp.minimum(lo + 1, n_in - 1)
    f = s - lo.astype(jnp.float32)
    rows = jnp.arange(n_out)
    U = jnp.zeros((n_out, n_in), jnp.float32)
    U = U.at[rows, lo].add(1.0 - f)
    U = U.at[rows, hi].add(f)
    return U


def _up_place_matrix(U_w, Cx, Cin, off):
    """(w_in*Cx, w_out*Cin): W-upsample + place channels at offset `off` of the concat."""
    w_out, w_in = U_w.shape
    place = jnp.zeros((Cx, Cin), jnp.float32).at[jnp.arange(Cx), off + jnp.arange(Cx)].set(1.0)
    M = U_w.T[:, None, :, None] * place[None, :, None, :]   # (w_in, Cx, w_out, Cin)
    return M.reshape(w_in * Cx, w_out * Cin)


def _skip_place_matrix(W, Cs, Cin, off):
    """(W*Cs, W*Cin): place the skip channels at offset `off` of the concat lanes."""
    place = jnp.zeros((Cs, Cin), jnp.float32).at[jnp.arange(Cs), off + jnp.arange(Cs)].set(1.0)
    eyeW = jnp.eye(W, dtype=jnp.float32)
    M = eyeW[:, None, :, None] * place[None, :, None, :]    # (W, Cs, W, Cin)
    return M.reshape(W * Cs, W * Cin)


def _resblock_consts(params, W, H, groups):
    """10 grid-invariant constants of one ResBlock (band weights already bf16)."""
    w1, b1, g1, be1, w2, b2, g2, be2 = params
    cmid, cout = w1.shape[-1], w2.shape[-1]
    return [
        _band_matrix(w1, W).astype(jnp.bfloat16), _row(b1, W),
        _gn_proj(cmid, W, H, groups), _row(g1, W), _row(be1, W),
        _band_matrix(w2, W).astype(jnp.bfloat16), _row(b2, W),
        _gn_proj(cout, W, H, groups), _row(g2, W), _row(be2, W),
    ]


# --------------------------------------------------------------------------
# in-kernel helpers
# --------------------------------------------------------------------------
def _halo_banded_conv(hp_ref, x, wb_ref, H):
    """3x3 conv as ONE large-K bf16 MXU matmul.

    The value `x` (H, K) is staged through an (H+2, K) row-halo scratch (only
    the two halo rows are zeroed -- no full memset, no masked interior store);
    the three ky windows are lane-concatenated into a (H, 3*K) bf16 LHS and
    multiplied against the ky-stacked band (3*K, Nout) in one dot, f32 acc.
    """
    K = hp_ref.shape[1]
    hp_ref[0:1, :] = jnp.zeros((1, K), jnp.float32)
    hp_ref[H + 1:H + 2, :] = jnp.zeros((1, K), jnp.float32)
    hp_ref[1:H + 1, :] = x
    lhs = jnp.concatenate(
        [hp_ref[0:H, :].astype(jnp.bfloat16),
         hp_ref[1:H + 1, :].astype(jnp.bfloat16),
         hp_ref[2:H + 2, :].astype(jnp.bfloat16)], axis=1)       # (H, 3K) bf16
    return jnp.dot(lhs, wb_ref[...], preferred_element_type=jnp.float32)


def _group_norm_2d(a, gproj, gamma_row, beta_row, eps=1e-5):
    """GroupNorm on a lane-dense (H, W*C) f32 activation (two-pass variance).

    Mean/var are each ONE M=1 dot against the combined group projection.
    """
    mean = jnp.dot(jnp.sum(a, axis=0, keepdims=True), gproj,
                   preferred_element_type=jnp.float32)
    d = a - mean
    var = jnp.dot(jnp.sum(d * d, axis=0, keepdims=True), gproj,
                  preferred_element_type=jnp.float32)
    return d * lax.rsqrt(var + eps) * gamma_row + beta_row


# --------------------------------------------------------------------------
# kernels
# --------------------------------------------------------------------------
def _make_up_resblock_kernel(H):
    """Upsample(x) -> concat(skip, x_up) -> ResBlock(residual=True), one sample."""
    def kernel(x_ref, skip_ref, uh_ref, mwp_ref, sp_ref,
               w1b_ref, b1_ref, gp1_ref, g1_ref, be1_ref,
               w2b_ref, b2_ref, gp2_ref, g2_ref, be2_ref,
               o_ref, hp1_ref, hp2_ref):
        # ---- bilinear x2 (align_corners=True) + channel-concat placement ----
        xu = jnp.dot(uh_ref[...], x_ref[...], preferred_element_type=jnp.float32)
        cat = (jnp.dot(skip_ref[...], sp_ref[...], preferred_element_type=jnp.float32)
               + jnp.dot(xu, mwp_ref[...], preferred_element_type=jnp.float32))

        # ---- conv1 (one fused bf16 MXU dot) + GN(8) + SiLU ----
        acc1 = _halo_banded_conv(hp1_ref, cat, w1b_ref, H) + b1_ref[...]
        h1 = _group_norm_2d(acc1, gp1_ref[...], g1_ref[...], be1_ref[...])
        h1 = h1 * jax.nn.sigmoid(h1)

        # ---- conv2 + GN(8) + residual ----
        acc2 = _halo_banded_conv(hp2_ref, h1, w2b_ref, H) + b2_ref[...]
        h2 = _group_norm_2d(acc2, gp2_ref[...], g2_ref[...], be2_ref[...])
        o_ref[...] = (cat + h2).astype(o_ref.dtype)

    return kernel


def _make_resblock_temb_kernel(H):
    """ResBlock(residual=False) + fused SiLU+Linear time-embedding add, one sample."""
    def kernel(x_ref, t_ref,
               w1b_ref, b1_ref, gp1_ref, g1_ref, be1_ref,
               w2b_ref, b2_ref, gp2_ref, g2_ref, be2_ref,
               wtt_ref, bt_ref,
               o_ref, hp1_ref, hp2_ref):
        x = x_ref[...]
        acc1 = _halo_banded_conv(hp1_ref, x, w1b_ref, H) + b1_ref[...]
        h1 = _group_norm_2d(acc1, gp1_ref[...], g1_ref[...], be1_ref[...])
        h1 = h1 * jax.nn.sigmoid(h1)

        acc2 = _halo_banded_conv(hp2_ref, h1, w2b_ref, H) + b2_ref[...]
        h2 = _group_norm_2d(acc2, gp2_ref[...], g2_ref[...], be2_ref[...])

        # time embedding: SiLU(t) @ (W-tiled linear) -> (1, W*Cout) row add
        tt = t_ref[...]
        s = tt * jax.nn.sigmoid(tt)
        trow = jnp.dot(s, wtt_ref[...], preferred_element_type=jnp.float32) + bt_ref[...]
        o_ref[...] = (h2 + trow).astype(o_ref.dtype)

    return kernel


# --------------------------------------------------------------------------
# pallas_call wrappers
# --------------------------------------------------------------------------
def up_resblock_pallas(x_nhwc, skip_nhwc, rb_params, groups=8):
    """Fused: upsample x2 -> concat([skip, x_up]) -> ResBlock(residual=True)."""
    N, h, w, Cx = x_nhwc.shape
    _, H, W, Cs = skip_nhwc.shape
    assert H == 2 * h and W == 2 * w
    Cin = Cs + Cx
    w1, _, _, _, w2, _, _, _ = rb_params
    Cmid, Cout = w1.shape[-1], w2.shape[-1]
    assert w1.shape[-2] == Cin and Cin == Cout   # residual needs Cin == Cout

    x2d = x_nhwc.reshape(N, h, w * Cx)            # (N, 8, 128)   lane-dense
    skip2d = skip_nhwc.reshape(N, H, W * Cs)      # (N, 16, 256)  lane-dense

    Uh = _lin_interp_matrix(h, H)                                 # (H, h)
    Mwp = _up_place_matrix(_lin_interp_matrix(w, W), Cx, Cin, off=Cs)  # (w*Cx, W*Cin)
    Sp = _skip_place_matrix(W, Cs, Cin, off=0)                    # (W*Cs, W*Cin)
    consts = [Uh, Mwp, Sp] + _resblock_consts(rb_params, W, H, groups)

    inputs = [x2d, skip2d]
    in_specs = [pl.BlockSpec((None, h, w * Cx), lambda n: (n, 0, 0)),
                pl.BlockSpec((None, H, W * Cs), lambda n: (n, 0, 0))]
    for c in consts:
        inputs.append(c)
        in_specs.append(pl.BlockSpec(c.shape, lambda n, _nd=c.ndim: (0,) * _nd))

    out2d = pl.pallas_call(
        _make_up_resblock_kernel(H),
        out_shape=jax.ShapeDtypeStruct((N, H, W * Cout), x_nhwc.dtype),
        grid_spec=pltpu.PrefetchScalarGridSpec(
            num_scalar_prefetch=0,
            grid=(N,),
            in_specs=in_specs,
            out_specs=pl.BlockSpec((None, H, W * Cout), lambda n: (n, 0, 0)),
            scratch_shapes=[pltpu.VMEM((H + 2, W * Cin), jnp.float32),
                            pltpu.VMEM((H + 2, W * Cmid), jnp.float32)],
        ),
        compiler_params=pltpu.CompilerParams(
            dimension_semantics=("parallel",),       # one sample per TC on v7x
            vmem_limit_bytes=32 * 1024 * 1024,
        ),
    )(*inputs)
    return out2d.reshape(N, H, W, Cout)


def resblock_temb_pallas(x_nhwc, rb_params, t, wt, bt, groups=8):
    """Fused: ResBlock(residual=False) + (SiLU(t) @ wt + bt) broadcast add."""
    N, H, W, Cin = x_nhwc.shape
    w1, _, _, _, w2, _, _, _ = rb_params
    Cmid, Cout = w1.shape[-1], w2.shape[-1]

    x2d = x_nhwc.reshape(N, H, W * Cin)
    t3 = t.reshape(N, 1, t.shape[-1])
    wt_tiled = jnp.tile(wt, (1, W))                # (t_dim, W*Cout)
    bt_row = _row(bt, W)                           # (1, W*Cout)

    consts = _resblock_consts(rb_params, W, H, groups) + [wt_tiled, bt_row]

    inputs = [x2d, t3]
    in_specs = [pl.BlockSpec((None, H, W * Cin), lambda n: (n, 0, 0)),
                pl.BlockSpec((None, 1, t.shape[-1]), lambda n: (n, 0, 0))]
    for c in consts:
        inputs.append(c)
        in_specs.append(pl.BlockSpec(c.shape, lambda n, _nd=c.ndim: (0,) * _nd))

    out2d = pl.pallas_call(
        _make_resblock_temb_kernel(H),
        out_shape=jax.ShapeDtypeStruct((N, H, W * Cout), x_nhwc.dtype),
        grid_spec=pltpu.PrefetchScalarGridSpec(
            num_scalar_prefetch=0,
            grid=(N,),
            in_specs=in_specs,
            out_specs=pl.BlockSpec((None, H, W * Cout), lambda n: (n, 0, 0)),
            scratch_shapes=[pltpu.VMEM((H + 2, W * Cin), jnp.float32),
                            pltpu.VMEM((H + 2, W * Cmid), jnp.float32)],
        ),
        compiler_params=pltpu.CompilerParams(
            dimension_semantics=("parallel",),
            vmem_limit_bytes=32 * 1024 * 1024,
        ),
    )(*inputs)
    return out2d.reshape(N, H, W, Cout)


def upblock_pallas(x_nchw, skip_nchw, t, params):
    """UpBlock forward: upsample -> concat -> ResBlock(res) -> ResBlock -> + t_emb."""
    rb1_params, rb2_params, wt, bt = params
    x = jnp.transpose(x_nchw, (0, 2, 3, 1))        # NCHW -> NHWC (layout glue)
    skip = jnp.transpose(skip_nchw, (0, 2, 3, 1))

    h = up_resblock_pallas(x, skip, rb1_params)                 # kernel 1
    h = resblock_temb_pallas(h, rb2_params, t, wt, bt)          # kernel 2

    return jnp.transpose(h, (0, 3, 1, 2))          # back to NCHW


# --------------------------------------------------------------------------
# pure-JAX reference (for checking)
# --------------------------------------------------------------------------
def _bilinear_up_ref(x):  # NHWC, scale 2, align_corners=True
    def interp(a, axis):
        n_in = a.shape[axis]
        n_out = 2 * n_in
        if n_in == 1:
            return jnp.repeat(a, n_out, axis=axis)
        s = jnp.arange(n_out, dtype=jnp.float32) * (n_in - 1) / (n_out - 1)
        lo = jnp.minimum(jnp.floor(s).astype(jnp.int32), n_in - 1)
        hi = jnp.minimum(lo + 1, n_in - 1)
        f = s - lo.astype(jnp.float32)
        a_lo = jnp.take(a, lo, axis=axis)
        a_hi = jnp.take(a, hi, axis=axis)
        shape = [1] * a.ndim
        shape[axis] = n_out
        f = f.reshape(shape)
        return a_lo * (1.0 - f) + a_hi * f

    return interp(interp(x, 1), 2)


def _resblock_ref(x, params, *, residual=False, groups=8, eps=1e-5):
    w1, b1, g1, be1, w2, b2, g2, be2 = params

    def conv(h, w, b):
        y = lax.conv_general_dilated(h, w, (1, 1), "SAME",
                                     dimension_numbers=("NHWC", "HWIO", "NHWC"))
        return y + b

    def gn(h, gamma, beta):
        N, H, W, C = h.shape
        hg = h.reshape(N, H * W, groups, C // groups)
        mean = hg.mean(axis=(1, 3), keepdims=True)
        var = ((hg - mean) ** 2).mean(axis=(1, 3), keepdims=True)
        hn = (hg - mean) / jnp.sqrt(var + eps)
        return hn.reshape(N, H, W, C) * gamma + beta

    h = conv(x, w1, b1)
    h = gn(h, g1, be1)
    h = h * jax.nn.sigmoid(h)
    h = conv(h, w2, b2)
    h = gn(h, g2, be2)
    return x + h if residual else h


def upblock_ref(x_nchw, skip_nchw, t, params):
    rb1_params, rb2_params, wt, bt = params
    x = jnp.transpose(x_nchw, (0, 2, 3, 1))
    skip = jnp.transpose(skip_nchw, (0, 2, 3, 1))
    x = _bilinear_up_ref(x)
    h = jnp.concatenate([skip, x], axis=-1)
    h = _resblock_ref(h, rb1_params, residual=True)
    h = _resblock_ref(h, rb2_params, residual=False)
    te = t * jax.nn.sigmoid(t)
    te = te @ wt + bt
    h = h + te[:, None, None, :]
    return jnp.transpose(h, (0, 3, 1, 2))


# --------------------------------------------------------------------------
if __name__ == "__main__":
    # UpBlock(inp_ch=32, out_ch=16):  x is 16ch @ 8x8, skip is 16ch @ 16x16.
    N = 2
    cx, cs = 16, 16
    inp_ch = cx + cs          # 32  (channels entering the ResBlocks)
    out_ch = 16
    mid2 = inp_ch // 2        # 16  (mid channels of the 2nd ResBlock)
    h, w = 8, 8
    H, W = 2 * h, 2 * w
    t_dim = 256

    key = jax.random.PRNGKey(0)
    keys = jax.random.split(key, 24)
    ki = iter(keys)

    x = jax.random.normal(next(ki), (N, cx, h, w), jnp.float32)       # NCHW
    skip = jax.random.normal(next(ki), (N, cs, H, W), jnp.float32)    # NCHW
    t = jax.random.normal(next(ki), (N, t_dim), jnp.float32)

    def conv_p(k, cin, cout):
        return 0.1 * jax.random.normal(k, (3, 3, cin, cout), jnp.float32)  # HWIO

    def vec_p(k, c, base=0.0):
        return base + 0.1 * jax.random.normal(k, (c,), jnp.float32)

    # ResBlock1: inp_ch -> inp_ch (mid = inp_ch), residual=True
    rb1 = (conv_p(next(ki), inp_ch, inp_ch), vec_p(next(ki), inp_ch),
           vec_p(next(ki), inp_ch, 1.0), vec_p(next(ki), inp_ch),
           conv_p(next(ki), inp_ch, inp_ch), vec_p(next(ki), inp_ch),
           vec_p(next(ki), inp_ch, 1.0), vec_p(next(ki), inp_ch))
    # ResBlock2: inp_ch -> out_ch (mid = inp_ch // 2)
    rb2 = (conv_p(next(ki), inp_ch, mid2), vec_p(next(ki), mid2),
           vec_p(next(ki), mid2, 1.0), vec_p(next(ki), mid2),
           conv_p(next(ki), mid2, out_ch), vec_p(next(ki), out_ch),
           vec_p(next(ki), out_ch, 1.0), vec_p(next(ki), out_ch))
    wt = 0.1 * jax.random.normal(next(ki), (t_dim, out_ch), jnp.float32)
    bt = 0.1 * jax.random.normal(next(ki), (out_ch,), jnp.float32)
    params = (rb1, rb2, wt, bt)

    out = jax.block_until_ready(upblock_pallas(x, skip, t, params))
    ref = jax.block_until_ready(upblock_ref(x, skip, t, params))

    assert out.shape == (N, out_ch, H, W), out.shape
    # bf16 MXU operands (f32 accumulation) vs. a pure-f32 reference: allow a
    # correspondingly looser tolerance.  The all-f32 variant of this kernel
    # matched the same reference to < 1e-3.
    max_err = float(jnp.max(jnp.abs(out - ref)))
    mean_err = float(jnp.mean(jnp.abs(out - ref)))
    assert max_err < 1e-1 and mean_err < 2.5e-2, f"max={max_err} mean={mean_err}"
    print("KERNEL_OK")
</pallas_src>

<mosaic_0001>
module attributes {stable_mosaic.version = 11 : i64} {
  func.func @kernel(%arg0: i32, %arg1: memref<1x8x128xf32, #tpu.memory_space<vmem>>, %arg2: memref<1x16x256xf32, #tpu.memory_space<vmem>>, %arg3: memref<16x8xf32, #tpu.memory_space<vmem>>, %arg4: memref<128x512xf32, #tpu.memory_space<vmem>>, %arg5: memref<256x512xf32, #tpu.memory_space<vmem>>, %arg6: memref<1536x512xbf16, #tpu.memory_space<vmem>>, %arg7: memref<1x512xf32, #tpu.memory_space<vmem>>, %arg8: memref<512x512xf32, #tpu.memory_space<vmem>>, %arg9: memref<1x512xf32, #tpu.memory_space<vmem>>, %arg10: memref<1x512xf32, #tpu.memory_space<vmem>>, %arg11: memref<1536x512xbf16, #tpu.memory_space<vmem>>, %arg12: memref<1x512xf32, #tpu.memory_space<vmem>>, %arg13: memref<512x512xf32, #tpu.memory_space<vmem>>, %arg14: memref<1x512xf32, #tpu.memory_space<vmem>>, %arg15: memref<1x512xf32, #tpu.memory_space<vmem>>, %arg16: memref<1x16x512xf32, #tpu.memory_space<vmem>>, %arg17: memref<18x512xf32, #tpu.memory_space<vmem>>, %arg18: memref<18x512xf32, #tpu.memory_space<vmem>>) attributes {dimension_semantics = [#tpu.dimension_semantics<parallel>], iteration_bounds = array<i64: 2>, scalar_prefetch = 0 : i64, scratch_operands = 2 : i64, tpu.core_type = #tpu.core_type<tc>, window_params = [{transform_indices = @transform_0, window_bounds = array<i64: 1, 8, 128>}, {transform_indices = @transform_1, window_bounds = array<i64: 1, 16, 256>}, {pipeline_mode = #tpu.pipeline_mode<synchronous>, transform_indices = @transform_2, window_bounds = array<i64: 16, 8>}, {pipeline_mode = #tpu.pipeline_mode<synchronous>, transform_indices = @transform_3, window_bounds = array<i64: 128, 512>}, {pipeline_mode = #tpu.pipeline_mode<synchronous>, transform_indices = @transform_4, window_bounds = array<i64: 256, 512>}, {pipeline_mode = #tpu.pipeline_mode<synchronous>, transform_indices = @transform_5, window_bounds = array<i64: 1536, 512>}, {pipeline_mode = #tpu.pipeline_mode<synchronous>, transform_indices = @transform_6, window_bounds = array<i64: 1, 512>}, {pipeline_mode = #tpu.pipeline_mode<synchronous>, transform_indices = @transform_7, window_bounds = array<i64: 512, 512>}, {pipeline_mode = #tpu.pipeline_mode<synchronous>, transform_indices = @transform_8, window_bounds = array<i64: 1, 512>}, {pipeline_mode = #tpu.pipeline_mode<synchronous>, transform_indices = @transform_9, window_bounds = array<i64: 1, 512>}, {pipeline_mode = #tpu.pipeline_mode<synchronous>, transform_indices = @transform_10, window_bounds = array<i64: 1536, 512>}, {pipeline_mode = #tpu.pipeline_mode<synchronous>, transform_indices = @transform_11, window_bounds = array<i64: 1, 512>}, {pipeline_mode = #tpu.pipeline_mode<synchronous>, transform_indices = @transform_12, window_bounds = array<i64: 512, 512>}, {pipeline_mode = #tpu.pipeline_mode<synchronous>, transform_indices = @transform_13, window_bounds = array<i64: 1, 512>}, {pipeline_mode = #tpu.pipeline_mode<synchronous>, transform_indices = @transform_14, window_bounds = array<i64: 1, 512>}, {transform_indices = @transform_15, window_bounds = array<i64: 1, 16, 512>}]} {
    %c0 = arith.constant 0 : index
    %c0_0 = arith.constant 0 : index
    %0 = vector.load %arg3[%c0, %c0_0] : memref<16x8xf32, #tpu.memory_space<vmem>>, vector<16x8xf32>
    %c0_1 = arith.constant 0 : index
    %c0_2 = arith.constant 0 : index
    %c0_3 = arith.constant 0 : index
    %1 = vector.load %arg1[%c0_1, %c0_2, %c0_3] : memref<1x8x128xf32, #tpu.memory_space<vmem>>, vector<1x8x128xf32>
    %2 = vector.shape_cast %1 : vector<1x8x128xf32> to vector<8x128xf32>
    %cst = arith.constant dense<0.000000e+00> : vector<16x128xf32>
    %3 = tpu.matmul %0, %2, %cst {dimension_numbers = #tpu.dot_dimension_numbers<[1], [0], [0], [1], [0, 0, 1, 1], [], []>} : vector<16x8xf32>, vector<8x128xf32>, vector<16x128xf32> -> vector<16x128xf32>
    %c0_4 = arith.constant 0 : index
    %c0_5 = arith.constant 0 : index
    %c0_6 = arith.constant 0 : index
    %4 = vector.load %arg2[%c0_4, %c0_5, %c0_6] : memref<1x16x256xf32, #tpu.memory_space<vmem>>, vector<1x16x256xf32>
    %5 = vector.shape_cast %4 : vector<1x16x256xf32> to vector<16x256xf32>
    %c0_7 = arith.constant 0 : index
    %c0_8 = arith.constant 0 : index
    %6 = vector.load %arg5[%c0_7, %c0_8] : memref<256x512xf32, #tpu.memory_space<vmem>>, vector<256x512xf32>
    %cst_9 = arith.constant dense<0.000000e+00> : vector<16x512xf32>
    %7 = tpu.matmul %5, %6, %cst_9 {dimension_numbers = #tpu.dot_dimension_numbers<[1], [0], [0], [1], [0, 0, 1, 1], [], []>} : vector<16x256xf32>, vector<256x512xf32>, vector<16x512xf32> -> vector<16x512xf32>
    %c0_10 = arith.constant 0 : index
    %c0_11 = arith.constant 0 : index
    %8 = vector.load %arg4[%c0_10, %c0_11] : memref<128x512xf32, #tpu.memory_space<vmem>>, vector<128x512xf32>
    %cst_12 = arith.constant dense<0.000000e+00> : vector<16x512xf32>
    %9 = tpu.matmul %3, %8, %cst_12 {dimension_numbers = #tpu.dot_dimension_numbers<[1], [0], [0], [1], [0, 0, 1, 1], [], []>} : vector<16x128xf32>, vector<128x512xf32>, vector<16x512xf32> -> vector<16x512xf32>
    %10 = arith.addf %7, %9 : vector<16x512xf32>
    %cst_13 = arith.constant 0.000000e+00 : f32
    %11 = vector.broadcast %cst_13 : f32 to vector<1x512xf32>
    %c0_14 = arith.constant 0 : index
    %c0_15 = arith.constant 0 : index
    %12 = vector.load %arg17[%c0_14, %c0_15] : memref<18x512xf32, #tpu.memory_space<vmem>>, vector<1x512xf32>
    tpu.vector_store %arg17[%c0_14, %c0_15], %11 {strides = array<i32>} : memref<18x512xf32, #tpu.memory_space<vmem>>, vector<1x512xf32>,
    %cst_16 = arith.constant 0.000000e+00 : f32
    %13 = vector.broadcast %cst_16 : f32 to vector<1x512xf32>
    %c17 = arith.constant 17 : index
    %c0_17 = arith.constant 0 : index
    %14 = vector.load %arg17[%c17, %c0_17] : memref<18x512xf32, #tpu.memory_space<vmem>>, vector<1x512xf32>
    tpu.vector_store %arg17[%c17, %c0_17], %13 {strides = array<i32>} : memref<18x512xf32, #tpu.memory_space<vmem>>, vector<1x512xf32>,
    %c1 = arith.constant 1 : index
    %c0_18 = arith.constant 0 : index
    %15 = vector.load %arg17[%c1, %c0_18] : memref<18x512xf32, #tpu.memory_space<vmem>>, vector<16x512xf32>
    tpu.vector_store %arg17[%c1, %c0_18], %10 {strides = array<i32>} : memref<18x512xf32, #tpu.memory_space<vmem>>, vector<16x512xf32>,
    %c0_19 = arith.constant 0 : index
    %c0_20 = arith.constant 0 : index
    %16 = vector.load %arg17[%c0_19, %c0_20] : memref<18x512xf32, #tpu.memory_space<vmem>>, vector<16x512xf32>
    %17 = arith.truncf %16 : vector<16x512xf32> to vector<16x512xbf16>
    %c1_21 = arith.constant 1 : index
    %c0_22 = arith.constant 0 : index
    %18 = vector.load %arg17[%c1_21, %c0_22] : memref<18x512xf32, #tpu.memory_space<vmem>>, vector<16x512xf32>
    %19 = arith.truncf %18 : vector<16x512xf32> to vector<16x512xbf16>
    %c2 = arith.constant 2 : index
    %c0_23 = arith.constant 0 : index
    %20 = vector.load %arg17[%c2, %c0_23] : memref<18x512xf32, #tpu.memory_space<vmem>>, vector<16x512xf32>
    %21 = arith.truncf %20 : vector<16x512xf32> to vector<16x512xbf16>
    %22 = tpu.concatenate %17, %19, %21 in 1 : vector<16x512xbf16>, vector<16x512xbf16>, vector<16x512xbf16> -> vector<16x1536xbf16>
    %c0_24 = arith.constant 0 : index
    %c0_25 = arith.constant 0 : index
    %23 = vector.load %arg6[%c0_24, %c0_25] : memref<1536x512xbf16, #tpu.memory_space<vmem>>, vector<1536x512xbf16>
    %cst_26 = arith.constant dense<0.000000e+00> : vector<16x512xf32>
    %24 = tpu.matmul %22, %23, %cst_26 {dimension_numbers = #tpu.dot_dimension_numbers<[1], [0], [0], [1], [0, 0, 1, 1], [], []>} : vector<16x1536xbf16>, vector<1536x512xbf16>, vector<16x512xf32> -> vector<16x512xf32>
    %c0_27 = arith.constant 0 : index
    %c0_28 = arith.constant 0 : index
    %25 = vector.load %arg7[%c0_27, %c0_28] : memref<1x512xf32, #tpu.memory_space<vmem>>, vector<1x512xf32>
    %26 = vector.broadcast %25 : vector<1x512xf32> to vector<16x512xf32>
    %27 = arith.addf %24, %26 : vector<16x512xf32>
    %c0_29 = arith.constant 0 : index
    %c0_30 = arith.constant 0 : index
    %28 = vector.load %arg8[%c0_29, %c0_30] : memref<512x512xf32, #tpu.memory_space<vmem>>, vector<512x512xf32>
    %c0_31 = arith.constant 0 : index
    %c0_32 = arith.constant 0 : index
    %29 = vector.load %arg9[%c0_31, %c0_32] : memref<1x512xf32, #tpu.memory_space<vmem>>, vector<1x512xf32>
    %c0_33 = arith.constant 0 : index
    %c0_34 = arith.constant 0 : index
    %30 = vector.load %arg10[%c0_33, %c0_34] : memref<1x512xf32, #tpu.memory_space<vmem>>, vector<1x512xf32>
    %cst_35 = arith.constant dense<0.000000e+00> : vector<512xf32>
    %31 = vector.multi_reduction <add>, %27, %cst_35 [0] : vector<16x512xf32> to vector<512xf32>
    %32 = vector.shape_cast %31 : vector<512xf32> to vector<1x512xf32>
    %cst_36 = arith.constant dense<0.000000e+00> : vector<1x512xf32>
    %33 = tpu.matmul %32, %28, %cst_36 {dimension_numbers = #tpu.dot_dimension_numbers<[1], [0], [0], [1], [0, 0, 1, 1], [], []>} : vector<1x512xf32>, vector<512x512xf32>, vector<1x512xf32> -> vector<1x512xf32>
    %34 = vector.broadcast %33 : vector<1x512xf32> to vector<16x512xf32>
    %35 = arith.subf %27, %34 : vector<16x512xf32>
    %36 = arith.mulf %35, %35 : vector<16x512xf32>
    %cst_37 = arith.constant dense<0.000000e+00> : vector<512xf32>
    %37 = vector.multi_reduction <add>, %36, %cst_37 [0] : vector<16x512xf32> to vector<512xf32>
    %38 = vector.shape_cast %37 : vector<512xf32> to vector<1x512xf32>
    %cst_38 = arith.constant dense<0.000000e+00> : vector<1x512xf32>
    %39 = tpu.matmul %38, %28, %cst_38 {dimension_numbers = #tpu.dot_dimension_numbers<[1], [0], [0], [1], [0, 0, 1, 1], [], []>} : vector<1x512xf32>, vector<512x512xf32>, vector<1x512xf32> -> vector<1x512xf32>
    %cst_39 = arith.constant 9.99999974E-6 : f32
    %40 = vector.broadcast %cst_39 : f32 to vector<1x512xf32>
    %41 = arith.addf %39, %40 : vector<1x512xf32>
    %42 = math.rsqrt %41 : vector<1x512xf32>
    %43 = vector.broadcast %42 : vector<1x512xf32> to vector<16x512xf32>
    %44 = arith.mulf %35, %43 : vector<16x512xf32>
    %45 = vector.broadcast %29 : vector<1x512xf32> to vector<16x512xf32>
    %46 = arith.mulf %44, %45 : vector<16x512xf32>
    %47 = vector.broadcast %30 : vector<1x512xf32> to vector<16x512xf32>
    %48 = arith.addf %46, %47 : vector<16x512xf32>
    %49 = arith.negf %48 : vector<16x512xf32>
    %50 = math.exp %49 : vector<16x512xf32>
    %cst_40 = arith.constant 1.000000e+00 : f32
    %51 = vector.broadcast %cst_40 : f32 to vector<16x512xf32>
    %52 = arith.addf %51, %50 : vector<16x512xf32>
    %53 = arith.divf %51, %52 : vector<16x512xf32>
    %54 = arith.mulf %48, %53 : vector<16x512xf32>
    %cst_41 = arith.constant 0.000000e+00 : f32
    %55 = vector.broadcast %cst_41 : f32 to vector<1x512xf32>
    %c0_42 = arith.constant 0 : index
    %c0_43 = arith.constant 0 : index
    %56 = vector.load %arg18[%c0_42, %c0_43] : memref<18x512xf32, #tpu.memory_space<vmem>>, vector<1x512xf32>
    tpu.vector_store %arg18[%c0_42, %c0_43], %55 {strides = array<i32>} : memref<18x512xf32, #tpu.memory_space<vmem>>, vector<1x512xf32>,
    %cst_44 = arith.constant 0.000000e+00 : f32
    %57 = vector.broadcast %cst_44 : f32 to vector<1x512xf32>
    %c17_45 = arith.constant 17 : index
    %c0_46 = arith.constant 0 : index
    %58 = vector.load %arg18[%c17_45, %c0_46] : memref<18x512xf32, #tpu.memory_space<vmem>>, vector<1x512xf32>
    tpu.vector_store %arg18[%c17_45, %c0_46], %57 {strides = array<i32>} : memref<18x512xf32, #tpu.memory_space<vmem>>, vector<1x512xf32>,
    %c1_47 = arith.constant 1 : index
    %c0_48 = arith.constant 0 : index
    %59 = vector.load %arg18[%c1_47, %c0_48] : memref<18x512xf32, #tpu.memory_space<vmem>>, vector<16x512xf32>
    tpu.vector_store %arg18[%c1_47, %c0_48], %54 {strides = array<i32>} : memref<18x512xf32, #tpu.memory_space<vmem>>, vector<16x512xf32>,
    %c0_49 = arith.constant 0 : index
    %c0_50 = arith.constant 0 : index
    %60 = vector.load %arg18[%c0_49, %c0_50] : memref<18x512xf32, #tpu.memory_space<vmem>>, vector<16x512xf32>
    %61 = arith.truncf %60 : vector<16x512xf32> to vector<16x512xbf16>
    %c1_51 = arith.constant 1 : index
    %c0_52 = arith.constant 0 : index
    %62 = vector.load %arg18[%c1_51, %c0_52] : memref<18x512xf32, #tpu.memory_space<vmem>>, vector<16x512xf32>
    %63 = arith.truncf %62 : vector<16x512xf32> to vector<16x512xbf16>
    %c2_53 = arith.constant 2 : index
    %c0_54 = arith.constant 0 : index
    %64 = vector.load %arg18[%c2_53, %c0_54] : memref<18x512xf32, #tpu.memory_space<vmem>>, vector<16x512xf32>
    %65 = arith.truncf %64 : vector<16x512xf32> to vector<16x512xbf16>
    %66 = tpu.concatenate %61, %63, %65 in 1 : vector<16x512xbf16>, vector<16x512xbf16>, vector<16x512xbf16> -> vector<16x1536xbf16>
    %c0_55 = arith.constant 0 : index
    %c0_56 = arith.constant 0 : index
    %67 = vector.load %arg11[%c0_55, %c0_56] : memref<1536x512xbf16, #tpu.memory_space<vmem>>, vector<1536x512xbf16>
    %cst_57 = arith.constant dense<0.000000e+00> : vector<16x512xf32>
    %68 = tpu.matmul %66, %67, %cst_57 {dimension_numbers = #tpu.dot_dimension_numbers<[1], [0], [0], [1], [0, 0, 1, 1], [], []>} : vector<16x1536xbf16>, vector<1536x512xbf16>, vector<16x512xf32> -> vector<16x512xf32>
    %c0_58 = arith.constant 0 : index
    %c0_59 = arith.constant 0 : index
    %69 = vector.load %arg12[%c0_58, %c0_59] : memref<1x512xf32, #tpu.memory_space<vmem>>, vector<1x512xf32>
    %70 = vector.broadcast %69 : vector<1x512xf32> to vector<16x512xf32>
    %71 = arith.addf %68, %70 : vector<16x512xf32>
    %c0_60 = arith.constant 0 : index
    %c0_61 = arith.constant 0 : index
    %72 = vector.load %arg13[%c0_60, %c0_61] : memref<512x512xf32, #tpu.memory_space<vmem>>, vector<512x512xf32>
    %c0_62 = arith.constant 0 : index
    %c0_63 = arith.constant 0 : index
    %73 = vector.load %arg14[%c0_62, %c0_63] : memref<1x512xf32, #tpu.memory_space<vmem>>, vector<1x512xf32>
    %c0_64 = arith.constant 0 : index
    %c0_65 = arith.constant 0 : index
    %74 = vector.load %arg15[%c0_64, %c0_65] : memref<1x512xf32, #tpu.memory_space<vmem>>, vector<1x512xf32>
    %cst_66 = arith.constant dense<0.000000e+00> : vector<512xf32>
    %75 = vector.multi_reduction <add>, %71, %cst_66 [0] : vector<16x512xf32> to vector<512xf32>
    %76 = vector.shape_cast %75 : vector<512xf32> to vector<1x512xf32>
    %cst_67 = arith.constant dense<0.000000e+00> : vector<1x512xf32>
    %77 = tpu.matmul %76, %72, %cst_67 {dimension_numbers = #tpu.dot_dimension_numbers<[1], [0], [0], [1], [0, 0, 1, 1], [], []>} : vector<1x512xf32>, vector<512x512xf32>, vector<1x512xf32> -> vector<1x512xf32>
    %78 = vector.broadcast %77 : vector<1x512xf32> to vector<16x512xf32>
    %79 = arith.subf %71, %78 : vector<16x512xf32>
    %80 = arith.mulf %79, %79 : vector<16x512xf32>
    %cst_68 = arith.constant dense<0.000000e+00> : vector<512xf32>
    %81 = vector.multi_reduction <add>, %80, %cst_68 [0] : vector<16x512xf32> to vector<512xf32>
    %82 = vector.shape_cast %81 : vector<512xf32> to vector<1x512xf32>
    %cst_69 = arith.constant dense<0.000000e+00> : vector<1x512xf32>
    %83 = tpu.matmul %82, %72, %cst_69 {dimension_numbers = #tpu.dot_dimension_numbers<[1], [0], [0], [1], [0, 0, 1, 1], [], []>} : vector<1x512xf32>, vector<512x512xf32>, vector<1x512xf32> -> vector<1x512xf32>
    %cst_70 = arith.constant 9.99999974E-6 : f32
    %84 = vector.broadcast %cst_70 : f32 to vector<1x512xf32>
    %85 = arith.addf %83, %84 : vector<1x512xf32>
    %86 = math.rsqrt %85 : vector<1x512xf32>
    %87 = vector.broadcast %86 : vector<1x512xf32> to vector<16x512xf32>
    %88 = arith.mulf %79, %87 : vector<16x512xf32>
    %89 = vector.broadcast %73 : vector<1x512xf32> to vector<16x512xf32>
    %90 = arith.mulf %88, %89 : vector<16x512xf32>
    %91 = vector.broadcast %74 : vector<1x512xf32> to vector<16x512xf32>
    %92 = arith.addf %90, %91 : vector<16x512xf32>
    %93 = arith.addf %10, %92 : vector<16x512xf32>
    %c0_71 = arith.constant 0 : index
    %c0_72 = arith.constant 0 : index
    %c0_73 = arith.constant 0 : index
    %94 = vector.load %arg16[%c0_71, %c0_72, %c0_73] : memref<1x16x512xf32, #tpu.memory_space<vmem>>, vector<1x16x512xf32>
    %95 = vector.shape_cast %94 : vector<1x16x512xf32> to vector<16x512xf32>
    %96 = vector.shape_cast %93 : vector<16x512xf32> to vector<1x16x512xf32>
    tpu.vector_store %arg16[%c0_71, %c0_72, %c0_73], %96 {strides = array<i32>} : memref<1x16x512xf32, #tpu.memory_space<vmem>>, vector<1x16x512xf32>,
    return
  }
  func.func @transform_0(%arg0: i32) -> (i32, i32, i32) {
    %c0_i32 = arith.constant 0 : i32
    %c0_i32_0 = arith.constant 0 : i32
    %c0_i32_1 = arith.constant 0 : i32
    return %arg0, %c0_i32, %c0_i32_0 : i32, i32, i32
  }
  func.func @transform_1(%arg0: i32) -> (i32, i32, i32) {
    %c0_i32 = arith.constant 0 : i32
    %c0_i32_0 = arith.constant 0 : i32
    %c0_i32_1 = arith.constant 0 : i32
    return %arg0, %c0_i32, %c0_i32_0 : i32, i32, i32
  }
  func.func @transform_2(%arg0: i32) -> (i32, i32) {
    %c0_i32 = arith.constant 0 : i32
    %c0_i32_0 = arith.constant 0 : i32
    %c0_i32_1 = arith.constant 0 : i32
    return %c0_i32, %c0_i32_0 : i32, i32
  }
  func.func @transform_3(%arg0: i32) -> (i32, i32) {
    %c0_i32 = arith.constant 0 : i32
    %c0_i32_0 = arith.constant 0 : i32
    %c0_i32_1 = arith.constant 0 : i32
    return %c0_i32, %c0_i32_0 : i32, i32
  }
  func.func @transform_4(%arg0: i32) -> (i32, i32) {
    %c0_i32 = arith.constant 0 : i32
    %c0_i32_0 = arith.constant 0 : i32
    %c0_i32_1 = arith.constant 0 : i32
    return %c0_i32, %c0_i32_0 : i32, i32
  }
  func.func @transform_5(%arg0: i32) -> (i32, i32) {
    %c0_i32 = arith.constant 0 : i32
    %c0_i32_0 = arith.constant 0 : i32
    %c0_i32_1 = arith.constant 0 : i32
    return %c0_i32, %c0_i32_0 : i32, i32
  }
  func.func @transform_6(%arg0: i32) -> (i32, i32) {
    %c0_i32 = arith.constant 0 : i32
    %c0_i32_0 = arith.constant 0 : i32
    %c0_i32_1 = arith.constant 0 : i32
    return %c0_i32, %c0_i32_0 : i32, i32
  }
  func.func @transform_7(%arg0: i32) -> (i32, i32) {
    %c0_i32 = arith.constant 0 : i32
    %c0_i32_0 = arith.constant 0 : i32
    %c0_i32_1 = arith.constant 0 : i32
    return %c0_i32, %c0_i32_0 : i32, i32
  }
  func.func @transform_8(%arg0: i32) -> (i32, i32) {
    %c0_i32 = arith.constant 0 : i32
    %c0_i32_0 = arith.constant 0 : i32
    %c0_i32_1 = arith.constant 0 : i32
    return %c0_i32, %c0_i32_0 : i32, i32
  }
  func.func @transform_9(%arg0: i32) -> (i32, i32) {
    %c0_i32 = arith.constant 0 : i32
    %c0_i32_0 = arith.constant 0 : i32
    %c0_i32_1 = arith.constant 0 : i32
    return %c0_i32, %c0_i32_0 : i32, i32
  }
  func.func @transform_10(%arg0: i32) -> (i32, i32) {
    %c0_i32 = arith.constant 0 : i32
    %c0_i32_0 = arith.constant 0 : i32
    %c0_i32_1 = arith.constant 0 : i32
    return %c0_i32, %c0_i32_0 : i32, i32
  }
  func.func @transform_11(%arg0: i32) -> (i32, i32) {
    %c0_i32 = arith.constant 0 : i32
    %c0_i32_0 = arith.constant 0 : i32
    %c0_i32_1 = arith.constant 0 : i32
    return %c0_i32, %c0_i32_0 : i32, i32
  }
  func.func @transform_12(%arg0: i32) -> (i32, i32) {
    %c0_i32 = arith.constant 0 : i32
    %c0_i32_0 = arith.constant 0 : i32
    %c0_i32_1 = arith.constant 0 : i32
    return %c0_i32, %c0_i32_0 : i32, i32
  }
  func.func @transform_13(%arg0: i32) -> (i32, i32) {
    %c0_i32 = arith.constant 0 : i32
    %c0_i32_0 = arith.constant 0 : i32
    %c0_i32_1 = arith.constant 0 : i32
    return %c0_i32, %c0_i32_0 : i32, i32
  }
  func.func @transform_14(%arg0: i32) -> (i32, i32) {
    %c0_i32 = arith.constant 0 : i32
    %c0_i32_0 = arith.constant 0 : i32
    %c0_i32_1 = arith.constant 0 : i32
    return %c0_i32, %c0_i32_0 : i32, i32
  }
  func.func @transform_15(%arg0: i32) -> (i32, i32, i32) {
    %c0_i32 = arith.constant 0 : i32
    %c0_i32_0 = arith.constant 0 : i32
    %c0_i32_1 = arith.constant 0 : i32
    return %arg0, %c0_i32, %c0_i32_0 : i32, i32, i32
  }
}

</mosaic_0001>

<bundles_post_ra>
// kernel: tpu_custom_call.1
= control target key start
LH: loop header
LB: loop body
LE: loop exit
PB: predicated region body
PF: predicated region fallthrough
CT: control target
= control target key end

     0   :  { %s15696_s0 = inlined_call_operand.hbm [shape: f32[2,8,128], index: 0, kind: input, shape index: {}]   ;;  %s15697_s1 = inlined_call_operand.hbm [shape: f32[2,16,256], index: 1, kind: input, shape index: {}]   ;;  %s15698_s2 = inlined_call_operand.vmem [shape: f32[16,8], index: 2, kind: input, shape index: {}]   ;;  %s15699_s3 = inlined_call_operand.hbm [shape: f32[128,512], index: 3, kind: input, shape index: {}]   ;;  %s15700_s4 = inlined_call_operand.hbm [shape: f32[256,512], index: 4, kind: input, shape index: {}]   ;;  %s15701_s5 = inlined_call_operand.hbm [shape: bf16[1536,512], index: 5, kind: input, shape index: {}]   ;;  %s15702_s6 = inlined_call_operand.hbm [shape: f32[1,512], index: 6, kind: input, shape index: {}]   ;;  %s15703_s7 = inlined_call_operand.hbm [shape: f32[512,512], index: 7, kind: input, shape index: {}]   ;;  %s15704_s8 = inlined_call_operand.hbm [shape: f32[1,512], index: 8, kind: input, shape index: {}]   ;;  %s15705_s9 = inlined_call_operand.hbm [shape: f32[1,512], index: 9, kind: input, shape index: {}]   ;;  %s15706_s10 = inlined_call_operand.hbm [shape: bf16[1536,512], index: 10, kind: input, shape index: {}]   ;;  %s15707_s11 = inlined_call_operand.hbm [shape: f32[1,512], index: 11, kind: input, shape index: {}]   ;;  %s15708_s12 = inlined_call_operand.hbm [shape: f32[512,512], index: 12, kind: input, shape index: {}]   ;;  %s15709_s13 = inlined_call_operand.hbm [shape: f32[1,512], index: 13, kind: input, shape index: {}]   ;;  %s15710_s14 = inlined_call_operand.hbm [shape: f32[1,512], index: 14, kind: input, shape index: {}]   ;;  %s15711_s15 = inlined_call_operand.hbm [shape: f32[2,16,512], index: 15, kind: output, shape index: {}]  }
   0x1   :  { %15921 = sst [smem:[#allocation138_spill]] %s15696_s0 }
   0x2   :  { %15922 = sst [smem:[#allocation139_spill]] %s15697_s1 }
   0x3   :  { %15923 = sst [smem:[#allocation140_spill]] %s15698_s2 }
   0x4   :  { %15924 = sst [smem:[#allocation141_spill]] %s15699_s3 }
   0x5   :  { %15925 = sst [smem:[#allocation142_spill]] %s15700_s4 }
   0x6   :  { %15926 = sst [smem:[#allocation143_spill]] %s15701_s5 }
   0x7   :  { %15927 = sst [smem:[#allocation144_spill]] %s15702_s6 }
   0x8   :  { %15928 = sst [smem:[#allocation145_spill]] %s15703_s7 }
   0x9   :  { %15929 = sst [smem:[#allocation146_spill]] %s15704_s8 }
   0xa   :  { %15930 = sst [smem:[#allocation147_spill]] %s15705_s9 }
   0xb   :  { %15931 = sst [smem:[#allocation148_spill]] %s15706_s10 }
   0xc   :  { %15932 = sst [smem:[#allocation149_spill]] %s15711_s15 }
   0xd   :  { %20 = vsyncpa [#allocation5], 0 }
   0xe   :  { %22 = vsyncpa [#allocation5 + $0x1], 0 }
   0xf   :  { %23 = vsyncpa [#allocation8], 0 }
  0x10   :  { %25 = vsyncpa [#allocation8 + $0x1], 0 }
  0x11   :  { %26 = vsyncpa [#allocation11], 0 }
  0x12   :  { %27 = vsyncpa [#allocation14], 0 }
  0x13   :  { %28 = vsyncpa [#allocation17], 0 }
  0x14   :  { %29 = vsyncpa [#allocation20], 0 }
  0x15   :  { %30 = vsyncpa [#allocation23], 0 }
  0x16   :  { %31 = vsyncpa [#allocation26], 0 }
  0x17   :  { %32 = vsyncpa [#allocation6], 0 }
  0x18   :  { %34 = vsyncpa [#allocation6 + $0x1], 0  ;;  %s13782_s18 = smov 0   ;;  %s13784_s19 = smov 0  }
  0x19   :  { %s13786_s20 = smov 0   ;;  %s13788_s21 = smov 0  }
  0x1a LB: > { %15933 = sst [smem:[#allocation38_spill]] %s13666_s18  ;;  %s13680_s22 = smov [#allocation9]   ;;  %s13678_s21 = sphi %s13788_s21, %s16357_s21   ;;  %s13674_s20 = sphi %s13786_s20, %s16356_s20   ;;  %s13670_s19 = sphi %s13784_s19, %s16355_s19   ;;  %s13666_s18 = sphi %s13782_s18, %s16354_s18  }
  0x1b   : > { %s411_s23 = sshll.u32 %s13680_s22, 4  ;;  %s13803_s24 = sadd.s32 4294967295, %s13678_s21   ;;  %s13808_s23 = int_to_ptr.vmem [resolvable:$true] %s411_s23 }
  0x1c   : > { %15934 = sst [smem:[#allocation39_spill]] %s13803_s24  ;;  %p9627_p0 = scmp.ge.s32.totalorder %s13678_s21, 1 }
  0x1d   : > { %p15720_p1 = scmp.eq.s32.totalorder %s13803_s24, 0  ;;  %p396_p2 = scmp.lt.s32.totalorder %s13678_s21, 3 }
  0x1e   : > { %s13681_s26 = smov [#allocation10]   ;;  %s13682_s29 = smov [#allocation13]  }
  0x1f   : > { %p13810_p3 = pnand %p9627_p0, %p396_p2  ;;  %s424_s27 = sshll.u32 %s13681_s26, 4  ;;  %s13823_s27 = int_to_ptr.vmem [resolvable:$true] %s424_s27 }
  0x20   : > { %s451_s30 = sshll.u32 %s13682_s29, 4  ;;  %s15938_s3 = sld [smem:[#allocation141_spill]]  ;;  %s13825_s30 = int_to_ptr.vmem [resolvable:$true] %s451_s30 }
  0x21   : > { %s15935_s25 = scalar_select %p13810_p3, 1, 0 }
  0x22   : > { %p11853_p5 = pneg %p13810_p3 }
  0x23   : > { %15936 = sst [smem:[#allocation40_spill]] %s15935_s25 }
  0x24   : > { %p13819_p6 = pnand %p11853_p5, %p15720_p1 }
  0x26   : > { %s13184_s22 = scalar_lea.hbm %s15938_s3, 8192  ;;  %p13835_p8 = pneg %p13819_p6 }
  0x27   : > { %p13185_p7 = scmp.ne.s32.totalorder %s15938_s3, %s13184_s22  ;;  %p13191_p11 = scmp.lt.u32.totalorder %s13184_s22, %s15938_s3 }
  0x29   : > { %p13187_p9 = pnand %p13835_p8, %p13185_p7 }
  0x2b   : > { %p13188_p10 = pneg %p13187_p9 }
  0x2d   : > { %p13193_p12 = pnand %p13191_p11, %p13188_p10 }
  0x2f   : > { %13196 = shalt.err (!%p13193_p12)
}
  0x30   : > { %s13197_s2 = scalar_lea.vmem %s13808_s23, 8192  ;;  %p13205_p5 = scmp.lt.s32.totalorder %s13808_s23, %s13808_s23 }
  0x31   : > { %p13198_p13 = scmp.ne.s32.totalorder %s13808_s23, %s13197_s2  ;;  %p13206_p4 = scmp.lt.s32.totalorder %s13197_s2, %s13197_s2 }
  0x33   : > { %p13200_p0 = pnand %p13198_p13, %p13835_p8  ;;  %p13207_p7 = por %p13206_p4, %p13205_p5 }
  0x35   : > { %p13201_p2 = pneg %p13200_p0 }
  0x37   : > { %p13208_p9 = pnand %p13207_p7, %p13201_p2 }
  0x39   : > { %13211 = shalt.err (!%p13208_p9)
}
  0x3a   : > { %s15722_s15 = smov 512   ;;  %s15728_s25 = smov 32  }
  0x3b   : > { %11856 = dma.hbm_to_vmem [thread:$0]  (!%p13819_p6), %s15938_s3, 8192, %s13808_s23, [#allocation8], %s15722_s15, %s15722_s15, %s15728_s25  }
  0x3c   : > { %s15940_s4 = sld [smem:[#allocation142_spill]] }
  0x42   : > { %s13212_s2 = scalar_lea.hbm %s15940_s4, 16384 }
  0x43   : > { %p13213_p4 = scmp.ne.s32.totalorder %s15940_s4, %s13212_s2  ;;  %p13219_p12 = scmp.lt.u32.totalorder %s13212_s2, %s15940_s4 }
  0x45   : > { %p13215_p10 = pnand %p13213_p4, %p13835_p8 }
  0x47   : > { %p13216_p11 = pneg %p13215_p10 }
  0x49   : > { %p13221_p13 = pnand %p13219_p12, %p13216_p11 }
  0x4b   : > { %13224 = shalt.err (!%p13221_p13)
}
  0x4c   : > { %s13225_s23 = scalar_lea.vmem %s13823_s27, 16384  ;;  %p13233_p7 = scmp.lt.s32.totalorder %s13823_s27, %s13823_s27 }
  0x4d   : > { %p13226_p0 = scmp.ne.s32.totalorder %s13823_s27, %s13225_s23  ;;  %p13234_p9 = scmp.lt.s32.totalorder %s13225_s23, %s13225_s23 }
  0x4f   : > { %p13228_p2 = pnand %p13226_p0, %p13835_p8  ;;  %p13235_p4 = por %p13234_p9, %p13233_p7 }
  0x51   : > { %p13229_p5 = pneg %p13228_p2 }
  0x53   : > { %p13236_p10 = pnand %p13235_p4, %p13229_p5 }
  0x55   : > { %13239 = shalt.err (!%p13236_p10)
}
  0x56   : > { %11859 = dma.hbm_to_vmem [thread:$0]  (!%p13819_p6), %s15940_s4, 16384, %s13823_s27, [#allocation11], %s15722_s15, %s15722_s15, %s15728_s25  }
  0x57   : > { %s15941_s6 = sld [smem:[#allocation144_spill]] }
  0x5d   : > { %s13240_s16 = scalar_lea.hbm %s15941_s6, 64 }
  0x5e   : > { %p13241_p11 = scmp.ne.s32.totalorder %s15941_s6, %s13240_s16  ;;  %p13247_p0 = scmp.lt.u32.totalorder %s13240_s16, %s15941_s6 }
  0x60   : > { %p13243_p12 = pnand %p13241_p11, %p13835_p8 }
  0x62   : > { %p13244_p13 = pneg %p13243_p12 }
  0x64   : > { %p13249_p2 = pnand %p13247_p0, %p13244_p13 }
  0x66   : > { %13252 = shalt.err (!%p13249_p2)
}
  0x67   : > { %s13253_s27 = scalar_lea.vmem %s13825_s30, 64  ;;  %p13261_p4 = scmp.lt.s32.totalorder %s13825_s30, %s13825_s30 }
  0x68   : > { %p13254_p5 = scmp.ne.s32.totalorder %s13825_s30, %s13253_s27  ;;  %p13262_p10 = scmp.lt.s32.totalorder %s13253_s27, %s13253_s27 }
  0x6a   : > { %p13256_p7 = pnand %p13254_p5, %p13835_p8  ;;  %p13263_p11 = por %p13262_p10, %p13261_p4 }
  0x6c   : > { %p13257_p9 = pneg %p13256_p7 }
  0x6e   : > { %p13264_p12 = pnand %p13263_p11, %p13257_p9 }
  0x70   : > { %13267 = shalt.err (!%p13264_p12)
}
  0x71   : > { %11865 = dma.hbm_to_vmem [thread:$0]  (!%p13819_p6), %s15941_s6, 64, %s13825_s30, [#allocation14]  }
  0x72   : > { %s13685_s1 = smov [#allocation16]   ;;  %s15942_s8 = sld [smem:[#allocation146_spill]] }
  0x73   : > { %s475_s18 = sshll.u32 %s13685_s1, 4  ;;  %s476_s18 = int_to_ptr.vmem [resolvable:$true] %s475_s18 }
  0x78   : > { %s13268_s17 = scalar_lea.hbm %s15942_s8, 64 }
  0x79   : > { %p13269_p13 = scmp.ne.s32.totalorder %s15942_s8, %s13268_s17  ;;  %p13275_p5 = scmp.lt.u32.totalorder %s13268_s17, %s15942_s8 }
  0x7b   : > { %p13271_p0 = pnand %p13269_p13, %p13835_p8 }
  0x7d   : > { %p13272_p2 = pneg %p13271_p0 }
  0x7f   : > { %p13277_p7 = pnand %p13275_p5, %p13272_p2 }
  0x81   : > { %13280 = shalt.err (!%p13277_p7)
}
  0x82   : > { %s13281_s30 = scalar_lea.vmem %s476_s18, 64  ;;  %p13289_p11 = scmp.lt.s32.totalorder %s476_s18, %s476_s18 }
  0x83   : > { %p13282_p9 = scmp.ne.s32.totalorder %s476_s18, %s13281_s30  ;;  %p13290_p12 = scmp.lt.s32.totalorder %s13281_s30, %s13281_s30 }
  0x85   : > { %p13284_p4 = pnand %p13282_p9, %p13835_p8  ;;  %p13291_p1 = por %p13290_p12, %p13289_p11 }
  0x87   : > { %p13285_p10 = pneg %p13284_p4 }
  0x89   : > { %p13292_p3 = pnand %p13291_p1, %p13285_p10 }
  0x8b   : > { %13295 = shalt.err (!%p13292_p3)
}
  0x8c   : > { %11871 = dma.hbm_to_vmem [thread:$0]  (!%p13819_p6), %s15942_s8, 64, %s476_s18, [#allocation17]  }
  0x8d   : > { %s13686_s1 = smov [#allocation19]   ;;  %s13687_s16 = smov [#allocation22]  }
  0x8e   : > { %s496_s24 = sshll.u32 %s13686_s1, 4  ;;  %s520_s17 = sshll.u32 %s13687_s16, 4  ;;  %s497_s24 = int_to_ptr.vmem [resolvable:$true] %s496_s24  ;;  %s13926_s17 = int_to_ptr.vmem [resolvable:$true] %s520_s17 }
  0x8f   : > { %s15943_s10 = sld [smem:[#allocation148_spill]] }
  0x95   : > { %s13296_s2 = scalar_lea.hbm %s15943_s10, 49152 }
  0x96   : > { %p13297_p1 = scmp.ne.s32.totalorder %s15943_s10, %s13296_s2  ;;  %p13303_p0 = scmp.lt.u32.totalorder %s13296_s2, %s15943_s10 }
  0x98   : > { %p13299_p3 = pnand %p13297_p1, %p13835_p8 }
  0x9a   : > { %p13300_p13 = pneg %p13299_p3 }
  0x9c   : > { %p13305_p2 = pnand %p13303_p0, %p13300_p13 }
  0x9e   : > { %13308 = shalt.err (!%p13305_p2)
}
  0x9f   : > { %s13309_s0 = scalar_lea.vmem %s497_s24, 49152  ;;  %p13317_p4 = scmp.lt.s32.totalorder %s497_s24, %s497_s24 }
  0xa0   : > { %p13310_p5 = scmp.ne.s32.totalorder %s497_s24, %s13309_s0  ;;  %p13318_p10 = scmp.lt.s32.totalorder %s13309_s0, %s13309_s0 }
  0xa2   : > { %p13312_p7 = pnand %p13310_p5, %p13835_p8  ;;  %p13319_p11 = por %p13318_p10, %p13317_p4 }
  0xa4   : > { %p13313_p9 = pneg %p13312_p7 }
  0xa6   : > { %p13320_p12 = pnand %p13319_p11, %p13313_p9 }
  0xa8   : > { %13323 = shalt.err (!%p13320_p12)
}
  0xa9   : > { %s15724_s1 = smov 256   ;;  %s15726_s16 = smov 16  }
  0xaa   : > { %11877 = dma.hbm_to_vmem [thread:$0]  (!%p13819_p6), %s15943_s10, 49152, %s497_s24, [#allocation20], %s15724_s1, %s15724_s1, %s15726_s16  }
  0xab   : > { %s13324_s30 = scalar_lea.hbm %s15708_s12, 32768 }
  0xac   : > { %p13325_p1 = scmp.ne.s32.totalorder %s15708_s12, %s13324_s30  ;;  %p13331_p0 = scmp.lt.u32.totalorder %s13324_s30, %s15708_s12 }
  0xae   : > { %p13327_p3 = pnand %p13325_p1, %p13835_p8 }
  0xb0   : > { %p13328_p13 = pneg %p13327_p3 }
  0xb2   : > { %p13333_p2 = pnand %p13331_p0, %p13328_p13 }
  0xb4   : > { %13336 = shalt.err (!%p13333_p2)
}
  0xb5   : > { %s13337_s24 = scalar_lea.vmem %s13926_s17, 32768  ;;  %p13345_p4 = scmp.lt.s32.totalorder %s13926_s17, %s13926_s17 }
  0xb6   : > { %p13338_p5 = scmp.ne.s32.totalorder %s13926_s17, %s13337_s24  ;;  %p13346_p10 = scmp.lt.s32.totalorder %s13337_s24, %s13337_s24 }
  0xb8   : > { %p13340_p7 = pnand %p13338_p5, %p13835_p8  ;;  %p13347_p11 = por %p13346_p10, %p13345_p4 }
  0xba   : > { %p13341_p9 = pneg %p13340_p7 }
  0xbc   : > { %p13348_p12 = pnand %p13347_p11, %p13341_p9 }
  0xbe   : > { %13351 = shalt.err (!%p13348_p12)
}
  0xbf   : > { %s15944_s15 = smov 512   ;;  %s13690_s2 = smov [#allocation12]  }
  0xc0   : > { %11883 = dma.hbm_to_vmem [thread:$0]  (!%p13819_p6), %s15708_s12, 32768, %s13926_s17, [#allocation23], %s15944_s15, %s15944_s15, %s15728_s25  }
  0xc1   : > { %s437_s27 = sshll.u32 %s13690_s2, 4  ;;  %s13691_s30 = smov [#allocation15]   ;;  %s438_s27 = int_to_ptr.vmem [resolvable:$true] %s437_s27 }
  0xc2   : > { %s461_s23 = sshll.u32 %s13691_s30, 4  ;;  %s15945_s5 = sld [smem:[#allocation143_spill]]  ;;  %s13975_s23 = int_to_ptr.vmem [resolvable:$true] %s461_s23 }
  0xc8   : > { %s13352_s24 = scalar_lea.hbm %s15945_s5, 49152 }
  0xc9   : > { %p13353_p1 = scmp.ne.s32.totalorder %s15945_s5, %s13352_s24  ;;  %p13359_p0 = scmp.lt.u32.totalorder %s13352_s24, %s15945_s5 }
  0xcb   : > { %p13355_p3 = pnand %p13353_p1, %p13835_p8 }
  0xcd   : > { %p13356_p13 = pneg %p13355_p3 }
  0xcf   : > { %p13361_p2 = pnand %p13359_p0, %p13356_p13 }
  0xd1   : > { %13364 = shalt.err (!%p13361_p2)
}
  0xd2   : > { %s13365_s29 = scalar_lea.vmem %s438_s27, 49152  ;;  %p13373_p4 = scmp.lt.s32.totalorder %s438_s27, %s438_s27 }
  0xd3   : > { %p13366_p5 = scmp.ne.s32.totalorder %s438_s27, %s13365_s29  ;;  %p13374_p10 = scmp.lt.s32.totalorder %s13365_s29, %s13365_s29 }
  0xd5   : > { %p13368_p7 = pnand %p13366_p5, %p13835_p8  ;;  %p13375_p11 = por %p13374_p10, %p13373_p4 }
  0xd7   : > { %p13369_p9 = pneg %p13368_p7 }
  0xd9   : > { %p13376_p12 = pnand %p13375_p11, %p13369_p9 }
  0xdb   : > { %13379 = shalt.err (!%p13376_p12)
}
  0xdc   : > { %s15946_s1 = smov 16   ;;  %s15947_s16 = smov 256  }
  0xdd   : > { %11862 = dma.hbm_to_vmem [thread:$0]  (!%p13819_p6), %s15945_s5, 49152, %s438_s27, [#allocation11], %s15947_s16, %s15947_s16, %s15946_s1  }
  0xde   : > { %s15948_s7 = sld [smem:[#allocation145_spill]] }
  0xe4   : > { %s13380_s24 = scalar_lea.hbm %s15948_s7, 32768 }
  0xe5   : > { %p13381_p1 = scmp.ne.s32.totalorder %s15948_s7, %s13380_s24  ;;  %p13387_p0 = scmp.lt.u32.totalorder %s13380_s24, %s15948_s7 }
  0xe7   : > { %p13383_p3 = pnand %p13381_p1, %p13835_p8 }
  0xe9   : > { %p13384_p13 = pneg %p13383_p3 }
  0xeb   : > { %p13389_p2 = pnand %p13387_p0, %p13384_p13 }
  0xed   : > { %13392 = shalt.err (!%p13389_p2)
}
  0xee   : > { %s13393_s27 = scalar_lea.vmem %s13975_s23, 32768  ;;  %p13401_p4 = scmp.lt.s32.totalorder %s13975_s23, %s13975_s23 }
  0xef   : > { %p13394_p5 = scmp.ne.s32.totalorder %s13975_s23, %s13393_s27  ;;  %p13402_p10 = scmp.lt.s32.totalorder %s13393_s27, %s13393_s27 }
  0xf1   : > { %p13396_p7 = pnand %p13394_p5, %p13835_p8  ;;  %p13403_p11 = por %p13402_p10, %p13401_p4 }
  0xf3   : > { %p13397_p9 = pneg %p13396_p7 }
  0xf5   : > { %p13404_p12 = pnand %p13403_p11, %p13397_p9 }
  0xf7   : > { %13407 = shalt.err (!%p13404_p12)
}
  0xf8   : > { %s15949_s25 = smov 32   ;;  %s13692_s18 = smov [#allocation18]  }
  0xf9   : > { %11868 = dma.hbm_to_vmem [thread:$0]  (!%p13819_p6), %s15948_s7, 32768, %s13975_s23, [#allocation14], %s15944_s15, %s15944_s15, %s15949_s25  }
  0xfa   : > { %s486_s0 = sshll.u32 %s13692_s18, 4  ;;  %s13693_s24 = smov [#allocation21]   ;;  %s487_s0 = int_to_ptr.vmem [resolvable:$true] %s486_s0 }
  0xfb   : > { %s510_s22 = sshll.u32 %s13693_s24, 4  ;;  %s15950_s9 = sld [smem:[#allocation147_spill]]  ;;  %s14024_s22 = int_to_ptr.vmem [resolvable:$true] %s510_s22 }
 0x101   : > { %s13408_s27 = scalar_lea.hbm %s15950_s9, 64 }
 0x102   : > { %p13409_p1 = scmp.ne.s32.totalorder %s15950_s9, %s13408_s27  ;;  %p13415_p0 = scmp.lt.u32.totalorder %s13408_s27, %s15950_s9 }
 0x104   : > { %p13411_p3 = pnand %p13409_p1, %p13835_p8 }
 0x106   : > { %p13412_p13 = pneg %p13411_p3 }
 0x108   : > { %p13417_p2 = pnand %p13415_p0, %p13412_p13 }
 0x10a   : > { %13420 = shalt.err (!%p13417_p2)
}
 0x10b   : > { %s13421_s23 = scalar_lea.vmem %s487_s0, 64  ;;  %p13429_p4 = scmp.lt.s32.totalorder %s487_s0, %s487_s0 }
 0x10c   : > { %p13422_p5 = scmp.ne.s32.totalorder %s487_s0, %s13421_s23  ;;  %p13430_p10 = scmp.lt.s32.totalorder %s13421_s23, %s13421_s23 }
 0x10e   : > { %p13424_p7 = pnand %p13422_p5, %p13835_p8  ;;  %p13431_p11 = por %p13430_p10, %p13429_p4 }
 0x110   : > { %p13425_p9 = pneg %p13424_p7 }
 0x112   : > { %p13432_p12 = pnand %p13431_p11, %p13425_p9 }
 0x114   : > { %13435 = shalt.err (!%p13432_p12)
}
 0x115   : > { %11874 = dma.hbm_to_vmem [thread:$0]  (!%p13819_p6), %s15950_s9, 64, %s487_s0, [#allocation17]  }
 0x116   : > { %s13436_s18 = scalar_lea.hbm %s15707_s11, 64 }
 0x117   : > { %p13437_p1 = scmp.ne.s32.totalorder %s15707_s11, %s13436_s18  ;;  %p13443_p0 = scmp.lt.u32.totalorder %s13436_s18, %s15707_s11 }
 0x119   : > { %p13439_p3 = pnand %p13437_p1, %p13835_p8 }
 0x11b   : > { %p13440_p13 = pneg %p13439_p3 }
 0x11d   : > { %p13445_p2 = pnand %p13443_p0, %p13440_p13 }
 0x11f   : > { %13448 = shalt.err (!%p13445_p2)
}
 0x120   : > { %s13449_s0 = scalar_lea.vmem %s14024_s22, 64  ;;  %p13457_p4 = scmp.lt.s32.totalorder %s14024_s22, %s14024_s22 }
 0x121   : > { %p13450_p5 = scmp.ne.s32.totalorder %s14024_s22, %s13449_s0  ;;  %p13458_p10 = scmp.lt.s32.totalorder %s13449_s0, %s13449_s0 }
 0x123   : > { %p13452_p7 = pnand %p13450_p5, %p13835_p8  ;;  %p13459_p11 = por %p13458_p10, %p13457_p4 }
 0x125   : > { %p13453_p9 = pneg %p13452_p7 }
 0x127   : > { %p13460_p12 = pnand %p13459_p11, %p13453_p9 }
 0x129   : > { %13463 = shalt.err (!%p13460_p12)
}
 0x12a   : > { %11880 = dma.hbm_to_vmem [thread:$0]  (!%p13819_p6), %s15707_s11, 64, %s14024_s22, [#allocation20]  }
 0x12b   : > { %s13694_s23 = smov [#allocation24]   ;;  %s13695_s4 = smov [#allocation25]  }
 0x12c   : > { %s534_s3 = sshll.u32 %s13694_s23, 4  ;;  %s545_s25 = sshll.u32 %s13695_s4, 4  ;;  %s535_s3 = int_to_ptr.vmem [resolvable:$true] %s534_s3  ;;  %s14067_s25 = int_to_ptr.vmem [resolvable:$true] %s545_s25 }
 0x12d   : > { %s13464_s24 = scalar_lea.hbm %s15709_s13, 64 }
 0x12e   : > { %p13465_p1 = scmp.ne.s32.totalorder %s15709_s13, %s13464_s24  ;;  %p13471_p0 = scmp.lt.u32.totalorder %s13464_s24, %s15709_s13 }
 0x130   : > { %p13467_p3 = pnand %p13465_p1, %p13835_p8 }
 0x132   : > { %p13468_p13 = pneg %p13467_p3 }
 0x134   : > { %p13473_p2 = pnand %p13471_p0, %p13468_p13 }
 0x136   : > { %13476 = shalt.err (!%p13473_p2)
}
 0x137   : > { %s13477_s0 = scalar_lea.vmem %s535_s3, 64  ;;  %p13485_p4 = scmp.lt.s32.totalorder %s535_s3, %s535_s3 }
 0x138   : > { %p13478_p5 = scmp.ne.s32.totalorder %s535_s3, %s13477_s0  ;;  %p13486_p10 = scmp.lt.s32.totalorder %s13477_s0, %s13477_s0 }
 0x13a   : > { %p13480_p7 = pnand %p13478_p5, %p13835_p8  ;;  %p13487_p11 = por %p13486_p10, %p13485_p4 }
 0x13c   : > { %p13481_p9 = pneg %p13480_p7 }
 0x13e   : > { %p13488_p12 = pnand %p13487_p11, %p13481_p9 }
 0x140   : > { %13491 = shalt.err (!%p13488_p12)
}
 0x141   : > { %11886 = dma.hbm_to_vmem [thread:$0]  (!%p13819_p6), %s15709_s13, 64, %s535_s3, [#allocation23]  }
 0x142   : > { %s13492_s30 = scalar_lea.hbm %s15710_s14, 64 }
 0x143   : > { %p13493_p1 = scmp.ne.s32.totalorder %s15710_s14, %s13492_s30  ;;  %p13499_p0 = scmp.lt.u32.totalorder %s13492_s30, %s15710_s14 }
 0x145   : > { %p13495_p3 = pnand %p13493_p1, %p13835_p8 }
 0x147   : > { %p13496_p13 = pneg %p13495_p3 }
 0x149   : > { %p13501_p2 = pnand %p13499_p0, %p13496_p13 }
 0x14b   : > { %13504 = shalt.err (!%p13501_p2)
}
 0x14c   : > { %s13505_s3 = scalar_lea.vmem %s14067_s25, 64  ;;  %p13513_p4 = scmp.lt.s32.totalorder %s14067_s25, %s14067_s25 }
 0x14d   : > { %p13506_p5 = scmp.ne.s32.totalorder %s14067_s25, %s13505_s3  ;;  %p13514_p10 = scmp.lt.s32.totalorder %s13505_s3, %s13505_s3 }
 0x14f   : > { %p13508_p7 = pnand %p13506_p5, %p13835_p8  ;;  %p13515_p11 = por %p13514_p10, %p13513_p4 }
 0x151   : > { %p13509_p9 = pneg %p13508_p7 }
 0x153   : > { %p13516_p12 = pnand %p13515_p11, %p13509_p9 }
 0x155   : > { %13519 = shalt.err (!%p13516_p12)
}
 0x156   : > { %s15951_s26 = sld [smem:[#allocation38_spill]]  ;;  %s15952_s0 = sld [smem:[#allocation39_spill]] }
 0x157   : > { %11889 = dma.hbm_to_vmem [thread:$0]  (!%p13819_p6), %s15710_s14, 64, %s14067_s25, [#allocation26]  }
 0x158   : > { %s9626_s28 = sadd.s32 4294967294, %s13678_s21   ;;  %s14112_s2 = sadd.s32 1, %s13678_s21  }
 0x159   : > { %s44_s15 = ssub.s32 %s13678_s21, %s14112_s2  ;;  %s47_s23 = sadd.s32 1, %s13674_s20 }
 0x15a   : > { %p45_p8 = scmp.eq.s32.totalorder %s44_s15, 0  ;;  %p54_p1 = scmp.ne.s32.totalorder %s13674_s20, %s13670_s19 }
 0x15b   : > { %p55_p3 = scmp.eq.s32.totalorder %s13678_s21, 0  ;;  %p389_p7 = scmp.eq.s32.totalorder %s9626_s28, 1 }
 0x15c   : > { %p60_p13 = scmp.ne.s32.totalorder %s13670_s19, %s15951_s26  ;;  %p15954_p2 = scmp.eq.s32.totalorder %s15952_s0, 0 }
 0x15d   : > { %s14123_s4 = scalar_select %p45_p8, %s13674_s20, %s47_s23  }
 0x15e   : > { %p14125_p0 = por %p55_p3, %p54_p1  ;;  %p14131_p6 = por %p15954_p2, %p60_p13 }
 0x15f   : > { %p383_p5 = scmp.eq.s32.totalorder %s15952_s0, 1  ;;  %p11913_p9 = scmp.lt.s32.totalorder %s13678_s21, 2 }
 0x160   : > { %s14138_s18 = sand.u32 1, %s13674_s20   ;;  %p14144_p10 = por %p389_p7, %p60_p13 }
 0x161   : > { %p14140_p4 = por %p383_p5, %p54_p1  ;;  %s9641_s29 = sshll.u32 %s14138_s18, 3 }
 0x162   : > { %s15957_s17 = scalar_select %p14144_p10, 1, 0 }
 0x163   : > { %s15956_s24 = scalar_select %p14140_p4, 1, 0 }
 0x164   : > { %s9642_s3 = sshll.u32 %s13678_s21, 7  ;;  %s15958_s26 = sld [smem:[#allocation138_spill]] }
 0x165   : > { %s560_s28 = scalar_lea.vmem [#allocation4], %s9641_s29  ;;  %p14159_p11 = pnand %p11913_p9, %p14125_p0 }
 0x166   : > { %s567_s15 = sshll.u32 %s560_s28, 4  ;;  %s9643_s5 = sshll.u32 %s14138_s18, 5  ;;  %s14155_s15 = int_to_ptr.vmem [resolvable:$true] %s567_s15 }
 0x167   : > { %s557_s27 = scalar_lea.sflag [#allocation5], %s14138_s18  ;;  %p13522_p8 = pneg %p14159_p11 }
 0x16a   : > { %s14153_s0 = scalar_lea.hbm %s15958_s26, %s9642_s3  ;;  %s13525_s30 = scalar_lea.hbm %s15958_s26, 256 }
 0x16b   : > { %s13520_s3 = scalar_lea.hbm %s14153_s0, 128  ;;  %p13526_p13 = scmp.lt.u32.totalorder %s14153_s0, %s15958_s26 }
 0x16c   : > { %p13521_p12 = scmp.ne.s32.totalorder %s14153_s0, %s13520_s3  ;;  %p13527_p0 = scmp.lt.u32.totalorder %s13525_s30, %s13520_s3 }
 0x16d   : > { %p13529_p5 = scmp.lt.u32.totalorder %s13520_s3, %s14153_s0 }
 0x16e   : > { %p13523_p1 = pnand %p13522_p8, %p13521_p12  ;;  %p13528_p2 = por %p13527_p0, %p13526_p13 }
 0x170   : > { %p13524_p3 = pneg %p13523_p1  ;;  %p13530_p7 = por %p13529_p5, %p13528_p2 }
 0x172   : > { %p13531_p9 = pnand %p13530_p7, %p13524_p3 }
 0x174   : > { %13534 = shalt.err (!%p13531_p9)
}
 0x175   : > { %s13535_s6 = scalar_lea.vmem %s14155_s15, 128  ;;  %s13696_s29 = smov [#allocation4]  }
 0x176   : > { %p13536_p12 = scmp.ne.s32.totalorder %s14155_s15, %s13535_s6  ;;  %s13540_s22 = sshll.u32 %s13696_s29, 4  ;;  %s13541_s22 = int_to_ptr.vmem [resolvable:$false] %s13540_s22 }
 0x177   : > { %s13542_s7 = scalar_lea.vmem %s13541_s22, 256  ;;  %p13543_p4 = scmp.lt.s32.totalorder %s14155_s15, %s13541_s22 }
 0x178   : > { %p13538_p1 = pnand %p13536_p12, %p13522_p8  ;;  %p13544_p13 = scmp.lt.s32.totalorder %s13542_s7, %s13535_s6 }
 0x17a   : > { %p13539_p10 = pneg %p13538_p1  ;;  %p13545_p0 = por %p13544_p13, %p13543_p4 }
 0x17c   : > { %p13546_p2 = pnand %p13545_p0, %p13539_p10 }
 0x17e   : > { %13549 = shalt.err (!%p13546_p2)
}
 0x17f   : > { %11893 = dma.hbm_to_vmem [thread:$0]  (!%p14159_p11), %s14153_s0, 128, %s14155_s15, %s557_s27  }
 0x180   : > { %s578_s3 = scalar_lea.vmem [#allocation7], %s9643_s5  ;;  %s10445_s28 = sshll.u32 %s13678_s21, 9 }
 0x181   : > { %s585_s30 = sshll.u32 %s578_s3, 4  ;;  %s15960_s22 = sld [smem:[#allocation139_spill]]  ;;  %s14193_s30 = int_to_ptr.vmem [resolvable:$true] %s585_s30 }
 0x182   : > { %s15961_s8 = sand.u32 1, %s13678_s21  }
 0x183   : > { %s14203_s9 = scalar_lea.sflag [#allocation8], %s15961_s8 }
 0x187   : > { %s14199_s7 = scalar_lea.hbm %s15960_s22, %s10445_s28  ;;  %s13555_s0 = scalar_lea.hbm %s15960_s22, 1024 }
 0x188   : > { %s13550_s10 = scalar_lea.hbm %s14199_s7, 512  ;;  %p13556_p5 = scmp.lt.u32.totalorder %s14199_s7, %s15960_s22 }
 0x189   : > { %p13551_p4 = scmp.ne.s32.totalorder %s14199_s7, %s13550_s10  ;;  %p13557_p7 = scmp.lt.u32.totalorder %s13555_s0, %s13550_s10 }
 0x18a   : > { %p13559_p12 = scmp.lt.u32.totalorder %s13550_s10, %s14199_s7 }
 0x18b   : > { %p13553_p10 = pnand %p13551_p4, %p13522_p8  ;;  %p13558_p9 = por %p13557_p7, %p13556_p5 }
 0x18d   : > { %p13554_p3 = pneg %p13553_p10  ;;  %p13560_p1 = por %p13559_p12, %p13558_p9 }
 0x18f   : > { %p13561_p13 = pnand %p13560_p1, %p13554_p3 }
 0x191   : > { %13564 = shalt.err (!%p13561_p13)
}
 0x192   : > { %s13565_s8 = scalar_lea.vmem %s14193_s30, 512  ;;  %s13697_s3 = smov [#allocation7]  }
 0x193   : > { %p13566_p0 = scmp.ne.s32.totalorder %s14193_s30, %s13565_s8  ;;  %s13570_s28 = sshll.u32 %s13697_s3, 4  ;;  %s13571_s28 = int_to_ptr.vmem [resolvable:$false] %s13570_s28 }
 0x194   : > { %s13572_s29 = scalar_lea.vmem %s13571_s28, 1024  ;;  %p13573_p10 = scmp.lt.s32.totalorder %s14193_s30, %s13571_s28 }
 0x195   : > { %p13568_p2 = pnand %p13566_p0, %p13522_p8  ;;  %p13574_p5 = scmp.lt.s32.totalorder %s13572_s29, %s13565_s8 }
 0x197   : > { %p13569_p4 = pneg %p13568_p2  ;;  %p13575_p7 = por %p13574_p5, %p13573_p10 }
 0x199   : > { %p13576_p9 = pnand %p13575_p7, %p13569_p4 }
 0x19b   : > { %13579 = shalt.err (!%p13576_p9)
}
 0x19c   : > { %11896 = dma.hbm_to_vmem [thread:$0]  (!%p14159_p11), %s14199_s7, 512, %s14193_s30, %s14203_s9, %s15947_s16, %s15947_s16, %s15946_s1  }
 0x19d   : > { %s15962_s10 = sld [smem:[#allocation40_spill]] }
 0x1a3   : > { %p15963_p8 = scmp.ne.s32.totalorder %s15962_s10, 0 }
 0x1a5   : > { %597 = sbr.rel (%p15963_p8) target bundleno = 3333 (0xd05), region = 80 }
 0x1ac   : > { %s14235_s6 = sand.u32 1, %s13670_s19  }
 0x1ad   : > { %s9647_s5 = sshll.u32 %s14235_s6, 3  ;;  %s600_s18 = scalar_lea.sflag [#allocation5], %s14235_s6 }
 0x1ae   : > { %s603_s0 = scalar_lea.vmem [#allocation4], %s9647_s5 }
 0x1af   : > { %13625 = dma.done.wait (%p14131_p6), %s600_s18, 128  }
 0x1b0   : > { %13627 = vsyncadd (%p14131_p6), %s600_s18, 4294967168  ;;  %s15964_s23 = sld [smem:[#allocation39_spill]]  ;;  %s9648_s1 = sshll.u32 %s14235_s6, 5 }
 0x1b1   : > { %s14245_s30 = scalar_lea.vmem [#allocation7], %s9648_s1 }
 0x1b6   : > { %s608_s9 = sand.u32 1, %s15964_s23  }
 0x1b7   : > { %s609_s16 = scalar_lea.sflag [#allocation8], %s608_s9 }
 0x1b8   : > { %13629 = dma.done.wait (%p14131_p6), %s609_s16, 512  }
 0x1b9   : > { %13631 = vsyncadd (%p14131_p6), %s609_s16, 4294966784  ;;  %p15965_p11 = scmp.eq.s32.totalorder %s15964_s23, 0 }
 0x1bb   : > { %13633 = dma.done.wait (%p15965_p11), [#allocation8], 8192   ;;  %p15966_p3 = pmov %p15965_p11 }
 0x1bd   : > { %13635 = vsyncadd (%p15966_p3), [#allocation8], 4294959104  ;;  %p15967_p12 = pmov %p15966_p3 }
 0x1be   : > { %p15968_p1 = pmov %p15966_p3 }
 0x1bf   : > { %13637 = dma.done.wait (%p15967_p12), [#allocation11], 65536  }
 0x1c0   : > { %13639 = vsyncadd (%p15968_p1), [#allocation11], 4294901760  ;;  %p15969_p13 = pmov %p15968_p1 }
 0x1c1   : > { %p15970_p0 = pmov %p15968_p1 }
 0x1c2   : > { %13641 = dma.done.wait (%p15969_p13), [#allocation14], 32832  }
 0x1c3   : > { %13643 = vsyncadd (%p15970_p0), [#allocation14], 4294934464  ;;  %p15971_p6 = pmov %p15970_p0 }
 0x1c4   : > { %p15972_p2 = pmov %p15970_p0 }
 0x1c5   : > { %13645 = dma.done.wait (%p15971_p6), [#allocation17], 128  }
 0x1c6   : > { %13647 = vsyncadd (%p15972_p2), [#allocation17], 4294967168  ;;  %p15973_p4 = pmov %p15970_p0 }
 0x1c7   : > { %p15974_p10 = pmov %p15970_p0 }
 0x1c8   : > { %13649 = dma.done.wait (%p15973_p4), [#allocation20], 49216  }
 0x1c9   : > { %13651 = vsyncadd (%p15974_p10), [#allocation20], 4294918080  ;;  %p15975_p5 = pmov %p15970_p0 }
 0x1ca   : > { %p15976_p7 = pmov %p15970_p0 }
 0x1cb   : > { %13653 = dma.done.wait (%p15975_p5), [#allocation23], 32832  }
 0x1cc   : > { %13655 = vsyncadd (%p15976_p7), [#allocation23], 4294934464  ;;  %p15977_p9 = pmov %p15970_p0 }
 0x1cd   : > { %p15978_p8 = pmov %p15970_p0 }
 0x1ce   : > { %13657 = dma.done.wait (%p15977_p9), [#allocation26], 64  }
 0x1cf   : > { %13659 = vsyncadd (%p15978_p8), [#allocation26], 4294967232  ;;  %vm715_vm0 = vcmask 64512   ;;  %v714_v0 = vld [vmem:[%s603_s0] sm:$0xff]  ;;  %s15979_s15 = sld [smem:[#allocation140_spill]]  ;;  %v930_v3 = vld [vmem:[#allocation9 + $0x8] sm:$0xff] }
 0x1d0   : > { %10450 = vmatprep.subr.mxu0 %v714_v0  ;;  %v934_v4 = vld [vmem:[#allocation9 + $0x28] sm:$0xff]  ;;  %v932_v5 = vld [vmem:[#allocation9 + $0x18] sm:$0xff]  ;;  %v929_v8 = vld [vmem:[#allocation9] sm:$0xff]  ;;  %vm1318_vm2 = vcmask 1040384   ;;  %vm1399_vm3 = vsmask.f32 7424 }
 0x1d1   : > { %10451 = vmatpush3.msra.mxu0 %v714_v0  ;;  %v10455_v6 = vpack.c.bf16 %v934_v4, %v930_v3  ;;  %v936_v7 = vld [vmem:[#allocation9 + $0x38] sm:$0xff]  ;;  %v933_v9 = vld [vmem:[#allocation9 + $0x20] sm:$0xff]  ;;  %v931_v12 = vld [vmem:[#allocation9 + $0x10] sm:$0xff]  ;;  %vm1460_vm4 = vcmask 1046528   ;;  %s9661_s3 = sshll.u32 %s14235_s6, 6  ;;  %s10446_s28 = sshll.u32 %s15964_s23, 10 }
 0x1d2   : > { %v10487_v10 = vpack.c.bf16 %v936_v7, %v932_v5  ;;  %v10457_v11 = vpack.c.bf16 %v933_v9, %v929_v8  ;;  %v935_v13 = vld [vmem:[#allocation9 + $0x30] sm:$0xff]  ;;  %v938_v14 = vld [vmem:[#allocation9 + $0x48] sm:$0xff]  ;;  %v940_v17 = vld [vmem:[#allocation9 + $0x58] sm:$0xff]  ;;  %s711_s29 = scalar_lea.vmem [#allocation27], %s9661_s3  ;;  %s16347_s0 = sld [smem:[#allocation149_spill]] }
 0x1d3   : > { %10456 = vmatprep.subr.bf16.mxu1 %v10455_v6  ;;  %v10489_v15 = vpack.c.bf16 %v935_v13, %v931_v12  ;;  %v942_v16 = vld [vmem:[#allocation9 + $0x68] sm:$0xff]  ;;  %v944_v18 = vld [vmem:[#allocation9 + $0x78] sm:$0xff]  ;;  %v937_v21 = vld [vmem:[#allocation9 + $0x40] sm:$0xff]  ;;  %s9416_s10 = sshll.u32 %s711_s29, 4  ;;  %s9403_s9 = scalar_lea.sflag [#allocation6], %s14235_s6  ;;  %s15650_s10 = int_to_ptr.vmem [resolvable:$true] %s9416_s10 }
 0x1d4   : > { %10488 = vmatprep.subr.bf16.mxu0 %v10487_v10  ;;  %10458 = vmatpush1.bf16.msra.mxu1 %v10457_v11  ;;  %v10459_v19 = vpack.c.bf16 %v942_v16, %v938_v14  ;;  %v10491_v20 = vpack.c.bf16 %v944_v18, %v940_v17  ;;  %v941_v22 = vld [vmem:[#allocation9 + $0x60] sm:$0xff]  ;;  %v939_v23 = vld [vmem:[#allocation9 + $0x50] sm:$0xff]  ;;  %v946_v26 = vld [vmem:[#allocation9 + $0x88] sm:$0xff]  ;;  %s13580_s1 = scalar_lea.vmem %s15650_s10, 1024  ;;  %p16350_p3 = scmp.ne.s32.totalorder %s15956_s24, 0 }
 0x1d5   : > { %v712_v1 = vld [vmem:[%s15979_s15] sm:$0xff]  ;;  %v713_v2 = vld [vmem:[%s15979_s15 + $0x8] sm:$0xff]  ;;  %v10461_v24 = vpack.c.bf16 %v941_v22, %v937_v21  ;;  %v950_v27 = vld [vmem:[#allocation9 + $0xa8] sm:$0xff]  ;;  %p13581_p11 = scmp.ne.s32.totalorder %s15650_s10, %s13580_s1  ;;  %s13699_s16 = smov [#allocation27]  }
 0x1d6   : > { %10452 = vmatprep.mubr.msk.f32.mxu0 %vm715_vm0, %v712_v1  ;;  %v943_v25 = vld [vmem:[#allocation9 + $0x70] sm:$0xff]  ;;  %10460 = vmatprep.subr.bf16.mxu1 %v10459_v19  ;;  %v10463_v29 = vpack.c.bf16 %v950_v27, %v946_v26  ;;  %v948_v30 = vld [vmem:[#allocation9 + $0x98] sm:$0xff]  ;;  %v945_v32 = vld [vmem:[#allocation9 + $0x80] sm:$0xff] }
 0x1d7   : > { %10453 = vmatmul.mubr.msk.f32.vlgmr.msra.gmra.mrb[0].mxu0 %vm715_vm0, %v713_v2  ;;  %v10493_v28 = vpack.c.bf16 %v943_v25, %v939_v23  ;;  %v952_v31 = vld [vmem:[#allocation9 + $0xb8] sm:$0xff]  ;;  %v949_v34 = vld [vmem:[#allocation9 + $0xa0] sm:$0xff]  ;;  %v947_v35 = vld [vmem:[#allocation9 + $0x90] sm:$0xff]  ;;  %p13582_p12 = pnand %p13581_p11, %p16350_p3 }
 0x1d8   : > { %10490 = vmatpush1.bf16.msra.mxu0 %v10489_v15  ;;  %v10495_v33 = vpack.c.bf16 %v952_v31, %v948_v30  ;;  %v951_v36 = vld [vmem:[#allocation9 + $0xb0] sm:$0xff]  ;;  %10462 = vmatpush1.bf16.msra.mxu1 %v10461_v24  ;;  %v10465_v37 = vpack.c.bf16 %v949_v34, %v945_v32  ;;  %v954_v38 = vld [vmem:[#allocation9 + $0xc8] sm:$0xff]  ;;  %v956_v40 = vld [vmem:[#allocation9 + $0xd8] sm:$0xff]  ;;  %s15648_s23 = scalar_lea.hbm %s16347_s0, %s10446_s28 }
 0x1d9   : > { %10492 = vmatprep.subr.bf16.mxu0 %v10491_v20  ;;  %v958_v39 = vld [vmem:[#allocation9 + $0xe8] sm:$0xff]  ;;  %10464 = vmatprep.subr.bf16.mxu1 %v10463_v29  ;;  %v10497_v41 = vpack.c.bf16 %v951_v36, %v947_v35  ;;  %v960_v43 = vld [vmem:[#allocation9 + $0xf8] sm:$0xff]  ;;  %v953_v44 = vld [vmem:[#allocation9 + $0xc0] sm:$0xff]  ;;  %p13583_p1 = pneg %p13582_p12 }
 0x1da   : > { %v10467_v42 = vpack.c.bf16 %v958_v39, %v954_v38  ;;  %v957_v45 = vld [vmem:[#allocation9 + $0xe0] sm:$0xff]  ;;  %v10499_v46 = vpack.c.bf16 %v960_v43, %v956_v40  ;;  %v955_v47 = vld [vmem:[#allocation9 + $0xd0] sm:$0xff]  ;;  %v962_v49 = vld [vmem:[#allocation9 + $0x108] sm:$0xff] }
 0x1db   : > { %v959_v48 = vld [vmem:[#allocation9 + $0xf0] sm:$0xff]  ;;  %v966_v50 = vld [vmem:[#allocation9 + $0x128] sm:$0xff]  ;;  %v964_v51 = vld [vmem:[#allocation9 + $0x118] sm:$0xff]  ;;  %v10469_v53 = vpack.c.bf16 %v957_v45, %v953_v44 }
 0x1dc   : > { %10494 = vmatpush1.bf16.msra.mxu0 %v10493_v28  ;;  %v968_v52 = vld [vmem:[#allocation9 + $0x138] sm:$0xff]  ;;  %10466 = vmatpush1.bf16.msra.mxu1 %v10465_v37  ;;  %v10501_v54 = vpack.c.bf16 %v959_v48, %v955_v47  ;;  %v10471_v55 = vpack.c.bf16 %v966_v50, %v962_v49  ;;  %v961_v56 = vld [vmem:[#allocation9 + $0x100] sm:$0xff]  ;;  %v963_v58 = vld [vmem:[#allocation9 + $0x110] sm:$0xff] }
 0x1dd   : > { %10496 = vmatprep.subr.bf16.mxu0 %v10495_v33  ;;  %10468 = vmatprep.subr.bf16.mxu1 %v10467_v42  ;;  %v965_v57 = vld [vmem:[#allocation9 + $0x120] sm:$0xff]  ;;  %v10503_v59 = vpack.c.bf16 %v968_v52, %v964_v51  ;;  %v967_v60 = vld [vmem:[#allocation9 + $0x130] sm:$0xff]  ;;  %v970_v61 = vld [vmem:[#allocation9 + $0x148] sm:$0xff]  ;;  %v15730_v42 = vlaneseq }
 0x1de   : > { %v974_v62 = vld [vmem:[#allocation9 + $0x168] sm:$0xff]  ;;  %v972_v63 = vld [vmem:[#allocation9 + $0x158] sm:$0xff]  ;;  %v10473_v1 = vpack.c.bf16 %v965_v57, %v961_v56  ;;  %v969_v2 = vld [vmem:[#allocation9 + $0x140] sm:$0xff]  ;;  %v10505_v3 = vpack.c.bf16 %v967_v60, %v963_v58 }
 0x1df   : > { %v976_v0 = vld [vmem:[#allocation9 + $0x178] sm:$0xff]  ;;  %v10475_v4 = vpack.c.bf16 %v974_v62, %v970_v61  ;;  %v973_v5 = vld [vmem:[#allocation9 + $0x160] sm:$0xff]  ;;  %v971_v6 = vld [vmem:[#allocation9 + $0x150] sm:$0xff]  ;;  %vm1303_vm1 = vcmp.lt.s32.totalorder %v15730_v42, 512 }
 0x1e0   : > { %10498 = vmatpush1.bf16.msra.mxu0 %v10497_v41  ;;  %10470 = vmatpush1.bf16.msra.mxu1 %v10469_v53  ;;  %v975_v7 = vld [vmem:[#allocation9 + $0x170] sm:$0xff]  ;;  %v10507_v8 = vpack.c.bf16 %v976_v0, %v972_v63  ;;  %v978_v9 = vld [vmem:[#allocation9 + $0x188] sm:$0xff]  ;;  %v980_v11 = vld [vmem:[#allocation9 + $0x198] sm:$0xff]  ;;  %v10477_v15 = vpack.c.bf16 %v973_v5, %v969_v2  ;;  %v13698_v41 = vmov 0.0  }
 0x1e1   : > { %10500 = vmatprep.subr.bf16.mxu0 %v10499_v46  ;;  %10472 = vmatprep.subr.bf16.mxu1 %v10471_v55  ;;  %v982_v10 = vld [vmem:[#allocation9 + $0x1a8] sm:$0xff]  ;;  %v984_v12 = vld [vmem:[#allocation9 + $0x1b8] sm:$0xff]  ;;  %v977_v13 = vld [vmem:[#allocation9 + $0x180] sm:$0xff]  ;;  %v10509_v20 = vpack.c.bf16 %v975_v7, %v971_v6  ;;  %1305 = vst.msk [vmem:[#allocation2] ss:$8 sm:$0xf] %vm1303_vm1, %v13698_v41 }
 0x1e2   : > { %v981_v14 = vld [vmem:[#allocation9 + $0x1a0] sm:$0xff]  ;;  %v979_v16 = vld [vmem:[#allocation9 + $0x190] sm:$0xff]  ;;  %v986_v18 = vld [vmem:[#allocation9 + $0x1c8] sm:$0xff]  ;;  %v10479_v21 = vpack.c.bf16 %v982_v10, %v978_v9  ;;  %v10511_v24 = vpack.c.bf16 %v984_v12, %v980_v11  ;;  %1057 = vmatprep.mubr.f32.mxu1 %v13698_v41  ;;  %1134 = vmatprep.mubr.f32.mxu0 %v13698_v41  ;;  %1308 = vst.msk [vmem:[#allocation2 + $0x41] ss:$8 sm:$0xf] %vm1303_vm1, %v13698_v41 }
 0x1e3   : > { %v983_v17 = vld [vmem:[#allocation9 + $0x1b0] sm:$0xff]  ;;  %v990_v19 = vld [vmem:[#allocation9 + $0x1e8] sm:$0xff]  ;;  %v988_v22 = vld [vmem:[#allocation9 + $0x1d8] sm:$0xff]  ;;  %v10481_v27 = vpack.c.bf16 %v981_v14, %v977_v13  ;;  %5375 = vst.msk [vmem:[#allocation3] ss:$8 sm:$0xf] %vm1303_vm1, %v13698_v41 }
 0x1e4   : > { %10502 = vmatpush1.bf16.msra.mxu0 %v10501_v54  ;;  %10474 = vmatpush1.bf16.msra.mxu1 %v10473_v1  ;;  %v992_v23 = vld [vmem:[#allocation9 + $0x1f8] sm:$0xff]  ;;  %v985_v25 = vld [vmem:[#allocation9 + $0x1c0] sm:$0xff]  ;;  %v987_v28 = vld [vmem:[#allocation9 + $0x1d0] sm:$0xff]  ;;  %v10513_v30 = vpack.c.bf16 %v983_v17, %v979_v16  ;;  %v10483_v31 = vpack.c.bf16 %v990_v19, %v986_v18  ;;  %5378 = vst.msk [vmem:[#allocation3 + $0x41] ss:$8 sm:$0xf] %vm1303_vm1, %v13698_v41 }
 0x1e5   : > { %10504 = vmatprep.subr.bf16.mxu0 %v10503_v59  ;;  %10476 = vmatprep.subr.bf16.mxu1 %v10475_v4  ;;  %v989_v26 = vld [vmem:[#allocation9 + $0x1e0] sm:$0xff]  ;;  %v991_v29 = vld [vmem:[#allocation9 + $0x1f0] sm:$0xff]  ;;  %v10515_v32 = vpack.c.bf16 %v992_v23, %v988_v22  ;;  %v802_v35 = vld [vmem:[#allocation10 + $0x8] sm:$0xff] }
 0x1e6   : > { %v10485_v33 = vpack.c.bf16 %v989_v26, %v985_v25  ;;  %v10517_v34 = vpack.c.bf16 %v991_v29, %v987_v28  ;;  %v806_v36 = vld [vmem:[#allocation10 + $0x28] sm:$0xff]  ;;  %v804_v37 = vld [vmem:[#allocation10 + $0x18] sm:$0xff]  ;;  %v801_v43 = vld [vmem:[#allocation10] sm:$0xff] }
 0x1e7   : > { %v10519_v38 = vpack.c.bf16 %v806_v36, %v802_v35  ;;  %v808_v39 = vld [vmem:[#allocation10 + $0x38] sm:$0xff]  ;;  %v805_v44 = vld [vmem:[#allocation10 + $0x20] sm:$0xff]  ;;  %v803_v45 = vld [vmem:[#allocation10 + $0x10] sm:$0xff] }
 0x1e8   : > { %10506 = vmatpush1.bf16.msra.mxu0 %v10505_v3  ;;  %10478 = vmatpush1.bf16.msra.mxu1 %v10477_v15  ;;  %v10583_v40 = vpack.c.bf16 %v808_v39, %v804_v37  ;;  %v807_v46 = vld [vmem:[#allocation10 + $0x30] sm:$0xff]  ;;  %v810_v47 = vld [vmem:[#allocation10 + $0x48] sm:$0xff]  ;;  %v812_v49 = vld [vmem:[#allocation10 + $0x58] sm:$0xff]  ;;  %v10521_v55 = vpack.c.bf16 %v805_v44, %v801_v43 }
 0x1e9   : > { %10508 = vmatprep.subr.bf16.mxu0 %v10507_v8  ;;  %10480 = vmatprep.subr.bf16.mxu1 %v10479_v21  ;;  %v814_v48 = vld [vmem:[#allocation10 + $0x68] sm:$0xff]  ;;  %v816_v50 = vld [vmem:[#allocation10 + $0x78] sm:$0xff]  ;;  %v809_v51 = vld [vmem:[#allocation10 + $0x40] sm:$0xff]  ;;  %v10585_v56 = vpack.c.bf16 %v807_v46, %v803_v45 }
 0x1ea   : > { %v813_v52 = vld [vmem:[#allocation10 + $0x60] sm:$0xff]  ;;  %v811_v53 = vld [vmem:[#allocation10 + $0x50] sm:$0xff]  ;;  %v818_v57 = vld [vmem:[#allocation10 + $0x88] sm:$0xff]  ;;  %v10523_v63 = vpack.c.bf16 %v814_v48, %v810_v47  ;;  %v10587_v0 = vpack.c.bf16 %v816_v50, %v812_v49 }
 0x1eb   : > { %v815_v54 = vld [vmem:[#allocation10 + $0x70] sm:$0xff]  ;;  %v822_v58 = vld [vmem:[#allocation10 + $0xa8] sm:$0xff]  ;;  %v820_v59 = vld [vmem:[#allocation10 + $0x98] sm:$0xff]  ;;  %v10525_v5 = vpack.c.bf16 %v813_v52, %v809_v51 }
 0x1ec   : > { %10510 = vmatpush1.bf16.msra.mxu0 %v10509_v20  ;;  %10482 = vmatpush1.bf16.msra.mxu1 %v10481_v27  ;;  %v824_v60 = vld [vmem:[#allocation10 + $0xb8] sm:$0xff]  ;;  %v817_v1 = vld [vmem:[#allocation10 + $0x80] sm:$0xff]  ;;  %v819_v3 = vld [vmem:[#allocation10 + $0x90] sm:$0xff]  ;;  %v10589_v6 = vpack.c.bf16 %v815_v54, %v811_v53  ;;  %v10527_v11 = vpack.c.bf16 %v822_v58, %v818_v57 }
 0x1ed   : > { %10512 = vmatprep.subr.bf16.mxu0 %v10511_v24  ;;  %10484 = vmatprep.subr.bf16.mxu1 %v10483_v31  ;;  %v821_v2 = vld [vmem:[#allocation10 + $0xa0] sm:$0xff]  ;;  %v823_v4 = vld [vmem:[#allocation10 + $0xb0] sm:$0xff]  ;;  %v826_v7 = vld [vmem:[#allocation10 + $0xc8] sm:$0xff]  ;;  %v10591_v12 = vpack.c.bf16 %v824_v60, %v820_v59 }
 0x1ee   : > { %v830_v8 = vld [vmem:[#allocation10 + $0xe8] sm:$0xff]  ;;  %v828_v9 = vld [vmem:[#allocation10 + $0xd8] sm:$0xff]  ;;  %v825_v14 = vld [vmem:[#allocation10 + $0xc0] sm:$0xff]  ;;  %v10529_v18 = vpack.c.bf16 %v821_v2, %v817_v1  ;;  %v10593_v19 = vpack.c.bf16 %v823_v4, %v819_v3 }
 0x1ef   : > { %v832_v10 = vld [vmem:[#allocation10 + $0xf8] sm:$0xff]  ;;  %v798_v13 = vld [vmem:[%s14245_s30 + $0x8] sm:$0xff]  ;;  %v829_v15 = vld [vmem:[#allocation10 + $0xe0] sm:$0xff]  ;;  %v10531_v24 = vpack.c.bf16 %v830_v8, %v826_v7 }
 0x1f0   : > { %10514 = vmatpush1.bf16.msra.mxu0 %v10513_v30  ;;  %10486 = vmatpush1.bf16.msra.mxu1 %v10485_v33  ;;  %v827_v16 = vld [vmem:[#allocation10 + $0xd0] sm:$0xff]  ;;  %v834_v20 = vld [vmem:[#allocation10 + $0x108] sm:$0xff]  ;;  %v836_v22 = vld [vmem:[#allocation10 + $0x118] sm:$0xff]  ;;  %v10595_v25 = vpack.c.bf16 %v832_v10, %v828_v9  ;;  %v10533_v30 = vpack.c.bf16 %v829_v15, %v825_v14 }
 0x1f1   : > { %10516 = vmatprep.subr.bf16.mxu0 %v10515_v32  ;;  %10520 = vmatprep.subr.bf16.mxu1 %v10519_v38  ;;  %v831_v17 = vld [vmem:[#allocation10 + $0xf0] sm:$0xff]  ;;  %v838_v21 = vld [vmem:[#allocation10 + $0x128] sm:$0xff]  ;;  %v840_v23 = vld [vmem:[#allocation10 + $0x138] sm:$0xff] }
 0x1f2   : > { %v833_v26 = vld [vmem:[#allocation10 + $0x100] sm:$0xff]  ;;  %v835_v28 = vld [vmem:[#allocation10 + $0x110] sm:$0xff]  ;;  %v10597_v31 = vpack.c.bf16 %v831_v17, %v827_v16  ;;  %v842_v32 = vld [vmem:[#allocation10 + $0x148] sm:$0xff]  ;;  %v10535_v36 = vpack.c.bf16 %v838_v21, %v834_v20  ;;  %v10599_v37 = vpack.c.bf16 %v840_v23, %v836_v22 }
 0x1f3   : > { %v837_v27 = vld [vmem:[#allocation10 + $0x120] sm:$0xff]  ;;  %v839_v29 = vld [vmem:[#allocation10 + $0x130] sm:$0xff]  ;;  %v846_v33 = vld [vmem:[#allocation10 + $0x168] sm:$0xff] }
 0x1f4   : > { %10518 = vmatpush1.bf16.msra.mxu0 %v10517_v34  ;;  %v844_v34 = vld [vmem:[#allocation10 + $0x158] sm:$0xff]  ;;  %v841_v38 = vld [vmem:[#allocation10 + $0x140] sm:$0xff]  ;;  %v10537_v43 = vpack.c.bf16 %v837_v27, %v833_v26  ;;  %v10601_v44 = vpack.c.bf16 %v839_v29, %v835_v28  ;;  %v850_v45 = vld [vmem:[#allocation10 + $0x188] sm:$0xff]  ;;  %v10539_v49 = vpack.c.bf16 %v846_v33, %v842_v32 }
 0x1f5   : > { %10584 = vmatprep.subr.bf16.mxu0 %v10583_v40  ;;  %v848_v35 = vld [vmem:[#allocation10 + $0x178] sm:$0xff]  ;;  %v845_v39 = vld [vmem:[#allocation10 + $0x160] sm:$0xff]  ;;  %v843_v40 = vld [vmem:[#allocation10 + $0x150] sm:$0xff] }
 0x1f6   : > { %v854_v46 = vld [vmem:[#allocation10 + $0x1a8] sm:$0xff]  ;;  %v852_v47 = vld [vmem:[#allocation10 + $0x198] sm:$0xff]  ;;  %v10603_v50 = vpack.c.bf16 %v848_v35, %v844_v34  ;;  %v849_v51 = vld [vmem:[#allocation10 + $0x180] sm:$0xff] }
 0x1f7   : > { %v856_v48 = vld [vmem:[#allocation10 + $0x1b8] sm:$0xff]  ;;  %v853_v52 = vld [vmem:[#allocation10 + $0x1a0] sm:$0xff]  ;;  %v851_v53 = vld [vmem:[#allocation10 + $0x190] sm:$0xff] }
 0x1f8   : > { %v855_v54 = vld [vmem:[#allocation10 + $0x1b0] sm:$0xff]  ;;  %v858_v57 = vld [vmem:[#allocation10 + $0x1c8] sm:$0xff]  ;;  %v860_v59 = vld [vmem:[#allocation10 + $0x1d8] sm:$0xff]  ;;  %v10545_v3 = vpack.c.bf16 %v853_v52, %v849_v51 }
 0x1f9   : > { %v862_v58 = vld [vmem:[#allocation10 + $0x1e8] sm:$0xff]  ;;  %v864_v60 = vld [vmem:[#allocation10 + $0x1f8] sm:$0xff]  ;;  %v859_v1 = vld [vmem:[#allocation10 + $0x1d0] sm:$0xff]  ;;  %v10609_v4 = vpack.c.bf16 %v855_v54, %v851_v53 }
 0x1fa   : > { %v863_v2 = vld [vmem:[#allocation10 + $0x1f0] sm:$0xff]  ;;  %v868_v7 = vld [vmem:[#allocation10 + $0x218] sm:$0xff]  ;;  %v10547_v9 = vpack.c.bf16 %v862_v58, %v858_v57  ;;  %v10611_v10 = vpack.c.bf16 %v864_v60, %v860_v59  ;;  %v874_v17 = vld [vmem:[#allocation10 + $0x248] sm:$0xff] }
 0x1fb   : > { %v872_v8 = vld [vmem:[#allocation10 + $0x238] sm:$0xff]  ;;  %v871_v14 = vld [vmem:[#allocation10 + $0x230] sm:$0xff]  ;;  %v10613_v16 = vpack.c.bf16 %v863_v2, %v859_v1  ;;  %v873_v23 = vld [vmem:[#allocation10 + $0x240] sm:$0xff] }
 0x1fc   : > { %v880_v20 = vld [vmem:[#allocation10 + $0x278] sm:$0xff]  ;;  %v10615_v22 = vpack.c.bf16 %v872_v8, %v868_v7  ;;  %v879_v26 = vld [vmem:[#allocation10 + $0x270] sm:$0xff]  ;;  %v882_v29 = vld [vmem:[#allocation10 + $0x288] sm:$0xff] }
 0x1fd   : > { %v888_v32 = vld [vmem:[#allocation10 + $0x2b8] sm:$0xff]  ;;  %v881_v35 = vld [vmem:[#allocation10 + $0x280] sm:$0xff]  ;;  %v895_v51 = vld [vmem:[#allocation10 + $0x2f0] sm:$0xff] }
 0x1fe   : > { %v898_v54 = vld [vmem:[#allocation10 + $0x308] sm:$0xff]  ;;  %v904_v57 = vld [vmem:[#allocation10 + $0x338] sm:$0xff]  ;;  %v897_v60 = vld [vmem:[#allocation10 + $0x300] sm:$0xff] }
 0x1ff   : > { %v906_v2 = vld [vmem:[#allocation10 + $0x348] sm:$0xff]  ;;  %v905_v8 = vld [vmem:[#allocation10 + $0x340] sm:$0xff] }
 0x2aa   : > { %v10454_v61 = vpop.f32.mrb[0].mxu0 }
 0x2ab   : > { %v788_v62 = vpop.f32.mrb[1].mxu0 }
 0x2ac   : > { %1058 = vmatmul.mubr.f32.vlgmr.msra.gmra.mrb[0].mxu1 %v788_v62  ;;  %1135 = vmatmul.mubr.f32.vlgmr.msra.gmra.mrb[2].mxu0 %v788_v62  ;;  %v10607_v62 = vpack.c.bf16 %v856_v48, %v852_v47  ;;  %v889_v48 = vld [vmem:[#allocation10 + $0x2c0] sm:$0xff] }
 0x2ad   : > { %10522 = vmatpush1.bf16.msra.mxu1 %v10521_v55  ;;  %10586 = vmatpush1.bf16.msra.mxu0 %v10585_v56  ;;  %v10541_v55 = vpack.c.bf16 %v845_v39, %v841_v38  ;;  %v887_v38 = vld [vmem:[#allocation10 + $0x2b0] sm:$0xff] }
 0x2ae   : > { %1063 = vmatprep.mubr.f32.mxu1 %v13698_v41  ;;  %1140 = vmatprep.mubr.f32.mxu0 %v13698_v41  ;;  %v847_v41 = vld [vmem:[#allocation10 + $0x170] sm:$0xff] }
 0x2af   : > { %10524 = vmatprep.subr.bf16.mxu1 %v10523_v63  ;;  %10588 = vmatprep.subr.bf16.mxu0 %v10587_v0  ;;  %v10605_v56 = vpack.c.bf16 %v847_v41, %v843_v40  ;;  %v857_v63 = vld [vmem:[#allocation10 + $0x1c0] sm:$0xff]  ;;  %v890_v41 = vld [vmem:[#allocation10 + $0x2c8] sm:$0xff] }
 0x2b0   : > { %1064 = vmatmul.mubr.f32.gmra.mrb[2].mxu1 %v10454_v61  ;;  %1141 = vmatmul.mubr.f32.gmra.mrb[4].mxu0 %v10454_v61  ;;  %v10543_v61 = vpack.c.bf16 %v854_v46, %v850_v45  ;;  %v861_v0 = vld [vmem:[#allocation10 + $0x1e0] sm:$0xff]  ;;  %v896_v45 = vld [vmem:[#allocation10 + $0x2f8] sm:$0xff] }
 0x2b1   : > { %10526 = vmatpush1.bf16.msra.mxu1 %v10525_v5  ;;  %10590 = vmatpush1.bf16.msra.mxu0 %v10589_v6  ;;  %v866_v5 = vld [vmem:[#allocation10 + $0x208] sm:$0xff]  ;;  %v10549_v15 = vpack.c.bf16 %v861_v0, %v857_v63  ;;  %v903_v63 = vld [vmem:[#allocation10 + $0x330] sm:$0xff] }
 0x2b2   : > { %10528 = vmatprep.subr.bf16.mxu1 %v10527_v11  ;;  %10592 = vmatprep.subr.bf16.mxu0 %v10591_v12  ;;  %v870_v6 = vld [vmem:[#allocation10 + $0x228] sm:$0xff]  ;;  %v865_v11 = vld [vmem:[#allocation10 + $0x200] sm:$0xff] }
 0x2b3   : > { %1211 = vmatprep.mubr.f32.mxu1 %v798_v13  ;;  %1288 = vmatprep.mubr.f32.mxu0 %v798_v13  ;;  %v869_v12 = vld [vmem:[#allocation10 + $0x220] sm:$0xff]  ;;  %v867_v13 = vld [vmem:[#allocation10 + $0x210] sm:$0xff]  ;;  %v10551_v21 = vpack.c.bf16 %v870_v6, %v866_v5  ;;  %v912_v5 = vld [vmem:[#allocation10 + $0x378] sm:$0xff] }
 0x2b4   : > { %v10553_v27 = vpack.c.bf16 %v869_v12, %v865_v11  ;;  %v10617_v28 = vpack.c.bf16 %v871_v14, %v867_v13  ;;  %v911_v11 = vld [vmem:[#allocation10 + $0x370] sm:$0xff]  ;;  %v914_v14 = vld [vmem:[#allocation10 + $0x388] sm:$0xff] }
 0x2b5   : > { %10530 = vmatpush1.bf16.msra.mxu1 %v10529_v18  ;;  %10594 = vmatpush1.bf16.msra.mxu0 %v10593_v19  ;;  %v878_v18 = vld [vmem:[#allocation10 + $0x268] sm:$0xff]  ;;  %v876_v19 = vld [vmem:[#allocation10 + $0x258] sm:$0xff] }
 0x2b6   : > { %10532 = vmatprep.subr.bf16.mxu1 %v10531_v24  ;;  %10596 = vmatprep.subr.bf16.mxu0 %v10595_v25  ;;  %v877_v24 = vld [vmem:[#allocation10 + $0x260] sm:$0xff]  ;;  %v875_v25 = vld [vmem:[#allocation10 + $0x250] sm:$0xff]  ;;  %v10555_v33 = vpack.c.bf16 %v878_v18, %v874_v17  ;;  %v10619_v34 = vpack.c.bf16 %v880_v20, %v876_v19  ;;  %v920_v17 = vld [vmem:[#allocation10 + $0x3b8] sm:$0xff] }
 0x2b7   : > { %v10557_v39 = vpack.c.bf16 %v877_v24, %v873_v23  ;;  %v10621_v40 = vpack.c.bf16 %v879_v26, %v875_v25  ;;  %v913_v20 = vld [vmem:[#allocation10 + $0x380] sm:$0xff]  ;;  %v919_v23 = vld [vmem:[#allocation10 + $0x3b0] sm:$0xff]  ;;  %v922_v26 = vld [vmem:[#allocation10 + $0x3c8] sm:$0xff] }
 0x2b9   : > { %10534 = vmatpush1.bf16.msra.mxu1 %v10533_v30  ;;  %10598 = vmatpush1.bf16.msra.mxu0 %v10597_v31  ;;  %v886_v30 = vld [vmem:[#allocation10 + $0x2a8] sm:$0xff]  ;;  %v884_v31 = vld [vmem:[#allocation10 + $0x298] sm:$0xff] }
 0x2ba   : > { %10536 = vmatprep.subr.bf16.mxu1 %v10535_v36  ;;  %10600 = vmatprep.subr.bf16.mxu0 %v10599_v37  ;;  %v885_v36 = vld [vmem:[#allocation10 + $0x2a0] sm:$0xff]  ;;  %v883_v37 = vld [vmem:[#allocation10 + $0x290] sm:$0xff]  ;;  %v10559_v46 = vpack.c.bf16 %v886_v30, %v882_v29  ;;  %v10623_v47 = vpack.c.bf16 %v888_v32, %v884_v31  ;;  %v928_v29 = vld [vmem:[#allocation10 + $0x3f8] sm:$0xff] }
 0x2bb   : > { %v10561_v52 = vpack.c.bf16 %v885_v36, %v881_v35  ;;  %v10625_v53 = vpack.c.bf16 %v887_v38, %v883_v37  ;;  %v921_v32 = vld [vmem:[#allocation10 + $0x3c0] sm:$0xff]  ;;  %v927_v35 = vld [vmem:[#allocation10 + $0x3f0] sm:$0xff] }
 0x2bd   : > { %10538 = vmatpush1.bf16.msra.mxu1 %v10537_v43  ;;  %10602 = vmatpush1.bf16.msra.mxu0 %v10601_v44  ;;  %v894_v43 = vld [vmem:[#allocation10 + $0x2e8] sm:$0xff]  ;;  %v892_v44 = vld [vmem:[#allocation10 + $0x2d8] sm:$0xff] }
 0x2be   : > { %10540 = vmatprep.subr.bf16.mxu1 %v10539_v49  ;;  %10604 = vmatprep.subr.bf16.mxu0 %v10603_v50  ;;  %v893_v49 = vld [vmem:[#allocation10 + $0x2e0] sm:$0xff]  ;;  %v891_v50 = vld [vmem:[#allocation10 + $0x2d0] sm:$0xff]  ;;  %v10563_v58 = vpack.c.bf16 %v894_v43, %v890_v41  ;;  %v10627_v59 = vpack.c.bf16 %v896_v45, %v892_v44  ;;  %v11983_v41 = vld [vmem:[#allocation12 + $0xc] ss:$16 sps:$4 sm:$0xff]  }
 0x2bf   : > { %v10565_v0 = vpack.c.bf16 %v893_v49, %v889_v48  ;;  %v10629_v1 = vpack.c.bf16 %v895_v51, %v891_v50  ;;  %v797_v45 = vld [vmem:[%s14245_s30] sm:$0xff]  ;;  %v11981_v48 = vld [vmem:[#allocation12 + $0x8] ss:$16 sps:$4 sm:$0xff]   ;;  %v11989_v50 = vld [vmem:[#allocation12 + $0x2c] ss:$16 sps:$4 sm:$0xff]  }
 0x2c0   : > { %v11986_v49 = vld [vmem:[#allocation12 + $0x24] ss:$16 sps:$4 sm:$0xff]  }
 0x2c1   : > { %10542 = vmatpush1.bf16.msra.mxu1 %v10541_v55  ;;  %10606 = vmatpush1.bf16.msra.mxu0 %v10605_v56  ;;  %v902_v55 = vld [vmem:[#allocation10 + $0x328] sm:$0xff]  ;;  %v900_v56 = vld [vmem:[#allocation10 + $0x318] sm:$0xff]  ;;  %v799_v51 = vld [vmem:[%s14245_s30 + $0x10] sm:$0xff] }
 0x2c2   : > { %10544 = vmatprep.subr.bf16.mxu1 %v10543_v61  ;;  %10608 = vmatprep.subr.bf16.mxu0 %v10607_v62  ;;  %v901_v61 = vld [vmem:[#allocation10 + $0x320] sm:$0xff]  ;;  %v899_v62 = vld [vmem:[#allocation10 + $0x310] sm:$0xff]  ;;  %v10567_v6 = vpack.c.bf16 %v902_v55, %v898_v54  ;;  %v10631_v7 = vpack.c.bf16 %v904_v57, %v900_v56  ;;  %v11995_v55 = vld [vmem:[#allocation12 + $0x4c] ss:$16 sps:$4 sm:$0xff]  }
 0x2c3   : > { %v10569_v12 = vpack.c.bf16 %v901_v61, %v897_v60  ;;  %v10633_v13 = vpack.c.bf16 %v903_v63, %v899_v62  ;;  %v11992_v54 = vld [vmem:[#allocation12 + $0x44] ss:$16 sps:$4 sm:$0xff]   ;;  %v11990_v56 = vld [vmem:[#allocation12 + $0x40] ss:$16 sps:$4 sm:$0xff]   ;;  %v11993_v57 = vld [vmem:[#allocation12 + $0x48] ss:$16 sps:$4 sm:$0xff]  }
 0x2c4   : > { %v11996_v60 = vld [vmem:[#allocation12 + $0x60] ss:$16 sps:$4 sm:$0xff]   ;;  %v11999_v61 = vld [vmem:[#allocation12 + $0x68] ss:$16 sps:$4 sm:$0xff]   ;;  %v12004_v62 = vld [vmem:[#allocation12 + $0x84] ss:$16 sps:$4 sm:$0xff]  }
 0x2c5   : > { %10546 = vmatpush1.bf16.msra.mxu1 %v10545_v3  ;;  %10610 = vmatpush1.bf16.msra.mxu0 %v10609_v4  ;;  %v910_v3 = vld [vmem:[#allocation10 + $0x368] sm:$0xff]  ;;  %v908_v4 = vld [vmem:[#allocation10 + $0x358] sm:$0xff] }
 0x2c6   : > { %10548 = vmatprep.subr.bf16.mxu1 %v10547_v9  ;;  %10612 = vmatprep.subr.bf16.mxu0 %v10611_v10  ;;  %v909_v9 = vld [vmem:[#allocation10 + $0x360] sm:$0xff]  ;;  %v907_v10 = vld [vmem:[#allocation10 + $0x350] sm:$0xff]  ;;  %v10571_v18 = vpack.c.bf16 %v910_v3, %v906_v2  ;;  %v10635_v19 = vpack.c.bf16 %v912_v5, %v908_v4  ;;  %v12007_v63 = vld [vmem:[#allocation12 + $0x8c] ss:$16 sps:$4 sm:$0xff]  }
 0x2c7   : > { %v10573_v24 = vpack.c.bf16 %v909_v9, %v905_v8  ;;  %v10637_v25 = vpack.c.bf16 %v911_v11, %v907_v10  ;;  %v12010_v2 = vld [vmem:[#allocation12 + $0xa4] ss:$16 sps:$4 sm:$0xff]   ;;  %v12013_v3 = vld [vmem:[#allocation12 + $0xac] ss:$16 sps:$4 sm:$0xff]   ;;  %v12008_v4 = vld [vmem:[#allocation12 + $0xa0] ss:$16 sps:$4 sm:$0xff]  }
 0x2c8   : > { %v12011_v5 = vld [vmem:[#allocation12 + $0xa8] ss:$16 sps:$4 sm:$0xff]   ;;  %v12014_v8 = vld [vmem:[#allocation12 + $0xc0] ss:$16 sps:$4 sm:$0xff]   ;;  %v12022_v10 = vld [vmem:[#allocation12 + $0xe4] ss:$16 sps:$4 sm:$0xff]  }
 0x2c9   : > { %10550 = vmatpush1.bf16.msra.mxu1 %v10549_v15  ;;  %10614 = vmatpush1.bf16.msra.mxu0 %v10613_v16  ;;  %v918_v15 = vld [vmem:[#allocation10 + $0x3a8] sm:$0xff]  ;;  %v916_v16 = vld [vmem:[#allocation10 + $0x398] sm:$0xff] }
 0x2ca   : > { %10552 = vmatprep.subr.bf16.mxu1 %v10551_v21  ;;  %10616 = vmatprep.subr.bf16.mxu0 %v10615_v22  ;;  %v917_v21 = vld [vmem:[#allocation10 + $0x3a0] sm:$0xff]  ;;  %v915_v22 = vld [vmem:[#allocation10 + $0x390] sm:$0xff]  ;;  %v10575_v30 = vpack.c.bf16 %v918_v15, %v914_v14  ;;  %v10639_v31 = vpack.c.bf16 %v920_v17, %v916_v16  ;;  %v12017_v9 = vld [vmem:[#allocation12 + $0xc8] ss:$16 sps:$4 sm:$0xff]  }
 0x2cb   : > { %v10577_v36 = vpack.c.bf16 %v917_v21, %v913_v20  ;;  %v10641_v37 = vpack.c.bf16 %v919_v23, %v915_v22  ;;  %v12025_v11 = vld [vmem:[#allocation12 + $0xec] ss:$16 sps:$4 sm:$0xff]   ;;  %v12028_v14 = vld [vmem:[#allocation12 + $0x104] ss:$16 sps:$4 sm:$0xff]   ;;  %v12026_v16 = vld [vmem:[#allocation12 + $0x100] ss:$16 sps:$4 sm:$0xff]  }
 0x2cc   : > { %v12031_v15 = vld [vmem:[#allocation12 + $0x10c] ss:$16 sps:$4 sm:$0xff]   ;;  %v12029_v17 = vld [vmem:[#allocation12 + $0x108] ss:$16 sps:$4 sm:$0xff]   ;;  %v12032_v20 = vld [vmem:[#allocation12 + $0x120] ss:$16 sps:$4 sm:$0xff]  }
 0x2cd   : > { %10554 = vmatpush1.bf16.msra.mxu1 %v10553_v27  ;;  %10618 = vmatpush1.bf16.msra.mxu0 %v10617_v28  ;;  %v926_v27 = vld [vmem:[#allocation10 + $0x3e8] sm:$0xff]  ;;  %v924_v28 = vld [vmem:[#allocation10 + $0x3d8] sm:$0xff]  ;;  %v12040_v22 = vld [vmem:[#allocation12 + $0x144] ss:$16 sps:$4 sm:$0xff]  }
 0x2ce   : > { %10556 = vmatprep.subr.bf16.mxu1 %v10555_v33  ;;  %10620 = vmatprep.subr.bf16.mxu0 %v10619_v34  ;;  %v925_v33 = vld [vmem:[#allocation10 + $0x3e0] sm:$0xff]  ;;  %v923_v34 = vld [vmem:[#allocation10 + $0x3d0] sm:$0xff]  ;;  %v10579_v38 = vpack.c.bf16 %v926_v27, %v922_v26  ;;  %v12035_v21 = vld [vmem:[#allocation12 + $0x128] ss:$16 sps:$4 sm:$0xff]  }
 0x2cf   : > { %v10581_v43 = vpack.c.bf16 %v925_v33, %v921_v32  ;;  %v10645_v44 = vpack.c.bf16 %v927_v35, %v923_v34  ;;  %v12043_v23 = vld [vmem:[#allocation12 + $0x14c] ss:$16 sps:$4 sm:$0xff]   ;;  %v12046_v26 = vld [vmem:[#allocation12 + $0x164] ss:$16 sps:$4 sm:$0xff]   ;;  %v12050_v32 = vld [vmem:[#allocation12 + $0x180] ss:$16 sps:$4 sm:$0xff]  }
 0x2d0   : > { %v12049_v27 = vld [vmem:[#allocation12 + $0x16c] ss:$16 sps:$4 sm:$0xff]   ;;  %v12053_v33 = vld [vmem:[#allocation12 + $0x188] ss:$16 sps:$4 sm:$0xff]   ;;  %v12058_v34 = vld [vmem:[#allocation12 + $0x1a4] ss:$16 sps:$4 sm:$0xff]  }
 0x2d1   : > { %10558 = vmatpush1.bf16.msra.mxu1 %v10557_v39  ;;  %10622 = vmatpush1.bf16.msra.mxu0 %v10621_v40  ;;  %v10643_v39 = vpack.c.bf16 %v928_v29, %v924_v28  ;;  %v11980_v40 = vld [vmem:[#allocation12 + $0x4] ss:$16 sps:$4 sm:$0xff]   ;;  %v12044_v28 = vld [vmem:[#allocation12 + $0x160] ss:$16 sps:$4 sm:$0xff]   ;;  %v12047_v29 = vld [vmem:[#allocation12 + $0x168] ss:$16 sps:$4 sm:$0xff]  }
 0x2d2   : > { %10560 = vmatprep.subr.bf16.mxu1 %v10559_v46  ;;  %10624 = vmatprep.subr.bf16.mxu0 %v10623_v47  ;;  %v800_v46 = vld [vmem:[%s14245_s30 + $0x18] sm:$0xff]  ;;  %v11978_v47 = vld [vmem:[#allocation12] ss:$16 sps:$4 sm:$0xff]   ;;  %s13584_s30 = sshll.u32 %s13699_s16, 4  ;;  %s13585_s30 = int_to_ptr.vmem [resolvable:$false] %s13584_s30 }
 0x2d3   : > { %v12061_v35 = vld [vmem:[#allocation12 + $0x1ac] ss:$16 sps:$4 sm:$0xff]   ;;  %s13586_s25 = scalar_lea.vmem %s13585_s30, 2048  ;;  %p13587_p13 = scmp.lt.s32.totalorder %s15650_s10, %s13585_s30 }
 0x2d4   : > { %p13588_p0 = scmp.lt.s32.totalorder %s13586_s25, %s13580_s1 }
 0x2d5   : > { %10562 = vmatpush1.bf16.msra.mxu1 %v10561_v52  ;;  %10626 = vmatpush1.bf16.msra.mxu0 %v10625_v53  ;;  %v11984_v52 = vld [vmem:[#allocation12 + $0x20] ss:$16 sps:$4 sm:$0xff]   ;;  %v11987_v53 = vld [vmem:[#allocation12 + $0x28] ss:$16 sps:$4 sm:$0xff]  }
 0x2d6   : > { %10564 = vmatprep.subr.bf16.mxu1 %v10563_v58  ;;  %10628 = vmatprep.subr.bf16.mxu0 %v10627_v59  ;;  %v11998_v58 = vld [vmem:[#allocation12 + $0x64] ss:$16 sps:$4 sm:$0xff]   ;;  %v12001_v59 = vld [vmem:[#allocation12 + $0x6c] ss:$16 sps:$4 sm:$0xff]   ;;  %p13589_p6 = por %p13588_p0, %p13587_p13 }
 0x2d8   : > { %p13590_p2 = pnand %p13589_p6, %p13583_p1 }
 0x2d9   : > { %10566 = vmatpush1.bf16.msra.mxu1 %v10565_v0  ;;  %10630 = vmatpush1.bf16.msra.mxu0 %v10629_v1  ;;  %v12002_v0 = vld [vmem:[#allocation12 + $0x80] ss:$16 sps:$4 sm:$0xff]   ;;  %v12005_v1 = vld [vmem:[#allocation12 + $0x88] ss:$16 sps:$4 sm:$0xff]  }
 0x2da   : > { %10568 = vmatprep.subr.bf16.mxu1 %v10567_v6  ;;  %10632 = vmatprep.subr.bf16.mxu0 %v10631_v7  ;;  %v12016_v6 = vld [vmem:[#allocation12 + $0xc4] ss:$16 sps:$4 sm:$0xff]   ;;  %v12019_v7 = vld [vmem:[#allocation12 + $0xcc] ss:$16 sps:$4 sm:$0xff]  }
 0x2dd   : > { %10570 = vmatpush1.bf16.msra.mxu1 %v10569_v12  ;;  %10634 = vmatpush1.bf16.msra.mxu0 %v10633_v13  ;;  %v12020_v12 = vld [vmem:[#allocation12 + $0xe0] ss:$16 sps:$4 sm:$0xff]   ;;  %v12023_v13 = vld [vmem:[#allocation12 + $0xe8] ss:$16 sps:$4 sm:$0xff]  }
 0x2de   : > { %10572 = vmatprep.subr.bf16.mxu1 %v10571_v18  ;;  %10636 = vmatprep.subr.bf16.mxu0 %v10635_v19  ;;  %v12034_v18 = vld [vmem:[#allocation12 + $0x124] ss:$16 sps:$4 sm:$0xff]   ;;  %v12037_v19 = vld [vmem:[#allocation12 + $0x12c] ss:$16 sps:$4 sm:$0xff]  }
 0x2e1   : > { %10574 = vmatpush1.bf16.msra.mxu1 %v10573_v24  ;;  %10638 = vmatpush1.bf16.msra.mxu0 %v10637_v25  ;;  %v12038_v24 = vld [vmem:[#allocation12 + $0x140] ss:$16 sps:$4 sm:$0xff]   ;;  %v12041_v25 = vld [vmem:[#allocation12 + $0x148] ss:$16 sps:$4 sm:$0xff]  }
 0x2e2   : > { %10576 = vmatprep.subr.bf16.mxu1 %v10575_v30  ;;  %10640 = vmatprep.subr.bf16.mxu0 %v10639_v31  ;;  %v12052_v30 = vld [vmem:[#allocation12 + $0x184] ss:$16 sps:$4 sm:$0xff]   ;;  %v12055_v31 = vld [vmem:[#allocation12 + $0x18c] ss:$16 sps:$4 sm:$0xff]  }
 0x2e5   : > { %10578 = vmatpush1.bf16.msra.mxu1 %v10577_v36  ;;  %10642 = vmatpush1.bf16.msra.mxu0 %v10641_v37  ;;  %v12056_v36 = vld [vmem:[#allocation12 + $0x1a0] ss:$16 sps:$4 sm:$0xff]   ;;  %v12059_v37 = vld [vmem:[#allocation12 + $0x1a8] ss:$16 sps:$4 sm:$0xff]  }
 0x2e6   : > { %10580 = vmatprep.subr.bf16.mxu1 %v10579_v38  ;;  %10644 = vmatprep.subr.bf16.mxu0 %v10643_v39  ;;  %v12064_v38 = vld [vmem:[#allocation12 + $0x1c4] ss:$16 sps:$4 sm:$0xff]   ;;  %v12067_v39 = vld [vmem:[#allocation12 + $0x1cc] ss:$16 sps:$4 sm:$0xff]  }
 0x2e9   : > { %10582 = vmatpush1.bf16.msra.mxu1 %v10581_v43  ;;  %10646 = vmatpush1.bf16.msra.mxu0 %v10645_v44  ;;  %v12070_v43 = vld [vmem:[#allocation12 + $0x1e4] ss:$16 sps:$4 sm:$0xff]   ;;  %v12073_v44 = vld [vmem:[#allocation12 + $0x1ec] ss:$16 sps:$4 sm:$0xff]  }
 0x2ea   : > { %3803 = vmatprep.subr.bf16.mxu1 %v11980_v40  ;;  %4061 = vmatprep.subr.bf16.mxu0 %v11983_v41  ;;  %v12062_v40 = vld [vmem:[#allocation12 + $0x1c0] ss:$16 sps:$4 sm:$0xff]   ;;  %v12065_v41 = vld [vmem:[#allocation12 + $0x1c8] ss:$16 sps:$4 sm:$0xff]  }
 0x2ec   : > { %1212 = vmatmul.mubr.f32.vlgmr.msra.gmra.mrb[0].mxu1 %v797_v45  ;;  %1289 = vmatmul.mubr.f32.vlgmr.msra.gmra.mrb[2].mxu0 %v797_v45  ;;  %v12068_v45 = vld [vmem:[#allocation12 + $0x1e0] ss:$16 sps:$4 sm:$0xff]  }
 0x2ed   : > { %1217 = vmatprep.mubr.f32.mxu1 %v800_v46  ;;  %1294 = vmatprep.mubr.f32.mxu0 %v800_v46  ;;  %v12071_v46 = vld [vmem:[#allocation12 + $0x1e8] ss:$16 sps:$4 sm:$0xff]  }
 0x2ee   : > { %3804 = vmatpush1.bf16.msra.mxu1 %v11978_v47  ;;  %4062 = vmatpush1.bf16.msra.mxu0 %v11981_v48  ;;  %v12076_v47 = vld [vmem:[#allocation12 + $0x204] ss:$16 sps:$4 sm:$0xff]   ;;  %v12079_v48 = vld [vmem:[#allocation12 + $0x20c] ss:$16 sps:$4 sm:$0xff]  }
 0x2ef   : > { %3805 = vmatprep.subr.bf16.mxu1 %v11986_v49  ;;  %4063 = vmatprep.subr.bf16.mxu0 %v11989_v50 }
 0x2f0   : > { %1218 = vmatmul.mubr.f32.gmra.mrb[2].mxu1 %v799_v51  ;;  %1295 = vmatmul.mubr.f32.gmra.mrb[4].mxu0 %v799_v51 }
 0x2f2   : > { %3806 = vmatpush1.bf16.msra.mxu1 %v11984_v52  ;;  %4064 = vmatpush1.bf16.msra.mxu0 %v11987_v53 }
 0x2f3   : > { %3807 = vmatprep.subr.bf16.mxu1 %v11992_v54  ;;  %4065 = vmatprep.subr.bf16.mxu0 %v11995_v55 }
 0x2f6   : > { %3808 = vmatpush1.bf16.msra.mxu1 %v11990_v56  ;;  %4066 = vmatpush1.bf16.msra.mxu0 %v11993_v57 }
 0x2f7   : > { %3809 = vmatprep.subr.bf16.mxu1 %v11998_v58  ;;  %4067 = vmatprep.subr.bf16.mxu0 %v12001_v59 }
 0x2fa   : > { %3810 = vmatpush1.bf16.msra.mxu1 %v11996_v60  ;;  %4068 = vmatpush1.bf16.msra.mxu0 %v11999_v61 }
 0x2fb   : > { %3811 = vmatprep.subr.bf16.mxu1 %v12004_v62  ;;  %4069 = vmatprep.subr.bf16.mxu0 %v12007_v63 }
 0x2fe   : > { %3812 = vmatpush1.bf16.msra.mxu1 %v12002_v0  ;;  %4070 = vmatpush1.bf16.msra.mxu0 %v12005_v1 }
 0x2ff   : > { %3813 = vmatprep.subr.bf16.mxu1 %v12010_v2  ;;  %4071 = vmatprep.subr.bf16.mxu0 %v12013_v3 }
 0x302   : > { %3814 = vmatpush1.bf16.msra.mxu1 %v12008_v4  ;;  %4072 = vmatpush1.bf16.msra.mxu0 %v12011_v5 }
 0x303   : > { %3815 = vmatprep.subr.bf16.mxu1 %v12016_v6  ;;  %4073 = vmatprep.subr.bf16.mxu0 %v12019_v7 }
 0x306   : > { %3816 = vmatpush1.bf16.msra.mxu1 %v12014_v8  ;;  %4074 = vmatpush1.bf16.msra.mxu0 %v12017_v9  ;;  %v12074_v8 = vld [vmem:[#allocation12 + $0x200] ss:$16 sps:$4 sm:$0xff]   ;;  %v12077_v9 = vld [vmem:[#allocation12 + $0x208] ss:$16 sps:$4 sm:$0xff]  }
 0x307   : > { %3817 = vmatprep.subr.bf16.mxu1 %v12022_v10  ;;  %4075 = vmatprep.subr.bf16.mxu0 %v12025_v11 }
 0x30a   : > { %3818 = vmatpush1.bf16.msra.mxu1 %v12020_v12  ;;  %4076 = vmatpush1.bf16.msra.mxu0 %v12023_v13  ;;  %v12082_v12 = vld [vmem:[#allocation12 + $0x224] ss:$16 sps:$4 sm:$0xff]   ;;  %v12085_v13 = vld [vmem:[#allocation12 + $0x22c] ss:$16 sps:$4 sm:$0xff]  }
 0x30b   : > { %3819 = vmatprep.subr.bf16.mxu1 %v12028_v14  ;;  %4077 = vmatprep.subr.bf16.mxu0 %v12031_v15  ;;  %v12080_v15 = vld [vmem:[#allocation12 + $0x220] ss:$16 sps:$4 sm:$0xff]  }
 0x30e   : > { %3820 = vmatpush1.bf16.msra.mxu1 %v12026_v16  ;;  %4078 = vmatpush1.bf16.msra.mxu0 %v12029_v17  ;;  %v12083_v16 = vld [vmem:[#allocation12 + $0x228] ss:$16 sps:$4 sm:$0xff]   ;;  %v12088_v17 = vld [vmem:[#allocation12 + $0x244] ss:$16 sps:$4 sm:$0xff]  }
 0x30f   : > { %3821 = vmatprep.subr.bf16.mxu1 %v12034_v18  ;;  %4079 = vmatprep.subr.bf16.mxu0 %v12037_v19  ;;  %v12091_v18 = vld [vmem:[#allocation12 + $0x24c] ss:$16 sps:$4 sm:$0xff]   ;;  %v12086_v19 = vld [vmem:[#allocation12 + $0x240] ss:$16 sps:$4 sm:$0xff]  }
 0x312   : > { %3822 = vmatpush1.bf16.msra.mxu1 %v12032_v20  ;;  %4080 = vmatpush1.bf16.msra.mxu0 %v12035_v21  ;;  %v12089_v20 = vld [vmem:[#allocation12 + $0x248] ss:$16 sps:$4 sm:$0xff]   ;;  %v12094_v21 = vld [vmem:[#allocation12 + $0x264] ss:$16 sps:$4 sm:$0xff]  }
 0x313   : > { %3823 = vmatprep.subr.bf16.mxu1 %v12040_v22  ;;  %4081 = vmatprep.subr.bf16.mxu0 %v12043_v23  ;;  %v12097_v22 = vld [vmem:[#allocation12 + $0x26c] ss:$16 sps:$4 sm:$0xff]   ;;  %v12092_v23 = vld [vmem:[#allocation12 + $0x260] ss:$16 sps:$4 sm:$0xff]  }
 0x316   : > { %3824 = vmatpush1.bf16.msra.mxu1 %v12038_v24  ;;  %4082 = vmatpush1.bf16.msra.mxu0 %v12041_v25  ;;  %v12095_v24 = vld [vmem:[#allocation12 + $0x268] ss:$16 sps:$4 sm:$0xff]   ;;  %v12100_v25 = vld [vmem:[#allocation12 + $0x284] ss:$16 sps:$4 sm:$0xff]  }
 0x317   : > { %3825 = vmatprep.subr.bf16.mxu1 %v12046_v26  ;;  %4083 = vmatprep.subr.bf16.mxu0 %v12049_v27  ;;  %v12103_v26 = vld [vmem:[#allocation12 + $0x28c] ss:$16 sps:$4 sm:$0xff]   ;;  %v12098_v27 = vld [vmem:[#allocation12 + $0x280] ss:$16 sps:$4 sm:$0xff]  }
 0x31a   : > { %3826 = vmatpush1.bf16.msra.mxu1 %v12044_v28  ;;  %4084 = vmatpush1.bf16.msra.mxu0 %v12047_v29  ;;  %v12101_v28 = vld [vmem:[#allocation12 + $0x288] ss:$16 sps:$4 sm:$0xff]   ;;  %v12106_v29 = vld [vmem:[#allocation12 + $0x2a4] ss:$16 sps:$4 sm:$0xff]  }
 0x31b   : > { %3827 = vmatprep.subr.bf16.mxu1 %v12052_v30  ;;  %4085 = vmatprep.subr.bf16.mxu0 %v12055_v31  ;;  %v12109_v30 = vld [vmem:[#allocation12 + $0x2ac] ss:$16 sps:$4 sm:$0xff]   ;;  %v12104_v31 = vld [vmem:[#allocation12 + $0x2a0] ss:$16 sps:$4 sm:$0xff]  }
 0x31e   : > { %3828 = vmatpush1.bf16.msra.mxu1 %v12050_v32  ;;  %4086 = vmatpush1.bf16.msra.mxu0 %v12053_v33  ;;  %v12107_v32 = vld [vmem:[#allocation12 + $0x2a8] ss:$16 sps:$4 sm:$0xff]   ;;  %v12112_v33 = vld [vmem:[#allocation12 + $0x2c4] ss:$16 sps:$4 sm:$0xff]  }
 0x31f   : > { %3829 = vmatprep.subr.bf16.mxu1 %v12058_v34  ;;  %4087 = vmatprep.subr.bf16.mxu0 %v12061_v35  ;;  %v12115_v34 = vld [vmem:[#allocation12 + $0x2cc] ss:$16 sps:$4 sm:$0xff]   ;;  %v12110_v35 = vld [vmem:[#allocation12 + $0x2c0] ss:$16 sps:$4 sm:$0xff]  }
 0x322   : > { %3830 = vmatpush1.bf16.msra.mxu1 %v12056_v36  ;;  %4088 = vmatpush1.bf16.msra.mxu0 %v12059_v37  ;;  %v12113_v36 = vld [vmem:[#allocation12 + $0x2c8] ss:$16 sps:$4 sm:$0xff]   ;;  %v12118_v37 = vld [vmem:[#allocation12 + $0x2e4] ss:$16 sps:$4 sm:$0xff]  }
 0x323   : > { %3831 = vmatprep.subr.bf16.mxu1 %v12064_v38  ;;  %4089 = vmatprep.subr.bf16.mxu0 %v12067_v39  ;;  %v12121_v38 = vld [vmem:[#allocation12 + $0x2ec] ss:$16 sps:$4 sm:$0xff]   ;;  %v12116_v39 = vld [vmem:[#allocation12 + $0x2e0] ss:$16 sps:$4 sm:$0xff]  }
 0x326   : > { %3832 = vmatpush1.bf16.msra.mxu1 %v12062_v40  ;;  %4090 = vmatpush1.bf16.msra.mxu0 %v12065_v41  ;;  %v12119_v40 = vld [vmem:[#allocation12 + $0x2e8] ss:$16 sps:$4 sm:$0xff]   ;;  %v12124_v41 = vld [vmem:[#allocation12 + $0x304] ss:$16 sps:$4 sm:$0xff]  }
 0x327   : > { %3833 = vmatprep.subr.bf16.mxu1 %v12070_v43  ;;  %4091 = vmatprep.subr.bf16.mxu0 %v12073_v44  ;;  %v12127_v43 = vld [vmem:[#allocation12 + $0x30c] ss:$16 sps:$4 sm:$0xff]   ;;  %v12122_v44 = vld [vmem:[#allocation12 + $0x300] ss:$16 sps:$4 sm:$0xff]  }
 0x32a   : > { %3834 = vmatpush1.bf16.msra.mxu1 %v12068_v45  ;;  %4092 = vmatpush1.bf16.msra.mxu0 %v12071_v46  ;;  %v12125_v45 = vld [vmem:[#allocation12 + $0x308] ss:$16 sps:$4 sm:$0xff]   ;;  %v12130_v46 = vld [vmem:[#allocation12 + $0x324] ss:$16 sps:$4 sm:$0xff]  }
 0x32b   : > { %3846 = vmatprep.subr.bf16.mxu1 %v12076_v47  ;;  %4104 = vmatprep.subr.bf16.mxu0 %v12079_v48  ;;  %v12133_v47 = vld [vmem:[#allocation12 + $0x32c] ss:$16 sps:$4 sm:$0xff]   ;;  %v12128_v48 = vld [vmem:[#allocation12 + $0x320] ss:$16 sps:$4 sm:$0xff]  }
 0x3bf   : > { %v14290_v49 = vpop.f32.mrb[0].mxu1  ;;  %v14292_v50 = vpop.f32.mrb[2].mxu0 }
 0x3c0   : > { %15980 = vst [vmem:[#allocation41_spill] sm:$0xff] %v14290_v49  ;;  %15981 = vst [vmem:[#allocation42_spill] sm:$0xff] %v14292_v50  ;;  %v1319_v51 = vrot.slane %v14290_v49, 7  ;;  %v1321_v52 = vrot.slane %v14292_v50, 7  ;;  %v14296_v53 = vpop.f32.mrb[1].mxu1  ;;  %v14298_v54 = vpop.f32.mrb[3].mxu0 }
 0x3c1   : > { %15982 = vst [vmem:[#allocation43_spill] sm:$0xff] %v14296_v53  ;;  %15983 = vst [vmem:[#allocation44_spill] sm:$0xff] %v14298_v54  ;;  %v1320_v55 = vrot.slane %v14296_v53, 7  ;;  %v1322_v56 = vrot.slane %v14298_v54, 7  ;;  %v4424_v53 = vld [vmem:[#allocation15 + $0x348] sm:$0xff]  ;;  %v4430_v49 = vld [vmem:[#allocation15 + $0x378] sm:$0xff] }
 0x3c2   : > { %1343 = vst [vmem:[#allocation2] sm:$0xfe] %v1319_v51  ;;  %1345 = vst [vmem:[#allocation2 + $0x10] sm:$0xfe] %v1321_v52  ;;  %v4428_v50 = vld [vmem:[#allocation15 + $0x368] sm:$0xff] }
 0x3c3   : > { %1344 = vst [vmem:[#allocation2 + $0x8] sm:$0xfe] %v1320_v55  ;;  %1346 = vst [vmem:[#allocation2 + $0x18] sm:$0xfe] %v1322_v56  ;;  %v14302_v57 = vpop.f32.mrb[2].mxu1  ;;  %v14304_v58 = vpop.f32.mrb[4].mxu0 }
 0x3c4   : > { %15984 = vst [vmem:[#allocation45_spill] sm:$0xff] %v14302_v57  ;;  %15985 = vst [vmem:[#allocation46_spill] sm:$0xff] %v14304_v58  ;;  %v1323_v59 = vrot.slane %v14302_v57, 7  ;;  %v1327_v60 = vrot.slane %v14304_v58, 7  ;;  %v14308_v61 = vpop.f32.mrb[3].mxu1  ;;  %v14310_v62 = vpop.f32.mrb[5].mxu0 }
 0x3c5   : > { %15986 = vst [vmem:[#allocation47_spill] sm:$0xff] %v14308_v61  ;;  %15987 = vst [vmem:[#allocation48_spill] sm:$0xff] %v14310_v62  ;;  %v1325_v63 = vrot.slane %v14308_v61, 7  ;;  %v1329_v0 = vrot.slane %v14310_v62, 7  ;;  %v4418_v62 = vld [vmem:[#allocation15 + $0x318] sm:$0xff] }
 0x3c6   : > { %v14315_v1 = vsel %vm1318_vm2, %v1319_v51, %v1323_v59  ;;  %1351 = vst [vmem:[#allocation2 + $0x40] sm:$0x1] %v1323_v59  ;;  %v14318_v2 = vsel %vm1318_vm2, %v1321_v52, %v1327_v60  ;;  %1353 = vst [vmem:[#allocation2 + $0x50] sm:$0x1] %v1327_v60  ;;  %v12131_v51 = vld [vmem:[#allocation12 + $0x328] ss:$16 sps:$4 sm:$0xff]  }
 0x3c7   : > { %1347 = vst [vmem:[#allocation2 + $0x20] sm:$0xff] %v14315_v1  ;;  %1349 = vst [vmem:[#allocation2 + $0x30] sm:$0xff] %v14318_v2  ;;  %v14323_v3 = vsel %vm1318_vm2, %v1320_v55, %v1325_v63  ;;  %v14326_v4 = vsel %vm1318_vm2, %v1322_v56, %v1329_v0  ;;  %v12136_v52 = vld [vmem:[#allocation12 + $0x344] ss:$16 sps:$4 sm:$0xff]   ;;  %v12139_v55 = vld [vmem:[#allocation12 + $0x34c] ss:$16 sps:$4 sm:$0xff]  }
 0x3c8   : > { %1352 = vst [vmem:[#allocation2 + $0x48] sm:$0x1] %v1325_v63  ;;  %1354 = vst [vmem:[#allocation2 + $0x58] sm:$0x1] %v1329_v0  ;;  %v12134_v56 = vld [vmem:[#allocation12 + $0x340] ss:$16 sps:$4 sm:$0xff]  }
 0x3c9   : > { %1350 = vst [vmem:[#allocation2 + $0x38] sm:$0xff] %v14326_v4  ;;  %v1355_v5 = vld [vmem:[#allocation2] sm:$0xff]  ;;  %v12137_v59 = vld [vmem:[#allocation12 + $0x348] ss:$16 sps:$4 sm:$0xff]   ;;  %v12145_v63 = vld [vmem:[#allocation12 + $0x36c] ss:$16 sps:$4 sm:$0xff]  }
 0x3ca   : > { %v1356_v6 = vld [vmem:[#allocation2 + $0x8] sm:$0xff]  ;;  %v1358_v10 = vld [vmem:[#allocation2 + $0x18] sm:$0xff]  ;;  %v1363_v11 = vpack.c.bf16 %v14315_v1, %v1355_v5  ;;  %v12142_v60 = vld [vmem:[#allocation12 + $0x364] ss:$16 sps:$4 sm:$0xff]  }
 0x3cb   : > { %v1364_v7 = vpack.c.bf16 %v14323_v3, %v1356_v6  ;;  %v1366_v14 = vpack.c.bf16 %v14326_v4, %v1358_v10  ;;  %v12140_v0 = vld [vmem:[#allocation12 + $0x360] ss:$16 sps:$4 sm:$0xff]   ;;  %v12143_v5 = vld [vmem:[#allocation12 + $0x368] ss:$16 sps:$4 sm:$0xff]   ;;  %v12148_v6 = vld [vmem:[#allocation12 + $0x384] ss:$16 sps:$4 sm:$0xff]  }
 0x3cc   : > { %v12154_v10 = vld [vmem:[#allocation12 + $0x3a4] ss:$16 sps:$4 sm:$0xff]   ;;  %v4426_v57 = vld [vmem:[#allocation15 + $0x358] sm:$0xff] }
 0x3cd   : > { %3835 = vmatprep.mubr.bf16.mxu1 %v1364_v7  ;;  %4093 = vmatprep.mubr.bf16.mxu0 %v1364_v7  ;;  %v12151_v7 = vld [vmem:[#allocation12 + $0x38c] ss:$16 sps:$4 sm:$0xff]  }
 0x3ce   : > { %3836 = vmatmul.mubr.bf16.vlgmr.msra.gmra.mrb[4].mxu1 %v1363_v11  ;;  %4094 = vmatmul.mubr.bf16.vlgmr.msra.gmra.mrb[8].mxu0 %v1363_v11  ;;  %v12157_v11 = vld [vmem:[#allocation12 + $0x3ac] ss:$16 sps:$4 sm:$0xff]  }
 0x3cf   : > { %3847 = vmatpush1.bf16.msra.mxu1 %v12074_v8  ;;  %4105 = vmatpush1.bf16.msra.mxu0 %v12077_v9  ;;  %v12146_v8 = vld [vmem:[#allocation12 + $0x380] ss:$16 sps:$4 sm:$0xff]   ;;  %v12149_v9 = vld [vmem:[#allocation12 + $0x388] ss:$16 sps:$4 sm:$0xff]  }
 0x3d0   : > { %3878 = vmatprep.mubr.bf16.mxu1 %v1366_v14  ;;  %4136 = vmatprep.mubr.bf16.mxu0 %v1366_v14  ;;  %v12155_v14 = vld [vmem:[#allocation12 + $0x3a8] ss:$16 sps:$4 sm:$0xff]  }
 0x3d1   : > { %3848 = vmatprep.subr.bf16.mxu1 %v12082_v12  ;;  %4106 = vmatprep.subr.bf16.mxu0 %v12085_v13  ;;  %v1368_v12 = vld [vmem:[#allocation2 + $0x8] sm:$0xfe]  ;;  %v12152_v13 = vld [vmem:[#allocation12 + $0x3a0] ss:$16 sps:$4 sm:$0xff]  }
 0x3d3   : > { %3849 = vmatpush1.bf16.msra.mxu1 %v12080_v15  ;;  %4107 = vmatpush1.bf16.msra.mxu0 %v12083_v16  ;;  %v1372_v15 = vld [vmem:[#allocation2 + $0x48] sm:$0x1]  ;;  %v1376_v16 = vpack.c.bf16 %v14323_v3, %v1368_v12  ;;  %v12214_v12 = vld [vmem:[#allocation12 + $0x4e4] ss:$16 sps:$4 sm:$0xff]  }
 0x3d4   : > { %3850 = vmatprep.subr.bf16.mxu1 %v12088_v17  ;;  %4108 = vmatprep.subr.bf16.mxu0 %v12091_v18  ;;  %v12160_v17 = vld [vmem:[#allocation12 + $0x3c4] ss:$16 sps:$4 sm:$0xff]   ;;  %v12163_v18 = vld [vmem:[#allocation12 + $0x3cc] ss:$16 sps:$4 sm:$0xff]  }
 0x3d7   : > { %3851 = vmatpush1.bf16.msra.mxu1 %v12086_v19  ;;  %4109 = vmatpush1.bf16.msra.mxu0 %v12089_v20  ;;  %v1380_v19 = vpack.c.bf16 %v1372_v15, %v1372_v15  ;;  %v12158_v20 = vld [vmem:[#allocation12 + $0x3c0] ss:$16 sps:$4 sm:$0xff]   ;;  %v12215_v15 = vld [vmem:[#allocation12 + $0x4e8] ss:$16 sps:$4 sm:$0xff]  }
 0x3d8   : > { %3852 = vmatprep.subr.bf16.mxu1 %v12094_v21  ;;  %4110 = vmatprep.subr.bf16.mxu0 %v12097_v22  ;;  %v12161_v21 = vld [vmem:[#allocation12 + $0x3c8] ss:$16 sps:$4 sm:$0xff]   ;;  %v12166_v22 = vld [vmem:[#allocation12 + $0x3e4] ss:$16 sps:$4 sm:$0xff]  }
 0x3db   : > { %3853 = vmatpush1.bf16.msra.mxu1 %v12092_v23  ;;  %4111 = vmatpush1.bf16.msra.mxu0 %v12095_v24  ;;  %v12169_v23 = vld [vmem:[#allocation12 + $0x3ec] ss:$16 sps:$4 sm:$0xff]   ;;  %v1415_v24 = vshll.u32 %v1376_v16, 16 }
 0x3dc   : > { %3854 = vmatprep.subr.bf16.mxu1 %v12100_v25  ;;  %4112 = vmatprep.subr.bf16.mxu0 %v12103_v26  ;;  %v1420_v25 = vshll.u32 %v1380_v19, 16  ;;  %v12164_v26 = vld [vmem:[#allocation12 + $0x3e0] ss:$16 sps:$4 sm:$0xff]   ;;  %v12221_v19 = vld [vmem:[#allocation12 + $0x508] ss:$16 sps:$4 sm:$0xff]  }
 0x3df   : > { %3855 = vmatpush1.bf16.msra.mxu1 %v12098_v27  ;;  %4113 = vmatpush1.bf16.msra.mxu0 %v12101_v28  ;;  %v12167_v27 = vld [vmem:[#allocation12 + $0x3e8] ss:$16 sps:$4 sm:$0xff]   ;;  %v12172_v28 = vld [vmem:[#allocation12 + $0x404] ss:$16 sps:$4 sm:$0xff]  }
 0x3e0   : > { %3856 = vmatprep.subr.bf16.mxu1 %v12106_v29  ;;  %4114 = vmatprep.subr.bf16.mxu0 %v12109_v30  ;;  %v12175_v29 = vld [vmem:[#allocation12 + $0x40c] ss:$16 sps:$4 sm:$0xff]   ;;  %v1417_v30 = vrot.slane %v1415_v24, 1  ;;  %v12232_v24 = vld [vmem:[#allocation12 + $0x544] ss:$16 sps:$4 sm:$0xff]  }
 0x3e3   : > { %3857 = vmatpush1.bf16.msra.mxu1 %v12104_v31  ;;  %4115 = vmatpush1.bf16.msra.mxu0 %v12107_v32  ;;  %v1357_v31 = vld [vmem:[#allocation2 + $0x10] sm:$0xff]  ;;  %v1413_v32 = vshrl.u32 %v1376_v16, 16 }
 0x3e4   : > { %3858 = vmatprep.subr.bf16.mxu1 %v12112_v33  ;;  %4116 = vmatprep.subr.bf16.mxu0 %v12115_v34  ;;  %v1422_v33 = vrot.slane %v1420_v25, 1  ;;  %v12170_v34 = vld [vmem:[#allocation12 + $0x400] ss:$16 sps:$4 sm:$0xff]   ;;  %v12220_v16 = vld [vmem:[#allocation12 + $0x504] ss:$16 sps:$4 sm:$0xff]  }
 0x3e5   : > { %v12235_v25 = vld [vmem:[#allocation12 + $0x54c] ss:$16 sps:$4 sm:$0xff]  }
 0x3e7   : > { %3859 = vmatpush1.bf16.msra.mxu1 %v12110_v35  ;;  %4117 = vmatpush1.bf16.msra.mxu0 %v12113_v36  ;;  %v1365_v35 = vpack.c.bf16 %v14318_v2, %v1357_v31  ;;  %v12173_v36 = vld [vmem:[#allocation12 + $0x408] ss:$16 sps:$4 sm:$0xff]  }
 0x3e8   : > { %3860 = vmatprep.subr.bf16.mxu1 %v12118_v37  ;;  %4118 = vmatprep.subr.bf16.mxu0 %v12121_v38  ;;  %v1418_v37 = vor.u32 %v1417_v30, %v1413_v32  ;;  %v12178_v38 = vld [vmem:[#allocation12 + $0x424] ss:$16 sps:$4 sm:$0xff]   ;;  %v12236_v30 = vld [vmem:[#allocation12 + $0x560] ss:$16 sps:$4 sm:$0xff]   ;;  %v12239_v31 = vld [vmem:[#allocation12 + $0x568] ss:$16 sps:$4 sm:$0xff]  }
 0x3e9   : > { %v12244_v32 = vld [vmem:[#allocation12 + $0x584] ss:$16 sps:$4 sm:$0xff]  }
 0x3eb   : > { %3861 = vmatpush1.bf16.msra.mxu1 %v12116_v39  ;;  %4119 = vmatpush1.bf16.msra.mxu0 %v12119_v40  ;;  %v12181_v39 = vld [vmem:[#allocation12 + $0x42c] ss:$16 sps:$4 sm:$0xff]   ;;  %v1423_v40 = vsel %vm1399_vm3, %v1418_v37, %v1422_v33  ;;  %v1367_v37 = vld [vmem:[#allocation2] sm:$0xfe] }
 0x3ec   : > { %3862 = vmatprep.subr.bf16.mxu1 %v12124_v41  ;;  %4120 = vmatprep.subr.bf16.mxu0 %v12127_v43  ;;  %v12176_v41 = vld [vmem:[#allocation12 + $0x420] ss:$16 sps:$4 sm:$0xff]   ;;  %v12179_v43 = vld [vmem:[#allocation12 + $0x428] ss:$16 sps:$4 sm:$0xff]   ;;  %v12247_v33 = vld [vmem:[#allocation12 + $0x58c] ss:$16 sps:$4 sm:$0xff]  }
 0x3ef   : > { %3863 = vmatpush1.bf16.msra.mxu1 %v12122_v44  ;;  %4121 = vmatpush1.bf16.msra.mxu0 %v12125_v45  ;;  %v12184_v44 = vld [vmem:[#allocation12 + $0x444] ss:$16 sps:$4 sm:$0xff]   ;;  %v12187_v45 = vld [vmem:[#allocation12 + $0x44c] ss:$16 sps:$4 sm:$0xff]  }
 0x3f0   : > { %3864 = vmatprep.subr.bf16.mxu1 %v12130_v46  ;;  %4122 = vmatprep.subr.bf16.mxu0 %v12133_v47  ;;  %v12182_v46 = vld [vmem:[#allocation12 + $0x440] ss:$16 sps:$4 sm:$0xff]   ;;  %v12185_v47 = vld [vmem:[#allocation12 + $0x448] ss:$16 sps:$4 sm:$0xff]  }
 0x3f3   : > { %3865 = vmatpush1.bf16.msra.mxu1 %v12128_v48  ;;  %4123 = vmatpush1.bf16.msra.mxu0 %v12131_v51  ;;  %v12190_v48 = vld [vmem:[#allocation12 + $0x464] ss:$16 sps:$4 sm:$0xff]   ;;  %v12193_v51 = vld [vmem:[#allocation12 + $0x46c] ss:$16 sps:$4 sm:$0xff]  }
 0x3f4   : > { %3866 = vmatprep.subr.bf16.mxu1 %v12136_v52  ;;  %4124 = vmatprep.subr.bf16.mxu0 %v12139_v55  ;;  %v12188_v52 = vld [vmem:[#allocation12 + $0x460] ss:$16 sps:$4 sm:$0xff]   ;;  %v12191_v55 = vld [vmem:[#allocation12 + $0x468] ss:$16 sps:$4 sm:$0xff]  }
 0x3f7   : > { %3867 = vmatpush1.bf16.msra.mxu1 %v12134_v56  ;;  %4125 = vmatpush1.bf16.msra.mxu0 %v12137_v59  ;;  %v12196_v56 = vld [vmem:[#allocation12 + $0x484] ss:$16 sps:$4 sm:$0xff]   ;;  %v12199_v59 = vld [vmem:[#allocation12 + $0x48c] ss:$16 sps:$4 sm:$0xff]  }
 0x3f8   : > { %3868 = vmatprep.subr.bf16.mxu1 %v12142_v60  ;;  %4126 = vmatprep.subr.bf16.mxu0 %v12145_v63  ;;  %v12194_v60 = vld [vmem:[#allocation12 + $0x480] ss:$16 sps:$4 sm:$0xff]   ;;  %v12197_v63 = vld [vmem:[#allocation12 + $0x488] ss:$16 sps:$4 sm:$0xff]  }
 0x3fb   : > { %3869 = vmatpush1.bf16.msra.mxu1 %v12140_v0  ;;  %4127 = vmatpush1.bf16.msra.mxu0 %v12143_v5  ;;  %v12202_v0 = vld [vmem:[#allocation12 + $0x4a4] ss:$16 sps:$4 sm:$0xff]   ;;  %v12205_v5 = vld [vmem:[#allocation12 + $0x4ac] ss:$16 sps:$4 sm:$0xff]  }
 0x3fc   : > { %3870 = vmatprep.subr.bf16.mxu1 %v12148_v6  ;;  %4128 = vmatprep.subr.bf16.mxu0 %v12151_v7  ;;  %v12200_v6 = vld [vmem:[#allocation12 + $0x4a0] ss:$16 sps:$4 sm:$0xff]   ;;  %v12203_v7 = vld [vmem:[#allocation12 + $0x4a8] ss:$16 sps:$4 sm:$0xff]  }
 0x3ff   : > { %3871 = vmatpush1.bf16.msra.mxu1 %v12146_v8  ;;  %4129 = vmatpush1.bf16.msra.mxu0 %v12149_v9  ;;  %v12208_v8 = vld [vmem:[#allocation12 + $0x4c4] ss:$16 sps:$4 sm:$0xff]   ;;  %v12211_v9 = vld [vmem:[#allocation12 + $0x4cc] ss:$16 sps:$4 sm:$0xff]  }
 0x400   : > { %3872 = vmatprep.subr.bf16.mxu1 %v12154_v10  ;;  %4130 = vmatprep.subr.bf16.mxu0 %v12157_v11  ;;  %v12206_v10 = vld [vmem:[#allocation12 + $0x4c0] ss:$16 sps:$4 sm:$0xff]   ;;  %v12209_v11 = vld [vmem:[#allocation12 + $0x4c8] ss:$16 sps:$4 sm:$0xff]  }
 0x403   : > { %3873 = vmatpush1.bf16.msra.mxu1 %v12152_v13  ;;  %4131 = vmatpush1.bf16.msra.mxu0 %v12155_v14  ;;  %v12217_v13 = vld [vmem:[#allocation12 + $0x4ec] ss:$16 sps:$4 sm:$0xff]   ;;  %v12212_v14 = vld [vmem:[#allocation12 + $0x4e0] ss:$16 sps:$4 sm:$0xff]  }
 0x404   : > { %3874 = vmatprep.subr.bf16.mxu1 %v12160_v17  ;;  %4132 = vmatprep.subr.bf16.mxu0 %v12163_v18  ;;  %v12223_v17 = vld [vmem:[#allocation12 + $0x50c] ss:$16 sps:$4 sm:$0xff]   ;;  %v12218_v18 = vld [vmem:[#allocation12 + $0x500] ss:$16 sps:$4 sm:$0xff]  }
 0x407   : > { %3875 = vmatpush1.bf16.msra.mxu1 %v12158_v20  ;;  %4133 = vmatpush1.bf16.msra.mxu0 %v12161_v21  ;;  %v12226_v20 = vld [vmem:[#allocation12 + $0x524] ss:$16 sps:$4 sm:$0xff]   ;;  %v12229_v21 = vld [vmem:[#allocation12 + $0x52c] ss:$16 sps:$4 sm:$0xff]  }
 0x408   : > { %3876 = vmatprep.subr.bf16.mxu1 %v12166_v22  ;;  %4134 = vmatprep.subr.bf16.mxu0 %v12169_v23  ;;  %v12224_v22 = vld [vmem:[#allocation12 + $0x520] ss:$16 sps:$4 sm:$0xff]   ;;  %v12227_v23 = vld [vmem:[#allocation12 + $0x528] ss:$16 sps:$4 sm:$0xff]  }
 0x40b   : > { %3877 = vmatpush1.bf16.msra.mxu1 %v12164_v26  ;;  %4135 = vmatpush1.bf16.msra.mxu0 %v12167_v27  ;;  %v12230_v26 = vld [vmem:[#allocation12 + $0x540] ss:$16 sps:$4 sm:$0xff]   ;;  %v12233_v27 = vld [vmem:[#allocation12 + $0x548] ss:$16 sps:$4 sm:$0xff]  }
 0x40c   : > { %3889 = vmatprep.subr.bf16.mxu1 %v12172_v28  ;;  %4147 = vmatprep.subr.bf16.mxu0 %v12175_v29  ;;  %v12238_v28 = vld [vmem:[#allocation12 + $0x564] ss:$16 sps:$4 sm:$0xff]   ;;  %v12241_v29 = vld [vmem:[#allocation12 + $0x56c] ss:$16 sps:$4 sm:$0xff]  }
 0x40e   : > { %3879 = vmatmul.mubr.bf16.vlgmr.msra.gmra.mrb[4].mxu1 %v1365_v35  ;;  %4137 = vmatmul.mubr.bf16.vlgmr.msra.gmra.mrb[8].mxu0 %v1365_v35  ;;  %v12245_v35 = vld [vmem:[#allocation12 + $0x588] ss:$16 sps:$4 sm:$0xff]  }
 0x40f   : > { %3890 = vmatpush1.bf16.msra.mxu1 %v12170_v34  ;;  %3921 = vmatprep.mubr.bf16.mxu1 %v1423_v40  ;;  %v12242_v34 = vld [vmem:[#allocation12 + $0x580] ss:$16 sps:$4 sm:$0xff]  }
 0x410   : > { %4148 = vmatpush1.bf16.msra.mxu0 %v12173_v36  ;;  %4179 = vmatprep.mubr.bf16.mxu0 %v1423_v40  ;;  %v12250_v36 = vld [vmem:[#allocation12 + $0x5a4] ss:$16 sps:$4 sm:$0xff]   ;;  %v1371_v40 = vld [vmem:[#allocation2 + $0x40] sm:$0x1] }
 0x411   : > { %3891 = vmatprep.subr.bf16.mxu1 %v12178_v38  ;;  %4149 = vmatprep.subr.bf16.mxu0 %v12181_v39  ;;  %v12253_v38 = vld [vmem:[#allocation12 + $0x5ac] ss:$16 sps:$4 sm:$0xff]  }
 0x412   : > { %v1370_v39 = vld [vmem:[#allocation2 + $0x18] sm:$0xfe] }
 0x413   : > { %3892 = vmatpush1.bf16.msra.mxu1 %v12176_v41  ;;  %v12248_v41 = vld [vmem:[#allocation12 + $0x5a0] ss:$16 sps:$4 sm:$0xff]  }
 0x414   : > { %4150 = vmatpush1.bf16.msra.mxu0 %v12179_v43  ;;  %3893 = vmatprep.subr.bf16.mxu1 %v12184_v44  ;;  %v1375_v43 = vpack.c.bf16 %v14315_v1, %v1367_v37  ;;  %v12251_v44 = vld [vmem:[#allocation12 + $0x5a8] ss:$16 sps:$4 sm:$0xff]   ;;  %v12265_v1 = vld [vmem:[#allocation12 + $0x5ec] ss:$16 sps:$4 sm:$0xff]   ;;  %v12298_v37 = vld [vmem:[#allocation12 + $0x6a4] ss:$16 sps:$4 sm:$0xff]  }
 0x415   : > { %4151 = vmatprep.subr.bf16.mxu0 %v12187_v45  ;;  %v12256_v45 = vld [vmem:[#allocation12 + $0x5c4] ss:$16 sps:$4 sm:$0xff]  }
 0x417   : > { %3894 = vmatpush1.bf16.msra.mxu1 %v12182_v46  ;;  %v1374_v46 = vld [vmem:[#allocation2 + $0x58] sm:$0x1] }
 0x418   : > { %4152 = vmatpush1.bf16.msra.mxu0 %v12185_v47  ;;  %3895 = vmatprep.subr.bf16.mxu1 %v12190_v48  ;;  %v1378_v47 = vpack.c.bf16 %v14326_v4, %v1370_v39  ;;  %v12259_v48 = vld [vmem:[#allocation12 + $0x5cc] ss:$16 sps:$4 sm:$0xff]   ;;  %v12263_v4 = vld [vmem:[#allocation12 + $0x5e8] ss:$16 sps:$4 sm:$0xff]   ;;  %v12296_v39 = vld [vmem:[#allocation12 + $0x6a0] ss:$16 sps:$4 sm:$0xff]  }
 0x419   : > { %4153 = vmatprep.subr.bf16.mxu0 %v12193_v51  ;;  %v1379_v51 = vpack.c.bf16 %v1371_v40, %v1371_v40  ;;  %v12299_v40 = vld [vmem:[#allocation12 + $0x6a8] ss:$16 sps:$4 sm:$0xff]  }
 0x41b   : > { %3896 = vmatpush1.bf16.msra.mxu1 %v12188_v52  ;;  %v12254_v52 = vld [vmem:[#allocation12 + $0x5c0] ss:$16 sps:$4 sm:$0xff]  }
 0x41c   : > { %4154 = vmatpush1.bf16.msra.mxu0 %v12191_v55  ;;  %3897 = vmatprep.subr.bf16.mxu1 %v12196_v56  ;;  %v1403_v55 = vshll.u32 %v1375_v43, 16  ;;  %v1382_v56 = vpack.c.bf16 %v1374_v46, %v1374_v46  ;;  %v12310_v46 = vld [vmem:[#allocation12 + $0x6e4] ss:$16 sps:$4 sm:$0xff]  }
 0x41d   : > { %4155 = vmatprep.subr.bf16.mxu0 %v12199_v59  ;;  %v12257_v59 = vld [vmem:[#allocation12 + $0x5c8] ss:$16 sps:$4 sm:$0xff]  }
 0x41f   : > { %3898 = vmatpush1.bf16.msra.mxu1 %v12194_v60  ;;  %v12262_v60 = vld [vmem:[#allocation12 + $0x5e4] ss:$16 sps:$4 sm:$0xff]  }
 0x420   : > { %4156 = vmatpush1.bf16.msra.mxu0 %v12197_v63  ;;  %3899 = vmatprep.subr.bf16.mxu1 %v12202_v0  ;;  %v1408_v63 = vshll.u32 %v1379_v51, 16  ;;  %v1439_v0 = vshll.u32 %v1378_v47, 16  ;;  %v12311_v51 = vld [vmem:[#allocation12 + $0x6e8] ss:$16 sps:$4 sm:$0xff]  }
 0x421   : > { %4157 = vmatprep.subr.bf16.mxu0 %v12205_v5  ;;  %v12260_v5 = vld [vmem:[#allocation12 + $0x5e0] ss:$16 sps:$4 sm:$0xff]  }
 0x423   : > { %3900 = vmatpush1.bf16.msra.mxu1 %v12200_v6  ;;  %v1405_v6 = vrot.slane %v1403_v55, 1  ;;  %v12319_v55 = vld [vmem:[#allocation12 + $0x70c] ss:$16 sps:$4 sm:$0xff]  }
 0x424   : > { %4158 = vmatpush1.bf16.msra.mxu0 %v12203_v7  ;;  %3901 = vmatprep.subr.bf16.mxu1 %v12208_v8  ;;  %v1444_v7 = vshll.u32 %v1382_v56, 16  ;;  %v12268_v8 = vld [vmem:[#allocation12 + $0x604] ss:$16 sps:$4 sm:$0xff]   ;;  %v12314_v56 = vld [vmem:[#allocation12 + $0x700] ss:$16 sps:$4 sm:$0xff]  }
 0x425   : > { %4159 = vmatprep.subr.bf16.mxu0 %v12211_v9  ;;  %v1401_v9 = vshrl.u32 %v1375_v43, 16  ;;  %v12307_v43 = vld [vmem:[#allocation12 + $0x6cc] ss:$16 sps:$4 sm:$0xff]  }
 0x427   : > { %3902 = vmatpush1.bf16.msra.mxu1 %v12206_v10  ;;  %v1410_v10 = vrot.slane %v1408_v63, 1  ;;  %v12320_v63 = vld [vmem:[#allocation12 + $0x720] ss:$16 sps:$4 sm:$0xff]  }
 0x428   : > { %4160 = vmatpush1.bf16.msra.mxu0 %v12209_v11  ;;  %3903 = vmatprep.subr.bf16.mxu1 %v12214_v12  ;;  %v12271_v11 = vld [vmem:[#allocation12 + $0x60c] ss:$16 sps:$4 sm:$0xff]   ;;  %v1441_v12 = vrot.slane %v1439_v0, 1  ;;  %v12323_v0 = vld [vmem:[#allocation12 + $0x728] ss:$16 sps:$4 sm:$0xff]  }
 0x429   : > { %4161 = vmatprep.subr.bf16.mxu0 %v12217_v13  ;;  %v1406_v13 = vor.u32 %v1405_v6, %v1401_v9  ;;  %v12331_v6 = vld [vmem:[#allocation12 + $0x74c] ss:$16 sps:$4 sm:$0xff]  }
 0x42a   : > { %v12337_v9 = vld [vmem:[#allocation12 + $0x76c] ss:$16 sps:$4 sm:$0xff]  }
 0x42b   : > { %3904 = vmatpush1.bf16.msra.mxu1 %v12212_v14  ;;  %v12266_v14 = vld [vmem:[#allocation12 + $0x600] ss:$16 sps:$4 sm:$0xff]  }
 0x42c   : > { %4162 = vmatpush1.bf16.msra.mxu0 %v12215_v15  ;;  %3905 = vmatprep.subr.bf16.mxu1 %v12220_v16  ;;  %v1437_v15 = vshrl.u32 %v1378_v47, 16  ;;  %v1446_v16 = vrot.slane %v1444_v7, 1  ;;  %v12313_v47 = vld [vmem:[#allocation12 + $0x6ec] ss:$16 sps:$4 sm:$0xff]   ;;  %v12326_v7 = vld [vmem:[#allocation12 + $0x740] ss:$16 sps:$4 sm:$0xff]  }
 0x42d   : > { %4163 = vmatprep.subr.bf16.mxu0 %v12223_v17  ;;  %v12269_v17 = vld [vmem:[#allocation12 + $0x608] ss:$16 sps:$4 sm:$0xff]  }
 0x42f   : > { %3906 = vmatpush1.bf16.msra.mxu1 %v12218_v18  ;;  %v1411_v18 = vsel %vm1399_vm3, %v1406_v13, %v1410_v10  ;;  %v12332_v10 = vld [vmem:[#allocation12 + $0x760] ss:$16 sps:$4 sm:$0xff]   ;;  %v12343_v13 = vld [vmem:[#allocation12 + $0x78c] ss:$16 sps:$4 sm:$0xff]  }
 0x430   : > { %4164 = vmatpush1.bf16.msra.mxu0 %v12221_v19  ;;  %3907 = vmatprep.subr.bf16.mxu1 %v12226_v20  ;;  %v1442_v19 = vor.u32 %v1441_v12, %v1437_v15  ;;  %v12274_v20 = vld [vmem:[#allocation12 + $0x624] ss:$16 sps:$4 sm:$0xff]   ;;  %v12341_v15 = vld [vmem:[#allocation12 + $0x788] ss:$16 sps:$4 sm:$0xff]  }
 0x431   : > { %4165 = vmatprep.subr.bf16.mxu0 %v12229_v21  ;;  %v12277_v21 = vld [vmem:[#allocation12 + $0x62c] ss:$16 sps:$4 sm:$0xff]   ;;  %v12340_v12 = vld [vmem:[#allocation12 + $0x784] ss:$16 sps:$4 sm:$0xff]  }
 0x433   : > { %3908 = vmatpush1.bf16.msra.mxu1 %v12224_v22  ;;  %v1447_v22 = vsel %vm1399_vm3, %v1442_v19, %v1446_v16  ;;  %v12346_v16 = vld [vmem:[#allocation12 + $0x7a4] ss:$16 sps:$4 sm:$0xff]   ;;  %v1373_v19 = vld [vmem:[#allocation2 + $0x50] sm:$0x1] }
 0x434   : > { %4166 = vmatpush1.bf16.msra.mxu0 %v12227_v23  ;;  %3909 = vmatprep.subr.bf16.mxu1 %v12232_v24  ;;  %v12272_v23 = vld [vmem:[#allocation12 + $0x620] ss:$16 sps:$4 sm:$0xff]   ;;  %v12275_v24 = vld [vmem:[#allocation12 + $0x628] ss:$16 sps:$4 sm:$0xff]  }
 0x435   : > { %4167 = vmatprep.subr.bf16.mxu0 %v12235_v25  ;;  %v12280_v25 = vld [vmem:[#allocation12 + $0x644] ss:$16 sps:$4 sm:$0xff]  }
 0x437   : > { %3910 = vmatpush1.bf16.msra.mxu1 %v12230_v26  ;;  %v12283_v26 = vld [vmem:[#allocation12 + $0x64c] ss:$16 sps:$4 sm:$0xff]  }
 0x438   : > { %4168 = vmatpush1.bf16.msra.mxu0 %v12233_v27  ;;  %3911 = vmatprep.subr.bf16.mxu1 %v12238_v28  ;;  %v12278_v27 = vld [vmem:[#allocation12 + $0x640] ss:$16 sps:$4 sm:$0xff]   ;;  %v12281_v28 = vld [vmem:[#allocation12 + $0x648] ss:$16 sps:$4 sm:$0xff]  }
 0x439   : > { %4169 = vmatprep.subr.bf16.mxu0 %v12241_v29  ;;  %v12286_v29 = vld [vmem:[#allocation12 + $0x664] ss:$16 sps:$4 sm:$0xff]  }
 0x43b   : > { %3912 = vmatpush1.bf16.msra.mxu1 %v12236_v30  ;;  %v12289_v30 = vld [vmem:[#allocation12 + $0x66c] ss:$16 sps:$4 sm:$0xff]  }
 0x43c   : > { %4170 = vmatpush1.bf16.msra.mxu0 %v12239_v31  ;;  %3913 = vmatprep.subr.bf16.mxu1 %v12244_v32  ;;  %v12284_v31 = vld [vmem:[#allocation12 + $0x660] ss:$16 sps:$4 sm:$0xff]   ;;  %v12287_v32 = vld [vmem:[#allocation12 + $0x668] ss:$16 sps:$4 sm:$0xff]  }
 0x43d   : > { %4171 = vmatprep.subr.bf16.mxu0 %v12247_v33  ;;  %v12292_v33 = vld [vmem:[#allocation12 + $0x684] ss:$16 sps:$4 sm:$0xff]  }
 0x43f   : > { %3914 = vmatpush1.bf16.msra.mxu1 %v12242_v34  ;;  %v12295_v34 = vld [vmem:[#allocation12 + $0x68c] ss:$16 sps:$4 sm:$0xff]  }
 0x440   : > { %4172 = vmatpush1.bf16.msra.mxu0 %v12245_v35  ;;  %3915 = vmatprep.subr.bf16.mxu1 %v12250_v36  ;;  %v12290_v35 = vld [vmem:[#allocation12 + $0x680] ss:$16 sps:$4 sm:$0xff]   ;;  %v12293_v36 = vld [vmem:[#allocation12 + $0x688] ss:$16 sps:$4 sm:$0xff]  }
 0x441   : > { %4173 = vmatprep.subr.bf16.mxu0 %v12253_v38  ;;  %v12301_v38 = vld [vmem:[#allocation12 + $0x6ac] ss:$16 sps:$4 sm:$0xff]  }
 0x443   : > { %3916 = vmatpush1.bf16.msra.mxu1 %v12248_v41  ;;  %v12304_v41 = vld [vmem:[#allocation12 + $0x6c4] ss:$16 sps:$4 sm:$0xff]  }
 0x444   : > { %4174 = vmatpush1.bf16.msra.mxu0 %v12251_v44  ;;  %3917 = vmatprep.subr.bf16.mxu1 %v12256_v45  ;;  %v12302_v44 = vld [vmem:[#allocation12 + $0x6c0] ss:$16 sps:$4 sm:$0xff]   ;;  %v12305_v45 = vld [vmem:[#allocation12 + $0x6c8] ss:$16 sps:$4 sm:$0xff]  }
 0x445   : > { %4175 = vmatprep.subr.bf16.mxu0 %v12259_v48  ;;  %v12308_v48 = vld [vmem:[#allocation12 + $0x6e0] ss:$16 sps:$4 sm:$0xff]  }
 0x447   : > { %3918 = vmatpush1.bf16.msra.mxu1 %v12254_v52  ;;  %v12316_v52 = vld [vmem:[#allocation12 + $0x704] ss:$16 sps:$4 sm:$0xff]  }
 0x448   : > { %4176 = vmatpush1.bf16.msra.mxu0 %v12257_v59  ;;  %3919 = vmatprep.subr.bf16.mxu1 %v12262_v60  ;;  %v12317_v59 = vld [vmem:[#allocation12 + $0x708] ss:$16 sps:$4 sm:$0xff]   ;;  %v12322_v60 = vld [vmem:[#allocation12 + $0x724] ss:$16 sps:$4 sm:$0xff]  }
 0x449   : > { %4177 = vmatprep.subr.bf16.mxu0 %v12265_v1  ;;  %v12325_v1 = vld [vmem:[#allocation12 + $0x72c] ss:$16 sps:$4 sm:$0xff]  }
 0x44b   : > { %3920 = vmatpush1.bf16.msra.mxu1 %v12260_v5  ;;  %v12328_v5 = vld [vmem:[#allocation12 + $0x744] ss:$16 sps:$4 sm:$0xff]  }
 0x44c   : > { %4178 = vmatpush1.bf16.msra.mxu0 %v12263_v4  ;;  %3932 = vmatprep.subr.bf16.mxu1 %v12268_v8  ;;  %v12329_v4 = vld [vmem:[#allocation12 + $0x748] ss:$16 sps:$4 sm:$0xff]   ;;  %v12334_v8 = vld [vmem:[#allocation12 + $0x764] ss:$16 sps:$4 sm:$0xff]  }
 0x44d   : > { %4190 = vmatprep.subr.bf16.mxu0 %v12271_v11  ;;  %v12335_v11 = vld [vmem:[#allocation12 + $0x768] ss:$16 sps:$4 sm:$0xff]  }
 0x44e   : > { %3922 = vmatmul.mubr.bf16.vlgmr.msra.gmra.mrb[4].mxu1 %v1411_v18 }
 0x44f   : > { %4180 = vmatmul.mubr.bf16.vlgmr.msra.gmra.mrb[8].mxu0 %v1411_v18  ;;  %3933 = vmatpush1.bf16.msra.mxu1 %v12266_v14  ;;  %v12338_v14 = vld [vmem:[#allocation12 + $0x780] ss:$16 sps:$4 sm:$0xff]   ;;  %v12349_v18 = vld [vmem:[#allocation12 + $0x7ac] ss:$16 sps:$4 sm:$0xff]  }
 0x450   : > { %3964 = vmatprep.mubr.bf16.mxu1 %v1447_v22  ;;  %4191 = vmatpush1.bf16.msra.mxu0 %v12269_v17  ;;  %v1369_v17 = vld [vmem:[#allocation2 + $0x10] sm:$0xfe] }
 0x451   : > { %4222 = vmatprep.mubr.bf16.mxu0 %v1447_v22  ;;  %3934 = vmatprep.subr.bf16.mxu1 %v12274_v20  ;;  %v12344_v20 = vld [vmem:[#allocation12 + $0x7a0] ss:$16 sps:$4 sm:$0xff]   ;;  %v12347_v22 = vld [vmem:[#allocation12 + $0x7a8] ss:$16 sps:$4 sm:$0xff]  }
 0x452   : > { %4192 = vmatprep.subr.bf16.mxu0 %v12277_v21  ;;  %v1377_v21 = vpack.c.bf16 %v14318_v2, %v1369_v17  ;;  %v12356_v2 = vld [vmem:[#allocation12 + $0x7e0] ss:$16 sps:$4 sm:$0xff]  }
 0x453   : > { %3935 = vmatpush1.bf16.msra.mxu1 %v12272_v23  ;;  %v12352_v23 = vld [vmem:[#allocation12 + $0x7c4] ss:$16 sps:$4 sm:$0xff]   ;;  %v12398_v17 = vld [vmem:[#allocation12 + $0x8c0] ss:$16 sps:$4 sm:$0xff]  }
 0x454   : > { %4193 = vmatpush1.bf16.msra.mxu0 %v12275_v24  ;;  %3936 = vmatprep.subr.bf16.mxu1 %v12280_v25  ;;  %v12355_v24 = vld [vmem:[#allocation12 + $0x7cc] ss:$16 sps:$4 sm:$0xff]   ;;  %v1381_v25 = vpack.c.bf16 %v1373_v19, %v1373_v19  ;;  %v12406_v19 = vld [vmem:[#allocation12 + $0x8e4] ss:$16 sps:$4 sm:$0xff]  }
 0x455   : > { %4194 = vmatprep.subr.bf16.mxu0 %v12283_v26  ;;  %v12350_v26 = vld [vmem:[#allocation12 + $0x7c0] ss:$16 sps:$4 sm:$0xff]  }
 0x457   : > { %3937 = vmatpush1.bf16.msra.mxu1 %v12278_v27  ;;  %v1427_v27 = vshll.u32 %v1377_v21, 16 }
 0x458   : > { %4195 = vmatpush1.bf16.msra.mxu0 %v12281_v28  ;;  %3938 = vmatprep.subr.bf16.mxu1 %v12286_v29  ;;  %v12353_v28 = vld [vmem:[#allocation12 + $0x7c8] ss:$16 sps:$4 sm:$0xff]   ;;  %v12358_v29 = vld [vmem:[#allocation12 + $0x7e4] ss:$16 sps:$4 sm:$0xff]  }
 0x459   : > { %4196 = vmatprep.subr.bf16.mxu0 %v12289_v30  ;;  %v1388_v30 = vld [vmem:[#allocation2 + $0x48] sm:$0x3] }
 0x45b   : > { %3939 = vmatpush1.bf16.msra.mxu1 %v12284_v31  ;;  %v12361_v31 = vld [vmem:[#allocation12 + $0x7ec] ss:$16 sps:$4 sm:$0xff]  }
 0x45c   : > { %4197 = vmatpush1.bf16.msra.mxu0 %v12287_v32  ;;  %3940 = vmatprep.subr.bf16.mxu1 %v12292_v33  ;;  %v1432_v32 = vshll.u32 %v1381_v25, 16  ;;  %v1384_v33 = vld [vmem:[#allocation2 + $0x8] sm:$0xfc]  ;;  %v12410_v25 = vld [vmem:[#allocation12 + $0x900] ss:$16 sps:$4 sm:$0xff]  }
 0x45d   : > { %4198 = vmatprep.subr.bf16.mxu0 %v12295_v34  ;;  %v1429_v34 = vrot.slane %v1427_v27, 1  ;;  %v12418_v27 = vld [vmem:[#allocation12 + $0x924] ss:$16 sps:$4 sm:$0xff]  }
 0x45f   : > { %3941 = vmatpush1.bf16.msra.mxu1 %v12290_v35  ;;  %v1396_v35 = vpack.c.bf16 %v1388_v30, %v1388_v30  ;;  %v12419_v30 = vld [vmem:[#allocation12 + $0x928] ss:$16 sps:$4 sm:$0xff]  }
 0x460   : > { %4199 = vmatpush1.bf16.msra.mxu0 %v12293_v36  ;;  %3942 = vmatprep.subr.bf16.mxu1 %v12298_v37  ;;  %v12359_v36 = vld [vmem:[#allocation12 + $0x7e8] ss:$16 sps:$4 sm:$0xff]   ;;  %v12364_v37 = vld [vmem:[#allocation12 + $0x804] ss:$16 sps:$4 sm:$0xff]  }
 0x461   : > { %4200 = vmatprep.subr.bf16.mxu0 %v12301_v38  ;;  %v1425_v38 = vshrl.u32 %v1377_v21, 16  ;;  %v12404_v21 = vld [vmem:[#allocation12 + $0x8e0] ss:$16 sps:$4 sm:$0xff]  }
 0x463   : > { %3943 = vmatpush1.bf16.msra.mxu1 %v12296_v39  ;;  %v1434_v39 = vrot.slane %v1432_v32, 1  ;;  %v12427_v32 = vld [vmem:[#allocation12 + $0x94c] ss:$16 sps:$4 sm:$0xff]  }
 0x464   : > { %4201 = vmatpush1.bf16.msra.mxu0 %v12299_v40  ;;  %3944 = vmatprep.subr.bf16.mxu1 %v12304_v41  ;;  %v12367_v40 = vld [vmem:[#allocation12 + $0x80c] ss:$16 sps:$4 sm:$0xff]   ;;  %v1392_v41 = vpack.c.bf16 %v14323_v3, %v1384_v33  ;;  %v12368_v3 = vld [vmem:[#allocation12 + $0x820] ss:$16 sps:$4 sm:$0xff]  }
 0x465   : > { %4202 = vmatprep.subr.bf16.mxu0 %v12307_v43  ;;  %v1430_v43 = vor.u32 %v1429_v34, %v1425_v38  ;;  %v12422_v33 = vld [vmem:[#allocation12 + $0x940] ss:$16 sps:$4 sm:$0xff]   ;;  %v12430_v34 = vld [vmem:[#allocation12 + $0x964] ss:$16 sps:$4 sm:$0xff]  }
 0x466   : > { %v12436_v38 = vld [vmem:[#allocation12 + $0x984] ss:$16 sps:$4 sm:$0xff]  }
 0x467   : > { %3945 = vmatpush1.bf16.msra.mxu1 %v12302_v44  ;;  %v12362_v44 = vld [vmem:[#allocation12 + $0x800] ss:$16 sps:$4 sm:$0xff]  }
 0x468   : > { %4203 = vmatpush1.bf16.msra.mxu0 %v12305_v45  ;;  %3946 = vmatprep.subr.bf16.mxu1 %v12310_v46  ;;  %v1465_v45 = vrot.slane %v1396_v35, 1  ;;  %v12365_v46 = vld [vmem:[#allocation12 + $0x808] ss:$16 sps:$4 sm:$0xff]   ;;  %v12433_v35 = vld [vmem:[#allocation12 + $0x96c] ss:$16 sps:$4 sm:$0xff]  }
 0x469   : > { %4204 = vmatprep.subr.bf16.mxu0 %v12313_v47  ;;  %v1435_v47 = vsel %vm1399_vm3, %v1430_v43, %v1434_v39  ;;  %v12439_v39 = vld [vmem:[#allocation12 + $0x98c] ss:$16 sps:$4 sm:$0xff]   ;;  %v12442_v43 = vld [vmem:[#allocation12 + $0x9a4] ss:$16 sps:$4 sm:$0xff]  }
 0x46b   : > { %3947 = vmatpush1.bf16.msra.mxu1 %v12308_v48  ;;  %v1464_v48 = vrot.slane %v1392_v41, 1  ;;  %v12437_v41 = vld [vmem:[#allocation12 + $0x988] ss:$16 sps:$4 sm:$0xff]  }
 0x46c   : > { %4205 = vmatpush1.bf16.msra.mxu0 %v12311_v51  ;;  %3948 = vmatprep.subr.bf16.mxu1 %v12316_v52  ;;  %v12370_v51 = vld [vmem:[#allocation12 + $0x824] ss:$16 sps:$4 sm:$0xff]   ;;  %v12373_v52 = vld [vmem:[#allocation12 + $0x82c] ss:$16 sps:$4 sm:$0xff]  }
 0x46d   : > { %4206 = vmatprep.subr.bf16.mxu0 %v12319_v55  ;;  %v1466_v55 = vsel %vm1460_vm4, %v1464_v48, %v1465_v45  ;;  %v12440_v45 = vld [vmem:[#allocation12 + $0x9a0] ss:$16 sps:$4 sm:$0xff]   ;;  %v12451_v48 = vld [vmem:[#allocation12 + $0x9cc] ss:$16 sps:$4 sm:$0xff]  }
 0x46f   : > { %3949 = vmatpush1.bf16.msra.mxu1 %v12314_v56  ;;  %v12371_v56 = vld [vmem:[#allocation12 + $0x828] ss:$16 sps:$4 sm:$0xff]  }
 0x470   : > { %4207 = vmatpush1.bf16.msra.mxu0 %v12317_v59  ;;  %3950 = vmatprep.subr.bf16.mxu1 %v12322_v60  ;;  %v12376_v59 = vld [vmem:[#allocation12 + $0x844] ss:$16 sps:$4 sm:$0xff]   ;;  %v12379_v60 = vld [vmem:[#allocation12 + $0x84c] ss:$16 sps:$4 sm:$0xff]  }
 0x471   : > { %4208 = vmatprep.subr.bf16.mxu0 %v12325_v1  ;;  %v12374_v1 = vld [vmem:[#allocation12 + $0x840] ss:$16 sps:$4 sm:$0xff]  }
 0x473   : > { %3951 = vmatpush1.bf16.msra.mxu1 %v12320_v63  ;;  %v12377_v63 = vld [vmem:[#allocation12 + $0x848] ss:$16 sps:$4 sm:$0xff]  }
 0x474   : > { %4209 = vmatpush1.bf16.msra.mxu0 %v12323_v0  ;;  %3952 = vmatprep.subr.bf16.mxu1 %v12328_v5  ;;  %v12382_v0 = vld [vmem:[#allocation12 + $0x864] ss:$16 sps:$4 sm:$0xff]   ;;  %v12385_v5 = vld [vmem:[#allocation12 + $0x86c] ss:$16 sps:$4 sm:$0xff]  }
 0x475   : > { %4210 = vmatprep.subr.bf16.mxu0 %v12331_v6  ;;  %v12380_v6 = vld [vmem:[#allocation12 + $0x860] ss:$16 sps:$4 sm:$0xff]  }
 0x477   : > { %3953 = vmatpush1.bf16.msra.mxu1 %v12326_v7  ;;  %v12383_v7 = vld [vmem:[#allocation12 + $0x868] ss:$16 sps:$4 sm:$0xff]  }
 0x478   : > { %4211 = vmatpush1.bf16.msra.mxu0 %v12329_v4  ;;  %3954 = vmatprep.subr.bf16.mxu1 %v12334_v8  ;;  %v12388_v4 = vld [vmem:[#allocation12 + $0x884] ss:$16 sps:$4 sm:$0xff]   ;;  %v12391_v8 = vld [vmem:[#allocation12 + $0x88c] ss:$16 sps:$4 sm:$0xff]  }
 0x479   : > { %4212 = vmatprep.subr.bf16.mxu0 %v12337_v9  ;;  %v12386_v9 = vld [vmem:[#allocation12 + $0x880] ss:$16 sps:$4 sm:$0xff]  }
 0x47b   : > { %3955 = vmatpush1.bf16.msra.mxu1 %v12332_v10  ;;  %v12389_v10 = vld [vmem:[#allocation12 + $0x888] ss:$16 sps:$4 sm:$0xff]  }
 0x47c   : > { %4213 = vmatpush1.bf16.msra.mxu0 %v12335_v11  ;;  %3956 = vmatprep.subr.bf16.mxu1 %v12340_v12  ;;  %v12394_v11 = vld [vmem:[#allocation12 + $0x8a4] ss:$16 sps:$4 sm:$0xff]   ;;  %v12397_v12 = vld [vmem:[#allocation12 + $0x8ac] ss:$16 sps:$4 sm:$0xff]  }
 0x47d   : > { %4214 = vmatprep.subr.bf16.mxu0 %v12343_v13  ;;  %v12392_v13 = vld [vmem:[#allocation12 + $0x8a0] ss:$16 sps:$4 sm:$0xff]  }
 0x47f   : > { %3957 = vmatpush1.bf16.msra.mxu1 %v12338_v14  ;;  %v12395_v14 = vld [vmem:[#allocation12 + $0x8a8] ss:$16 sps:$4 sm:$0xff]  }
 0x480   : > { %4215 = vmatpush1.bf16.msra.mxu0 %v12341_v15  ;;  %3958 = vmatprep.subr.bf16.mxu1 %v12346_v16  ;;  %v12400_v15 = vld [vmem:[#allocation12 + $0x8c4] ss:$16 sps:$4 sm:$0xff]   ;;  %v12403_v16 = vld [vmem:[#allocation12 + $0x8cc] ss:$16 sps:$4 sm:$0xff]  }
 0x481   : > { %4216 = vmatprep.subr.bf16.mxu0 %v12349_v18  ;;  %v12401_v18 = vld [vmem:[#allocation12 + $0x8c8] ss:$16 sps:$4 sm:$0xff]  }
 0x483   : > { %3959 = vmatpush1.bf16.msra.mxu1 %v12344_v20  ;;  %v12409_v20 = vld [vmem:[#allocation12 + $0x8ec] ss:$16 sps:$4 sm:$0xff]  }
 0x484   : > { %4217 = vmatpush1.bf16.msra.mxu0 %v12347_v22  ;;  %3960 = vmatprep.subr.bf16.mxu1 %v12352_v23  ;;  %v12407_v22 = vld [vmem:[#allocation12 + $0x8e8] ss:$16 sps:$4 sm:$0xff]   ;;  %v12412_v23 = vld [vmem:[#allocation12 + $0x904] ss:$16 sps:$4 sm:$0xff]  }
 0x485   : > { %4218 = vmatprep.subr.bf16.mxu0 %v12355_v24  ;;  %v12415_v24 = vld [vmem:[#allocation12 + $0x90c] ss:$16 sps:$4 sm:$0xff]  }
 0x487   : > { %3961 = vmatpush1.bf16.msra.mxu1 %v12350_v26  ;;  %v12413_v26 = vld [vmem:[#allocation12 + $0x908] ss:$16 sps:$4 sm:$0xff]  }
 0x488   : > { %4219 = vmatpush1.bf16.msra.mxu0 %v12353_v28  ;;  %3962 = vmatprep.subr.bf16.mxu1 %v12358_v29  ;;  %v12421_v28 = vld [vmem:[#allocation12 + $0x92c] ss:$16 sps:$4 sm:$0xff]   ;;  %v12416_v29 = vld [vmem:[#allocation12 + $0x920] ss:$16 sps:$4 sm:$0xff]  }
 0x489   : > { %4220 = vmatprep.subr.bf16.mxu0 %v12361_v31  ;;  %v12424_v31 = vld [vmem:[#allocation12 + $0x944] ss:$16 sps:$4 sm:$0xff]  }
 0x48b   : > { %3963 = vmatpush1.bf16.msra.mxu1 %v12356_v2  ;;  %v12425_v2 = vld [vmem:[#allocation12 + $0x948] ss:$16 sps:$4 sm:$0xff]  }
 0x48c   : > { %4221 = vmatpush1.bf16.msra.mxu0 %v12359_v36  ;;  %3975 = vmatprep.subr.bf16.mxu1 %v12364_v37  ;;  %v12428_v36 = vld [vmem:[#allocation12 + $0x960] ss:$16 sps:$4 sm:$0xff]   ;;  %v12431_v37 = vld [vmem:[#allocation12 + $0x968] ss:$16 sps:$4 sm:$0xff]  }
 0x48d   : > { %4233 = vmatprep.subr.bf16.mxu0 %v12367_v40  ;;  %v12434_v40 = vld [vmem:[#allocation12 + $0x980] ss:$16 sps:$4 sm:$0xff]  }
 0x48e   : > { %3965 = vmatmul.mubr.bf16.vlgmr.msra.gmra.mrb[4].mxu1 %v1435_v47 }
 0x48f   : > { %4223 = vmatmul.mubr.bf16.vlgmr.msra.gmra.mrb[8].mxu0 %v1435_v47  ;;  %3976 = vmatpush1.bf16.msra.mxu1 %v12362_v44  ;;  %v12445_v44 = vld [vmem:[#allocation12 + $0x9ac] ss:$16 sps:$4 sm:$0xff]   ;;  %v12448_v47 = vld [vmem:[#allocation12 + $0x9c4] ss:$16 sps:$4 sm:$0xff]  }
 0x490   : > { %4007 = vmatprep.mubr.bf16.mxu1 %v1466_v55  ;;  %4234 = vmatpush1.bf16.msra.mxu0 %v12365_v46  ;;  %v12443_v46 = vld [vmem:[#allocation12 + $0x9a8] ss:$16 sps:$4 sm:$0xff]  }
 0x491   : > { %4265 = vmatprep.mubr.bf16.mxu0 %v1466_v55  ;;  %3977 = vmatprep.subr.bf16.mxu1 %v12370_v51  ;;  %v1387_v51 = vld [vmem:[#allocation2 + $0x40] sm:$0x3]  ;;  %v1383_v55 = vld [vmem:[#allocation2] sm:$0xfc] }
 0x492   : > { %4235 = vmatprep.subr.bf16.mxu0 %v12373_v52  ;;  %v12446_v52 = vld [vmem:[#allocation12 + $0x9c0] ss:$16 sps:$4 sm:$0xff]  }
 0x493   : > { %3978 = vmatpush1.bf16.msra.mxu1 %v12368_v3  ;;  %v12449_v3 = vld [vmem:[#allocation12 + $0x9c8] ss:$16 sps:$4 sm:$0xff]  }
 0x494   : > { %4236 = vmatpush1.bf16.msra.mxu0 %v12371_v56  ;;  %3979 = vmatprep.subr.bf16.mxu1 %v12376_v59  ;;  %v12454_v56 = vld [vmem:[#allocation12 + $0x9e4] ss:$16 sps:$4 sm:$0xff]   ;;  %v1390_v59 = vld [vmem:[#allocation2 + $0x58] sm:$0x3] }
 0x495   : > { %4237 = vmatprep.subr.bf16.mxu0 %v12379_v60  ;;  %v12457_v60 = vld [vmem:[#allocation12 + $0x9ec] ss:$16 sps:$4 sm:$0xff]  }
 0x497   : > { %3980 = vmatpush1.bf16.msra.mxu1 %v12374_v1  ;;  %v1395_v1 = vpack.c.bf16 %v1387_v51, %v1387_v51  ;;  %v12511_v51 = vld [vmem:[#allocation12 + $0xb0c] ss:$16 sps:$4 sm:$0xff]  }
 0x498   : > { %4238 = vmatpush1.bf16.msra.mxu0 %v12377_v63  ;;  %3981 = vmatprep.subr.bf16.mxu1 %v12382_v0  ;;  %v1386_v63 = vld [vmem:[#allocation2 + $0x18] sm:$0xfc]  ;;  %v12452_v0 = vld [vmem:[#allocation12 + $0x9e0] ss:$16 sps:$4 sm:$0xff]  }
 0x499   : > { %4239 = vmatprep.subr.bf16.mxu0 %v12385_v5  ;;  %v13178_v5 = vld [vmem:[#allocation2 + $0x20] sm:$0xff] }
 0x49b   : > { %3982 = vmatpush1.bf16.msra.mxu1 %v12380_v6  ;;  %v1391_v6 = vpack.c.bf16 %v13178_v5, %v1383_v55  ;;  %v12509_v55 = vld [vmem:[#allocation12 + $0xb08] ss:$16 sps:$4 sm:$0xff]  }
 0x49c   : > { %4240 = vmatpush1.bf16.msra.mxu0 %v12383_v7  ;;  %3983 = vmatprep.subr.bf16.mxu1 %v12388_v4  ;;  %v1398_v7 = vpack.c.bf16 %v1390_v59, %v1390_v59  ;;  %v12455_v4 = vld [vmem:[#allocation12 + $0x9e8] ss:$16 sps:$4 sm:$0xff]   ;;  %v12512_v59 = vld [vmem:[#allocation12 + $0xb20] ss:$16 sps:$4 sm:$0xff]  }
 0x49d   : > { %4241 = vmatprep.subr.bf16.mxu0 %v12391_v8  ;;  %v12460_v8 = vld [vmem:[#allocation12 + $0xa04] ss:$16 sps:$4 sm:$0xff]   ;;  %v12521_v5 = vld [vmem:[#allocation12 + $0xb48] ss:$16 sps:$4 sm:$0xff]  }
 0x49f   : > { %3984 = vmatpush1.bf16.msra.mxu1 %v12386_v9  ;;  %v1462_v9 = vrot.slane %v1395_v1, 1  ;;  %v12520_v1 = vld [vmem:[#allocation12 + $0xb44] ss:$16 sps:$4 sm:$0xff]  }
 0x4a0   : > { %4242 = vmatpush1.bf16.msra.mxu0 %v12389_v10  ;;  %3985 = vmatprep.subr.bf16.mxu1 %v12394_v11  ;;  %v12463_v10 = vld [vmem:[#allocation12 + $0xa0c] ss:$16 sps:$4 sm:$0xff]  }
 0x4a1   : > { %4243 = vmatprep.subr.bf16.mxu0 %v12397_v12  ;;  %v13179_v11 = vld [vmem:[#allocation2 + $0x38] sm:$0xff] }
 0x4a2   : > { %v1394_v12 = vpack.c.bf16 %v13179_v11, %v1386_v63  ;;  %v12523_v63 = vld [vmem:[#allocation12 + $0xb4c] ss:$16 sps:$4 sm:$0xff]   ;;  %v12530_v11 = vld [vmem:[#allocation12 + $0xb80] ss:$16 sps:$4 sm:$0xff]  }
 0x4a3   : > { %3986 = vmatpush1.bf16.msra.mxu1 %v12392_v13  ;;  %v1461_v13 = vrot.slane %v1391_v6, 1  ;;  %v12526_v6 = vld [vmem:[#allocation12 + $0xb64] ss:$16 sps:$4 sm:$0xff]  }
 0x4a4   : > { %4244 = vmatpush1.bf16.msra.mxu0 %v12395_v14  ;;  %3987 = vmatprep.subr.bf16.mxu1 %v12400_v15  ;;  %v12458_v14 = vld [vmem:[#allocation12 + $0xa00] ss:$16 sps:$4 sm:$0xff]   ;;  %v1471_v15 = vrot.slane %v1398_v7, 1  ;;  %v12529_v7 = vld [vmem:[#allocation12 + $0xb6c] ss:$16 sps:$4 sm:$0xff]  }
 0x4a5   : > { %4245 = vmatprep.subr.bf16.mxu0 %v12403_v16  ;;  %v12461_v16 = vld [vmem:[#allocation12 + $0xa08] ss:$16 sps:$4 sm:$0xff]  }
 0x4a7   : > { %3988 = vmatpush1.bf16.msra.mxu1 %v12398_v17  ;;  %v1463_v17 = vsel %vm1460_vm4, %v1461_v13, %v1462_v9  ;;  %v12532_v9 = vld [vmem:[#allocation12 + $0xb84] ss:$16 sps:$4 sm:$0xff]  }
 0x4a8   : > { %4246 = vmatpush1.bf16.msra.mxu0 %v12401_v18  ;;  %3989 = vmatprep.subr.bf16.mxu1 %v12406_v19  ;;  %v1470_v18 = vrot.slane %v1394_v12, 1  ;;  %v12466_v19 = vld [vmem:[#allocation12 + $0xa24] ss:$16 sps:$4 sm:$0xff]   ;;  %v12533_v12 = vld [vmem:[#allocation12 + $0xb88] ss:$16 sps:$4 sm:$0xff]  }
 0x4a9   : > { %4247 = vmatprep.subr.bf16.mxu0 %v12409_v20  ;;  %v12469_v20 = vld [vmem:[#allocation12 + $0xa2c] ss:$16 sps:$4 sm:$0xff]   ;;  %v12538_v13 = vld [vmem:[#allocation12 + $0xba4] ss:$16 sps:$4 sm:$0xff]  }
 0x4ab   : > { %3990 = vmatpush1.bf16.msra.mxu1 %v12404_v21  ;;  %v1472_v21 = vsel %vm1460_vm4, %v1470_v18, %v1471_v15  ;;  %v12536_v15 = vld [vmem:[#allocation12 + $0xba0] ss:$16 sps:$4 sm:$0xff]   ;;  %v12547_v18 = vld [vmem:[#allocation12 + $0xbcc] ss:$16 sps:$4 sm:$0xff]  }
 0x4ac   : > { %4248 = vmatpush1.bf16.msra.mxu0 %v12407_v22  ;;  %3991 = vmatprep.subr.bf16.mxu1 %v12412_v23  ;;  %v12464_v22 = vld [vmem:[#allocation12 + $0xa20] ss:$16 sps:$4 sm:$0xff]   ;;  %v12467_v23 = vld [vmem:[#allocation12 + $0xa28] ss:$16 sps:$4 sm:$0xff]  }
 0x4ad   : > { %4249 = vmatprep.subr.bf16.mxu0 %v12415_v24  ;;  %v12472_v24 = vld [vmem:[#allocation12 + $0xa44] ss:$16 sps:$4 sm:$0xff]  }
 0x4af   : > { %3992 = vmatpush1.bf16.msra.mxu1 %v12410_v25  ;;  %v12475_v25 = vld [vmem:[#allocation12 + $0xa4c] ss:$16 sps:$4 sm:$0xff]  }
 0x4b0   : > { %4250 = vmatpush1.bf16.msra.mxu0 %v12413_v26  ;;  %3993 = vmatprep.subr.bf16.mxu1 %v12418_v27  ;;  %v12470_v26 = vld [vmem:[#allocation12 + $0xa40] ss:$16 sps:$4 sm:$0xff]   ;;  %v12473_v27 = vld [vmem:[#allocation12 + $0xa48] ss:$16 sps:$4 sm:$0xff]  }
 0x4b1   : > { %4251 = vmatprep.subr.bf16.mxu0 %v12421_v28  ;;  %v12478_v28 = vld [vmem:[#allocation12 + $0xa64] ss:$16 sps:$4 sm:$0xff]  }
 0x4b3   : > { %3994 = vmatpush1.bf16.msra.mxu1 %v12416_v29  ;;  %v12481_v29 = vld [vmem:[#allocation12 + $0xa6c] ss:$16 sps:$4 sm:$0xff]  }
 0x4b4   : > { %4252 = vmatpush1.bf16.msra.mxu0 %v12419_v30  ;;  %3995 = vmatprep.subr.bf16.mxu1 %v12424_v31  ;;  %v12476_v30 = vld [vmem:[#allocation12 + $0xa60] ss:$16 sps:$4 sm:$0xff]   ;;  %v12479_v31 = vld [vmem:[#allocation12 + $0xa68] ss:$16 sps:$4 sm:$0xff]  }
 0x4b5   : > { %4253 = vmatprep.subr.bf16.mxu0 %v12427_v32  ;;  %v12484_v32 = vld [vmem:[#allocation12 + $0xa84] ss:$16 sps:$4 sm:$0xff]  }
 0x4b7   : > { %3996 = vmatpush1.bf16.msra.mxu1 %v12422_v33  ;;  %v12487_v33 = vld [vmem:[#allocation12 + $0xa8c] ss:$16 sps:$4 sm:$0xff]  }
 0x4b8   : > { %4254 = vmatpush1.bf16.msra.mxu0 %v12425_v2  ;;  %3997 = vmatprep.subr.bf16.mxu1 %v12430_v34  ;;  %v12482_v2 = vld [vmem:[#allocation12 + $0xa80] ss:$16 sps:$4 sm:$0xff]   ;;  %v12485_v34 = vld [vmem:[#allocation12 + $0xa88] ss:$16 sps:$4 sm:$0xff]  }
 0x4b9   : > { %4255 = vmatprep.subr.bf16.mxu0 %v12433_v35  ;;  %v12490_v35 = vld [vmem:[#allocation12 + $0xaa4] ss:$16 sps:$4 sm:$0xff]  }
 0x4bb   : > { %3998 = vmatpush1.bf16.msra.mxu1 %v12428_v36  ;;  %v12493_v36 = vld [vmem:[#allocation12 + $0xaac] ss:$16 sps:$4 sm:$0xff]  }
 0x4bc   : > { %4256 = vmatpush1.bf16.msra.mxu0 %v12431_v37  ;;  %3999 = vmatprep.subr.bf16.mxu1 %v12436_v38  ;;  %v12488_v37 = vld [vmem:[#allocation12 + $0xaa0] ss:$16 sps:$4 sm:$0xff]   ;;  %v12491_v38 = vld [vmem:[#allocation12 + $0xaa8] ss:$16 sps:$4 sm:$0xff]  }
 0x4bd   : > { %4257 = vmatprep.subr.bf16.mxu0 %v12439_v39  ;;  %v12496_v39 = vld [vmem:[#allocation12 + $0xac4] ss:$16 sps:$4 sm:$0xff]  }
 0x4bf   : > { %4000 = vmatpush1.bf16.msra.mxu1 %v12434_v40  ;;  %v12499_v40 = vld [vmem:[#allocation12 + $0xacc] ss:$16 sps:$4 sm:$0xff]  }
 0x4c0   : > { %4258 = vmatpush1.bf16.msra.mxu0 %v12437_v41  ;;  %4001 = vmatprep.subr.bf16.mxu1 %v12442_v43  ;;  %v12494_v41 = vld [vmem:[#allocation12 + $0xac0] ss:$16 sps:$4 sm:$0xff]   ;;  %v12497_v43 = vld [vmem:[#allocation12 + $0xac8] ss:$16 sps:$4 sm:$0xff]  }
 0x4c1   : > { %4259 = vmatprep.subr.bf16.mxu0 %v12445_v44  ;;  %v12502_v44 = vld [vmem:[#allocation12 + $0xae4] ss:$16 sps:$4 sm:$0xff]  }
 0x4c3   : > { %4002 = vmatpush1.bf16.msra.mxu1 %v12440_v45  ;;  %v12505_v45 = vld [vmem:[#allocation12 + $0xaec] ss:$16 sps:$4 sm:$0xff]  }
 0x4c4   : > { %4260 = vmatpush1.bf16.msra.mxu0 %v12443_v46  ;;  %4003 = vmatprep.subr.bf16.mxu1 %v12448_v47  ;;  %v12500_v46 = vld [vmem:[#allocation12 + $0xae0] ss:$16 sps:$4 sm:$0xff]   ;;  %v12503_v47 = vld [vmem:[#allocation12 + $0xae8] ss:$16 sps:$4 sm:$0xff]  }
 0x4c5   : > { %4261 = vmatprep.subr.bf16.mxu0 %v12451_v48  ;;  %v12508_v48 = vld [vmem:[#allocation12 + $0xb04] ss:$16 sps:$4 sm:$0xff]  }
 0x4c7   : > { %4004 = vmatpush1.bf16.msra.mxu1 %v12446_v52  ;;  %v12506_v52 = vld [vmem:[#allocation12 + $0xb00] ss:$16 sps:$4 sm:$0xff]  }
 0x4c8   : > { %4262 = vmatpush1.bf16.msra.mxu0 %v12449_v3  ;;  %4005 = vmatprep.subr.bf16.mxu1 %v12454_v56  ;;  %v12514_v3 = vld [vmem:[#allocation12 + $0xb24] ss:$16 sps:$4 sm:$0xff]   ;;  %v12517_v56 = vld [vmem:[#allocation12 + $0xb2c] ss:$16 sps:$4 sm:$0xff]  }
 0x4c9   : > { %4263 = vmatprep.subr.bf16.mxu0 %v12457_v60  ;;  %v12515_v60 = vld [vmem:[#allocation12 + $0xb28] ss:$16 sps:$4 sm:$0xff]  }
 0x4cb   : > { %4006 = vmatpush1.bf16.msra.mxu1 %v12452_v0  ;;  %v12518_v0 = vld [vmem:[#allocation12 + $0xb40] ss:$16 sps:$4 sm:$0xff]  }
 0x4cc   : > { %4264 = vmatpush1.bf16.msra.mxu0 %v12455_v4  ;;  %4018 = vmatprep.subr.bf16.mxu1 %v12460_v8  ;;  %v12524_v4 = vld [vmem:[#allocation12 + $0xb60] ss:$16 sps:$4 sm:$0xff]   ;;  %v12527_v8 = vld [vmem:[#allocation12 + $0xb68] ss:$16 sps:$4 sm:$0xff]  }
 0x4cd   : > { %4276 = vmatprep.subr.bf16.mxu0 %v12463_v10  ;;  %v12535_v10 = vld [vmem:[#allocation12 + $0xb8c] ss:$16 sps:$4 sm:$0xff]  }
 0x4ce   : > { %4008 = vmatmul.mubr.bf16.vlgmr.msra.gmra.mrb[4].mxu1 %v1463_v17 }
 0x4cf   : > { %4266 = vmatmul.mubr.bf16.vlgmr.msra.gmra.mrb[8].mxu0 %v1463_v17  ;;  %4019 = vmatpush1.bf16.msra.mxu1 %v12458_v14  ;;  %v12541_v14 = vld [vmem:[#allocation12 + $0xbac] ss:$16 sps:$4 sm:$0xff]   ;;  %v12544_v17 = vld [vmem:[#allocation12 + $0xbc4] ss:$16 sps:$4 sm:$0xff]  }
 0x4d0   : > { %4050 = vmatprep.mubr.bf16.mxu1 %v1472_v21  ;;  %4277 = vmatpush1.bf16.msra.mxu0 %v12461_v16  ;;  %v12539_v16 = vld [vmem:[#allocation12 + $0xba8] ss:$16 sps:$4 sm:$0xff]  }
 0x4d1   : > { %4308 = vmatprep.mubr.bf16.mxu0 %v1472_v21  ;;  %4020 = vmatprep.subr.bf16.mxu1 %v12466_v19  ;;  %v1389_v19 = vld [vmem:[#allocation2 + $0x50] sm:$0x3]  ;;  %v12545_v21 = vld [vmem:[#allocation12 + $0xbc8] ss:$16 sps:$4 sm:$0xff]  }
 0x4d2   : > { %4278 = vmatprep.subr.bf16.mxu0 %v12469_v20  ;;  %v12542_v20 = vld [vmem:[#allocation12 + $0xbc0] ss:$16 sps:$4 sm:$0xff]  }
 0x4d3   : > { %4021 = vmatpush1.bf16.msra.mxu1 %v12464_v22  ;;  %v12550_v22 = vld [vmem:[#allocation12 + $0xbe4] ss:$16 sps:$4 sm:$0xff]  }
 0x4d4   : > { %4279 = vmatpush1.bf16.msra.mxu0 %v12467_v23  ;;  %4022 = vmatprep.subr.bf16.mxu1 %v12472_v24  ;;  %v1385_v23 = vld [vmem:[#allocation2 + $0x10] sm:$0xfc]  ;;  %v12553_v24 = vld [vmem:[#allocation12 + $0xbec] ss:$16 sps:$4 sm:$0xff]  }
 0x4d5   : > { %4280 = vmatprep.subr.bf16.mxu0 %v12475_v25  ;;  %v1397_v25 = vpack.c.bf16 %v1389_v19, %v1389_v19  ;;  %v4343_v19 = vld [vmem:[#allocation15 + $0xc0] sm:$0xff] }
 0x4d7   : > { %4023 = vmatpush1.bf16.msra.mxu1 %v12470_v26  ;;  %v4320_v26 = vld [vmem:[#allocation15 + $0x8] sm:$0xff] }
 0x4d8   : > { %4281 = vmatpush1.bf16.msra.mxu0 %v12473_v27  ;;  %4024 = vmatprep.subr.bf16.mxu1 %v12478_v28  ;;  %v4324_v27 = vld [vmem:[#allocation15 + $0x28] sm:$0xff]  ;;  %v4322_v28 = vld [vmem:[#allocation15 + $0x18] sm:$0xff] }
 0x4d9   : > { %4282 = vmatprep.subr.bf16.mxu0 %v12481_v29  ;;  %v4326_v29 = vld [vmem:[#allocation15 + $0x38] sm:$0xff] }
 0x4db   : > { %4025 = vmatpush1.bf16.msra.mxu1 %v12476_v30  ;;  %v12548_v30 = vld [vmem:[#allocation12 + $0xbe0] ss:$16 sps:$4 sm:$0xff]  }
 0x4dc   : > { %4283 = vmatpush1.bf16.msra.mxu0 %v12479_v31  ;;  %4026 = vmatprep.subr.bf16.mxu1 %v12484_v32  ;;  %v12551_v31 = vld [vmem:[#allocation12 + $0xbe8] ss:$16 sps:$4 sm:$0xff]   ;;  %v13180_v32 = vld [vmem:[#allocation2 + $0x30] sm:$0xff] }
 0x4dd   : > { %4284 = vmatprep.subr.bf16.mxu0 %v12487_v33  ;;  %v1393_v33 = vpack.c.bf16 %v13180_v32, %v1385_v23  ;;  %v4349_v23 = vld [vmem:[#allocation15 + $0xf0] sm:$0xff]  ;;  %v4355_v32 = vld [vmem:[#allocation15 + $0x120] sm:$0xff] }
 0x4df   : > { %4027 = vmatpush1.bf16.msra.mxu1 %v12482_v2  ;;  %v14345_v2 = vpack.c.bf16 %v4324_v27, %v4320_v26  ;;  %v4354_v26 = vld [vmem:[#allocation15 + $0x118] sm:$0xff] }
 0x4e0   : > { %4285 = vmatpush1.bf16.msra.mxu0 %v12485_v34  ;;  %4028 = vmatprep.subr.bf16.mxu1 %v12490_v35  ;;  %v4319_v34 = vld [vmem:[#allocation15] sm:$0xff]  ;;  %v4358_v27 = vld [vmem:[#allocation15 + $0x138] sm:$0xff] }
 0x4e1   : > { %4286 = vmatprep.subr.bf16.mxu0 %v12493_v36  ;;  %v4323_v35 = vld [vmem:[#allocation15 + $0x20] sm:$0xff]  ;;  %v4321_v36 = vld [vmem:[#allocation15 + $0x10] sm:$0xff] }
 0x4e3   : > { %4029 = vmatpush1.bf16.msra.mxu1 %v12488_v37  ;;  %v1468_v37 = vrot.slane %v1397_v25, 1  ;;  %v4356_v25 = vld [vmem:[#allocation15 + $0x128] sm:$0xff] }
 0x4e4   : > { %4287 = vmatpush1.bf16.msra.mxu0 %v12491_v38  ;;  %4030 = vmatprep.subr.bf16.mxu1 %v12496_v39  ;;  %v14347_v38 = vpack.c.bf16 %v4326_v29, %v4322_v28  ;;  %v4325_v39 = vld [vmem:[#allocation15 + $0x30] sm:$0xff] }
 0x4e5   : > { %4288 = vmatprep.subr.bf16.mxu0 %v12499_v40  ;;  %v4328_v40 = vld [vmem:[#allocation15 + $0x48] sm:$0xff] }
 0x4e7   : > { %4031 = vmatpush1.bf16.msra.mxu1 %v12494_v41  ;;  %v4332_v41 = vld [vmem:[#allocation15 + $0x68] sm:$0xff] }
 0x4e8   : > { %4289 = vmatpush1.bf16.msra.mxu0 %v12497_v43  ;;  %4032 = vmatprep.subr.bf16.mxu1 %v12502_v44  ;;  %v4330_v43 = vld [vmem:[#allocation15 + $0x58] sm:$0xff] }
 0x4e9   : > { %4290 = vmatprep.subr.bf16.mxu0 %v12505_v45  ;;  %v4334_v44 = vld [vmem:[#allocation15 + $0x78] sm:$0xff]  ;;  %v1467_v45 = vrot.slane %v1393_v33, 1  ;;  %v4353_v33 = vld [vmem:[#allocation15 + $0x110] sm:$0xff] }
 0x4eb   : > { %4033 = vmatpush1.bf16.msra.mxu1 %v12500_v46  ;;  %v14349_v46 = vpack.c.bf16 %v4323_v35, %v4319_v34  ;;  %v14394_v34 = vpack.c.bf16 %v4358_v27, %v4354_v26  ;;  %v4357_v35 = vld [vmem:[#allocation15 + $0x130] sm:$0xff]  ;;  %v4375_v26 = vld [vmem:[#allocation15 + $0x1c0] sm:$0xff] }
 0x4ec   : > { %4291 = vmatpush1.bf16.msra.mxu0 %v12503_v47  ;;  %4034 = vmatprep.subr.bf16.mxu1 %v12508_v48  ;;  %v14352_v47 = vpack.c.bf16 %v4325_v39, %v4321_v36  ;;  %v14354_v48 = vpack.c.bf16 %v4332_v41, %v4328_v40  ;;  %v4360_v36 = vld [vmem:[#allocation15 + $0x148] sm:$0xff]  ;;  %v4362_v39 = vld [vmem:[#allocation15 + $0x158] sm:$0xff]  ;;  %v4379_v27 = vld [vmem:[#allocation15 + $0x1e0] sm:$0xff] }
 0x4ed   : > { %4292 = vmatprep.subr.bf16.mxu0 %v12511_v51  ;;  %v4327_v51 = vld [vmem:[#allocation15 + $0x40] sm:$0xff]  ;;  %v4366_v40 = vld [vmem:[#allocation15 + $0x178] sm:$0xff] }
 0x4ef   : > { %4035 = vmatpush1.bf16.msra.mxu1 %v12506_v52  ;;  %v4331_v52 = vld [vmem:[#allocation15 + $0x60] sm:$0xff] }
 0x4f0   : > { %4293 = vmatpush1.bf16.msra.mxu0 %v12509_v55  ;;  %4036 = vmatprep.subr.bf16.mxu1 %v12514_v3  ;;  %v4329_v55 = vld [vmem:[#allocation15 + $0x50] sm:$0xff]  ;;  %v1469_v3 = vsel %vm1460_vm4, %v1467_v45, %v1468_v37  ;;  %v4364_v37 = vld [vmem:[#allocation15 + $0x168] sm:$0xff]  ;;  %v4359_v45 = vld [vmem:[#allocation15 + $0x140] sm:$0xff] }
 0x4f1   : > { %4294 = vmatprep.subr.bf16.mxu0 %v12517_v56  ;;  %v14358_v56 = vpack.c.bf16 %v4334_v44, %v4330_v43  ;;  %v14401_v43 = vpack.c.bf16 %v4357_v35, %v4353_v33  ;;  %v14403_v44 = vpack.c.bf16 %v4364_v37, %v4360_v36  ;;  %v4381_v33 = vld [vmem:[#allocation15 + $0x1f0] sm:$0xff]  ;;  %v4384_v35 = vld [vmem:[#allocation15 + $0x208] sm:$0xff]  ;;  %v4386_v37 = vld [vmem:[#allocation15 + $0x218] sm:$0xff] }
 0x4f2   : > { %v4388_v36 = vld [vmem:[#allocation15 + $0x228] sm:$0xff] }
 0x4f3   : > { %4037 = vmatpush1.bf16.msra.mxu1 %v12512_v59  ;;  %v4333_v59 = vld [vmem:[#allocation15 + $0x70] sm:$0xff] }
 0x4f4   : > { %4295 = vmatpush1.bf16.msra.mxu0 %v12515_v60  ;;  %4038 = vmatprep.subr.bf16.mxu1 %v12520_v1  ;;  %v4336_v60 = vld [vmem:[#allocation15 + $0x88] sm:$0xff] }
 0x4f5   : > { %4296 = vmatprep.subr.bf16.mxu0 %v12523_v63  ;;  %v4340_v1 = vld [vmem:[#allocation15 + $0xa8] sm:$0xff]  ;;  %v4338_v63 = vld [vmem:[#allocation15 + $0x98] sm:$0xff] }
 0x4f7   : > { %4039 = vmatpush1.bf16.msra.mxu1 %v12518_v0  ;;  %v4342_v0 = vld [vmem:[#allocation15 + $0xb8] sm:$0xff] }
 0x4f8   : > { %4297 = vmatpush1.bf16.msra.mxu0 %v12521_v5  ;;  %4040 = vmatprep.subr.bf16.mxu1 %v12526_v6  ;;  %v14361_v5 = vpack.c.bf16 %v4331_v52, %v4327_v51  ;;  %v14365_v6 = vpack.c.bf16 %v4333_v59, %v4329_v55  ;;  %v4363_v51 = vld [vmem:[#allocation15 + $0x160] sm:$0xff]  ;;  %v4361_v52 = vld [vmem:[#allocation15 + $0x150] sm:$0xff]  ;;  %v14406_v55 = vpack.c.bf16 %v4366_v40, %v4362_v39  ;;  %v4368_v59 = vld [vmem:[#allocation15 + $0x188] sm:$0xff] }
 0x4f9   : > { %4298 = vmatprep.subr.bf16.mxu0 %v12529_v7  ;;  %v14367_v7 = vpack.c.bf16 %v4340_v1, %v4336_v60  ;;  %v4372_v60 = vld [vmem:[#allocation15 + $0x1a8] sm:$0xff]  ;;  %v4370_v1 = vld [vmem:[#allocation15 + $0x198] sm:$0xff]  ;;  %v14433_v40 = vpack.c.bf16 %v4379_v27, %v4375_v26  ;;  %v4393_v26 = vld [vmem:[#allocation15 + $0x250] sm:$0xff] }
 0x4fa   : > { %v4390_v39 = vld [vmem:[#allocation15 + $0x238] sm:$0xff] }
 0x4fb   : > { %4041 = vmatpush1.bf16.msra.mxu1 %v12524_v4  ;;  %v4335_v4 = vld [vmem:[#allocation15 + $0x80] sm:$0xff] }
 0x4fc   : > { %4299 = vmatpush1.bf16.msra.mxu0 %v12527_v8  ;;  %4042 = vmatprep.subr.bf16.mxu1 %v12532_v9  ;;  %v4339_v8 = vld [vmem:[#allocation15 + $0xa0] sm:$0xff]  ;;  %v4337_v9 = vld [vmem:[#allocation15 + $0x90] sm:$0xff] }
 0x4fd   : > { %4300 = vmatprep.subr.bf16.mxu0 %v12535_v10  ;;  %v14370_v10 = vpack.c.bf16 %v4342_v0, %v4338_v63  ;;  %v4374_v63 = vld [vmem:[#allocation15 + $0x1b8] sm:$0xff]  ;;  %v14409_v0 = vpack.c.bf16 %v4363_v51, %v4359_v45  ;;  %v14439_v51 = vpack.c.bf16 %v4388_v36, %v4384_v35  ;;  %v4404_v35 = vld [vmem:[#allocation15 + $0x2a8] sm:$0xff] }
 0x4fe   : > { %v4402_v36 = vld [vmem:[#allocation15 + $0x298] sm:$0xff] }
 0x4ff   : > { %4043 = vmatpush1.bf16.msra.mxu1 %v12530_v11  ;;  %v4341_v11 = vld [vmem:[#allocation15 + $0xb0] sm:$0xff]  ;;  %15988 = vst [vmem:[#allocation49_spill] sm:$0xff] %v14439_v51 }
 0x500   : > { %4301 = vmatpush1.bf16.msra.mxu0 %v12533_v12  ;;  %4044 = vmatprep.subr.bf16.mxu1 %v12538_v13  ;;  %v4344_v12 = vld [vmem:[#allocation15 + $0xc8] sm:$0xff] }
 0x501   : > { %4302 = vmatprep.subr.bf16.mxu0 %v12541_v14  ;;  %v4348_v13 = vld [vmem:[#allocation15 + $0xe8] sm:$0xff]  ;;  %v4346_v14 = vld [vmem:[#allocation15 + $0xd8] sm:$0xff] }
 0x503   : > { %4045 = vmatpush1.bf16.msra.mxu1 %v12536_v15  ;;  %v4350_v15 = vld [vmem:[#allocation15 + $0xf8] sm:$0xff] }
 0x504   : > { %4303 = vmatpush1.bf16.msra.mxu0 %v12539_v16  ;;  %4046 = vmatprep.subr.bf16.mxu1 %v12544_v17  ;;  %v14373_v16 = vpack.c.bf16 %v4339_v8, %v4335_v4  ;;  %v14377_v17 = vpack.c.bf16 %v4341_v11, %v4337_v9  ;;  %v14415_v8 = vpack.c.bf16 %v4372_v60, %v4368_v59  ;;  %v4367_v9 = vld [vmem:[#allocation15 + $0x180] sm:$0xff]  ;;  %v4385_v59 = vld [vmem:[#allocation15 + $0x210] sm:$0xff] }
 0x505   : > { %4304 = vmatprep.subr.bf16.mxu0 %v12547_v18  ;;  %v14379_v18 = vpack.c.bf16 %v4348_v13, %v4344_v12  ;;  %v4371_v11 = vld [vmem:[#allocation15 + $0x1a0] sm:$0xff]  ;;  %v4369_v12 = vld [vmem:[#allocation15 + $0x190] sm:$0xff]  ;;  %v14418_v13 = vpack.c.bf16 %v4374_v63, %v4370_v1  ;;  %v14442_v60 = vpack.c.bf16 %v4390_v39, %v4386_v37  ;;  %v4392_v63 = vld [vmem:[#allocation15 + $0x248] sm:$0xff] }
 0x506   : > { %v4389_v1 = vld [vmem:[#allocation15 + $0x230] sm:$0xff]  ;;  %v4406_v37 = vld [vmem:[#allocation15 + $0x2b8] sm:$0xff] }
 0x507   : > { %4047 = vmatpush1.bf16.msra.mxu1 %v12542_v20  ;;  %v4347_v20 = vld [vmem:[#allocation15 + $0xe0] sm:$0xff]  ;;  %15989 = vst [vmem:[#allocation50_spill] sm:$0xff] %v14442_v60 }
 0x508   : > { %4305 = vmatpush1.bf16.msra.mxu0 %v12545_v21  ;;  %4048 = vmatprep.subr.bf16.mxu1 %v12550_v22  ;;  %v4345_v21 = vld [vmem:[#allocation15 + $0xd0] sm:$0xff]  ;;  %v14382_v22 = vpack.c.bf16 %v4350_v15, %v4346_v14  ;;  %v14385_v28 = vpack.c.bf16 %v4347_v20, %v4343_v19  ;;  %v4376_v15 = vld [vmem:[#allocation15 + $0x1c8] sm:$0xff]  ;;  %v4378_v20 = vld [vmem:[#allocation15 + $0x1d8] sm:$0xff] }
 0x509   : > { %4306 = vmatprep.subr.bf16.mxu0 %v12553_v24  ;;  %v4352_v24 = vld [vmem:[#allocation15 + $0x108] sm:$0xff]  ;;  %v14389_v29 = vpack.c.bf16 %v4349_v23, %v4345_v21  ;;  %v4373_v14 = vld [vmem:[#allocation15 + $0x1b0] sm:$0xff]  ;;  %v4382_v21 = vld [vmem:[#allocation15 + $0x1f8] sm:$0xff]  ;;  %v14421_v23 = vpack.c.bf16 %v4371_v11, %v4367_v9 }
 0x50a   : > { %v4380_v19 = vld [vmem:[#allocation15 + $0x1e8] sm:$0xff]  ;;  %v4394_v11 = vld [vmem:[#allocation15 + $0x258] sm:$0xff] }
 0x50b   : > { %4049 = vmatpush1.bf16.msra.mxu1 %v12548_v30  ;;  %v14391_v30 = vpack.c.bf16 %v4356_v25, %v4352_v24  ;;  %v14425_v24 = vpack.c.bf16 %v4373_v14, %v4369_v12  ;;  %v14427_v25 = vpack.c.bf16 %v4380_v19, %v4376_v15  ;;  %v4396_v9 = vld [vmem:[#allocation15 + $0x268] sm:$0xff]  ;;  %v4398_v12 = vld [vmem:[#allocation15 + $0x278] sm:$0xff]  ;;  %v14449_v15 = vpack.c.bf16 %v4389_v1, %v4385_v59  ;;  %v4399_v59 = vld [vmem:[#allocation15 + $0x280] sm:$0xff] }
 0x50c   : > { %4307 = vmatpush1.bf16.msra.mxu0 %v12551_v31  ;;  %10648 = vmatprep.subr.bf16.mxu1 %v14345_v2  ;;  %v4351_v31 = vld [vmem:[#allocation15 + $0x100] sm:$0xff]  ;;  %v14451_v19 = vpack.c.bf16 %v4396_v9, %v4392_v63  ;;  %v14454_v27 = vpack.c.bf16 %v4398_v12, %v4394_v11  ;;  %v14466_v63 = vpack.c.bf16 %v4406_v37, %v4402_v36  ;;  %v4401_v9 = vld [vmem:[#allocation15 + $0x290] sm:$0xff] }
 0x50d   : > { %10776 = vmatprep.subr.bf16.mxu0 %v14347_v38  ;;  %v14397_v41 = vpack.c.bf16 %v4355_v32, %v4351_v31  ;;  %v4377_v31 = vld [vmem:[#allocation15 + $0x1d0] sm:$0xff]  ;;  %v14430_v32 = vpack.c.bf16 %v4382_v21, %v4378_v20  ;;  %15991 = vst [vmem:[#allocation52_spill] sm:$0xff] %v14449_v15  ;;  %v4391_v20 = vld [vmem:[#allocation15 + $0x240] sm:$0xff] }
 0x50e   : > { %4051 = vmatmul.mubr.bf16.vlgmr.msra.gmra.mrb[4].mxu1 %v1469_v3  ;;  %v14437_v45 = vpack.c.bf16 %v4381_v33, %v4377_v31  ;;  %15992 = vst [vmem:[#allocation53_spill] sm:$0xff] %v14451_v19  ;;  %v4395_v21 = vld [vmem:[#allocation15 + $0x260] sm:$0xff]  ;;  %15993 = vst [vmem:[#allocation54_spill] sm:$0xff] %v14454_v27  ;;  %v4397_v31 = vld [vmem:[#allocation15 + $0x270] sm:$0xff] }
 0x50f   : > { %4309 = vmatmul.mubr.bf16.vlgmr.msra.gmra.mrb[8].mxu0 %v1469_v3  ;;  %10650 = vmatpush1.bf16.msra.mxu1 %v14349_v46  ;;  %v4365_v3 = vld [vmem:[#allocation15 + $0x170] sm:$0xff]  ;;  %v4400_v33 = vld [vmem:[#allocation15 + $0x288] sm:$0xff]  ;;  %v14457_v39 = vpack.c.bf16 %v4395_v21, %v4391_v20  ;;  %v4403_v1 = vld [vmem:[#allocation15 + $0x2a0] sm:$0xff]  ;;  %15997 = vst [vmem:[#allocation58_spill] sm:$0xff] %v14466_v63 }
 0x510   : > { %10778 = vmatpush1.bf16.msra.mxu0 %v14352_v47  ;;  %10652 = vmatprep.subr.bf16.mxu1 %v14354_v48  ;;  %v14413_v4 = vpack.c.bf16 %v4365_v3, %v4361_v52  ;;  %v4383_v52 = vld [vmem:[#allocation15 + $0x200] sm:$0xff]  ;;  %v4405_v11 = vld [vmem:[#allocation15 + $0x2b0] sm:$0xff]  ;;  %v14469_v12 = vpack.c.bf16 %v4403_v1, %v4399_v59  ;;  %v4408_v21 = vld [vmem:[#allocation15 + $0x2c8] sm:$0xff] }
 0x511   : > { %10780 = vmatprep.subr.bf16.mxu0 %v14358_v56  ;;  %v4387_v3 = vld [vmem:[#allocation15 + $0x220] sm:$0xff]  ;;  %15994 = vst [vmem:[#allocation55_spill] sm:$0xff] %v14457_v39  ;;  %v14473_v20 = vpack.c.bf16 %v4405_v11, %v4401_v9  ;;  %v4409_v9 = vld [vmem:[#allocation15 + $0x2d0] sm:$0xff] }
 0x512   : > { %v14445_v14 = vpack.c.bf16 %v4387_v3, %v4383_v52  ;;  %v14461_v52 = vpack.c.bf16 %v4397_v31, %v4393_v26  ;;  %v14463_v3 = vpack.c.bf16 %v4404_v35, %v4400_v33  ;;  %15998 = vst [vmem:[#allocation59_spill] sm:$0xff] %v14469_v12  ;;  %v4412_v26 = vld [vmem:[#allocation15 + $0x2e8] sm:$0xff]  ;;  %v4410_v31 = vld [vmem:[#allocation15 + $0x2d8] sm:$0xff]  ;;  %v4407_v36 = vld [vmem:[#allocation15 + $0x2c0] sm:$0xff] }
 0x513   : > { %10654 = vmatpush1.bf16.msra.mxu1 %v14361_v5  ;;  %15999 = vst [vmem:[#allocation60_spill] sm:$0xff] %v14473_v20  ;;  %v14478_v33 = vpack.c.bf16 %v4412_v26, %v4408_v21  ;;  %v4414_v35 = vld [vmem:[#allocation15 + $0x2f8] sm:$0xff]  ;;  %v4411_v37 = vld [vmem:[#allocation15 + $0x2e0] sm:$0xff]  ;;  %v4413_v11 = vld [vmem:[#allocation15 + $0x2f0] sm:$0xff] }
 0x514   : > { %10782 = vmatpush1.bf16.msra.mxu0 %v14365_v6  ;;  %10656 = vmatprep.subr.bf16.mxu1 %v14367_v7  ;;  %15990 = vst [vmem:[#allocation51_spill] sm:$0xff] %v14445_v14  ;;  %15995 = vst [vmem:[#allocation56_spill] sm:$0xff] %v14461_v52  ;;  %v14480_v59 = vpack.c.bf16 %v4414_v35, %v4410_v31  ;;  %v14482_v1 = vpack.c.bf16 %v4411_v37, %v4407_v36  ;;  %v4416_v21 = vld [vmem:[#allocation15 + $0x308] sm:$0xff]  ;;  %v4422_v31 = vld [vmem:[#allocation15 + $0x338] sm:$0xff] }
 0x515   : > { %10784 = vmatprep.subr.bf16.mxu0 %v14370_v10  ;;  %15996 = vst [vmem:[#allocation57_spill] sm:$0xff] %v14463_v3  ;;  %16000 = vst [vmem:[#allocation61_spill] sm:$0xff] %v14478_v33  ;;  %v14485_v42 = vpack.c.bf16 %v4413_v11, %v4409_v9  ;;  %v4420_v26 = vld [vmem:[#allocation15 + $0x328] sm:$0xff]  ;;  %v4415_v35 = vld [vmem:[#allocation15 + $0x300] sm:$0xff]  ;;  %v14492_v37 = vpack.c.bf16 %v4422_v31, %v4418_v62  ;;  %v14503_v62 = vpack.c.bf16 %v4430_v49, %v4426_v57 }
 0x516   : > { %16001 = vst [vmem:[#allocation62_spill] sm:$0xff] %v14480_v59  ;;  %16002 = vst [vmem:[#allocation63_spill] sm:$0xff] %v14482_v1  ;;  %v14490_v54 = vpack.c.bf16 %v4420_v26, %v4416_v21  ;;  %v4419_v36 = vld [vmem:[#allocation15 + $0x320] sm:$0xff]  ;;  %v4417_v9 = vld [vmem:[#allocation15 + $0x310] sm:$0xff]  ;;  %v14501_v21 = vpack.c.bf16 %v4428_v50, %v4424_v53 }
 0x517   : > { %10658 = vmatpush1.bf16.msra.mxu1 %v14373_v16  ;;  %16003 = vst [vmem:[#allocation64_spill] sm:$0xff] %v14485_v42  ;;  %16005 = vst [vmem:[#allocation66_spill] sm:$0xff] %v14492_v37  ;;  %v14494_v61 = vpack.c.bf16 %v4419_v36, %v4415_v35  ;;  %v4421_v11 = vld [vmem:[#allocation15 + $0x330] sm:$0xff]  ;;  %v4423_v26 = vld [vmem:[#allocation15 + $0x340] sm:$0xff] }
 0x518   : > { %10786 = vmatpush1.bf16.msra.mxu0 %v14377_v17  ;;  %10660 = vmatprep.subr.bf16.mxu1 %v14379_v18  ;;  %16004 = vst [vmem:[#allocation65_spill] sm:$0xff] %v14490_v54  ;;  %v14497_v58 = vpack.c.bf16 %v4421_v11, %v4417_v9  ;;  %16008 = vst [vmem:[#allocation69_spill] sm:$0xff] %v14501_v21  ;;  %v4427_v31 = vld [vmem:[#allocation15 + $0x360] sm:$0xff]  ;;  %v4425_v35 = vld [vmem:[#allocation15 + $0x350] sm:$0xff] }
 0x519   : > { %10788 = vmatprep.subr.bf16.mxu0 %v14382_v22  ;;  %16006 = vst [vmem:[#allocation67_spill] sm:$0xff] %v14494_v61  ;;  %16009 = vst [vmem:[#allocation70_spill] sm:$0xff] %v14503_v62  ;;  %v14506_v36 = vpack.c.bf16 %v4427_v31, %v4423_v26  ;;  %v4429_v9 = vld [vmem:[#allocation15 + $0x370] sm:$0xff]  ;;  %v4432_v11 = vld [vmem:[#allocation15 + $0x388] sm:$0xff] }
 0x51a   : > { %16007 = vst [vmem:[#allocation68_spill] sm:$0xff] %v14497_v58  ;;  %v4434_v49 = vld [vmem:[#allocation15 + $0x398] sm:$0xff]  ;;  %v4431_v57 = vld [vmem:[#allocation15 + $0x380] sm:$0xff]  ;;  %v4437_v26 = vld [vmem:[#allocation15 + $0x3b0] sm:$0xff] }
 0x51b   : > { %10662 = vmatpush1.bf16.msra.mxu1 %v14385_v28  ;;  %16010 = vst [vmem:[#allocation71_spill] sm:$0xff] %v14506_v36  ;;  %v4438_v53 = vld [vmem:[#allocation15 + $0x3b8] sm:$0xff] }
 0x51c   : > { %10790 = vmatpush1.bf16.msra.mxu0 %v14389_v29  ;;  %10664 = vmatprep.subr.bf16.mxu1 %v14391_v30 }
 0x51d   : > { %10792 = vmatprep.subr.bf16.mxu0 %v14394_v34 }
 0x51f   : > { %10666 = vmatpush1.bf16.msra.mxu1 %v14397_v41 }
 0x520   : > { %10794 = vmatpush1.bf16.msra.mxu0 %v14401_v43  ;;  %10668 = vmatprep.subr.bf16.mxu1 %v14403_v44 }
 0x521   : > { %10796 = vmatprep.subr.bf16.mxu0 %v14406_v55 }
 0x523   : > { %10670 = vmatpush1.bf16.msra.mxu1 %v14409_v0 }
 0x524   : > { %10798 = vmatpush1.bf16.msra.mxu0 %v14413_v4  ;;  %10672 = vmatprep.subr.bf16.mxu1 %v14415_v8 }
 0x525   : > { %10800 = vmatprep.subr.bf16.mxu0 %v14418_v13 }
 0x527   : > { %10674 = vmatpush1.bf16.msra.mxu1 %v14421_v23 }
 0x528   : > { %10802 = vmatpush1.bf16.msra.mxu0 %v14425_v24  ;;  %10676 = vmatprep.subr.bf16.mxu1 %v14427_v25 }
 0x529   : > { %10804 = vmatprep.subr.bf16.mxu0 %v14430_v32 }
 0x52b   : > { %10678 = vmatpush1.bf16.msra.mxu1 %v14433_v40 }
 0x52c   : > { %10806 = vmatpush1.bf16.msra.mxu0 %v14437_v45  ;;  %10680 = vmatprep.subr.bf16.mxu1 %v14439_v51  ;;  %v4470_v51 = vld [vmem:[#allocation15 + $0x4b8] sm:$0xff] }
 0x52d   : > { %10808 = vmatprep.subr.bf16.mxu0 %v14442_v60  ;;  %v4466_v60 = vld [vmem:[#allocation15 + $0x498] sm:$0xff] }
 0x52f   : > { %10682 = vmatpush1.bf16.msra.mxu1 %v14445_v14  ;;  %v4468_v14 = vld [vmem:[#allocation15 + $0x4a8] sm:$0xff] }
 0x530   : > { %10810 = vmatpush1.bf16.msra.mxu0 %v14449_v15  ;;  %10684 = vmatprep.subr.bf16.mxu1 %v14451_v19  ;;  %v4456_v19 = vld [vmem:[#allocation15 + $0x448] sm:$0xff] }
 0x531   : > { %10812 = vmatprep.subr.bf16.mxu0 %v14454_v27  ;;  %v4453_v27 = vld [vmem:[#allocation15 + $0x430] sm:$0xff] }
 0x533   : > { %10686 = vmatpush1.bf16.msra.mxu1 %v14457_v39 }
 0x534   : > { %10814 = vmatpush1.bf16.msra.mxu0 %v14461_v52  ;;  %10688 = vmatprep.subr.bf16.mxu1 %v14463_v3 }
 0x535   : > { %10816 = vmatprep.subr.bf16.mxu0 %v14466_v63 }
 0x537   : > { %10690 = vmatpush1.bf16.msra.mxu1 %v14469_v12 }
 0x538   : > { %10818 = vmatpush1.bf16.msra.mxu0 %v14473_v20  ;;  %10692 = vmatprep.subr.bf16.mxu1 %v14478_v33  ;;  %v4450_v33 = vld [vmem:[#allocation15 + $0x418] sm:$0xff] }
 0x539   : > { %10820 = vmatprep.subr.bf16.mxu0 %v14480_v59  ;;  %v4442_v59 = vld [vmem:[#allocation15 + $0x3d8] sm:$0xff] }
 0x53a   : > { %v4454_v20 = vld [vmem:[#allocation15 + $0x438] sm:$0xff] }
 0x53b   : > { %10694 = vmatpush1.bf16.msra.mxu1 %v14482_v1  ;;  %v4440_v1 = vld [vmem:[#allocation15 + $0x3c8] sm:$0xff] }
 0x53c   : > { %10822 = vmatpush1.bf16.msra.mxu0 %v14485_v42  ;;  %10696 = vmatprep.subr.bf16.mxu1 %v14490_v54  ;;  %v4436_v54 = vld [vmem:[#allocation15 + $0x3a8] sm:$0xff]  ;;  %v4435_v42 = vld [vmem:[#allocation15 + $0x3a0] sm:$0xff] }
 0x53d   : > { %10824 = vmatprep.subr.bf16.mxu0 %v14492_v37  ;;  %v14510_v37 = vpack.c.bf16 %v4429_v9, %v4425_v35  ;;  %v14512_v50 = vpack.c.bf16 %v4436_v54, %v4432_v11  ;;  %v14517_v31 = vpack.c.bf16 %v4435_v42, %v4431_v57  ;;  %v4446_v9 = vld [vmem:[#allocation15 + $0x3f8] sm:$0xff]  ;;  %v4439_v11 = vld [vmem:[#allocation15 + $0x3c0] sm:$0xff]  ;;  %v4441_v42 = vld [vmem:[#allocation15 + $0x3d0] sm:$0xff] }
 0x53e   : > { %v4445_v57 = vld [vmem:[#allocation15 + $0x3f0] sm:$0xff] }
 0x53f   : > { %10698 = vmatpush1.bf16.msra.mxu1 %v14494_v61  ;;  %16011 = vst [vmem:[#allocation72_spill] sm:$0xff] %v14510_v37  ;;  %16012 = vst [vmem:[#allocation73_spill] sm:$0xff] %v14512_v50  ;;  %v14514_v61 = vpack.c.bf16 %v4438_v53, %v4434_v49  ;;  %v4443_v49 = vld [vmem:[#allocation15 + $0x3e0] sm:$0xff]  ;;  %v14526_v53 = vpack.c.bf16 %v4446_v9, %v4442_v59  ;;  %v14538_v59 = vpack.c.bf16 %v4454_v20, %v4450_v33 }
 0x540   : > { %10826 = vmatpush1.bf16.msra.mxu0 %v14497_v58  ;;  %10700 = vmatprep.subr.bf16.mxu1 %v14501_v21  ;;  %v4433_v58 = vld [vmem:[#allocation15 + $0x390] sm:$0xff]  ;;  %16014 = vst [vmem:[#allocation75_spill] sm:$0xff] %v14517_v31  ;;  %v4444_v21 = vld [vmem:[#allocation15 + $0x3e8] sm:$0xff] }
 0x541   : > { %10828 = vmatprep.subr.bf16.mxu0 %v14503_v62  ;;  %16013 = vst [vmem:[#allocation74_spill] sm:$0xff] %v14514_v61  ;;  %v14521_v54 = vpack.c.bf16 %v4437_v26, %v4433_v58  ;;  %v14523_v35 = vpack.c.bf16 %v4444_v21, %v4440_v1  ;;  %16017 = vst [vmem:[#allocation78_spill] sm:$0xff] %v14526_v53  ;;  %v4452_v62 = vld [vmem:[#allocation15 + $0x428] sm:$0xff]  ;;  %v14533_v58 = vpack.c.bf16 %v4445_v57, %v4441_v42  ;;  %v16022_v21 = vlaneseq }
 0x542   : > { %16021 = vst [vmem:[#allocation82_spill] sm:$0xff] %v14538_v59 }
 0x543   : > { %10702 = vmatpush1.bf16.msra.mxu1 %v14506_v36  ;;  %16015 = vst [vmem:[#allocation76_spill] sm:$0xff] %v14521_v54  ;;  %16016 = vst [vmem:[#allocation77_spill] sm:$0xff] %v14523_v35  ;;  %v4448_v36 = vld [vmem:[#allocation15 + $0x408] sm:$0xff]  ;;  %v14545_v26 = vshrl.u32 %v16022_v21, 7 }
 0x544   : > { %10830 = vmatpush1.bf16.msra.mxu0 %v14510_v37  ;;  %10704 = vmatprep.subr.bf16.mxu1 %v14512_v50  ;;  %v14529_v50 = vpack.c.bf16 %v4443_v49, %v4439_v11  ;;  %16019 = vst [vmem:[#allocation80_spill] sm:$0xff] %v14533_v58  ;;  %v14535_v1 = vpack.c.bf16 %v4452_v62, %v4448_v36  ;;  %v14550_v62 = vld [vmem:[#allocation13] sm:$0xf] }
 0x545   : > { %10832 = vmatprep.subr.bf16.mxu0 %v14514_v61  ;;  %v14548_v9 = vsub.s32 0, %v14545_v26  ;;  %v14553_v36 = vsub.s32 1, %v14545_v26  ;;  %v14556_v20 = vsub.s32 3, %v14545_v26 }
 0x546   : > { %16018 = vst [vmem:[#allocation79_spill] sm:$0xff] %v14529_v50  ;;  %16020 = vst [vmem:[#allocation81_spill] sm:$0xff] %v14535_v1 }
 0x547   : > { %10706 = vmatpush1.bf16.msra.mxu1 %v14517_v31  ;;  %16023 = vst [vmem:[#allocation83_spill] sm:$0xff] %v14548_v9  ;;  %16024 = vst [vmem:[#allocation84_spill] sm:$0xff] %v14553_v36  ;;  %v1866_v33 = vrot.slane %v14550_v62, %v14548_v9  ;;  %v1870_v49 = vrot.slane %v14550_v62, %v14553_v36  ;;  %v1878_v21 = vrot.slane %v14550_v62, %v14556_v20 }
 0x548   : > { %10834 = vmatpush1.bf16.msra.mxu0 %v14521_v54  ;;  %10708 = vmatprep.subr.bf16.mxu1 %v14523_v35  ;;  %16025 = vst [vmem:[#allocation85_spill] sm:$0xff] %v14556_v20 }
 0x549   : > { %10836 = vmatprep.subr.bf16.mxu0 %v14526_v53 }
 0x54b   : > { %10710 = vmatpush1.bf16.msra.mxu1 %v14529_v50 }
 0x54c   : > { %10838 = vmatpush1.bf16.msra.mxu0 %v14533_v58  ;;  %10712 = vmatprep.subr.bf16.mxu1 %v14535_v1 }
 0x54d   : > { %10840 = vmatprep.subr.bf16.mxu0 %v14538_v59 }
 0x5e1   : > { %v4052_v11 = vpop.f32.mrb[4].mxu1 }
 0x5e2   : > { %v14562_v42 = vpop.f32.mrb[8].mxu0  ;;  %v4054_v57 = vpop.f32.mrb[5].mxu1  ;;  %v14566_v58 = vadd.f32 %v4052_v11, %v1866_v33 }
 0x5e3   : > { %v4312_v59 = vpop.f32.mrb[9].mxu0  ;;  %v4056_v1 = vpop.f32.mrb[6].mxu1  ;;  %v14572_v9 = vadd.f32 %v4054_v57, %v1870_v49 }
 0x5e4   : > { %16026 = vst [vmem:[#allocation86_spill] sm:$0xff] %v14566_v58  ;;  %v14568_v50 = vadd.f32 %v4056_v1, %v1866_v33  ;;  %v14570_v53 = vpop.f32.mrb[10].mxu0  ;;  %v4058_v35 = vpop.f32.mrb[7].mxu1  ;;  %v14576_v31 = vadd.f32 %v4312_v59, %v1878_v21 }
 0x5e5   : > { %16028 = vst [vmem:[#allocation88_spill] sm:$0xff] %v14572_v9  ;;  %v14574_v54 = vadd.f32 %v4058_v35, %v1870_v49  ;;  %v4316_v36 = vpop.f32.mrb[11].mxu0 }
 0x5e6   : > { %16027 = vst [vmem:[#allocation87_spill] sm:$0xff] %v14568_v50  ;;  %16030 = vst [vmem:[#allocation90_spill] sm:$0xff] %v14576_v31  ;;  %v4577_v61 = vadd.f32 %v14568_v50, %v14566_v58  ;;  %v14580_v20 = vadd.f32 %v4316_v36, %v1878_v21  ;;  %v4447_v50 = vld [vmem:[#allocation15 + $0x400] sm:$0xff]  ;;  %v4449_v58 = vld [vmem:[#allocation15 + $0x410] sm:$0xff] }
 0x5e7   : > { %16029 = vst [vmem:[#allocation89_spill] sm:$0xff] %v14574_v54  ;;  %v4584_v11 = vadd.f32 %v14574_v54, %v14572_v9  ;;  %v4451_v21 = vld [vmem:[#allocation15 + $0x420] sm:$0xff] }
 0x5e8   : > { %16031 = vst [vmem:[#allocation91_spill] sm:$0xff] %v14580_v20  ;;  %v4578_v1 = vrot.slane %v4577_v61, 4  ;;  %v4598_v33 = vadd.f32 %v14580_v20, %v14576_v31  ;;  %v4460_v20 = vld [vmem:[#allocation15 + $0x468] sm:$0xff]  ;;  %v4458_v31 = vld [vmem:[#allocation15 + $0x458] sm:$0xff] }
 0x5e9   : > { %v4585_v37 = vrot.slane %v4584_v11, 4 }
 0x5ea   : > { %v4579_v57 = vadd.f32 %v4578_v1, %v4577_v61  ;;  %v4599_v12 = vrot.slane %v4598_v33, 4  ;;  %v4462_v61 = vld [vmem:[#allocation15 + $0x478] sm:$0xff] }
 0x5eb   : > { %v4586_v35 = vadd.f32 %v4585_v37, %v4584_v11  ;;  %v14586_v37 = vpack.c.bf16 %v4451_v21, %v4447_v50  ;;  %v4455_v11 = vld [vmem:[#allocation15 + $0x440] sm:$0xff]  ;;  %v4478_v21 = vld [vmem:[#allocation15 + $0x4f8] sm:$0xff] }
 0x5ec   : > { %v4580_v49 = vrot.slane %v4579_v57, 2  ;;  %v4600_v63 = vadd.f32 %v4599_v12, %v4598_v33  ;;  %v14588_v12 = vpack.c.bf16 %v4453_v27, %v4449_v58  ;;  %v4459_v33 = vld [vmem:[#allocation15 + $0x460] sm:$0xff] }
 0x5ed   : > { %v4587_v59 = vrot.slane %v4586_v35, 2  ;;  %v14596_v27 = vpack.c.bf16 %v4459_v33, %v4455_v11  ;;  %v4463_v50 = vld [vmem:[#allocation15 + $0x480] sm:$0xff]  ;;  %v4473_v33 = vld [vmem:[#allocation15 + $0x4d0] sm:$0xff] }
 0x5ee   : > { %v4581_v3 = vadd.f32 %v4580_v49, %v4579_v57  ;;  %v4601_v52 = vrot.slane %v4600_v63, 2  ;;  %v4461_v49 = vld [vmem:[#allocation15 + $0x470] sm:$0xff]  ;;  %v4467_v58 = vld [vmem:[#allocation15 + $0x4a0] sm:$0xff] }
 0x5ef   : > { %v4588_v39 = vadd.f32 %v4587_v59, %v4586_v35  ;;  %v4457_v35 = vld [vmem:[#allocation15 + $0x450] sm:$0xff]  ;;  %v4464_v59 = vld [vmem:[#allocation15 + $0x488] sm:$0xff] }
 0x5f0   : > { %v4582_v36 = vrot.slane %v4581_v3, 1  ;;  %v4602_v54 = vadd.f32 %v4601_v52, %v4600_v63  ;;  %v14590_v52 = vpack.c.bf16 %v4460_v20, %v4456_v19  ;;  %v14592_v63 = vpack.c.bf16 %v4462_v61, %v4458_v31  ;;  %v4469_v20 = vld [vmem:[#allocation15 + $0x4b0] sm:$0xff] }
 0x5f1   : > { %v4589_v9 = vrot.slane %v4588_v39, 1  ;;  %v14600_v19 = vpack.c.bf16 %v4468_v14, %v4464_v59  ;;  %v14602_v31 = vpack.c.bf16 %v4470_v51, %v4466_v60  ;;  %v14608_v61 = vpack.c.bf16 %v4467_v58, %v4463_v50  ;;  %v4471_v51 = vld [vmem:[#allocation15 + $0x4c0] sm:$0xff]  ;;  %v4482_v59 = vld [vmem:[#allocation15 + $0x518] sm:$0xff] }
 0x5f2   : > { %v4603_v15 = vrot.slane %v4602_v54, 1  ;;  %v4583_v57 = vadd.f32 %v4582_v36, %v4581_v3  ;;  %v14598_v3 = vpack.c.bf16 %v4461_v49, %v4457_v35  ;;  %v4472_v36 = vld [vmem:[#allocation15 + $0x4c8] sm:$0xff]  ;;  %v4475_v60 = vld [vmem:[#allocation15 + $0x4e0] sm:$0xff] }
 0x5f3   : > { %v4590_v1 = vadd.f32 %v4589_v9, %v4588_v39  ;;  %16032 = vst [vmem:[#allocation92_spill] sm:$0xff] %v14600_v19  ;;  %16033 = vst [vmem:[#allocation93_spill] sm:$0xff] %v14602_v31  ;;  %v4465_v9 = vld [vmem:[#allocation15 + $0x490] sm:$0xff]  ;;  %v4480_v35 = vld [vmem:[#allocation15 + $0x508] sm:$0xff]  ;;  %v14620_v50 = vpack.c.bf16 %v4475_v60, %v4471_v51 }
 0x5f4   : > { %v4604_v39 = vadd.f32 %v4603_v15, %v4602_v54  ;;  %v4476_v15 = vld [vmem:[#allocation15 + $0x4e8] sm:$0xff]  ;;  %v4474_v54 = vld [vmem:[#allocation15 + $0x4d8] sm:$0xff]  ;;  %16034 = vst [vmem:[#allocation94_spill] sm:$0xff] %v14608_v61  ;;  %v14610_v14 = vpack.c.bf16 %v4469_v20, %v4465_v9  ;;  %v4479_v9 = vld [vmem:[#allocation15 + $0x500] sm:$0xff] }
 0x5f5   : > { %4669 = vmatprep.mubr.f32.mxu1 %v4590_v1  ;;  %4811 = vmatprep.mubr.f32.mxu0 %v4590_v1  ;;  %v14614_v1 = vpack.c.bf16 %v4476_v15, %v4472_v36  ;;  %v14616_v11 = vpack.c.bf16 %v4478_v21, %v4474_v54  ;;  %v4484_v49 = vld [vmem:[#allocation15 + $0x528] sm:$0xff]  ;;  %16038 = vst [vmem:[#allocation98_spill] sm:$0xff] %v14620_v50  ;;  %v4483_v20 = vld [vmem:[#allocation15 + $0x520] sm:$0xff]  ;;  %v4481_v54 = vld [vmem:[#allocation15 + $0x510] sm:$0xff] }
 0x5f6   : > { %4670 = vmatmul.mubr.f32.vlgmr.msra.gmra.mrb[8].mxu1 %v4583_v57  ;;  %4812 = vmatmul.mubr.f32.vlgmr.msra.gmra.mrb[6].mxu0 %v4583_v57  ;;  %16035 = vst [vmem:[#allocation95_spill] sm:$0xff] %v14610_v14  ;;  %v4477_v57 = vld [vmem:[#allocation15 + $0x4f0] sm:$0xff]  ;;  %v14626_v36 = vpack.c.bf16 %v4484_v49, %v4480_v35  ;;  %v14632_v51 = vpack.c.bf16 %v4483_v20, %v4479_v9 }
 0x5f7   : > { %10714 = vmatpush1.bf16.msra.mxu1 %v14586_v37  ;;  %10842 = vmatpush1.bf16.msra.mxu0 %v14588_v12  ;;  %16036 = vst [vmem:[#allocation96_spill] sm:$0xff] %v14614_v1  ;;  %16037 = vst [vmem:[#allocation97_spill] sm:$0xff] %v14616_v11  ;;  %v14622_v58 = vpack.c.bf16 %v4477_v57, %v4473_v33  ;;  %v4485_v21 = vld [vmem:[#allocation15 + $0x530] sm:$0xff]  ;;  %v4487_v33 = vld [vmem:[#allocation15 + $0x540] sm:$0xff] }
 0x5f8   : > { %4740 = vmatprep.mubr.f32.mxu1 %v4604_v39  ;;  %4882 = vmatprep.mubr.f32.mxu0 %v4604_v39  ;;  %v4486_v39 = vld [vmem:[#allocation15 + $0x538] sm:$0xff]  ;;  %16040 = vst [vmem:[#allocation100_spill] sm:$0xff] %v14626_v36  ;;  %16042 = vst [vmem:[#allocation102_spill] sm:$0xff] %v14632_v51  ;;  %v14634_v60 = vpack.c.bf16 %v4485_v21, %v4481_v54  ;;  %v4491_v57 = vld [vmem:[#allocation15 + $0x560] sm:$0xff] }
 0x5f9   : > { %10716 = vmatprep.subr.bf16.mxu1 %v14590_v52  ;;  %10844 = vmatprep.subr.bf16.mxu0 %v14592_v63  ;;  %16039 = vst [vmem:[#allocation99_spill] sm:$0xff] %v14622_v58  ;;  %v14628_v15 = vpack.c.bf16 %v4486_v39, %v4482_v59  ;;  %v4489_v59 = vld [vmem:[#allocation15 + $0x550] sm:$0xff]  ;;  %v14644_v9 = vpack.c.bf16 %v4491_v57, %v4487_v33  ;;  %v4495_v54 = vld [vmem:[#allocation15 + $0x580] sm:$0xff] }
 0x5fa   : > { %16043 = vst [vmem:[#allocation103_spill] sm:$0xff] %v14634_v60  ;;  %v4493_v39 = vld [vmem:[#allocation15 + $0x570] sm:$0xff]  ;;  %v4499_v21 = vld [vmem:[#allocation15 + $0x5a0] sm:$0xff] }
 0x5fb   : > { %10718 = vmatpush1.bf16.msra.mxu1 %v14596_v27  ;;  %10846 = vmatpush1.bf16.msra.mxu0 %v14598_v3  ;;  %16041 = vst [vmem:[#allocation101_spill] sm:$0xff] %v14628_v15  ;;  %16046 = vst [vmem:[#allocation106_spill] sm:$0xff] %v14644_v9  ;;  %v14646_v20 = vpack.c.bf16 %v4493_v39, %v4489_v59  ;;  %v14656_v33 = vpack.c.bf16 %v4499_v21, %v4495_v54  ;;  %v4503_v59 = vld [vmem:[#allocation15 + $0x5c0] sm:$0xff] }
 0x5fc   : > { %10720 = vmatprep.subr.bf16.mxu1 %v14600_v19  ;;  %10848 = vmatprep.subr.bf16.mxu0 %v14602_v31  ;;  %v4488_v31 = vld [vmem:[#allocation15 + $0x548] sm:$0xff]  ;;  %v4490_v19 = vld [vmem:[#allocation15 + $0x558] sm:$0xff]  ;;  %v4507_v39 = vld [vmem:[#allocation15 + $0x5e0] sm:$0xff] }
 0x5fd   : > { %16047 = vst [vmem:[#allocation107_spill] sm:$0xff] %v14646_v20  ;;  %16050 = vst [vmem:[#allocation110_spill] sm:$0xff] %v14656_v33  ;;  %v14668_v54 = vpack.c.bf16 %v4507_v39, %v4503_v59  ;;  %v14679_v59 = vsub.s32 2, %v14545_v26  ;;  %v4521_v26 = vld [vmem:[#allocation15 + $0x650] sm:$0xff] }
 0x5ff   : > { %10722 = vmatpush1.bf16.msra.mxu1 %v14608_v61  ;;  %10850 = vmatpush1.bf16.msra.mxu0 %v14610_v14  ;;  %v4492_v61 = vld [vmem:[#allocation15 + $0x568] sm:$0xff]  ;;  %v4494_v14 = vld [vmem:[#allocation15 + $0x578] sm:$0xff]  ;;  %16054 = vst [vmem:[#allocation114_spill] sm:$0xff] %v14668_v54  ;;  %16058 = vst [vmem:[#allocation118_spill] sm:$0xff] %v14679_v59 }
 0x600   : > { %10724 = vmatprep.subr.bf16.mxu1 %v14614_v1  ;;  %10852 = vmatprep.subr.bf16.mxu0 %v14616_v11  ;;  %v14638_v35 = vpack.c.bf16 %v4492_v61, %v4488_v31  ;;  %v14640_v49 = vpack.c.bf16 %v4494_v14, %v4490_v19  ;;  %v4496_v11 = vld [vmem:[#allocation15 + $0x588] sm:$0xff]  ;;  %v4498_v1 = vld [vmem:[#allocation15 + $0x598] sm:$0xff]  ;;  %v4497_v61 = vld [vmem:[#allocation15 + $0x590] sm:$0xff] }
 0x601   : > { %v4501_v14 = vld [vmem:[#allocation15 + $0x5b0] sm:$0xff] }
 0x602   : > { %16044 = vst [vmem:[#allocation104_spill] sm:$0xff] %v14638_v35  ;;  %16045 = vst [vmem:[#allocation105_spill] sm:$0xff] %v14640_v49  ;;  %v14658_v57 = vpack.c.bf16 %v4501_v14, %v4497_v61  ;;  %v4511_v61 = vld [vmem:[#allocation15 + $0x600] sm:$0xff] }
 0x603   : > { %10726 = vmatpush1.bf16.msra.mxu1 %v14620_v50  ;;  %10854 = vmatpush1.bf16.msra.mxu0 %v14622_v58  ;;  %v4500_v50 = vld [vmem:[#allocation15 + $0x5a8] sm:$0xff]  ;;  %v4502_v58 = vld [vmem:[#allocation15 + $0x5b8] sm:$0xff]  ;;  %v4515_v14 = vld [vmem:[#allocation15 + $0x620] sm:$0xff] }
 0x604   : > { %10728 = vmatprep.subr.bf16.mxu1 %v14626_v36  ;;  %10856 = vmatprep.subr.bf16.mxu0 %v14628_v15  ;;  %v14650_v19 = vpack.c.bf16 %v4500_v50, %v4496_v11  ;;  %v14652_v31 = vpack.c.bf16 %v4502_v58, %v4498_v1  ;;  %v4504_v15 = vld [vmem:[#allocation15 + $0x5c8] sm:$0xff]  ;;  %v4506_v36 = vld [vmem:[#allocation15 + $0x5d8] sm:$0xff]  ;;  %16051 = vst [vmem:[#allocation111_spill] sm:$0xff] %v14658_v57  ;;  %v4505_v50 = vld [vmem:[#allocation15 + $0x5d0] sm:$0xff] }
 0x605   : > { %v4509_v58 = vld [vmem:[#allocation15 + $0x5f0] sm:$0xff]  ;;  %v14683_v39 = vpack.c.bf16 %v4515_v14, %v4511_v61  ;;  %v1874_v61 = vrot.slane %v14550_v62, %v14679_v59 }
 0x606   : > { %16048 = vst [vmem:[#allocation108_spill] sm:$0xff] %v14650_v19  ;;  %16049 = vst [vmem:[#allocation109_spill] sm:$0xff] %v14652_v31  ;;  %v14670_v21 = vpack.c.bf16 %v4509_v58, %v4505_v50  ;;  %v4525_v58 = vld [vmem:[#allocation15 + $0x670] sm:$0xff] }
 0x607   : > { %10730 = vmatpush1.bf16.msra.mxu1 %v14632_v51  ;;  %10858 = vmatpush1.bf16.msra.mxu0 %v14634_v60  ;;  %v4508_v51 = vld [vmem:[#allocation15 + $0x5e8] sm:$0xff]  ;;  %v4510_v60 = vld [vmem:[#allocation15 + $0x5f8] sm:$0xff]  ;;  %16059 = vst [vmem:[#allocation119_spill] sm:$0xff] %v14683_v39  ;;  %v4533_v59 = vld [vmem:[#allocation15 + $0x6b0] sm:$0xff] }
 0x608   : > { %10732 = vmatprep.subr.bf16.mxu1 %v14638_v35  ;;  %10860 = vmatprep.subr.bf16.mxu0 %v14640_v49  ;;  %v14662_v1 = vpack.c.bf16 %v4508_v51, %v4504_v15  ;;  %v14664_v11 = vpack.c.bf16 %v4510_v60, %v4506_v36  ;;  %v4512_v49 = vld [vmem:[#allocation15 + $0x608] sm:$0xff]  ;;  %v4514_v35 = vld [vmem:[#allocation15 + $0x618] sm:$0xff]  ;;  %16055 = vst [vmem:[#allocation115_spill] sm:$0xff] %v14670_v21  ;;  %v4513_v51 = vld [vmem:[#allocation15 + $0x610] sm:$0xff] }
 0x609   : > { %v4517_v60 = vld [vmem:[#allocation15 + $0x630] sm:$0xff] }
 0x60a   : > { %16052 = vst [vmem:[#allocation112_spill] sm:$0xff] %v14662_v1  ;;  %16053 = vst [vmem:[#allocation113_spill] sm:$0xff] %v14664_v11  ;;  %v14685_v50 = vpack.c.bf16 %v4517_v60, %v4513_v51  ;;  %v14699_v51 = vpack.c.bf16 %v4525_v58, %v4521_v26  ;;  %v4529_v60 = vld [vmem:[#allocation15 + $0x690] sm:$0xff]  ;;  %v4542_v26 = vld [vmem:[#allocation15 + $0x6f8] sm:$0xff]  ;;  %v14711_v58 = vadd.f32 %v14562_v42, %v1874_v61 }
 0x60b   : > { %10734 = vmatpush1.bf16.msra.mxu1 %v14644_v9  ;;  %10862 = vmatpush1.bf16.msra.mxu0 %v14646_v20  ;;  %v4516_v9 = vld [vmem:[#allocation15 + $0x628] sm:$0xff]  ;;  %v4518_v20 = vld [vmem:[#allocation15 + $0x638] sm:$0xff] }
 0x60c   : > { %10736 = vmatprep.subr.bf16.mxu1 %v14650_v19  ;;  %10864 = vmatprep.subr.bf16.mxu0 %v14652_v31  ;;  %v14674_v36 = vpack.c.bf16 %v4516_v9, %v4512_v49  ;;  %v14676_v15 = vpack.c.bf16 %v4518_v20, %v4514_v35  ;;  %v4520_v31 = vld [vmem:[#allocation15 + $0x648] sm:$0xff]  ;;  %v4522_v19 = vld [vmem:[#allocation15 + $0x658] sm:$0xff]  ;;  %16060 = vst [vmem:[#allocation120_spill] sm:$0xff] %v14685_v50  ;;  %v4519_v49 = vld [vmem:[#allocation15 + $0x640] sm:$0xff] }
 0x60d   : > { %v4523_v35 = vld [vmem:[#allocation15 + $0x660] sm:$0xff]  ;;  %16064 = vst [vmem:[#allocation124_spill] sm:$0xff] %v14699_v51 }
 0x60e   : > { %16056 = vst [vmem:[#allocation116_spill] sm:$0xff] %v14674_v36  ;;  %16057 = vst [vmem:[#allocation117_spill] sm:$0xff] %v14676_v15  ;;  %v14697_v14 = vpack.c.bf16 %v4523_v35, %v4519_v49  ;;  %v4540_v49 = vld [vmem:[#allocation15 + $0x6e8] sm:$0xff]  ;;  %v4538_v35 = vld [vmem:[#allocation15 + $0x6d8] sm:$0xff] }
 0x60f   : > { %10738 = vmatpush1.bf16.msra.mxu1 %v14656_v33  ;;  %10866 = vmatpush1.bf16.msra.mxu0 %v14658_v57  ;;  %v4524_v33 = vld [vmem:[#allocation15 + $0x668] sm:$0xff]  ;;  %v4526_v57 = vld [vmem:[#allocation15 + $0x678] sm:$0xff]  ;;  %v14725_v42 = vpack.c.bf16 %v4542_v26, %v4538_v35  ;;  %v4545_v26 = vld [vmem:[#allocation15 + $0x710] sm:$0xff] }
 0x610   : > { %10740 = vmatprep.subr.bf16.mxu1 %v14662_v1  ;;  %10868 = vmatprep.subr.bf16.mxu0 %v14664_v11  ;;  %v14689_v9 = vpack.c.bf16 %v4524_v33, %v4520_v31  ;;  %v14691_v20 = vpack.c.bf16 %v4526_v57, %v4522_v19  ;;  %v4528_v11 = vld [vmem:[#allocation15 + $0x688] sm:$0xff]  ;;  %v4530_v1 = vld [vmem:[#allocation15 + $0x698] sm:$0xff]  ;;  %16063 = vst [vmem:[#allocation123_spill] sm:$0xff] %v14697_v14  ;;  %v4527_v31 = vld [vmem:[#allocation15 + $0x680] sm:$0xff] }
 0x611   : > { %v4531_v19 = vld [vmem:[#allocation15 + $0x6a0] sm:$0xff]  ;;  %v14702_v33 = vadd.f32 %v14570_v53, %v1874_v61  ;;  %16070 = vst [vmem:[#allocation130_spill] sm:$0xff] %v14725_v42  ;;  %v4537_v61 = vld [vmem:[#allocation15 + $0x6d0] sm:$0xff] }
 0x612   : > { %16061 = vst [vmem:[#allocation121_spill] sm:$0xff] %v14689_v9  ;;  %16062 = vst [vmem:[#allocation122_spill] sm:$0xff] %v14691_v20  ;;  %v14715_v53 = vpack.c.bf16 %v4531_v19, %v4527_v31  ;;  %v4548_v31 = vld [vmem:[#allocation15 + $0x728] sm:$0xff]  ;;  %v4546_v19 = vld [vmem:[#allocation15 + $0x718] sm:$0xff] }
 0x613   : > { %10742 = vmatpush1.bf16.msra.mxu1 %v14668_v54  ;;  %10870 = vmatpush1.bf16.msra.mxu0 %v14670_v21  ;;  %v4532_v54 = vld [vmem:[#allocation15 + $0x6a8] sm:$0xff]  ;;  %v4534_v21 = vld [vmem:[#allocation15 + $0x6b8] sm:$0xff] }
 0x614   : > { %10744 = vmatprep.subr.bf16.mxu1 %v14674_v36  ;;  %10872 = vmatprep.subr.bf16.mxu0 %v14676_v15  ;;  %v14706_v57 = vpack.c.bf16 %v4532_v54, %v4528_v11  ;;  %v14708_v62 = vpack.c.bf16 %v4534_v21, %v4530_v1  ;;  %16067 = vst [vmem:[#allocation127_spill] sm:$0xff] %v14715_v53  ;;  %v4535_v11 = vld [vmem:[#allocation15 + $0x6c0] sm:$0xff]  ;;  %v4556_v15 = vld [vmem:[#allocation15 + $0x768] sm:$0xff] }
 0x615   : > { %v4539_v1 = vld [vmem:[#allocation15 + $0x6e0] sm:$0xff]  ;;  %v4591_v54 = vadd.f32 %v14702_v33, %v14711_v58  ;;  %v4564_v36 = vld [vmem:[#allocation15 + $0x7a8] sm:$0xff] }
 0x616   : > { %16065 = vst [vmem:[#allocation125_spill] sm:$0xff] %v14706_v57  ;;  %16066 = vst [vmem:[#allocation126_spill] sm:$0xff] %v14708_v62 }
 0x617   : > { %10746 = vmatpush1.bf16.msra.mxu1 %v14683_v39  ;;  %10874 = vmatpush1.bf16.msra.mxu0 %v14685_v50  ;;  %v4536_v50 = vld [vmem:[#allocation15 + $0x6c8] sm:$0xff]  ;;  %v4549_v39 = vld [vmem:[#allocation15 + $0x730] sm:$0xff] }
 0x618   : > { %10748 = vmatprep.subr.bf16.mxu1 %v14689_v9  ;;  %10876 = vmatprep.subr.bf16.mxu0 %v14691_v20  ;;  %v14717_v20 = vpack.c.bf16 %v4533_v59, %v4529_v60  ;;  %v14723_v21 = vpack.c.bf16 %v4540_v49, %v4536_v50  ;;  %v4550_v59 = vld [vmem:[#allocation15 + $0x738] sm:$0xff]  ;;  %v14729_v60 = vpack.c.bf16 %v4539_v1, %v4535_v11  ;;  %v4592_v50 = vrot.slane %v4591_v54, 4 }
 0x619   : > { %v14737_v35 = vpack.c.bf16 %v4550_v59, %v4546_v19  ;;  %v4558_v11 = vld [vmem:[#allocation15 + $0x778] sm:$0xff]  ;;  %v14743_v1 = vpack.c.bf16 %v4549_v39, %v4545_v26  ;;  %v4553_v59 = vld [vmem:[#allocation15 + $0x750] sm:$0xff] }
 0x61a   : > { %16068 = vst [vmem:[#allocation128_spill] sm:$0xff] %v14717_v20  ;;  %16069 = vst [vmem:[#allocation129_spill] sm:$0xff] %v14723_v21  ;;  %v4561_v26 = vld [vmem:[#allocation15 + $0x790] sm:$0xff] }
 0x61b   : > { %10750 = vmatpush1.bf16.msra.mxu1 %v14697_v14  ;;  %10878 = vmatpush1.bf16.msra.mxu0 %v14699_v51  ;;  %v4541_v14 = vld [vmem:[#allocation15 + $0x6f0] sm:$0xff]  ;;  %v4544_v51 = vld [vmem:[#allocation15 + $0x708] sm:$0xff]  ;;  %16071 = vst [vmem:[#allocation131_spill] sm:$0xff] %v14729_v60  ;;  %16073 = vst [vmem:[#allocation133_spill] sm:$0xff] %v14737_v35 }
 0x61c   : > { %10752 = vmatprep.subr.bf16.mxu1 %v14706_v57  ;;  %10880 = vmatprep.subr.bf16.mxu0 %v14708_v62  ;;  %v14731_v9 = vpack.c.bf16 %v4541_v14, %v4537_v61  ;;  %v4543_v57 = vld [vmem:[#allocation15 + $0x700] sm:$0xff]  ;;  %v14735_v49 = vpack.c.bf16 %v4548_v31, %v4544_v51  ;;  %16075 = vst [vmem:[#allocation135_spill] sm:$0xff] %v14743_v1 }
 0x61d   : > { %v4547_v62 = vld [vmem:[#allocation15 + $0x720] sm:$0xff]  ;;  %v4593_v51 = vadd.f32 %v4592_v50, %v4591_v54 }
 0x61e   : > { %16072 = vst [vmem:[#allocation132_spill] sm:$0xff] %v14731_v9  ;;  %v14741_v14 = vpack.c.bf16 %v4547_v62, %v4543_v57  ;;  %v4551_v61 = vld [vmem:[#allocation15 + $0x740] sm:$0xff]  ;;  %v4566_v57 = vld [vmem:[#allocation15 + $0x7b8] sm:$0xff] }
 0x61f   : > { %10754 = vmatpush1.bf16.msra.mxu1 %v14715_v53  ;;  %10882 = vmatpush1.bf16.msra.mxu0 %v14717_v20  ;;  %v4552_v53 = vld [vmem:[#allocation15 + $0x748] sm:$0xff]  ;;  %v4554_v20 = vld [vmem:[#allocation15 + $0x758] sm:$0xff]  ;;  %v4559_v54 = vld [vmem:[#allocation15 + $0x780] sm:$0xff] }
 0x620   : > { %10756 = vmatprep.subr.bf16.mxu1 %v14723_v21  ;;  %10884 = vmatprep.subr.bf16.mxu0 %v14725_v42  ;;  %16074 = vst [vmem:[#allocation134_spill] sm:$0xff] %v14741_v14  ;;  %v4555_v42 = vld [vmem:[#allocation15 + $0x760] sm:$0xff]  ;;  %v14747_v31 = vpack.c.bf16 %v4556_v15, %v4552_v53  ;;  %v14749_v19 = vpack.c.bf16 %v4558_v11, %v4554_v20  ;;  %v4557_v21 = vld [vmem:[#allocation15 + $0x770] sm:$0xff]  ;;  %v4594_v15 = vrot.slane %v4593_v51, 2 }
 0x621   : > { %v14753_v39 = vpack.c.bf16 %v4555_v42, %v4551_v61  ;;  %v14755_v62 = vpack.c.bf16 %v4557_v21, %v4553_v59  ;;  %v4563_v50 = vld [vmem:[#allocation15 + $0x7a0] sm:$0xff]  ;;  %v4565_v11 = vld [vmem:[#allocation15 + $0x7b0] sm:$0xff]  ;;  %v4574_v42 = vld [vmem:[#allocation15 + $0x7f8] sm:$0xff] }
 0x622   : > { %16076 = vst [vmem:[#allocation136_spill] sm:$0xff] %v14747_v31  ;;  %16077 = vst [vmem:[#allocation137_spill] sm:$0xff] %v14749_v19  ;;  %v14765_v21 = vpack.c.bf16 %v4563_v50, %v4559_v54  ;;  %v14767_v61 = vpack.c.bf16 %v4565_v11, %v4561_v26  ;;  %v4567_v59 = vld [vmem:[#allocation15 + $0x7c0] sm:$0xff] }
 0x623   : > { %10758 = vmatpush1.bf16.msra.mxu1 %v14729_v60  ;;  %10886 = vmatpush1.bf16.msra.mxu0 %v14731_v9  ;;  %v4560_v60 = vld [vmem:[#allocation15 + $0x788] sm:$0xff]  ;;  %v4562_v9 = vld [vmem:[#allocation15 + $0x798] sm:$0xff] }
 0x624   : > { %10760 = vmatprep.subr.bf16.mxu1 %v14735_v49  ;;  %10888 = vmatprep.subr.bf16.mxu0 %v14737_v35  ;;  %v14759_v20 = vpack.c.bf16 %v4564_v36, %v4560_v60  ;;  %v14761_v53 = vpack.c.bf16 %v4566_v57, %v4562_v9  ;;  %v4572_v35 = vld [vmem:[#allocation15 + $0x7e8] sm:$0xff]  ;;  %v4571_v60 = vld [vmem:[#allocation15 + $0x7e0] sm:$0xff]  ;;  %v4569_v57 = vld [vmem:[#allocation15 + $0x7d0] sm:$0xff] }
 0x625   : > { %v14777_v54 = vpack.c.bf16 %v4571_v60, %v4567_v59 }
 0x627   : > { %10762 = vmatpush1.bf16.msra.mxu1 %v14741_v14  ;;  %10890 = vmatpush1.bf16.msra.mxu0 %v14743_v1  ;;  %v4568_v14 = vld [vmem:[#allocation15 + $0x7c8] sm:$0xff]  ;;  %v4570_v1 = vld [vmem:[#allocation15 + $0x7d8] sm:$0xff] }
 0x628   : > { %10764 = vmatprep.subr.bf16.mxu1 %v14747_v31  ;;  %10892 = vmatprep.subr.bf16.mxu0 %v14749_v19  ;;  %v4595_v19 = vadd.f32 %v4594_v15, %v4593_v51  ;;  %v14771_v36 = vpack.c.bf16 %v4572_v35, %v4568_v14  ;;  %v14773_v9 = vpack.c.bf16 %v4574_v42, %v4570_v1  ;;  %v4573_v31 = vld [vmem:[#allocation15 + $0x7f0] sm:$0xff]  ;;  %v16111_v1 = vld [vmem:[#allocation82_spill] sm:$0xff]  ;;  %v16112_v15 = vld [vmem:[#allocation83_spill] sm:$0xff] }
 0x629   : > { %v14779_v50 = vpack.c.bf16 %v4573_v31, %v4569_v57  ;;  %v16110_v14 = vld [vmem:[#allocation81_spill] sm:$0xff]  ;;  %v16113_v57 = vld [vmem:[#allocation86_spill] sm:$0xff] }
 0x62a   : > { %v4596_v51 = vrot.slane %v4595_v19, 1 }
 0x62b   : > { %10766 = vmatpush1.bf16.msra.mxu1 %v14753_v39  ;;  %10894 = vmatpush1.bf16.msra.mxu0 %v14755_v62 }
 0x62c   : > { %10768 = vmatprep.subr.bf16.mxu1 %v14759_v20  ;;  %10896 = vmatprep.subr.bf16.mxu0 %v14761_v53  ;;  %v4597_v35 = vadd.f32 %v4596_v51, %v4595_v19 }
 0x62f   : > { %10770 = vmatpush1.bf16.msra.mxu1 %v14765_v21  ;;  %10898 = vmatpush1.bf16.msra.mxu0 %v14767_v61 }
 0x630   : > { %10772 = vmatprep.subr.bf16.mxu1 %v14771_v36  ;;  %10900 = vmatprep.subr.bf16.mxu0 %v14773_v9 }
 0x633   : > { %10774 = vmatpush1.bf16.msra.mxu1 %v14777_v54  ;;  %10902 = vmatpush1.bf16.msra.mxu0 %v14779_v50 }
 0x634   : > { %10904 = vmatprep.subr.bf16.mxu1 %v14345_v2  ;;  %11032 = vmatprep.subr.bf16.mxu0 %v14347_v38  ;;  %v16078_v2 = vld [vmem:[#allocation49_spill] sm:$0xff]  ;;  %v16079_v38 = vld [vmem:[#allocation50_spill] sm:$0xff] }
 0x636   : > { %4741 = vmatmul.mubr.f32.vlgmr.msra.gmra.mrb[8].mxu1 %v4597_v35  ;;  %4883 = vmatmul.mubr.f32.vlgmr.msra.gmra.mrb[6].mxu0 %v4597_v35  ;;  %v16114_v35 = vld [vmem:[#allocation87_spill] sm:$0xff] }
 0x637   : > { %10906 = vmatpush1.bf16.msra.mxu1 %v14349_v46  ;;  %11034 = vmatpush1.bf16.msra.mxu0 %v14352_v47  ;;  %v16080_v46 = vld [vmem:[#allocation51_spill] sm:$0xff]  ;;  %v16081_v47 = vld [vmem:[#allocation52_spill] sm:$0xff] }
 0x638   : > { %10908 = vmatprep.subr.bf16.mxu1 %v14354_v48  ;;  %11036 = vmatprep.subr.bf16.mxu0 %v14358_v56  ;;  %v16082_v48 = vld [vmem:[#allocation53_spill] sm:$0xff]  ;;  %v16083_v56 = vld [vmem:[#allocation54_spill] sm:$0xff] }
 0x63b   : > { %10910 = vmatpush1.bf16.msra.mxu1 %v14361_v5  ;;  %11038 = vmatpush1.bf16.msra.mxu0 %v14365_v6  ;;  %v16084_v5 = vld [vmem:[#allocation55_spill] sm:$0xff]  ;;  %v16085_v6 = vld [vmem:[#allocation56_spill] sm:$0xff] }
 0x63c   : > { %10912 = vmatprep.subr.bf16.mxu1 %v14367_v7  ;;  %11040 = vmatprep.subr.bf16.mxu0 %v14370_v10  ;;  %v16086_v7 = vld [vmem:[#allocation57_spill] sm:$0xff]  ;;  %v16087_v10 = vld [vmem:[#allocation58_spill] sm:$0xff] }
 0x63f   : > { %10914 = vmatpush1.bf16.msra.mxu1 %v14373_v16  ;;  %11042 = vmatpush1.bf16.msra.mxu0 %v14377_v17  ;;  %v16088_v16 = vld [vmem:[#allocation59_spill] sm:$0xff]  ;;  %v16089_v17 = vld [vmem:[#allocation60_spill] sm:$0xff] }
 0x640   : > { %10916 = vmatprep.subr.bf16.mxu1 %v14379_v18  ;;  %11044 = vmatprep.subr.bf16.mxu0 %v14382_v22  ;;  %v16090_v18 = vld [vmem:[#allocation61_spill] sm:$0xff]  ;;  %v16091_v22 = vld [vmem:[#allocation62_spill] sm:$0xff] }
 0x643   : > { %10918 = vmatpush1.bf16.msra.mxu1 %v14385_v28  ;;  %11046 = vmatpush1.bf16.msra.mxu0 %v14389_v29  ;;  %v16092_v28 = vld [vmem:[#allocation63_spill] sm:$0xff]  ;;  %v16093_v29 = vld [vmem:[#allocation64_spill] sm:$0xff] }
 0x644   : > { %10920 = vmatprep.subr.bf16.mxu1 %v14391_v30  ;;  %11048 = vmatprep.subr.bf16.mxu0 %v14394_v34  ;;  %v16094_v30 = vld [vmem:[#allocation65_spill] sm:$0xff]  ;;  %v16095_v34 = vld [vmem:[#allocation66_spill] sm:$0xff] }
 0x647   : > { %10922 = vmatpush1.bf16.msra.mxu1 %v14397_v41  ;;  %11050 = vmatpush1.bf16.msra.mxu0 %v14401_v43  ;;  %v16096_v41 = vld [vmem:[#allocation67_spill] sm:$0xff]  ;;  %v16097_v43 = vld [vmem:[#allocation68_spill] sm:$0xff] }
 0x648   : > { %10924 = vmatprep.subr.bf16.mxu1 %v14403_v44  ;;  %11052 = vmatprep.subr.bf16.mxu0 %v14406_v55  ;;  %v16098_v44 = vld [vmem:[#allocation69_spill] sm:$0xff]  ;;  %v16099_v55 = vld [vmem:[#allocation70_spill] sm:$0xff] }
 0x64b   : > { %10926 = vmatpush1.bf16.msra.mxu1 %v14409_v0  ;;  %11054 = vmatpush1.bf16.msra.mxu0 %v14413_v4  ;;  %v16100_v0 = vld [vmem:[#allocation71_spill] sm:$0xff]  ;;  %v16101_v4 = vld [vmem:[#allocation72_spill] sm:$0xff] }
 0x64c   : > { %10928 = vmatprep.subr.bf16.mxu1 %v14415_v8  ;;  %11056 = vmatprep.subr.bf16.mxu0 %v14418_v13  ;;  %v16102_v8 = vld [vmem:[#allocation73_spill] sm:$0xff]  ;;  %v16103_v13 = vld [vmem:[#allocation74_spill] sm:$0xff] }
 0x64f   : > { %10930 = vmatpush1.bf16.msra.mxu1 %v14421_v23  ;;  %11058 = vmatpush1.bf16.msra.mxu0 %v14425_v24  ;;  %v16104_v23 = vld [vmem:[#allocation75_spill] sm:$0xff]  ;;  %v16105_v24 = vld [vmem:[#allocation76_spill] sm:$0xff] }
 0x650   : > { %10932 = vmatprep.subr.bf16.mxu1 %v14427_v25  ;;  %11060 = vmatprep.subr.bf16.mxu0 %v14430_v32  ;;  %v16106_v25 = vld [vmem:[#allocation77_spill] sm:$0xff]  ;;  %v16107_v32 = vld [vmem:[#allocation78_spill] sm:$0xff] }
 0x653   : > { %10934 = vmatpush1.bf16.msra.mxu1 %v14433_v40  ;;  %11062 = vmatpush1.bf16.msra.mxu0 %v14437_v45  ;;  %v16108_v40 = vld [vmem:[#allocation79_spill] sm:$0xff]  ;;  %v16109_v45 = vld [vmem:[#allocation80_spill] sm:$0xff] }
 0x654   : > { %10936 = vmatprep.subr.bf16.mxu1 %v16078_v2  ;;  %11064 = vmatprep.subr.bf16.mxu0 %v16079_v38  ;;  %v16115_v38 = vld [vmem:[#allocation88_spill] sm:$0xff] }
 0x657   : > { %10938 = vmatpush1.bf16.msra.mxu1 %v16080_v46  ;;  %11066 = vmatpush1.bf16.msra.mxu0 %v16081_v47  ;;  %v16116_v47 = vld [vmem:[#allocation89_spill] sm:$0xff] }
 0x658   : > { %10940 = vmatprep.subr.bf16.mxu1 %v16082_v48  ;;  %11068 = vmatprep.subr.bf16.mxu0 %v16083_v56  ;;  %v16117_v56 = vld [vmem:[#allocation90_spill] sm:$0xff] }
 0x65b   : > { %10942 = vmatpush1.bf16.msra.mxu1 %v16084_v5  ;;  %11070 = vmatpush1.bf16.msra.mxu0 %v16085_v6  ;;  %v16118_v6 = vld [vmem:[#allocation91_spill] sm:$0xff] }
 0x65c   : > { %10944 = vmatprep.subr.bf16.mxu1 %v16086_v7  ;;  %11072 = vmatprep.subr.bf16.mxu0 %v16087_v10 }
 0x65f   : > { %10946 = vmatpush1.bf16.msra.mxu1 %v16088_v16  ;;  %11074 = vmatpush1.bf16.msra.mxu0 %v16089_v17 }
 0x660   : > { %10948 = vmatprep.subr.bf16.mxu1 %v16090_v18  ;;  %11076 = vmatprep.subr.bf16.mxu0 %v16091_v22 }
 0x663   : > { %10950 = vmatpush1.bf16.msra.mxu1 %v16092_v28  ;;  %11078 = vmatpush1.bf16.msra.mxu0 %v16093_v29 }
 0x664   : > { %10952 = vmatprep.subr.bf16.mxu1 %v16094_v30  ;;  %11080 = vmatprep.subr.bf16.mxu0 %v16095_v34 }
 0x667   : > { %10954 = vmatpush1.bf16.msra.mxu1 %v16096_v41  ;;  %11082 = vmatpush1.bf16.msra.mxu0 %v16097_v43 }
 0x668   : > { %10956 = vmatprep.subr.bf16.mxu1 %v16098_v44  ;;  %11084 = vmatprep.subr.bf16.mxu0 %v16099_v55 }
 0x66b   : > { %10958 = vmatpush1.bf16.msra.mxu1 %v16100_v0  ;;  %11086 = vmatpush1.bf16.msra.mxu0 %v16101_v4 }
 0x66c   : > { %10960 = vmatprep.subr.bf16.mxu1 %v16102_v8  ;;  %11088 = vmatprep.subr.bf16.mxu0 %v16103_v13 }
 0x66f   : > { %10962 = vmatpush1.bf16.msra.mxu1 %v16104_v23  ;;  %11090 = vmatpush1.bf16.msra.mxu0 %v16105_v24 }
 0x670   : > { %10964 = vmatprep.subr.bf16.mxu1 %v16106_v25  ;;  %11092 = vmatprep.subr.bf16.mxu0 %v16107_v32 }
 0x673   : > { %10966 = vmatpush1.bf16.msra.mxu1 %v16108_v40  ;;  %11094 = vmatpush1.bf16.msra.mxu0 %v16109_v45 }
 0x674   : > { %10968 = vmatprep.subr.bf16.mxu1 %v16110_v14  ;;  %11096 = vmatprep.subr.bf16.mxu0 %v16111_v1 }
 0x709   : > { %v4742_v31 = vpop.f32.mrb[8].mxu1  ;;  %v14851_v19 = vpop.f32.mrb[6].mxu0 }
 0x70a   : > { %v4892_v26 = vrot.slane %v4742_v31, %v16112_v15  ;;  %v4744_v11 = vpop.f32.mrb[9].mxu1  ;;  %v4886_v42 = vpop.f32.mrb[7].mxu0 }
 0x70b   : > { %v4896_v59 = vrot.slane %v4744_v11, %v16112_v15  ;;  %v4904_v60 = vrot.slane %v4886_v42, %v16112_v15  ;;  %v16119_v11 = vld [vmem:[#allocation92_spill] sm:$0xff]  ;;  %v16120_v42 = vld [vmem:[#allocation93_spill] sm:$0xff] }
 0x70c   : > { %v14857_v51 = vsub.f32 %v16113_v57, %v4892_v26  ;;  %v14860_v2 = vsub.f32 %v16114_v35, %v4892_v26  ;;  %v16125_v57 = vld [vmem:[#allocation98_spill] sm:$0xff]  ;;  %v16130_v35 = vld [vmem:[#allocation103_spill] sm:$0xff] }
 0x70d   : > { %v14863_v46 = vsub.f32 %v16115_v38, %v4896_v59  ;;  %v14866_v48 = vsub.f32 %v16116_v47, %v4896_v59  ;;  %v14869_v5 = vsub.f32 %v16117_v56, %v4904_v60  ;;  %v14872_v7 = vsub.f32 %v16118_v6, %v4904_v60  ;;  %v16121_v59 = vld [vmem:[#allocation94_spill] sm:$0xff]  ;;  %v16122_v60 = vld [vmem:[#allocation95_spill] sm:$0xff]  ;;  %v16131_v38 = vld [vmem:[#allocation104_spill] sm:$0xff] }
 0x70e   : > { %v4913_v10 = vmul.f32 %v14857_v51, %v14857_v51  ;;  %v4917_v16 = vmul.f32 %v14860_v2, %v14860_v2  ;;  %v16132_v47 = vld [vmem:[#allocation105_spill] sm:$0xff]  ;;  %v16133_v56 = vld [vmem:[#allocation106_spill] sm:$0xff]  ;;  %v16134_v6 = vld [vmem:[#allocation107_spill] sm:$0xff] }
 0x70f   : > { %v4914_v17 = vmul.f32 %v14863_v46, %v14863_v46  ;;  %v4918_v18 = vmul.f32 %v14866_v48, %v14866_v48  ;;  %v4916_v22 = vmul.f32 %v14869_v5, %v14869_v5  ;;  %v4920_v28 = vmul.f32 %v14872_v7, %v14872_v7 }
 0x710   : > { %v4921_v29 = vadd.f32 %v4917_v16, %v4913_v10  ;;  %v16135_v10 = vld [vmem:[#allocation108_spill] sm:$0xff]  ;;  %v16136_v16 = vld [vmem:[#allocation109_spill] sm:$0xff] }
 0x711   : > { %v4928_v30 = vadd.f32 %v4918_v18, %v4914_v17  ;;  %v4942_v34 = vadd.f32 %v4920_v28, %v4916_v22  ;;  %v16137_v17 = vld [vmem:[#allocation110_spill] sm:$0xff]  ;;  %v16138_v18 = vld [vmem:[#allocation111_spill] sm:$0xff]  ;;  %v4900_v22 = vrot.slane %v14851_v19, %v16112_v15  ;;  %v16139_v28 = vld [vmem:[#allocation112_spill] sm:$0xff] }
 0x712   : > { %v4922_v41 = vrot.slane %v4921_v29, 4  ;;  %v16146_v19 = vld [vmem:[#allocation120_spill] sm:$0xff] }
 0x713   : > { %v4929_v43 = vrot.slane %v4928_v30, 4  ;;  %v4943_v44 = vrot.slane %v4942_v34, 4 }
 0x714   : > { %v4923_v55 = vadd.f32 %v4922_v41, %v4921_v29  ;;  %v16140_v29 = vld [vmem:[#allocation113_spill] sm:$0xff]  ;;  %v14919_v41 = vsub.f32 %v14711_v58, %v4900_v22  ;;  %v16148_v58 = vld [vmem:[#allocation122_spill] sm:$0xff] }
 0x715   : > { %v4930_v0 = vadd.f32 %v4929_v43, %v4928_v30  ;;  %v4944_v4 = vadd.f32 %v4943_v44, %v4942_v34  ;;  %v16141_v30 = vld [vmem:[#allocation114_spill] sm:$0xff]  ;;  %v16142_v34 = vld [vmem:[#allocation115_spill] sm:$0xff]  ;;  %v14922_v43 = vsub.f32 %v14702_v33, %v4900_v22  ;;  %v16143_v44 = vld [vmem:[#allocation116_spill] sm:$0xff] }
 0x716   : > { %v4924_v8 = vrot.slane %v4923_v55, 2  ;;  %v16149_v33 = vld [vmem:[#allocation123_spill] sm:$0xff]  ;;  %v12586_v22 = vld [vmem:[#allocation19 + $0xa4] ss:$16 sps:$4 sm:$0xff]  }
 0x717   : > { %v4931_v13 = vrot.slane %v4930_v0, 2  ;;  %v4945_v23 = vrot.slane %v4944_v4, 2 }
 0x718   : > { %v4925_v24 = vadd.f32 %v4924_v8, %v4923_v55  ;;  %v16144_v55 = vld [vmem:[#allocation117_spill] sm:$0xff]  ;;  %v4919_v8 = vmul.f32 %v14922_v43, %v14922_v43 }
 0x719   : > { %v4932_v25 = vadd.f32 %v4931_v13, %v4930_v0  ;;  %v4946_v32 = vadd.f32 %v4945_v23, %v4944_v4  ;;  %v16145_v0 = vld [vmem:[#allocation119_spill] sm:$0xff]  ;;  %v4915_v4 = vmul.f32 %v14919_v41, %v14919_v41  ;;  %v16147_v13 = vld [vmem:[#allocation121_spill] sm:$0xff]  ;;  %v16150_v23 = vld [vmem:[#allocation124_spill] sm:$0xff] }
 0x71a   : > { %v4926_v40 = vrot.slane %v4925_v24, 1 }
 0x71b   : > { %v4933_v45 = vrot.slane %v4932_v25, 1  ;;  %v4947_v14 = vrot.slane %v4946_v32, 1 }
 0x71c   : > { %v4927_v31 = vadd.f32 %v4926_v40, %v4925_v24  ;;  %v4935_v24 = vadd.f32 %v4919_v8, %v4915_v4  ;;  %v16153_v40 = vld [vmem:[#allocation127_spill] sm:$0xff] }
 0x71d   : > { %v4934_v1 = vadd.f32 %v4933_v45, %v4932_v25  ;;  %v4948_v26 = vadd.f32 %v4947_v14, %v4946_v32  ;;  %v16151_v25 = vld [vmem:[#allocation125_spill] sm:$0xff]  ;;  %v16152_v32 = vld [vmem:[#allocation126_spill] sm:$0xff]  ;;  %v16154_v45 = vld [vmem:[#allocation128_spill] sm:$0xff] }
 0x71e   : > { %v4936_v14 = vrot.slane %v4935_v24, 4  ;;  %v12601_v4 = vld [vmem:[#allocation19 + $0xec] ss:$16 sps:$4 sm:$0xff]   ;;  %v12596_v8 = vld [vmem:[#allocation19 + $0xe0] ss:$16 sps:$4 sm:$0xff]  }
 0x71f   : > { %5013 = vmatprep.mubr.f32.mxu1 %v4934_v1  ;;  %5155 = vmatprep.mubr.f32.mxu0 %v4934_v1  ;;  %v16155_v1 = vld [vmem:[#allocation129_spill] sm:$0xff] }
 0x720   : > { %5014 = vmatmul.mubr.f32.vlgmr.msra.gmra.mrb[10].mxu1 %v4927_v31  ;;  %5156 = vmatmul.mubr.f32.vlgmr.msra.gmra.mrb[12].mxu0 %v4927_v31  ;;  %v16156_v31 = vld [vmem:[#allocation130_spill] sm:$0xff] }
 0x721   : > { %10970 = vmatpush1.bf16.msra.mxu1 %v14586_v37  ;;  %11098 = vmatpush1.bf16.msra.mxu0 %v14588_v12  ;;  %v16123_v37 = vld [vmem:[#allocation96_spill] sm:$0xff]  ;;  %v16124_v12 = vld [vmem:[#allocation97_spill] sm:$0xff] }
 0x722   : > { %5084 = vmatprep.mubr.f32.mxu1 %v4948_v26  ;;  %5226 = vmatprep.mubr.f32.mxu0 %v4948_v26  ;;  %v16157_v26 = vld [vmem:[#allocation131_spill] sm:$0xff] }
 0x723   : > { %10972 = vmatprep.subr.bf16.mxu1 %v14590_v52  ;;  %11100 = vmatprep.subr.bf16.mxu0 %v14592_v63  ;;  %v16126_v52 = vld [vmem:[#allocation99_spill] sm:$0xff]  ;;  %v16127_v63 = vld [vmem:[#allocation100_spill] sm:$0xff] }
 0x725   : > { %10974 = vmatpush1.bf16.msra.mxu1 %v14596_v27  ;;  %11102 = vmatpush1.bf16.msra.mxu0 %v14598_v3  ;;  %v16128_v27 = vld [vmem:[#allocation101_spill] sm:$0xff]  ;;  %v16129_v3 = vld [vmem:[#allocation102_spill] sm:$0xff] }
 0x726   : > { %10976 = vmatprep.subr.bf16.mxu1 %v16119_v11  ;;  %11104 = vmatprep.subr.bf16.mxu0 %v16120_v42  ;;  %v16158_v11 = vld [vmem:[#allocation132_spill] sm:$0xff]  ;;  %v4937_v42 = vadd.f32 %v4936_v14, %v4935_v24 }
 0x727   : > { %v12605_v24 = vld [vmem:[#allocation19 + $0x108] ss:$16 sps:$4 sm:$0xff]   ;;  %v12616_v14 = vld [vmem:[#allocation19 + $0x144] ss:$16 sps:$4 sm:$0xff]  }
 0x729   : > { %10978 = vmatpush1.bf16.msra.mxu1 %v16121_v59  ;;  %11106 = vmatpush1.bf16.msra.mxu0 %v16122_v60  ;;  %v16159_v59 = vld [vmem:[#allocation133_spill] sm:$0xff]  ;;  %v16160_v60 = vld [vmem:[#allocation134_spill] sm:$0xff] }
 0x72a   : > { %10980 = vmatprep.subr.bf16.mxu1 %v16123_v37  ;;  %11108 = vmatprep.subr.bf16.mxu0 %v16124_v12  ;;  %v16161_v37 = vld [vmem:[#allocation135_spill] sm:$0xff]  ;;  %v4938_v12 = vrot.slane %v4937_v42, 2 }
 0x72d   : > { %10982 = vmatpush1.bf16.msra.mxu1 %v16125_v57  ;;  %11110 = vmatpush1.bf16.msra.mxu0 %v16126_v52  ;;  %v16162_v57 = vld [vmem:[#allocation136_spill] sm:$0xff]  ;;  %v16163_v52 = vld [vmem:[#allocation137_spill] sm:$0xff] }
 0x72e   : > { %10984 = vmatprep.subr.bf16.mxu1 %v16127_v63  ;;  %11112 = vmatprep.subr.bf16.mxu0 %v16128_v27  ;;  %v12557_v27 = vld [vmem:[#allocation19 + $0x8] ss:$16 sps:$4 sm:$0xff]  }
 0x731   : > { %10986 = vmatpush1.bf16.msra.mxu1 %v16129_v3  ;;  %11114 = vmatpush1.bf16.msra.mxu0 %v16130_v35  ;;  %v12566_v3 = vld [vmem:[#allocation19 + $0x40] ss:$16 sps:$4 sm:$0xff]   ;;  %v12569_v35 = vld [vmem:[#allocation19 + $0x48] ss:$16 sps:$4 sm:$0xff]  }
 0x732   : > { %10988 = vmatprep.subr.bf16.mxu1 %v16131_v38  ;;  %11116 = vmatprep.subr.bf16.mxu0 %v16132_v47  ;;  %v12574_v38 = vld [vmem:[#allocation19 + $0x64] ss:$16 sps:$4 sm:$0xff]   ;;  %v12577_v47 = vld [vmem:[#allocation19 + $0x6c] ss:$16 sps:$4 sm:$0xff]  }
 0x735   : > { %10990 = vmatpush1.bf16.msra.mxu1 %v16133_v56  ;;  %11118 = vmatpush1.bf16.msra.mxu0 %v16134_v6  ;;  %v12572_v56 = vld [vmem:[#allocation19 + $0x60] ss:$16 sps:$4 sm:$0xff]   ;;  %v12575_v6 = vld [vmem:[#allocation19 + $0x68] ss:$16 sps:$4 sm:$0xff]  }
 0x736   : > { %10992 = vmatprep.subr.bf16.mxu1 %v16135_v10  ;;  %11120 = vmatprep.subr.bf16.mxu0 %v16136_v16  ;;  %v12580_v10 = vld [vmem:[#allocation19 + $0x84] ss:$16 sps:$4 sm:$0xff]   ;;  %v12583_v16 = vld [vmem:[#allocation19 + $0x8c] ss:$16 sps:$4 sm:$0xff]  }
 0x739   : > { %10994 = vmatpush1.bf16.msra.mxu1 %v16137_v17  ;;  %11122 = vmatpush1.bf16.msra.mxu0 %v16138_v18  ;;  %v12578_v17 = vld [vmem:[#allocation19 + $0x80] ss:$16 sps:$4 sm:$0xff]   ;;  %v12581_v18 = vld [vmem:[#allocation19 + $0x88] ss:$16 sps:$4 sm:$0xff]  }
 0x73a   : > { %10996 = vmatprep.subr.bf16.mxu1 %v16139_v28  ;;  %11124 = vmatprep.subr.bf16.mxu0 %v16140_v29  ;;  %v12589_v28 = vld [vmem:[#allocation19 + $0xac] ss:$16 sps:$4 sm:$0xff]   ;;  %v12584_v29 = vld [vmem:[#allocation19 + $0xa0] ss:$16 sps:$4 sm:$0xff]  }
 0x73d   : > { %10998 = vmatpush1.bf16.msra.mxu1 %v16141_v30  ;;  %11126 = vmatpush1.bf16.msra.mxu0 %v16142_v34  ;;  %v12587_v30 = vld [vmem:[#allocation19 + $0xa8] ss:$16 sps:$4 sm:$0xff]   ;;  %v12592_v34 = vld [vmem:[#allocation19 + $0xc4] ss:$16 sps:$4 sm:$0xff]  }
 0x73e   : > { %11000 = vmatprep.subr.bf16.mxu1 %v16143_v44  ;;  %11128 = vmatprep.subr.bf16.mxu0 %v16144_v55  ;;  %v12595_v44 = vld [vmem:[#allocation19 + $0xcc] ss:$16 sps:$4 sm:$0xff]   ;;  %v12590_v55 = vld [vmem:[#allocation19 + $0xc0] ss:$16 sps:$4 sm:$0xff]  }
 0x741   : > { %11002 = vmatpush1.bf16.msra.mxu1 %v16145_v0  ;;  %11130 = vmatpush1.bf16.msra.mxu0 %v16146_v19  ;;  %v12593_v0 = vld [vmem:[#allocation19 + $0xc8] ss:$16 sps:$4 sm:$0xff]   ;;  %v12598_v19 = vld [vmem:[#allocation19 + $0xe4] ss:$16 sps:$4 sm:$0xff]  }
 0x742   : > { %11004 = vmatprep.subr.bf16.mxu1 %v16147_v13  ;;  %11132 = vmatprep.subr.bf16.mxu0 %v16148_v58  ;;  %v12599_v13 = vld [vmem:[#allocation19 + $0xe8] ss:$16 sps:$4 sm:$0xff]   ;;  %v12604_v58 = vld [vmem:[#allocation19 + $0x104] ss:$16 sps:$4 sm:$0xff]  }
 0x745   : > { %11006 = vmatpush1.bf16.msra.mxu1 %v16149_v33  ;;  %11134 = vmatpush1.bf16.msra.mxu0 %v16150_v23  ;;  %v12607_v33 = vld [vmem:[#allocation19 + $0x10c] ss:$16 sps:$4 sm:$0xff]   ;;  %v12602_v23 = vld [vmem:[#allocation19 + $0x100] ss:$16 sps:$4 sm:$0xff]  }
 0x746   : > { %11008 = vmatprep.subr.bf16.mxu1 %v16151_v25  ;;  %11136 = vmatprep.subr.bf16.mxu0 %v16152_v32  ;;  %v12610_v25 = vld [vmem:[#allocation19 + $0x124] ss:$16 sps:$4 sm:$0xff]   ;;  %v12613_v32 = vld [vmem:[#allocation19 + $0x12c] ss:$16 sps:$4 sm:$0xff]  }
 0x749   : > { %11010 = vmatpush1.bf16.msra.mxu1 %v16153_v40  ;;  %11138 = vmatpush1.bf16.msra.mxu0 %v16154_v45  ;;  %v12608_v40 = vld [vmem:[#allocation19 + $0x120] ss:$16 sps:$4 sm:$0xff]   ;;  %v12611_v45 = vld [vmem:[#allocation19 + $0x128] ss:$16 sps:$4 sm:$0xff]  }
 0x74a   : > { %11012 = vmatprep.subr.bf16.mxu1 %v16155_v1  ;;  %11140 = vmatprep.subr.bf16.mxu0 %v16156_v31  ;;  %v12619_v1 = vld [vmem:[#allocation19 + $0x14c] ss:$16 sps:$4 sm:$0xff]   ;;  %v12614_v31 = vld [vmem:[#allocation19 + $0x140] ss:$16 sps:$4 sm:$0xff]  }
 0x74d   : > { %11014 = vmatpush1.bf16.msra.mxu1 %v16157_v26  ;;  %11142 = vmatpush1.bf16.msra.mxu0 %v16158_v11  ;;  %v12617_v26 = vld [vmem:[#allocation19 + $0x148] ss:$16 sps:$4 sm:$0xff]   ;;  %v12622_v11 = vld [vmem:[#allocation19 + $0x164] ss:$16 sps:$4 sm:$0xff]  }
 0x74e   : > { %11016 = vmatprep.subr.bf16.mxu1 %v14735_v49  ;;  %11144 = vmatprep.subr.bf16.mxu0 %v16159_v59  ;;  %v4939_v49 = vadd.f32 %v4938_v12, %v4937_v42  ;;  %v12625_v42 = vld [vmem:[#allocation19 + $0x16c] ss:$16 sps:$4 sm:$0xff]   ;;  %v12620_v59 = vld [vmem:[#allocation19 + $0x160] ss:$16 sps:$4 sm:$0xff]  }
 0x74f   : > { %v12631_v12 = vld [vmem:[#allocation19 + $0x18c] ss:$16 sps:$4 sm:$0xff]  }
 0x750   : > { %v4940_v63 = vrot.slane %v4939_v49, 1 }
 0x751   : > { %11018 = vmatpush1.bf16.msra.mxu1 %v16160_v60  ;;  %11146 = vmatpush1.bf16.msra.mxu0 %v16161_v37  ;;  %v12623_v60 = vld [vmem:[#allocation19 + $0x168] ss:$16 sps:$4 sm:$0xff]   ;;  %v12628_v37 = vld [vmem:[#allocation19 + $0x184] ss:$16 sps:$4 sm:$0xff]  }
 0x752   : > { %11020 = vmatprep.subr.bf16.mxu1 %v16162_v57  ;;  %11148 = vmatprep.subr.bf16.mxu0 %v16163_v52  ;;  %v12626_v57 = vld [vmem:[#allocation19 + $0x180] ss:$16 sps:$4 sm:$0xff]   ;;  %v12629_v52 = vld [vmem:[#allocation19 + $0x188] ss:$16 sps:$4 sm:$0xff]  }
 0x755   : > { %11022 = vmatpush1.bf16.msra.mxu1 %v14753_v39  ;;  %11150 = vmatpush1.bf16.msra.mxu0 %v14755_v62  ;;  %v4941_v39 = vadd.f32 %v4940_v63, %v4939_v49  ;;  %v12556_v62 = vld [vmem:[#allocation19 + $0x4] ss:$16 sps:$4 sm:$0xff]   ;;  %v12632_v49 = vld [vmem:[#allocation19 + $0x1a0] ss:$16 sps:$4 sm:$0xff]  }
 0x756   : > { %11024 = vmatprep.subr.bf16.mxu1 %v14759_v20  ;;  %11152 = vmatprep.subr.bf16.mxu0 %v14761_v53  ;;  %v12559_v20 = vld [vmem:[#allocation19 + $0xc] ss:$16 sps:$4 sm:$0xff]   ;;  %v12554_v53 = vld [vmem:[#allocation19] ss:$16 sps:$4 sm:$0xff]   ;;  %v12634_v63 = vld [vmem:[#allocation19 + $0x1a4] ss:$16 sps:$4 sm:$0xff]  }
 0x759   : > { %11026 = vmatpush1.bf16.msra.mxu1 %v14765_v21  ;;  %11154 = vmatpush1.bf16.msra.mxu0 %v14767_v61  ;;  %v12562_v21 = vld [vmem:[#allocation19 + $0x24] ss:$16 sps:$4 sm:$0xff]   ;;  %v12565_v61 = vld [vmem:[#allocation19 + $0x2c] ss:$16 sps:$4 sm:$0xff]  }
 0x75a   : > { %11028 = vmatprep.subr.bf16.mxu1 %v14771_v36  ;;  %11156 = vmatprep.subr.bf16.mxu0 %v14773_v9  ;;  %v12560_v36 = vld [vmem:[#allocation19 + $0x20] ss:$16 sps:$4 sm:$0xff]   ;;  %v12563_v9 = vld [vmem:[#allocation19 + $0x28] ss:$16 sps:$4 sm:$0xff]  }
 0x75d   : > { %11030 = vmatpush1.bf16.msra.mxu1 %v14777_v54  ;;  %11158 = vmatpush1.bf16.msra.mxu0 %v14779_v50  ;;  %v12568_v54 = vld [vmem:[#allocation19 + $0x44] ss:$16 sps:$4 sm:$0xff]   ;;  %v12571_v50 = vld [vmem:[#allocation19 + $0x4c] ss:$16 sps:$4 sm:$0xff]  }
 0x75e   : > { %7870 = vmatprep.subr.bf16.mxu1 %v12556_v62  ;;  %8128 = vmatprep.subr.bf16.mxu0 %v12559_v20  ;;  %v12637_v62 = vld [vmem:[#allocation19 + $0x1ac] ss:$16 sps:$4 sm:$0xff]   ;;  %v12640_v20 = vld [vmem:[#allocation19 + $0x1c4] ss:$16 sps:$4 sm:$0xff]  }
 0x760   : > { %5085 = vmatmul.mubr.f32.vlgmr.msra.gmra.mrb[10].mxu1 %v4941_v39  ;;  %5227 = vmatmul.mubr.f32.vlgmr.msra.gmra.mrb[12].mxu0 %v4941_v39  ;;  %v12635_v39 = vld [vmem:[#allocation19 + $0x1a8] ss:$16 sps:$4 sm:$0xff]  }
 0x761   : > { %7871 = vmatpush1.bf16.msra.mxu1 %v12554_v53  ;;  %8129 = vmatpush1.bf16.msra.mxu0 %v12557_v27  ;;  %v12643_v53 = vld [vmem:[#allocation19 + $0x1cc] ss:$16 sps:$4 sm:$0xff]   ;;  %v12638_v27 = vld [vmem:[#allocation19 + $0x1c0] ss:$16 sps:$4 sm:$0xff]  }
 0x762   : > { %7872 = vmatprep.subr.bf16.mxu1 %v12562_v21  ;;  %8130 = vmatprep.subr.bf16.mxu0 %v12565_v61  ;;  %v12641_v21 = vld [vmem:[#allocation19 + $0x1c8] ss:$16 sps:$4 sm:$0xff]   ;;  %v12646_v61 = vld [vmem:[#allocation19 + $0x1e4] ss:$16 sps:$4 sm:$0xff]  }
 0x765   : > { %7873 = vmatpush1.bf16.msra.mxu1 %v12560_v36  ;;  %8131 = vmatpush1.bf16.msra.mxu0 %v12563_v9  ;;  %v12649_v36 = vld [vmem:[#allocation19 + $0x1ec] ss:$16 sps:$4 sm:$0xff]   ;;  %v12644_v9 = vld [vmem:[#allocation19 + $0x1e0] ss:$16 sps:$4 sm:$0xff]  }
 0x766   : > { %7874 = vmatprep.subr.bf16.mxu1 %v12568_v54  ;;  %8132 = vmatprep.subr.bf16.mxu0 %v12571_v50  ;;  %v12647_v54 = vld [vmem:[#allocation19 + $0x1e8] ss:$16 sps:$4 sm:$0xff]   ;;  %v12652_v50 = vld [vmem:[#allocation19 + $0x204] ss:$16 sps:$4 sm:$0xff]  }
 0x769   : > { %7875 = vmatpush1.bf16.msra.mxu1 %v12566_v3  ;;  %8133 = vmatpush1.bf16.msra.mxu0 %v12569_v35  ;;  %v12655_v3 = vld [vmem:[#allocation19 + $0x20c] ss:$16 sps:$4 sm:$0xff]  }
 0x76a   : > { %7876 = vmatprep.subr.bf16.mxu1 %v12574_v38  ;;  %8134 = vmatprep.subr.bf16.mxu0 %v12577_v47 }
 0x76d   : > { %7877 = vmatpush1.bf16.msra.mxu1 %v12572_v56  ;;  %8135 = vmatpush1.bf16.msra.mxu0 %v12575_v6 }
 0x76e   : > { %7878 = vmatprep.subr.bf16.mxu1 %v12580_v10  ;;  %8136 = vmatprep.subr.bf16.mxu0 %v12583_v16 }
 0x771   : > { %7879 = vmatpush1.bf16.msra.mxu1 %v12578_v17  ;;  %8137 = vmatpush1.bf16.msra.mxu0 %v12581_v18  ;;  %v4575_v18 = vld [vmem:[#allocation16] sm:$0xf] }
 0x772   : > { %7880 = vmatprep.subr.bf16.mxu1 %v12586_v22  ;;  %8138 = vmatprep.subr.bf16.mxu0 %v12589_v28  ;;  %v4576_v22 = vld [vmem:[#allocation18] sm:$0xf] }
 0x775   : > { %7881 = vmatpush1.bf16.msra.mxu1 %v12584_v29  ;;  %8139 = vmatpush1.bf16.msra.mxu0 %v12587_v30 }
 0x776   : > { %7882 = vmatprep.subr.bf16.mxu1 %v12592_v34  ;;  %8140 = vmatprep.subr.bf16.mxu0 %v12595_v44  ;;  %v5265_v34 = vrot.slane %v4575_v18, %v16112_v15  ;;  %v5294_v44 = vrot.slane %v4576_v22, %v16112_v15 }
 0x779   : > { %7883 = vmatpush1.bf16.msra.mxu1 %v12590_v55  ;;  %8141 = vmatpush1.bf16.msra.mxu0 %v12593_v0  ;;  %v16164_v55 = vld [vmem:[#allocation118_spill] sm:$0xff] }
 0x77a   : > { %7884 = vmatprep.subr.bf16.mxu1 %v12598_v19  ;;  %8142 = vmatprep.subr.bf16.mxu0 %v12601_v4  ;;  %v5273_v0 = vrot.slane %v4575_v18, %v16164_v55 }
 0x77d   : > { %7885 = vmatpush1.bf16.msra.mxu1 %v12596_v8  ;;  %8143 = vmatpush1.bf16.msra.mxu0 %v12599_v13  ;;  %v5302_v8 = vrot.slane %v4576_v22, %v16164_v55  ;;  %v16165_v13 = vld [vmem:[#allocation84_spill] sm:$0xff] }
 0x77e   : > { %7886 = vmatprep.subr.bf16.mxu1 %v12604_v58  ;;  %8144 = vmatprep.subr.bf16.mxu0 %v12607_v33  ;;  %v5269_v58 = vrot.slane %v4575_v18, %v16165_v13  ;;  %v16166_v33 = vld [vmem:[#allocation85_spill] sm:$0xff] }
 0x781   : > { %7887 = vmatpush1.bf16.msra.mxu1 %v12602_v23  ;;  %8145 = vmatpush1.bf16.msra.mxu0 %v12605_v24  ;;  %v5277_v23 = vrot.slane %v4575_v18, %v16166_v33 }
 0x782   : > { %7888 = vmatprep.subr.bf16.mxu1 %v12610_v25  ;;  %8146 = vmatprep.subr.bf16.mxu0 %v12613_v32 }
 0x785   : > { %7889 = vmatpush1.bf16.msra.mxu1 %v12608_v40  ;;  %8147 = vmatpush1.bf16.msra.mxu0 %v12611_v45  ;;  %v5298_v45 = vrot.slane %v4576_v22, %v16165_v13 }
 0x786   : > { %7890 = vmatprep.subr.bf16.mxu1 %v12616_v14  ;;  %8148 = vmatprep.subr.bf16.mxu0 %v12619_v1 }
 0x789   : > { %7891 = vmatpush1.bf16.msra.mxu1 %v12614_v31  ;;  %8149 = vmatpush1.bf16.msra.mxu0 %v12617_v26  ;;  %v5306_v26 = vrot.slane %v4576_v22, %v16166_v33 }
 0x78a   : > { %7892 = vmatprep.subr.bf16.mxu1 %v12622_v11  ;;  %8150 = vmatprep.subr.bf16.mxu0 %v12625_v42 }
 0x78d   : > { %7893 = vmatpush1.bf16.msra.mxu1 %v12620_v59  ;;  %8151 = vmatpush1.bf16.msra.mxu0 %v12623_v60 }
 0x78e   : > { %7894 = vmatprep.subr.bf16.mxu1 %v12628_v37  ;;  %8152 = vmatprep.subr.bf16.mxu0 %v12631_v12 }
 0x791   : > { %7895 = vmatpush1.bf16.msra.mxu1 %v12626_v57  ;;  %8153 = vmatpush1.bf16.msra.mxu0 %v12629_v52 }
 0x792   : > { %7896 = vmatprep.subr.bf16.mxu1 %v12634_v63  ;;  %8154 = vmatprep.subr.bf16.mxu0 %v12637_v62 }
 0x795   : > { %7897 = vmatpush1.bf16.msra.mxu1 %v12632_v49  ;;  %8155 = vmatpush1.bf16.msra.mxu0 %v12635_v39 }
 0x796   : > { %7898 = vmatprep.subr.bf16.mxu1 %v12640_v20  ;;  %8156 = vmatprep.subr.bf16.mxu0 %v12643_v53 }
 0x799   : > { %7899 = vmatpush1.bf16.msra.mxu1 %v12638_v27  ;;  %8157 = vmatpush1.bf16.msra.mxu0 %v12641_v21 }
 0x79a   : > { %7900 = vmatprep.subr.bf16.mxu1 %v12646_v61  ;;  %8158 = vmatprep.subr.bf16.mxu0 %v12649_v36 }
 0x79d   : > { %7901 = vmatpush1.bf16.msra.mxu1 %v12644_v9  ;;  %8159 = vmatpush1.bf16.msra.mxu0 %v12647_v54 }
 0x79e   : > { %7913 = vmatprep.subr.bf16.mxu1 %v12652_v50  ;;  %8171 = vmatprep.subr.bf16.mxu0 %v12655_v3 }
 0x833   : > { %v5086_v35 = vpop.f32.mrb[10].mxu1  ;;  %v5228_v38 = vpop.f32.mrb[12].mxu0 }
 0x834   : > { %v11679_v47 = vadd.f32 1e-05, %v5086_v35  ;;  %v11681_v56 = vadd.f32 1e-05, %v5228_v38  ;;  %v5088_v6 = vpop.f32.mrb[11].mxu1  ;;  %v5230_v10 = vpop.f32.mrb[13].mxu0 }
 0x835   : > { %v11680_v16 = vadd.f32 1e-05, %v5088_v6  ;;  %v11682_v17 = vadd.f32 1e-05, %v5230_v10 }
 0x836   : > { %13130 = vrsqrt.f32 %v11679_v47 }
 0x837   : > { %13132 = vrsqrt.f32 %v11681_v56 }
 0x838   : > { %13134 = vrsqrt.f32 %v11680_v16 }
 0x839   : > { %13136 = vrsqrt.f32 %v11682_v17 }
 0x840   : > { %v13131_v28 = vpop.eup %13130 }
 0x841   : > { %v13133_v29 = vpop.eup %13132  ;;  %v5240_v30 = vrot.slane %v13131_v28, %v16112_v15 }
 0x842   : > { %v13135_v19 = vpop.eup %13134  ;;  %v5248_v4 = vrot.slane %v13133_v29, %v16112_v15 }
 0x843   : > { %v13137_v24 = vpop.eup %13136  ;;  %v5253_v25 = vmul.f32 %v5240_v30, %v14857_v51  ;;  %v5257_v32 = vmul.f32 %v5240_v30, %v14860_v2  ;;  %v5244_v40 = vrot.slane %v13135_v19, %v16112_v15 }
 0x844   : > { %v5255_v14 = vmul.f32 %v5248_v4, %v14919_v41  ;;  %v5259_v1 = vmul.f32 %v5248_v4, %v14922_v43  ;;  %v5252_v31 = vrot.slane %v13137_v24, %v16112_v15 }
 0x845   : > { %v5282_v11 = vmul.f32 %v5265_v34, %v5253_v25  ;;  %v5286_v42 = vmul.f32 %v5265_v34, %v5257_v32  ;;  %v5254_v59 = vmul.f32 %v5244_v40, %v14863_v46  ;;  %v5258_v51 = vmul.f32 %v5244_v40, %v14866_v48 }
 0x846   : > { %v5284_v60 = vmul.f32 %v5273_v0, %v5255_v14  ;;  %v5288_v2 = vmul.f32 %v5273_v0, %v5259_v1  ;;  %v5256_v37 = vmul.f32 %v5252_v31, %v14869_v5  ;;  %v5260_v12 = vmul.f32 %v5252_v31, %v14872_v7 }
 0x847   : > { %v5311_v57 = vadd.f32 %v5294_v44, %v5282_v11  ;;  %v5315_v41 = vadd.f32 %v5294_v44, %v5286_v42  ;;  %v5283_v52 = vmul.f32 %v5269_v58, %v5254_v59  ;;  %v5287_v43 = vmul.f32 %v5269_v58, %v5258_v51 }
 0x848   : > { %v5313_v49 = vadd.f32 %v5302_v8, %v5284_v60  ;;  %v5317_v63 = vadd.f32 %v5302_v8, %v5288_v2  ;;  %v5285_v39 = vmul.f32 %v5277_v23, %v5256_v37  ;;  %v5289_v62 = vmul.f32 %v5277_v23, %v5260_v12 }
 0x849   : > { %v10048_v20 = vmul.f32 -1.442695, %v5311_v57  ;;  %v10052_v53 = vmul.f32 -1.442695, %v5315_v41  ;;  %v5312_v27 = vadd.f32 %v5298_v45, %v5283_v52  ;;  %v5316_v46 = vadd.f32 %v5298_v45, %v5287_v43 }
 0x84a   : > { %v10050_v21 = vmul.f32 -1.442695, %v5313_v49  ;;  %v10054_v48 = vmul.f32 -1.442695, %v5317_v63  ;;  %v5314_v61 = vadd.f32 %v5306_v26, %v5285_v39  ;;  %v14980_v36 = vadd.f32 %v5306_v26, %v5289_v62  ;;  %v12650_v62 = vld [vmem:[#allocation19 + $0x200] ss:$16 sps:$4 sm:$0xff]  }
 0x84b   : > { %13138 = vpow2.f32 %v10048_v20  ;;  %v10049_v5 = vmul.f32 -1.442695, %v5312_v27  ;;  %v10053_v7 = vmul.f32 -1.442695, %v5316_v46  ;;  %v12653_v20 = vld [vmem:[#allocation19 + $0x208] ss:$16 sps:$4 sm:$0xff]  }
 0x84c   : > { %13140 = vpow2.f32 %v10052_v53  ;;  %v10051_v9 = vmul.f32 -1.442695, %v5314_v61  ;;  %v10055_v54 = vmul.f32 -1.442695, %v14980_v36 }
 0x84d   : > { %13142 = vpow2.f32 %v10050_v21  ;;  %v12661_v21 = vld [vmem:[#allocation19 + $0x22c] ss:$16 sps:$4 sm:$0xff]  }
 0x84e   : > { %13144 = vpow2.f32 %v10054_v48 }
 0x84f   : > { %13146 = vpow2.f32 %v10049_v5  ;;  %v12664_v5 = vld [vmem:[#allocation19 + $0x244] ss:$16 sps:$4 sm:$0xff]  }
 0x850   : > { %13148 = vpow2.f32 %v10053_v7  ;;  %v12667_v7 = vld [vmem:[#allocation19 + $0x24c] ss:$16 sps:$4 sm:$0xff]  }
 0x851   : > { %13150 = vpow2.f32 %v10051_v9  ;;  %v12662_v9 = vld [vmem:[#allocation19 + $0x240] ss:$16 sps:$4 sm:$0xff]  }
 0x852   : > { %13152 = vpow2.f32 %v10055_v54  ;;  %v12665_v54 = vld [vmem:[#allocation19 + $0x248] ss:$16 sps:$4 sm:$0xff]  }
 0x855   : > { %v13139_v50 = vpop.eup %13138 }
 0x856   : > { %v13141_v3 = vpop.eup %13140  ;;  %v5343_v35 = vadd.f32 1.0, %v13139_v50  ;;  %v12670_v50 = vld [vmem:[#allocation19 + $0x264] ss:$16 sps:$4 sm:$0xff]  }
 0x857   : > { %v13143_v38 = vpop.eup %13142  ;;  %v5347_v47 = vadd.f32 1.0, %v13141_v3  ;;  %v12673_v3 = vld [vmem:[#allocation19 + $0x26c] ss:$16 sps:$4 sm:$0xff]  }
 0x858   : > { %v13145_v56 = vpop.eup %13144  ;;  %13154 = vrcp.f32 %v5343_v35  ;;  %v5345_v6 = vadd.f32 1.0, %v13143_v38  ;;  %v12668_v35 = vld [vmem:[#allocation19 + $0x260] ss:$16 sps:$4 sm:$0xff]   ;;  %v12671_v38 = vld [vmem:[#allocation19 + $0x268] ss:$16 sps:$4 sm:$0xff]  }
 0x859   : > { %v13147_v10 = vpop.eup %13146  ;;  %13156 = vrcp.f32 %v5347_v47  ;;  %v5349_v16 = vadd.f32 1.0, %v13145_v56  ;;  %v12676_v47 = vld [vmem:[#allocation19 + $0x284] ss:$16 sps:$4 sm:$0xff]   ;;  %v12679_v56 = vld [vmem:[#allocation19 + $0x28c] ss:$16 sps:$4 sm:$0xff]  }
 0x85a   : > { %v13149_v17 = vpop.eup %13148  ;;  %13158 = vrcp.f32 %v5345_v6  ;;  %v5344_v18 = vadd.f32 1.0, %v13147_v10  ;;  %v12674_v6 = vld [vmem:[#allocation19 + $0x280] ss:$16 sps:$4 sm:$0xff]   ;;  %v12677_v10 = vld [vmem:[#allocation19 + $0x288] ss:$16 sps:$4 sm:$0xff]  }
 0x85b   : > { %v13151_v22 = vpop.eup %13150  ;;  %13160 = vrcp.f32 %v5349_v16  ;;  %v5348_v28 = vadd.f32 1.0, %v13149_v17  ;;  %v12682_v16 = vld [vmem:[#allocation19 + $0x2a4] ss:$16 sps:$4 sm:$0xff]   ;;  %v12685_v17 = vld [vmem:[#allocation19 + $0x2ac] ss:$16 sps:$4 sm:$0xff]  }
 0x85c   : > { %v13153_v29 = vpop.eup %13152  ;;  %13162 = vrcp.f32 %v5344_v18  ;;  %v5346_v30 = vadd.f32 1.0, %v13151_v22  ;;  %v12680_v18 = vld [vmem:[#allocation19 + $0x2a0] ss:$16 sps:$4 sm:$0xff]   ;;  %v12683_v22 = vld [vmem:[#allocation19 + $0x2a8] ss:$16 sps:$4 sm:$0xff]  }
 0x85d   : > { %13164 = vrcp.f32 %v5348_v28  ;;  %v5350_v34 = vadd.f32 1.0, %v13153_v29  ;;  %v12688_v28 = vld [vmem:[#allocation19 + $0x2c4] ss:$16 sps:$4 sm:$0xff]   ;;  %v12691_v29 = vld [vmem:[#allocation19 + $0x2cc] ss:$16 sps:$4 sm:$0xff]  }
 0x85e   : > { %13166 = vrcp.f32 %v5346_v30  ;;  %v12686_v30 = vld [vmem:[#allocation19 + $0x2c0] ss:$16 sps:$4 sm:$0xff]  }
 0x85f   : > { %13168 = vrcp.f32 %v5350_v34  ;;  %v12689_v34 = vld [vmem:[#allocation19 + $0x2c8] ss:$16 sps:$4 sm:$0xff]  }
 0x862   : > { %v13155_v44 = vpop.eup %13154 }
 0x863   : > { %v13157_v0 = vpop.eup %13156  ;;  %v5367_v19 = vmul.f32 %v13155_v44, %v5311_v57  ;;  %v12694_v44 = vld [vmem:[#allocation19 + $0x2e4] ss:$16 sps:$4 sm:$0xff]  }
 0x864   : > { %v13159_v4 = vpop.eup %13158  ;;  %v5371_v8 = vmul.f32 %v13157_v0, %v5315_v41  ;;  %v12697_v0 = vld [vmem:[#allocation19 + $0x2ec] ss:$16 sps:$4 sm:$0xff]  }
 0x865   : > { %v13161_v58 = vpop.eup %13160  ;;  %v5388_v23 = vrot.slane %v5367_v19, 7  ;;  %v5369_v24 = vmul.f32 %v13159_v4, %v5313_v49  ;;  %v12692_v19 = vld [vmem:[#allocation19 + $0x2e0] ss:$16 sps:$4 sm:$0xff]   ;;  %v12695_v4 = vld [vmem:[#allocation19 + $0x2e8] ss:$16 sps:$4 sm:$0xff]  }
 0x866   : > { %v13163_v25 = vpop.eup %13162  ;;  %v5392_v32 = vrot.slane %v5371_v8, 7  ;;  %v5373_v40 = vmul.f32 %v13161_v58, %v5317_v63  ;;  %v12700_v8 = vld [vmem:[#allocation19 + $0x304] ss:$16 sps:$4 sm:$0xff]   ;;  %v12703_v58 = vld [vmem:[#allocation19 + $0x30c] ss:$16 sps:$4 sm:$0xff]  }
 0x867   : > { %v13165_v45 = vpop.eup %13164  ;;  %5412 = vst [vmem:[#allocation3] sm:$0xfe] %v5388_v23  ;;  %v5390_v14 = vrot.slane %v5369_v24, 7  ;;  %v5368_v1 = vmul.f32 %v13163_v25, %v5312_v27  ;;  %v12701_v24 = vld [vmem:[#allocation19 + $0x308] ss:$16 sps:$4 sm:$0xff]  }
 0x868   : > { %v13167_v31 = vpop.eup %13166  ;;  %v14984_v26 = vsel %vm1318_vm2, %v5388_v23, %v5392_v32  ;;  %5420 = vst [vmem:[#allocation3 + $0x40] sm:$0x1] %v5392_v32  ;;  %v5396_v11 = vrot.slane %v5373_v40, 7  ;;  %v5372_v42 = vmul.f32 %v13165_v45, %v5316_v46  ;;  %v12658_v46 = vld [vmem:[#allocation19 + $0x224] ss:$16 sps:$4 sm:$0xff]  }
 0x869   : > { %v13169_v59 = vpop.eup %13168  ;;  %5416 = vst [vmem:[#allocation3 + $0x20] sm:$0xff] %v14984_v26  ;;  %5414 = vst [vmem:[#allocation3 + $0x10] sm:$0xfe] %v5390_v14  ;;  %v5389_v51 = vrot.slane %v5368_v1, 7  ;;  %v5370_v60 = vmul.f32 %v13167_v31, %v5314_v61  ;;  %v12656_v61 = vld [vmem:[#allocation19 + $0x220] ss:$16 sps:$4 sm:$0xff]  }
 0x86a   : > { %v14988_v2 = vsel %vm1318_vm2, %v5390_v14, %v5396_v11  ;;  %5422 = vst [vmem:[#allocation3 + $0x50] sm:$0x1] %v5396_v11  ;;  %v5394_v37 = vrot.slane %v5372_v42, 7  ;;  %v5374_v12 = vmul.f32 %v13169_v59, %v14980_v36  ;;  %v12659_v36 = vld [vmem:[#allocation19 + $0x228] ss:$16 sps:$4 sm:$0xff]  }
 0x86b   : > { %5418 = vst [vmem:[#allocation3 + $0x30] sm:$0xff] %v14988_v2  ;;  %5413 = vst [vmem:[#allocation3 + $0x8] sm:$0xfe] %v5389_v51  ;;  %v5391_v57 = vrot.slane %v5370_v60, 7  ;;  %v12698_v23 = vld [vmem:[#allocation19 + $0x300] ss:$16 sps:$4 sm:$0xff]  }
 0x86c   : > { %v14993_v41 = vsel %vm1318_vm2, %v5389_v51, %v5394_v37  ;;  %5421 = vst [vmem:[#allocation3 + $0x48] sm:$0x1] %v5394_v37  ;;  %v5398_v52 = vrot.slane %v5374_v12, 7  ;;  %v12706_v25 = vld [vmem:[#allocation19 + $0x324] ss:$16 sps:$4 sm:$0xff]  }
 0x86d   : > { %5415 = vst [vmem:[#allocation3 + $0x18] sm:$0xfe] %v5391_v57  ;;  %v12709_v32 = vld [vmem:[#allocation19 + $0x32c] ss:$16 sps:$4 sm:$0xff]   ;;  %v12704_v40 = vld [vmem:[#allocation19 + $0x320] ss:$16 sps:$4 sm:$0xff]  }
 0x86e   : > { %v14996_v43 = vsel %vm1318_vm2, %v5391_v57, %v5398_v52  ;;  %5423 = vst [vmem:[#allocation3 + $0x58] sm:$0x1] %v5398_v52  ;;  %v5424_v49 = vld [vmem:[#allocation3] sm:$0xff]  ;;  %v12715_v1 = vld [vmem:[#allocation19 + $0x34c] ss:$16 sps:$4 sm:$0xff]  }
 0x86f   : > { %5419 = vst [vmem:[#allocation3 + $0x38] sm:$0xff] %v14996_v43  ;;  %v5432_v53 = vpack.c.bf16 %v14984_v26, %v5424_v49  ;;  %v12707_v45 = vld [vmem:[#allocation19 + $0x328] ss:$16 sps:$4 sm:$0xff]   ;;  %v12712_v14 = vld [vmem:[#allocation19 + $0x344] ss:$16 sps:$4 sm:$0xff]  }
 0x870   : > { %v12710_v31 = vld [vmem:[#allocation19 + $0x340] ss:$16 sps:$4 sm:$0xff]   ;;  %v12713_v11 = vld [vmem:[#allocation19 + $0x348] ss:$16 sps:$4 sm:$0xff]   ;;  %v12718_v42 = vld [vmem:[#allocation19 + $0x364] ss:$16 sps:$4 sm:$0xff]  }
 0x871   : > { %v12721_v59 = vld [vmem:[#allocation19 + $0x36c] ss:$16 sps:$4 sm:$0xff]   ;;  %v12716_v51 = vld [vmem:[#allocation19 + $0x360] ss:$16 sps:$4 sm:$0xff]   ;;  %v12719_v60 = vld [vmem:[#allocation19 + $0x368] ss:$16 sps:$4 sm:$0xff]  }
 0x872   : > { %v5425_v63 = vld [vmem:[#allocation3 + $0x8] sm:$0xff]  ;;  %v12724_v37 = vld [vmem:[#allocation19 + $0x384] ss:$16 sps:$4 sm:$0xff]   ;;  %v12725_v49 = vld [vmem:[#allocation19 + $0x388] ss:$16 sps:$4 sm:$0xff]  }
 0x873   : > { %v5433_v39 = vpack.c.bf16 %v14993_v41, %v5425_v63  ;;  %v12727_v12 = vld [vmem:[#allocation19 + $0x38c] ss:$16 sps:$4 sm:$0xff]   ;;  %v12722_v52 = vld [vmem:[#allocation19 + $0x380] ss:$16 sps:$4 sm:$0xff]   ;;  %v12730_v63 = vld [vmem:[#allocation19 + $0x3a4] ss:$16 sps:$4 sm:$0xff]  }
 0x874   : > { %v5427_v27 = vld [vmem:[#allocation3 + $0x18] sm:$0xff]  ;;  %v5437_v57 = vld [vmem:[#allocation3 + $0x8] sm:$0xfe] }
 0x875   : > { %7902 = vmatprep.mubr.bf16.mxu1 %v5433_v39  ;;  %8160 = vmatprep.mubr.bf16.mxu0 %v5433_v39  ;;  %v5435_v48 = vpack.c.bf16 %v14996_v43, %v5427_v27  ;;  %v12733_v39 = vld [vmem:[#allocation19 + $0x3ac] ss:$16 sps:$4 sm:$0xff]   ;;  %v12736_v27 = vld [vmem:[#allocation19 + $0x3c4] ss:$16 sps:$4 sm:$0xff]  }
 0x876   : > { %7903 = vmatmul.mubr.bf16.vlgmr.msra.gmra.mrb[12].mxu1 %v5432_v53  ;;  %8161 = vmatmul.mubr.bf16.vlgmr.msra.gmra.mrb[16].mxu0 %v5432_v53  ;;  %v12731_v53 = vld [vmem:[#allocation19 + $0x3a8] ss:$16 sps:$4 sm:$0xff]  }
 0x877   : > { %7914 = vmatpush1.bf16.msra.mxu1 %v12650_v62  ;;  %8172 = vmatpush1.bf16.msra.mxu0 %v12653_v20  ;;  %v5445_v62 = vpack.c.bf16 %v14993_v41, %v5437_v57  ;;  %v12728_v20 = vld [vmem:[#allocation19 + $0x3a0] ss:$16 sps:$4 sm:$0xff]   ;;  %v12793_v57 = vld [vmem:[#allocation19 + $0x4ec] ss:$16 sps:$4 sm:$0xff]  }
 0x878   : > { %7945 = vmatprep.mubr.bf16.mxu1 %v5435_v48  ;;  %8203 = vmatprep.mubr.bf16.mxu0 %v5435_v48 }
 0x879   : > { %7915 = vmatprep.subr.bf16.mxu1 %v12658_v46  ;;  %8173 = vmatprep.subr.bf16.mxu0 %v12661_v21  ;;  %v12739_v46 = vld [vmem:[#allocation19 + $0x3cc] ss:$16 sps:$4 sm:$0xff]   ;;  %v5483_v48 = vshll.u32 %v5445_v62, 16 }
 0x87a   : > { %v5441_v21 = vld [vmem:[#allocation3 + $0x48] sm:$0x1] }
 0x87b   : > { %7916 = vmatpush1.bf16.msra.mxu1 %v12656_v61  ;;  %8174 = vmatpush1.bf16.msra.mxu0 %v12659_v36  ;;  %v12734_v61 = vld [vmem:[#allocation19 + $0x3c0] ss:$16 sps:$4 sm:$0xff]   ;;  %v12737_v36 = vld [vmem:[#allocation19 + $0x3c8] ss:$16 sps:$4 sm:$0xff]  }
 0x87c   : > { %7917 = vmatprep.subr.bf16.mxu1 %v12664_v5  ;;  %8175 = vmatprep.subr.bf16.mxu0 %v12667_v7  ;;  %v12742_v5 = vld [vmem:[#allocation19 + $0x3e4] ss:$16 sps:$4 sm:$0xff]   ;;  %v12745_v7 = vld [vmem:[#allocation19 + $0x3ec] ss:$16 sps:$4 sm:$0xff]  }
 0x87f   : > { %7918 = vmatpush1.bf16.msra.mxu1 %v12662_v9  ;;  %8176 = vmatpush1.bf16.msra.mxu0 %v12665_v54  ;;  %v5449_v9 = vpack.c.bf16 %v5441_v21, %v5441_v21  ;;  %v5485_v54 = vrot.slane %v5483_v48, 1  ;;  %v12803_v21 = vld [vmem:[#allocation19 + $0x528] ss:$16 sps:$4 sm:$0xff]   ;;  %v12808_v48 = vld [vmem:[#allocation19 + $0x544] ss:$16 sps:$4 sm:$0xff]  }
 0x880   : > { %7919 = vmatprep.subr.bf16.mxu1 %v12670_v50  ;;  %8177 = vmatprep.subr.bf16.mxu0 %v12673_v3  ;;  %v12740_v50 = vld [vmem:[#allocation19 + $0x3e0] ss:$16 sps:$4 sm:$0xff]   ;;  %v12743_v3 = vld [vmem:[#allocation19 + $0x3e8] ss:$16 sps:$4 sm:$0xff]  }
 0x883   : > { %7920 = vmatpush1.bf16.msra.mxu1 %v12668_v35  ;;  %8178 = vmatpush1.bf16.msra.mxu0 %v12671_v38  ;;  %v12748_v35 = vld [vmem:[#allocation19 + $0x404] ss:$16 sps:$4 sm:$0xff]   ;;  %v12751_v38 = vld [vmem:[#allocation19 + $0x40c] ss:$16 sps:$4 sm:$0xff]  }
 0x884   : > { %7921 = vmatprep.subr.bf16.mxu1 %v12676_v47  ;;  %8179 = vmatprep.subr.bf16.mxu0 %v12679_v56  ;;  %v5481_v47 = vshrl.u32 %v5445_v62, 16  ;;  %v5488_v56 = vshll.u32 %v5449_v9, 16  ;;  %v12794_v62 = vld [vmem:[#allocation19 + $0x500] ss:$16 sps:$4 sm:$0xff]   ;;  %v12817_v9 = vld [vmem:[#allocation19 + $0x56c] ss:$16 sps:$4 sm:$0xff]  }
 0x887   : > { %7922 = vmatpush1.bf16.msra.mxu1 %v12674_v6  ;;  %8180 = vmatpush1.bf16.msra.mxu0 %v12677_v10  ;;  %v5426_v6 = vld [vmem:[#allocation3 + $0x10] sm:$0xff]  ;;  %v5486_v10 = vor.u32 %v5485_v54, %v5481_v47  ;;  %v12812_v54 = vld [vmem:[#allocation19 + $0x560] ss:$16 sps:$4 sm:$0xff]  }
 0x888   : > { %7923 = vmatprep.subr.bf16.mxu1 %v12682_v16  ;;  %8181 = vmatprep.subr.bf16.mxu0 %v12685_v17  ;;  %v12746_v16 = vld [vmem:[#allocation19 + $0x400] ss:$16 sps:$4 sm:$0xff]   ;;  %v5434_v17 = vpack.c.bf16 %v14988_v2, %v5426_v6  ;;  %v12821_v6 = vld [vmem:[#allocation19 + $0x588] ss:$16 sps:$4 sm:$0xff]  }
 0x889   : > { %v12818_v47 = vld [vmem:[#allocation19 + $0x580] ss:$16 sps:$4 sm:$0xff]  }
 0x88b   : > { %7924 = vmatpush1.bf16.msra.mxu1 %v12680_v18  ;;  %8182 = vmatpush1.bf16.msra.mxu0 %v12683_v22  ;;  %v12749_v18 = vld [vmem:[#allocation19 + $0x408] ss:$16 sps:$4 sm:$0xff]   ;;  %v5490_v22 = vrot.slane %v5488_v56, 1  ;;  %v5439_v56 = vld [vmem:[#allocation3 + $0x18] sm:$0xfe] }
 0x88c   : > { %7925 = vmatprep.subr.bf16.mxu1 %v12688_v28  ;;  %8183 = vmatprep.subr.bf16.mxu0 %v12691_v29  ;;  %v12754_v28 = vld [vmem:[#allocation19 + $0x424] ss:$16 sps:$4 sm:$0xff]   ;;  %v12757_v29 = vld [vmem:[#allocation19 + $0x42c] ss:$16 sps:$4 sm:$0xff]  }
 0x88f   : > { %7926 = vmatpush1.bf16.msra.mxu1 %v12686_v30  ;;  %8184 = vmatpush1.bf16.msra.mxu0 %v12689_v34  ;;  %v5491_v30 = vsel %vm1399_vm3, %v5486_v10, %v5490_v22  ;;  %v12752_v34 = vld [vmem:[#allocation19 + $0x420] ss:$16 sps:$4 sm:$0xff]   ;;  %v12826_v10 = vld [vmem:[#allocation19 + $0x5a4] ss:$16 sps:$4 sm:$0xff]  }
 0x890   : > { %7927 = vmatprep.subr.bf16.mxu1 %v12694_v44  ;;  %8185 = vmatprep.subr.bf16.mxu0 %v12697_v0  ;;  %v12755_v44 = vld [vmem:[#allocation19 + $0x428] ss:$16 sps:$4 sm:$0xff]   ;;  %v12760_v0 = vld [vmem:[#allocation19 + $0x444] ss:$16 sps:$4 sm:$0xff]   ;;  %v12824_v22 = vld [vmem:[#allocation19 + $0x5a0] ss:$16 sps:$4 sm:$0xff]  }
 0x893   : > { %7928 = vmatpush1.bf16.msra.mxu1 %v12692_v19  ;;  %8186 = vmatpush1.bf16.msra.mxu0 %v12695_v4  ;;  %v12763_v19 = vld [vmem:[#allocation19 + $0x44c] ss:$16 sps:$4 sm:$0xff]   ;;  %v12758_v4 = vld [vmem:[#allocation19 + $0x440] ss:$16 sps:$4 sm:$0xff]  }
 0x894   : > { %7929 = vmatprep.subr.bf16.mxu1 %v12700_v8  ;;  %8187 = vmatprep.subr.bf16.mxu0 %v12703_v58  ;;  %v12761_v8 = vld [vmem:[#allocation19 + $0x448] ss:$16 sps:$4 sm:$0xff]   ;;  %v12766_v58 = vld [vmem:[#allocation19 + $0x464] ss:$16 sps:$4 sm:$0xff]  }
 0x897   : > { %7930 = vmatpush1.bf16.msra.mxu1 %v12698_v23  ;;  %8188 = vmatpush1.bf16.msra.mxu0 %v12701_v24  ;;  %v12769_v23 = vld [vmem:[#allocation19 + $0x46c] ss:$16 sps:$4 sm:$0xff]   ;;  %v12764_v24 = vld [vmem:[#allocation19 + $0x460] ss:$16 sps:$4 sm:$0xff]  }
 0x898   : > { %7931 = vmatprep.subr.bf16.mxu1 %v12706_v25  ;;  %8189 = vmatprep.subr.bf16.mxu0 %v12709_v32  ;;  %v12767_v25 = vld [vmem:[#allocation19 + $0x468] ss:$16 sps:$4 sm:$0xff]   ;;  %v12772_v32 = vld [vmem:[#allocation19 + $0x484] ss:$16 sps:$4 sm:$0xff]  }
 0x89b   : > { %7932 = vmatpush1.bf16.msra.mxu1 %v12704_v40  ;;  %8190 = vmatpush1.bf16.msra.mxu0 %v12707_v45  ;;  %v12775_v40 = vld [vmem:[#allocation19 + $0x48c] ss:$16 sps:$4 sm:$0xff]   ;;  %v12770_v45 = vld [vmem:[#allocation19 + $0x480] ss:$16 sps:$4 sm:$0xff]  }
 0x89c   : > { %7933 = vmatprep.subr.bf16.mxu1 %v12712_v14  ;;  %8191 = vmatprep.subr.bf16.mxu0 %v12715_v1  ;;  %v12773_v14 = vld [vmem:[#allocation19 + $0x488] ss:$16 sps:$4 sm:$0xff]   ;;  %v12778_v1 = vld [vmem:[#allocation19 + $0x4a4] ss:$16 sps:$4 sm:$0xff]  }
 0x89f   : > { %7934 = vmatpush1.bf16.msra.mxu1 %v12710_v31  ;;  %8192 = vmatpush1.bf16.msra.mxu0 %v12713_v11  ;;  %v12781_v31 = vld [vmem:[#allocation19 + $0x4ac] ss:$16 sps:$4 sm:$0xff]   ;;  %v12776_v11 = vld [vmem:[#allocation19 + $0x4a0] ss:$16 sps:$4 sm:$0xff]  }
 0x8a0   : > { %7935 = vmatprep.subr.bf16.mxu1 %v12718_v42  ;;  %8193 = vmatprep.subr.bf16.mxu0 %v12721_v59  ;;  %v12779_v42 = vld [vmem:[#allocation19 + $0x4a8] ss:$16 sps:$4 sm:$0xff]   ;;  %v12784_v59 = vld [vmem:[#allocation19 + $0x4c4] ss:$16 sps:$4 sm:$0xff]  }
 0x8a3   : > { %7936 = vmatpush1.bf16.msra.mxu1 %v12716_v51  ;;  %8194 = vmatpush1.bf16.msra.mxu0 %v12719_v60  ;;  %v12787_v51 = vld [vmem:[#allocation19 + $0x4cc] ss:$16 sps:$4 sm:$0xff]   ;;  %v12782_v60 = vld [vmem:[#allocation19 + $0x4c0] ss:$16 sps:$4 sm:$0xff]  }
 0x8a4   : > { %7937 = vmatprep.subr.bf16.mxu1 %v12724_v37  ;;  %8195 = vmatprep.subr.bf16.mxu0 %v12727_v12  ;;  %v12785_v37 = vld [vmem:[#allocation19 + $0x4c8] ss:$16 sps:$4 sm:$0xff]   ;;  %v12790_v12 = vld [vmem:[#allocation19 + $0x4e4] ss:$16 sps:$4 sm:$0xff]  }
 0x8a7   : > { %7938 = vmatpush1.bf16.msra.mxu1 %v12722_v52  ;;  %8196 = vmatpush1.bf16.msra.mxu0 %v12725_v49  ;;  %v12788_v52 = vld [vmem:[#allocation19 + $0x4e0] ss:$16 sps:$4 sm:$0xff]   ;;  %v12791_v49 = vld [vmem:[#allocation19 + $0x4e8] ss:$16 sps:$4 sm:$0xff]  }
 0x8a8   : > { %7939 = vmatprep.subr.bf16.mxu1 %v12730_v63  ;;  %8197 = vmatprep.subr.bf16.mxu0 %v12733_v39  ;;  %v12796_v63 = vld [vmem:[#allocation19 + $0x504] ss:$16 sps:$4 sm:$0xff]   ;;  %v12799_v39 = vld [vmem:[#allocation19 + $0x50c] ss:$16 sps:$4 sm:$0xff]  }
 0x8ab   : > { %7940 = vmatpush1.bf16.msra.mxu1 %v12728_v20  ;;  %8198 = vmatpush1.bf16.msra.mxu0 %v12731_v53  ;;  %v12797_v20 = vld [vmem:[#allocation19 + $0x508] ss:$16 sps:$4 sm:$0xff]   ;;  %v12802_v53 = vld [vmem:[#allocation19 + $0x524] ss:$16 sps:$4 sm:$0xff]  }
 0x8ac   : > { %7941 = vmatprep.subr.bf16.mxu1 %v12736_v27  ;;  %8199 = vmatprep.subr.bf16.mxu0 %v12739_v46  ;;  %v12805_v27 = vld [vmem:[#allocation19 + $0x52c] ss:$16 sps:$4 sm:$0xff]   ;;  %v12800_v46 = vld [vmem:[#allocation19 + $0x520] ss:$16 sps:$4 sm:$0xff]  }
 0x8af   : > { %7942 = vmatpush1.bf16.msra.mxu1 %v12734_v61  ;;  %8200 = vmatpush1.bf16.msra.mxu0 %v12737_v36  ;;  %v12811_v61 = vld [vmem:[#allocation19 + $0x54c] ss:$16 sps:$4 sm:$0xff]   ;;  %v12806_v36 = vld [vmem:[#allocation19 + $0x540] ss:$16 sps:$4 sm:$0xff]  }
 0x8b0   : > { %7943 = vmatprep.subr.bf16.mxu1 %v12742_v5  ;;  %8201 = vmatprep.subr.bf16.mxu0 %v12745_v7  ;;  %v12809_v5 = vld [vmem:[#allocation19 + $0x548] ss:$16 sps:$4 sm:$0xff]   ;;  %v12814_v7 = vld [vmem:[#allocation19 + $0x564] ss:$16 sps:$4 sm:$0xff]  }
 0x8b3   : > { %7944 = vmatpush1.bf16.msra.mxu1 %v12740_v50  ;;  %8202 = vmatpush1.bf16.msra.mxu0 %v12743_v3  ;;  %v12815_v50 = vld [vmem:[#allocation19 + $0x568] ss:$16 sps:$4 sm:$0xff]   ;;  %v12820_v3 = vld [vmem:[#allocation19 + $0x584] ss:$16 sps:$4 sm:$0xff]  }
 0x8b4   : > { %7956 = vmatprep.subr.bf16.mxu1 %v12748_v35  ;;  %8214 = vmatprep.subr.bf16.mxu0 %v12751_v38  ;;  %v12823_v35 = vld [vmem:[#allocation19 + $0x58c] ss:$16 sps:$4 sm:$0xff]   ;;  %v5436_v38 = vld [vmem:[#allocation3] sm:$0xfe] }
 0x8b6   : > { %7946 = vmatmul.mubr.bf16.vlgmr.msra.gmra.mrb[12].mxu1 %v5434_v17  ;;  %8204 = vmatmul.mubr.bf16.vlgmr.msra.gmra.mrb[16].mxu0 %v5434_v17  ;;  %v5444_v17 = vpack.c.bf16 %v14984_v26, %v5436_v38  ;;  %v12833_v26 = vld [vmem:[#allocation19 + $0x5c8] ss:$16 sps:$4 sm:$0xff]   ;;  %v12872_v38 = vld [vmem:[#allocation19 + $0x6a0] ss:$16 sps:$4 sm:$0xff]  }
 0x8b7   : > { %7957 = vmatpush1.bf16.msra.mxu1 %v12746_v16  ;;  %7988 = vmatprep.mubr.bf16.mxu1 %v5491_v30  ;;  %v12829_v16 = vld [vmem:[#allocation19 + $0x5ac] ss:$16 sps:$4 sm:$0xff]  }
 0x8b8   : > { %8215 = vmatpush1.bf16.msra.mxu0 %v12749_v18  ;;  %8246 = vmatprep.mubr.bf16.mxu0 %v5491_v30  ;;  %v5447_v18 = vpack.c.bf16 %v14996_v43, %v5439_v56  ;;  %v5440_v30 = vld [vmem:[#allocation3 + $0x40] sm:$0x1]  ;;  %v12841_v43 = vld [vmem:[#allocation19 + $0x5ec] ss:$16 sps:$4 sm:$0xff]  }
 0x8b9   : > { %7958 = vmatprep.subr.bf16.mxu1 %v12754_v28  ;;  %8216 = vmatprep.subr.bf16.mxu0 %v12757_v29  ;;  %v12827_v28 = vld [vmem:[#allocation19 + $0x5a8] ss:$16 sps:$4 sm:$0xff]   ;;  %v12832_v29 = vld [vmem:[#allocation19 + $0x5c4] ss:$16 sps:$4 sm:$0xff]  }
 0x8ba   : > { %v12880_v56 = vld [vmem:[#allocation19 + $0x6c4] ss:$16 sps:$4 sm:$0xff]  }
 0x8bb   : > { %7959 = vmatpush1.bf16.msra.mxu1 %v12752_v34  ;;  %v12835_v34 = vld [vmem:[#allocation19 + $0x5cc] ss:$16 sps:$4 sm:$0xff]  }
 0x8bc   : > { %8217 = vmatpush1.bf16.msra.mxu0 %v12755_v44  ;;  %7960 = vmatprep.subr.bf16.mxu1 %v12760_v0  ;;  %v5471_v44 = vshll.u32 %v5444_v17, 16  ;;  %v5443_v0 = vld [vmem:[#allocation3 + $0x58] sm:$0x1] }
 0x8bd   : > { %8218 = vmatprep.subr.bf16.mxu0 %v12763_v19  ;;  %v12830_v19 = vld [vmem:[#allocation19 + $0x5c0] ss:$16 sps:$4 sm:$0xff]  }
 0x8bf   : > { %7961 = vmatpush1.bf16.msra.mxu1 %v12758_v4  ;;  %v5448_v4 = vpack.c.bf16 %v5440_v30, %v5440_v30  ;;  %v12895_v30 = vld [vmem:[#allocation19 + $0x70c] ss:$16 sps:$4 sm:$0xff]  }
 0x8c0   : > { %8219 = vmatpush1.bf16.msra.mxu0 %v12761_v8  ;;  %7962 = vmatprep.subr.bf16.mxu1 %v12766_v58  ;;  %v5507_v8 = vshll.u32 %v5447_v18, 16  ;;  %v12838_v58 = vld [vmem:[#allocation19 + $0x5e4] ss:$16 sps:$4 sm:$0xff]  }
 0x8c1   : > { %8220 = vmatprep.subr.bf16.mxu0 %v12769_v23  ;;  %v5473_v23 = vrot.slane %v5471_v44, 1  ;;  %v12893_v44 = vld [vmem:[#allocation19 + $0x708] ss:$16 sps:$4 sm:$0xff]  }
 0x8c3   : > { %7963 = vmatpush1.bf16.msra.mxu1 %v12764_v24  ;;  %v5451_v24 = vpack.c.bf16 %v5443_v0, %v5443_v0  ;;  %v12898_v0 = vld [vmem:[#allocation19 + $0x724] ss:$16 sps:$4 sm:$0xff]  }
 0x8c4   : > { %8221 = vmatpush1.bf16.msra.mxu0 %v12767_v25  ;;  %7964 = vmatprep.subr.bf16.mxu1 %v12772_v32  ;;  %v12836_v25 = vld [vmem:[#allocation19 + $0x5e0] ss:$16 sps:$4 sm:$0xff]   ;;  %v5469_v32 = vshrl.u32 %v5444_v17, 16  ;;  %v12886_v17 = vld [vmem:[#allocation19 + $0x6e4] ss:$16 sps:$4 sm:$0xff]  }
 0x8c5   : > { %8222 = vmatprep.subr.bf16.mxu0 %v12775_v40  ;;  %v5476_v40 = vshll.u32 %v5448_v4, 16  ;;  %v12896_v4 = vld [vmem:[#allocation19 + $0x720] ss:$16 sps:$4 sm:$0xff]  }
 0x8c7   : > { %7965 = vmatpush1.bf16.msra.mxu1 %v12770_v45  ;;  %v5509_v45 = vrot.slane %v5507_v8, 1  ;;  %v12899_v8 = vld [vmem:[#allocation19 + $0x728] ss:$16 sps:$4 sm:$0xff]  }
 0x8c8   : > { %8223 = vmatpush1.bf16.msra.mxu0 %v12773_v14  ;;  %7966 = vmatprep.subr.bf16.mxu1 %v12778_v1  ;;  %v12839_v14 = vld [vmem:[#allocation19 + $0x5e8] ss:$16 sps:$4 sm:$0xff]   ;;  %v12844_v1 = vld [vmem:[#allocation19 + $0x604] ss:$16 sps:$4 sm:$0xff]  }
 0x8c9   : > { %8224 = vmatprep.subr.bf16.mxu0 %v12781_v31  ;;  %v5474_v31 = vor.u32 %v5473_v23, %v5469_v32  ;;  %v12905_v23 = vld [vmem:[#allocation19 + $0x748] ss:$16 sps:$4 sm:$0xff]   ;;  %v12908_v32 = vld [vmem:[#allocation19 + $0x760] ss:$16 sps:$4 sm:$0xff]  }
 0x8cb   : > { %7967 = vmatpush1.bf16.msra.mxu1 %v12776_v11  ;;  %v12847_v11 = vld [vmem:[#allocation19 + $0x60c] ss:$16 sps:$4 sm:$0xff]  }
 0x8cc   : > { %8225 = vmatpush1.bf16.msra.mxu0 %v12779_v42  ;;  %7968 = vmatprep.subr.bf16.mxu1 %v12784_v59  ;;  %v5505_v42 = vshrl.u32 %v5447_v18, 16  ;;  %v5512_v59 = vshll.u32 %v5451_v24, 16  ;;  %v12889_v18 = vld [vmem:[#allocation19 + $0x6ec] ss:$16 sps:$4 sm:$0xff]   ;;  %v12910_v24 = vld [vmem:[#allocation19 + $0x764] ss:$16 sps:$4 sm:$0xff]  }
 0x8cd   : > { %8226 = vmatprep.subr.bf16.mxu0 %v12787_v51  ;;  %v5478_v51 = vrot.slane %v5476_v40, 1  ;;  %v12911_v40 = vld [vmem:[#allocation19 + $0x768] ss:$16 sps:$4 sm:$0xff]  }
 0x8cf   : > { %7969 = vmatpush1.bf16.msra.mxu1 %v12782_v60  ;;  %v12842_v60 = vld [vmem:[#allocation19 + $0x600] ss:$16 sps:$4 sm:$0xff]  }
 0x8d0   : > { %8227 = vmatpush1.bf16.msra.mxu0 %v12785_v37  ;;  %7970 = vmatprep.subr.bf16.mxu1 %v12790_v12  ;;  %v5510_v37 = vor.u32 %v5509_v45, %v5505_v42  ;;  %v12845_v12 = vld [vmem:[#allocation19 + $0x608] ss:$16 sps:$4 sm:$0xff]   ;;  %v12916_v45 = vld [vmem:[#allocation19 + $0x784] ss:$16 sps:$4 sm:$0xff]  }
 0x8d1   : > { %8228 = vmatprep.subr.bf16.mxu0 %v12793_v57  ;;  %v5479_v57 = vsel %vm1399_vm3, %v5474_v31, %v5478_v51  ;;  %v12914_v31 = vld [vmem:[#allocation19 + $0x780] ss:$16 sps:$4 sm:$0xff]   ;;  %v12922_v42 = vld [vmem:[#allocation19 + $0x7a4] ss:$16 sps:$4 sm:$0xff]  }
 0x8d3   : > { %7971 = vmatpush1.bf16.msra.mxu1 %v12788_v52  ;;  %v5514_v52 = vrot.slane %v5512_v59, 1  ;;  %v12925_v59 = vld [vmem:[#allocation19 + $0x7ac] ss:$16 sps:$4 sm:$0xff]  }
 0x8d4   : > { %8229 = vmatpush1.bf16.msra.mxu0 %v12791_v49  ;;  %7972 = vmatprep.subr.bf16.mxu1 %v12796_v63  ;;  %v12850_v49 = vld [vmem:[#allocation19 + $0x624] ss:$16 sps:$4 sm:$0xff]   ;;  %v12853_v63 = vld [vmem:[#allocation19 + $0x62c] ss:$16 sps:$4 sm:$0xff]  }
 0x8d5   : > { %8230 = vmatprep.subr.bf16.mxu0 %v12799_v39  ;;  %v5515_v39 = vsel %vm1399_vm3, %v5510_v37, %v5514_v52  ;;  %v12923_v37 = vld [vmem:[#allocation19 + $0x7a8] ss:$16 sps:$4 sm:$0xff]   ;;  %v12931_v52 = vld [vmem:[#allocation19 + $0x7cc] ss:$16 sps:$4 sm:$0xff]  }
 0x8d7   : > { %7973 = vmatpush1.bf16.msra.mxu1 %v12794_v62  ;;  %v12848_v62 = vld [vmem:[#allocation19 + $0x620] ss:$16 sps:$4 sm:$0xff]  }
 0x8d8   : > { %8231 = vmatpush1.bf16.msra.mxu0 %v12797_v20  ;;  %7974 = vmatprep.subr.bf16.mxu1 %v12802_v53  ;;  %v12851_v20 = vld [vmem:[#allocation19 + $0x628] ss:$16 sps:$4 sm:$0xff]   ;;  %v12856_v53 = vld [vmem:[#allocation19 + $0x644] ss:$16 sps:$4 sm:$0xff]  }
 0x8d9   : > { %8232 = vmatprep.subr.bf16.mxu0 %v12805_v27  ;;  %v12859_v27 = vld [vmem:[#allocation19 + $0x64c] ss:$16 sps:$4 sm:$0xff]  }
 0x8db   : > { %7975 = vmatpush1.bf16.msra.mxu1 %v12800_v46  ;;  %v12854_v46 = vld [vmem:[#allocation19 + $0x640] ss:$16 sps:$4 sm:$0xff]  }
 0x8dc   : > { %8233 = vmatpush1.bf16.msra.mxu0 %v12803_v21  ;;  %7976 = vmatprep.subr.bf16.mxu1 %v12808_v48  ;;  %v12857_v21 = vld [vmem:[#allocation19 + $0x648] ss:$16 sps:$4 sm:$0xff]   ;;  %v12862_v48 = vld [vmem:[#allocation19 + $0x664] ss:$16 sps:$4 sm:$0xff]  }
 0x8dd   : > { %8234 = vmatprep.subr.bf16.mxu0 %v12811_v61  ;;  %v12865_v61 = vld [vmem:[#allocation19 + $0x66c] ss:$16 sps:$4 sm:$0xff]  }
 0x8df   : > { %7977 = vmatpush1.bf16.msra.mxu1 %v12806_v36  ;;  %v12860_v36 = vld [vmem:[#allocation19 + $0x660] ss:$16 sps:$4 sm:$0xff]  }
 0x8e0   : > { %8235 = vmatpush1.bf16.msra.mxu0 %v12809_v5  ;;  %7978 = vmatprep.subr.bf16.mxu1 %v12814_v7  ;;  %v12863_v5 = vld [vmem:[#allocation19 + $0x668] ss:$16 sps:$4 sm:$0xff]   ;;  %v12868_v7 = vld [vmem:[#allocation19 + $0x684] ss:$16 sps:$4 sm:$0xff]  }
 0x8e1   : > { %8236 = vmatprep.subr.bf16.mxu0 %v12817_v9  ;;  %v12871_v9 = vld [vmem:[#allocation19 + $0x68c] ss:$16 sps:$4 sm:$0xff]  }
 0x8e3   : > { %7979 = vmatpush1.bf16.msra.mxu1 %v12812_v54  ;;  %v12866_v54 = vld [vmem:[#allocation19 + $0x680] ss:$16 sps:$4 sm:$0xff]  }
 0x8e4   : > { %8237 = vmatpush1.bf16.msra.mxu0 %v12815_v50  ;;  %7980 = vmatprep.subr.bf16.mxu1 %v12820_v3  ;;  %v12869_v50 = vld [vmem:[#allocation19 + $0x688] ss:$16 sps:$4 sm:$0xff]   ;;  %v12874_v3 = vld [vmem:[#allocation19 + $0x6a4] ss:$16 sps:$4 sm:$0xff]  }
 0x8e5   : > { %8238 = vmatprep.subr.bf16.mxu0 %v12823_v35  ;;  %v12877_v35 = vld [vmem:[#allocation19 + $0x6ac] ss:$16 sps:$4 sm:$0xff]  }
 0x8e7   : > { %7981 = vmatpush1.bf16.msra.mxu1 %v12818_v47  ;;  %v12875_v47 = vld [vmem:[#allocation19 + $0x6a8] ss:$16 sps:$4 sm:$0xff]  }
 0x8e8   : > { %8239 = vmatpush1.bf16.msra.mxu0 %v12821_v6  ;;  %7982 = vmatprep.subr.bf16.mxu1 %v12826_v10  ;;  %v12883_v6 = vld [vmem:[#allocation19 + $0x6cc] ss:$16 sps:$4 sm:$0xff]   ;;  %v12878_v10 = vld [vmem:[#allocation19 + $0x6c0] ss:$16 sps:$4 sm:$0xff]  }
 0x8e9   : > { %8240 = vmatprep.subr.bf16.mxu0 %v12829_v16  ;;  %v12881_v16 = vld [vmem:[#allocation19 + $0x6c8] ss:$16 sps:$4 sm:$0xff]  }
 0x8eb   : > { %7983 = vmatpush1.bf16.msra.mxu1 %v12824_v22  ;;  %v12884_v22 = vld [vmem:[#allocation19 + $0x6e0] ss:$16 sps:$4 sm:$0xff]  }
 0x8ec   : > { %8241 = vmatpush1.bf16.msra.mxu0 %v12827_v28  ;;  %7984 = vmatprep.subr.bf16.mxu1 %v12832_v29  ;;  %v12887_v28 = vld [vmem:[#allocation19 + $0x6e8] ss:$16 sps:$4 sm:$0xff]   ;;  %v12892_v29 = vld [vmem:[#allocation19 + $0x704] ss:$16 sps:$4 sm:$0xff]  }
 0x8ed   : > { %8242 = vmatprep.subr.bf16.mxu0 %v12835_v34  ;;  %v12890_v34 = vld [vmem:[#allocation19 + $0x700] ss:$16 sps:$4 sm:$0xff]  }
 0x8ef   : > { %7985 = vmatpush1.bf16.msra.mxu1 %v12830_v19  ;;  %v12901_v19 = vld [vmem:[#allocation19 + $0x72c] ss:$16 sps:$4 sm:$0xff]  }
 0x8f0   : > { %8243 = vmatpush1.bf16.msra.mxu0 %v12833_v26  ;;  %7986 = vmatprep.subr.bf16.mxu1 %v12838_v58  ;;  %v12904_v26 = vld [vmem:[#allocation19 + $0x744] ss:$16 sps:$4 sm:$0xff]   ;;  %v12907_v58 = vld [vmem:[#allocation19 + $0x74c] ss:$16 sps:$4 sm:$0xff]  }
 0x8f1   : > { %8244 = vmatprep.subr.bf16.mxu0 %v12841_v43  ;;  %v12902_v43 = vld [vmem:[#allocation19 + $0x740] ss:$16 sps:$4 sm:$0xff]  }
 0x8f3   : > { %7987 = vmatpush1.bf16.msra.mxu1 %v12836_v25  ;;  %v12913_v25 = vld [vmem:[#allocation19 + $0x76c] ss:$16 sps:$4 sm:$0xff]  }
 0x8f4   : > { %8245 = vmatpush1.bf16.msra.mxu0 %v12839_v14  ;;  %7999 = vmatprep.subr.bf16.mxu1 %v12844_v1  ;;  %v12919_v14 = vld [vmem:[#allocation19 + $0x78c] ss:$16 sps:$4 sm:$0xff]   ;;  %v5438_v1 = vld [vmem:[#allocation3 + $0x10] sm:$0xfe] }
 0x8f5   : > { %8257 = vmatprep.subr.bf16.mxu0 %v12847_v11  ;;  %v12917_v11 = vld [vmem:[#allocation19 + $0x788] ss:$16 sps:$4 sm:$0xff]   ;;  %v5446_v51 = vpack.c.bf16 %v14988_v2, %v5438_v1  ;;  %v12937_v2 = vld [vmem:[#allocation19 + $0x7ec] ss:$16 sps:$4 sm:$0xff]   ;;  %v12982_v1 = vld [vmem:[#allocation19 + $0x8e4] ss:$16 sps:$4 sm:$0xff]  }
 0x8f6   : > { %7989 = vmatmul.mubr.bf16.vlgmr.msra.gmra.mrb[12].mxu1 %v5479_v57 }
 0x8f7   : > { %8247 = vmatmul.mubr.bf16.vlgmr.msra.gmra.mrb[16].mxu0 %v5479_v57  ;;  %8000 = vmatpush1.bf16.msra.mxu1 %v12842_v60  ;;  %v12920_v60 = vld [vmem:[#allocation19 + $0x7a0] ss:$16 sps:$4 sm:$0xff]   ;;  %v5442_v57 = vld [vmem:[#allocation3 + $0x50] sm:$0x1] }
 0x8f8   : > { %8031 = vmatprep.mubr.bf16.mxu1 %v5515_v39  ;;  %8258 = vmatpush1.bf16.msra.mxu0 %v12845_v12  ;;  %v12928_v12 = vld [vmem:[#allocation19 + $0x7c4] ss:$16 sps:$4 sm:$0xff]  }
 0x8f9   : > { %8289 = vmatprep.mubr.bf16.mxu0 %v5515_v39  ;;  %8001 = vmatprep.subr.bf16.mxu1 %v12850_v49  ;;  %v5495_v49 = vshll.u32 %v5446_v51, 16  ;;  %v5450_v39 = vpack.c.bf16 %v5442_v57, %v5442_v57  ;;  %v12997_v57 = vld [vmem:[#allocation19 + $0x92c] ss:$16 sps:$4 sm:$0xff]  }
 0x8fa   : > { %8259 = vmatprep.subr.bf16.mxu0 %v12853_v63  ;;  %v12926_v63 = vld [vmem:[#allocation19 + $0x7c0] ss:$16 sps:$4 sm:$0xff]  }
 0x8fb   : > { %8002 = vmatpush1.bf16.msra.mxu1 %v12848_v62  ;;  %v5453_v62 = vld [vmem:[#allocation3 + $0x8] sm:$0xfc] }
 0x8fc   : > { %8260 = vmatpush1.bf16.msra.mxu0 %v12851_v20  ;;  %8003 = vmatprep.subr.bf16.mxu1 %v12856_v53  ;;  %v12929_v20 = vld [vmem:[#allocation19 + $0x7c8] ss:$16 sps:$4 sm:$0xff]   ;;  %v12934_v53 = vld [vmem:[#allocation19 + $0x7e4] ss:$16 sps:$4 sm:$0xff]  }
 0x8fd   : > { %8261 = vmatprep.subr.bf16.mxu0 %v12859_v27  ;;  %v5457_v27 = vld [vmem:[#allocation3 + $0x48] sm:$0x3] }
 0x8ff   : > { %8004 = vmatpush1.bf16.msra.mxu1 %v12854_v46  ;;  %v5497_v46 = vrot.slane %v5495_v49, 1  ;;  %v12995_v49 = vld [vmem:[#allocation19 + $0x928] ss:$16 sps:$4 sm:$0xff]  }
 0x900   : > { %8262 = vmatpush1.bf16.msra.mxu0 %v12857_v21  ;;  %8005 = vmatprep.subr.bf16.mxu1 %v12862_v48  ;;  %v12932_v21 = vld [vmem:[#allocation19 + $0x7e0] ss:$16 sps:$4 sm:$0xff]   ;;  %v5493_v48 = vshrl.u32 %v5446_v51, 16  ;;  %v12991_v51 = vld [vmem:[#allocation19 + $0x90c] ss:$16 sps:$4 sm:$0xff]  }
 0x901   : > { %8263 = vmatprep.subr.bf16.mxu0 %v12865_v61  ;;  %v5500_v61 = vshll.u32 %v5450_v39, 16  ;;  %v13003_v39 = vld [vmem:[#allocation19 + $0x94c] ss:$16 sps:$4 sm:$0xff]  }
 0x903   : > { %8006 = vmatpush1.bf16.msra.mxu1 %v12860_v36  ;;  %v5461_v36 = vpack.c.bf16 %v14993_v41, %v5453_v62  ;;  %v12946_v41 = vld [vmem:[#allocation19 + $0x824] ss:$16 sps:$4 sm:$0xff]   ;;  %v12998_v62 = vld [vmem:[#allocation19 + $0x940] ss:$16 sps:$4 sm:$0xff]  }
 0x904   : > { %8264 = vmatpush1.bf16.msra.mxu0 %v12863_v5  ;;  %8007 = vmatprep.subr.bf16.mxu1 %v12868_v7  ;;  %v5465_v5 = vpack.c.bf16 %v5457_v27, %v5457_v27  ;;  %v12935_v7 = vld [vmem:[#allocation19 + $0x7e8] ss:$16 sps:$4 sm:$0xff]   ;;  %v13009_v27 = vld [vmem:[#allocation19 + $0x96c] ss:$16 sps:$4 sm:$0xff]  }
 0x905   : > { %8265 = vmatprep.subr.bf16.mxu0 %v12871_v9  ;;  %v12940_v9 = vld [vmem:[#allocation19 + $0x804] ss:$16 sps:$4 sm:$0xff]  }
 0x907   : > { %8008 = vmatpush1.bf16.msra.mxu1 %v12866_v54  ;;  %v5498_v54 = vor.u32 %v5497_v46, %v5493_v48  ;;  %v13007_v46 = vld [vmem:[#allocation19 + $0x968] ss:$16 sps:$4 sm:$0xff]   ;;  %v13015_v48 = vld [vmem:[#allocation19 + $0x98c] ss:$16 sps:$4 sm:$0xff]  }
 0x908   : > { %8266 = vmatpush1.bf16.msra.mxu0 %v12869_v50  ;;  %8009 = vmatprep.subr.bf16.mxu1 %v12874_v3  ;;  %v12943_v50 = vld [vmem:[#allocation19 + $0x80c] ss:$16 sps:$4 sm:$0xff]   ;;  %v5502_v3 = vrot.slane %v5500_v61, 1  ;;  %v13010_v61 = vld [vmem:[#allocation19 + $0x980] ss:$16 sps:$4 sm:$0xff]  }
 0x909   : > { %8267 = vmatprep.subr.bf16.mxu0 %v12877_v35  ;;  %v12938_v35 = vld [vmem:[#allocation19 + $0x800] ss:$16 sps:$4 sm:$0xff]  }
 0x90b   : > { %8010 = vmatpush1.bf16.msra.mxu1 %v12872_v38  ;;  %v5531_v38 = vrot.slane %v5461_v36, 1  ;;  %v13013_v36 = vld [vmem:[#allocation19 + $0x988] ss:$16 sps:$4 sm:$0xff]  }
 0x90c   : > { %8268 = vmatpush1.bf16.msra.mxu0 %v12875_v47  ;;  %8011 = vmatprep.subr.bf16.mxu1 %v12880_v56  ;;  %v5532_v47 = vrot.slane %v5465_v5, 1  ;;  %v12941_v56 = vld [vmem:[#allocation19 + $0x808] ss:$16 sps:$4 sm:$0xff]   ;;  %v13018_v5 = vld [vmem:[#allocation19 + $0x9a4] ss:$16 sps:$4 sm:$0xff]  }
 0x90d   : > { %8269 = vmatprep.subr.bf16.mxu0 %v12883_v6  ;;  %v5503_v6 = vsel %vm1399_vm3, %v5498_v54, %v5502_v3  ;;  %v13019_v54 = vld [vmem:[#allocation19 + $0x9a8] ss:$16 sps:$4 sm:$0xff]   ;;  %v13027_v3 = vld [vmem:[#allocation19 + $0x9cc] ss:$16 sps:$4 sm:$0xff]  }
 0x90f   : > { %8012 = vmatpush1.bf16.msra.mxu1 %v12878_v10  ;;  %v12949_v10 = vld [vmem:[#allocation19 + $0x82c] ss:$16 sps:$4 sm:$0xff]  }
 0x910   : > { %8270 = vmatpush1.bf16.msra.mxu0 %v12881_v16  ;;  %8013 = vmatprep.subr.bf16.mxu1 %v12886_v17  ;;  %v5533_v16 = vsel %vm1460_vm4, %v5531_v38, %v5532_v47  ;;  %v12944_v17 = vld [vmem:[#allocation19 + $0x820] ss:$16 sps:$4 sm:$0xff]   ;;  %v5456_v38 = vld [vmem:[#allocation3 + $0x40] sm:$0x3] }
 0x911   : > { %8271 = vmatprep.subr.bf16.mxu0 %v12889_v18  ;;  %v12947_v18 = vld [vmem:[#allocation19 + $0x828] ss:$16 sps:$4 sm:$0xff]   ;;  %v13022_v47 = vld [vmem:[#allocation19 + $0x9c0] ss:$16 sps:$4 sm:$0xff]  }
 0x913   : > { %8014 = vmatpush1.bf16.msra.mxu1 %v12884_v22  ;;  %v12952_v22 = vld [vmem:[#allocation19 + $0x844] ss:$16 sps:$4 sm:$0xff]  }
 0x914   : > { %8272 = vmatpush1.bf16.msra.mxu0 %v12887_v28  ;;  %8015 = vmatprep.subr.bf16.mxu1 %v12892_v29  ;;  %v12955_v28 = vld [vmem:[#allocation19 + $0x84c] ss:$16 sps:$4 sm:$0xff]   ;;  %v12950_v29 = vld [vmem:[#allocation19 + $0x840] ss:$16 sps:$4 sm:$0xff]  }
 0x915   : > { %8273 = vmatprep.subr.bf16.mxu0 %v12895_v30  ;;  %v12953_v30 = vld [vmem:[#allocation19 + $0x848] ss:$16 sps:$4 sm:$0xff]  }
 0x917   : > { %8016 = vmatpush1.bf16.msra.mxu1 %v12890_v34  ;;  %v12958_v34 = vld [vmem:[#allocation19 + $0x864] ss:$16 sps:$4 sm:$0xff]  }
 0x918   : > { %8274 = vmatpush1.bf16.msra.mxu0 %v12893_v44  ;;  %8017 = vmatprep.subr.bf16.mxu1 %v12898_v0  ;;  %v12961_v44 = vld [vmem:[#allocation19 + $0x86c] ss:$16 sps:$4 sm:$0xff]   ;;  %v12956_v0 = vld [vmem:[#allocation19 + $0x860] ss:$16 sps:$4 sm:$0xff]  }
 0x919   : > { %8275 = vmatprep.subr.bf16.mxu0 %v12901_v19  ;;  %v12959_v19 = vld [vmem:[#allocation19 + $0x868] ss:$16 sps:$4 sm:$0xff]  }
 0x91b   : > { %8018 = vmatpush1.bf16.msra.mxu1 %v12896_v4  ;;  %v12964_v4 = vld [vmem:[#allocation19 + $0x884] ss:$16 sps:$4 sm:$0xff]  }
 0x91c   : > { %8276 = vmatpush1.bf16.msra.mxu0 %v12899_v8  ;;  %8019 = vmatprep.subr.bf16.mxu1 %v12904_v26  ;;  %v12967_v8 = vld [vmem:[#allocation19 + $0x88c] ss:$16 sps:$4 sm:$0xff]   ;;  %v12962_v26 = vld [vmem:[#allocation19 + $0x880] ss:$16 sps:$4 sm:$0xff]  }
 0x91d   : > { %8277 = vmatprep.subr.bf16.mxu0 %v12907_v58  ;;  %v12965_v58 = vld [vmem:[#allocation19 + $0x888] ss:$16 sps:$4 sm:$0xff]  }
 0x91f   : > { %8020 = vmatpush1.bf16.msra.mxu1 %v12902_v43  ;;  %v12970_v43 = vld [vmem:[#allocation19 + $0x8a4] ss:$16 sps:$4 sm:$0xff]  }
 0x920   : > { %8278 = vmatpush1.bf16.msra.mxu0 %v12905_v23  ;;  %8021 = vmatprep.subr.bf16.mxu1 %v12910_v24  ;;  %v12973_v23 = vld [vmem:[#allocation19 + $0x8ac] ss:$16 sps:$4 sm:$0xff]   ;;  %v12968_v24 = vld [vmem:[#allocation19 + $0x8a0] ss:$16 sps:$4 sm:$0xff]  }
 0x921   : > { %8279 = vmatprep.subr.bf16.mxu0 %v12913_v25  ;;  %v12971_v25 = vld [vmem:[#allocation19 + $0x8a8] ss:$16 sps:$4 sm:$0xff]  }
 0x923   : > { %8022 = vmatpush1.bf16.msra.mxu1 %v12908_v32  ;;  %v12976_v32 = vld [vmem:[#allocation19 + $0x8c4] ss:$16 sps:$4 sm:$0xff]  }
 0x924   : > { %8280 = vmatpush1.bf16.msra.mxu0 %v12911_v40  ;;  %8023 = vmatprep.subr.bf16.mxu1 %v12916_v45  ;;  %v12979_v40 = vld [vmem:[#allocation19 + $0x8cc] ss:$16 sps:$4 sm:$0xff]   ;;  %v12974_v45 = vld [vmem:[#allocation19 + $0x8c0] ss:$16 sps:$4 sm:$0xff]  }
 0x925   : > { %8281 = vmatprep.subr.bf16.mxu0 %v12919_v14  ;;  %v12977_v14 = vld [vmem:[#allocation19 + $0x8c8] ss:$16 sps:$4 sm:$0xff]  }
 0x927   : > { %8024 = vmatpush1.bf16.msra.mxu1 %v12914_v31  ;;  %v12985_v31 = vld [vmem:[#allocation19 + $0x8ec] ss:$16 sps:$4 sm:$0xff]  }
 0x928   : > { %8282 = vmatpush1.bf16.msra.mxu0 %v12917_v11  ;;  %8025 = vmatprep.subr.bf16.mxu1 %v12922_v42  ;;  %v12980_v11 = vld [vmem:[#allocation19 + $0x8e0] ss:$16 sps:$4 sm:$0xff]   ;;  %v12983_v42 = vld [vmem:[#allocation19 + $0x8e8] ss:$16 sps:$4 sm:$0xff]  }
 0x929   : > { %8283 = vmatprep.subr.bf16.mxu0 %v12925_v59  ;;  %v12988_v59 = vld [vmem:[#allocation19 + $0x904] ss:$16 sps:$4 sm:$0xff]  }
 0x92b   : > { %8026 = vmatpush1.bf16.msra.mxu1 %v12920_v60  ;;  %v12986_v60 = vld [vmem:[#allocation19 + $0x900] ss:$16 sps:$4 sm:$0xff]  }
 0x92c   : > { %8284 = vmatpush1.bf16.msra.mxu0 %v12923_v37  ;;  %8027 = vmatprep.subr.bf16.mxu1 %v12928_v12  ;;  %v12989_v37 = vld [vmem:[#allocation19 + $0x908] ss:$16 sps:$4 sm:$0xff]   ;;  %v12994_v12 = vld [vmem:[#allocation19 + $0x924] ss:$16 sps:$4 sm:$0xff]  }
 0x92d   : > { %8285 = vmatprep.subr.bf16.mxu0 %v12931_v52  ;;  %v12992_v52 = vld [vmem:[#allocation19 + $0x920] ss:$16 sps:$4 sm:$0xff]  }
 0x92f   : > { %8028 = vmatpush1.bf16.msra.mxu1 %v12926_v63  ;;  %v13000_v63 = vld [vmem:[#allocation19 + $0x944] ss:$16 sps:$4 sm:$0xff]  }
 0x930   : > { %8286 = vmatpush1.bf16.msra.mxu0 %v12929_v20  ;;  %8029 = vmatprep.subr.bf16.mxu1 %v12934_v53  ;;  %v13001_v20 = vld [vmem:[#allocation19 + $0x948] ss:$16 sps:$4 sm:$0xff]   ;;  %v13006_v53 = vld [vmem:[#allocation19 + $0x964] ss:$16 sps:$4 sm:$0xff]  }
 0x931   : > { %8287 = vmatprep.subr.bf16.mxu0 %v12937_v2  ;;  %v13004_v2 = vld [vmem:[#allocation19 + $0x960] ss:$16 sps:$4 sm:$0xff]  }
 0x933   : > { %8030 = vmatpush1.bf16.msra.mxu1 %v12932_v21  ;;  %v13012_v21 = vld [vmem:[#allocation19 + $0x984] ss:$16 sps:$4 sm:$0xff]  }
 0x934   : > { %8288 = vmatpush1.bf16.msra.mxu0 %v12935_v7  ;;  %8042 = vmatprep.subr.bf16.mxu1 %v12940_v9  ;;  %v13021_v7 = vld [vmem:[#allocation19 + $0x9ac] ss:$16 sps:$4 sm:$0xff]   ;;  %v13016_v9 = vld [vmem:[#allocation19 + $0x9a0] ss:$16 sps:$4 sm:$0xff]  }
 0x935   : > { %8300 = vmatprep.subr.bf16.mxu0 %v12943_v50  ;;  %v13024_v50 = vld [vmem:[#allocation19 + $0x9c4] ss:$16 sps:$4 sm:$0xff]  }
 0x936   : > { %8032 = vmatmul.mubr.bf16.vlgmr.msra.gmra.mrb[12].mxu1 %v5503_v6 }
 0x937   : > { %8290 = vmatmul.mubr.bf16.vlgmr.msra.gmra.mrb[16].mxu0 %v5503_v6  ;;  %8043 = vmatpush1.bf16.msra.mxu1 %v12938_v35  ;;  %v5452_v35 = vld [vmem:[#allocation3] sm:$0xfc] }
 0x938   : > { %8074 = vmatprep.mubr.bf16.mxu1 %v5533_v16  ;;  %8301 = vmatpush1.bf16.msra.mxu0 %v12941_v56  ;;  %v5455_v56 = vld [vmem:[#allocation3 + $0x18] sm:$0xfc]  ;;  %v13025_v6 = vld [vmem:[#allocation19 + $0x9c8] ss:$16 sps:$4 sm:$0xff]  }
 0x939   : > { %8332 = vmatprep.mubr.bf16.mxu0 %v5533_v16  ;;  %8044 = vmatprep.subr.bf16.mxu1 %v12946_v41  ;;  %v13030_v41 = vld [vmem:[#allocation19 + $0x9e4] ss:$16 sps:$4 sm:$0xff]   ;;  %v13033_v16 = vld [vmem:[#allocation19 + $0x9ec] ss:$16 sps:$4 sm:$0xff]  }
 0x93a   : > { %8302 = vmatprep.subr.bf16.mxu0 %v12949_v10  ;;  %v5459_v10 = vld [vmem:[#allocation3 + $0x58] sm:$0x3] }
 0x93b   : > { %8045 = vmatpush1.bf16.msra.mxu1 %v12944_v17  ;;  %v13181_v17 = vld [vmem:[#allocation3 + $0x20] sm:$0xff] }
 0x93c   : > { %8303 = vmatpush1.bf16.msra.mxu0 %v12947_v18  ;;  %8046 = vmatprep.subr.bf16.mxu1 %v12952_v22  ;;  %v5460_v18 = vpack.c.bf16 %v13181_v17, %v5452_v35  ;;  %v5464_v22 = vpack.c.bf16 %v5456_v38, %v5456_v38  ;;  %v13088_v35 = vld [vmem:[#allocation19 + $0xb20] ss:$16 sps:$4 sm:$0xff]   ;;  %v13091_v38 = vld [vmem:[#allocation19 + $0xb28] ss:$16 sps:$4 sm:$0xff]  }
 0x93d   : > { %8304 = vmatprep.subr.bf16.mxu0 %v12955_v28  ;;  %v13028_v28 = vld [vmem:[#allocation19 + $0x9e0] ss:$16 sps:$4 sm:$0xff]  }
 0x93e   : > { %v13100_v17 = vld [vmem:[#allocation19 + $0xb60] ss:$16 sps:$4 sm:$0xff]  }
 0x93f   : > { %8047 = vmatpush1.bf16.msra.mxu1 %v12950_v29  ;;  %v13182_v29 = vld [vmem:[#allocation3 + $0x38] sm:$0xff] }
 0x940   : > { %8305 = vmatpush1.bf16.msra.mxu0 %v12953_v30  ;;  %8048 = vmatprep.subr.bf16.mxu1 %v12958_v34  ;;  %v5463_v30 = vpack.c.bf16 %v13182_v29, %v5455_v56  ;;  %v5467_v34 = vpack.c.bf16 %v5459_v10, %v5459_v10  ;;  %v13099_v56 = vld [vmem:[#allocation19 + $0xb4c] ss:$16 sps:$4 sm:$0xff]   ;;  %v13102_v10 = vld [vmem:[#allocation19 + $0xb64] ss:$16 sps:$4 sm:$0xff]   ;;  %v13106_v29 = vld [vmem:[#allocation19 + $0xb80] ss:$16 sps:$4 sm:$0xff]  }
 0x941   : > { %8306 = vmatprep.subr.bf16.mxu0 %v12961_v44  ;;  %v13031_v44 = vld [vmem:[#allocation19 + $0x9e8] ss:$16 sps:$4 sm:$0xff]  }
 0x943   : > { %8049 = vmatpush1.bf16.msra.mxu1 %v12956_v0  ;;  %v13036_v0 = vld [vmem:[#allocation19 + $0xa04] ss:$16 sps:$4 sm:$0xff]  }
 0x944   : > { %8307 = vmatpush1.bf16.msra.mxu0 %v12959_v19  ;;  %8050 = vmatprep.subr.bf16.mxu1 %v12964_v4  ;;  %v5528_v19 = vrot.slane %v5460_v18, 1  ;;  %v5529_v4 = vrot.slane %v5464_v22, 1  ;;  %v13103_v18 = vld [vmem:[#allocation19 + $0xb68] ss:$16 sps:$4 sm:$0xff]   ;;  %v13108_v22 = vld [vmem:[#allocation19 + $0xb84] ss:$16 sps:$4 sm:$0xff]  }
 0x945   : > { %8308 = vmatprep.subr.bf16.mxu0 %v12967_v8  ;;  %v13039_v8 = vld [vmem:[#allocation19 + $0xa0c] ss:$16 sps:$4 sm:$0xff]  }
 0x947   : > { %8051 = vmatpush1.bf16.msra.mxu1 %v12962_v26  ;;  %v13034_v26 = vld [vmem:[#allocation19 + $0xa00] ss:$16 sps:$4 sm:$0xff]  }
 0x948   : > { %8309 = vmatpush1.bf16.msra.mxu0 %v12965_v58  ;;  %8052 = vmatprep.subr.bf16.mxu1 %v12970_v43  ;;  %v5537_v58 = vrot.slane %v5463_v30, 1  ;;  %v5538_v43 = vrot.slane %v5467_v34, 1  ;;  %v13109_v30 = vld [vmem:[#allocation19 + $0xb88] ss:$16 sps:$4 sm:$0xff]   ;;  %v13114_v34 = vld [vmem:[#allocation19 + $0xba4] ss:$16 sps:$4 sm:$0xff]  }
 0x949   : > { %8310 = vmatprep.subr.bf16.mxu0 %v12973_v23  ;;  %v13037_v23 = vld [vmem:[#allocation19 + $0xa08] ss:$16 sps:$4 sm:$0xff]  }
 0x94b   : > { %8053 = vmatpush1.bf16.msra.mxu1 %v12968_v24  ;;  %v5530_v24 = vsel %vm1460_vm4, %v5528_v19, %v5529_v4  ;;  %v13115_v19 = vld [vmem:[#allocation19 + $0xba8] ss:$16 sps:$4 sm:$0xff]   ;;  %v13120_v4 = vld [vmem:[#allocation19 + $0xbc4] ss:$16 sps:$4 sm:$0xff]  }
 0x94c   : > { %8311 = vmatpush1.bf16.msra.mxu0 %v12971_v25  ;;  %8054 = vmatprep.subr.bf16.mxu1 %v12976_v32  ;;  %v13042_v25 = vld [vmem:[#allocation19 + $0xa24] ss:$16 sps:$4 sm:$0xff]   ;;  %v13045_v32 = vld [vmem:[#allocation19 + $0xa2c] ss:$16 sps:$4 sm:$0xff]  }
 0x94d   : > { %8312 = vmatprep.subr.bf16.mxu0 %v12979_v40  ;;  %v5539_v40 = vsel %vm1460_vm4, %v5537_v58, %v5538_v43  ;;  %v5458_v58 = vld [vmem:[#allocation3 + $0x50] sm:$0x3]  ;;  %v13118_v43 = vld [vmem:[#allocation19 + $0xbc0] ss:$16 sps:$4 sm:$0xff]  }
 0x94f   : > { %8055 = vmatpush1.bf16.msra.mxu1 %v12974_v45  ;;  %v13040_v45 = vld [vmem:[#allocation19 + $0xa20] ss:$16 sps:$4 sm:$0xff]  }
 0x950   : > { %8313 = vmatpush1.bf16.msra.mxu0 %v12977_v14  ;;  %8056 = vmatprep.subr.bf16.mxu1 %v12982_v1  ;;  %v13043_v14 = vld [vmem:[#allocation19 + $0xa28] ss:$16 sps:$4 sm:$0xff]   ;;  %v13048_v1 = vld [vmem:[#allocation19 + $0xa44] ss:$16 sps:$4 sm:$0xff]  }
 0x951   : > { %8314 = vmatprep.subr.bf16.mxu0 %v12985_v31  ;;  %v13051_v31 = vld [vmem:[#allocation19 + $0xa4c] ss:$16 sps:$4 sm:$0xff]  }
 0x953   : > { %8057 = vmatpush1.bf16.msra.mxu1 %v12980_v11  ;;  %v13046_v11 = vld [vmem:[#allocation19 + $0xa40] ss:$16 sps:$4 sm:$0xff]  }
 0x954   : > { %8315 = vmatpush1.bf16.msra.mxu0 %v12983_v42  ;;  %8058 = vmatprep.subr.bf16.mxu1 %v12988_v59  ;;  %v13049_v42 = vld [vmem:[#allocation19 + $0xa48] ss:$16 sps:$4 sm:$0xff]   ;;  %v13054_v59 = vld [vmem:[#allocation19 + $0xa64] ss:$16 sps:$4 sm:$0xff]  }
 0x955   : > { %8316 = vmatprep.subr.bf16.mxu0 %v12991_v51  ;;  %v13057_v51 = vld [vmem:[#allocation19 + $0xa6c] ss:$16 sps:$4 sm:$0xff]  }
 0x957   : > { %8059 = vmatpush1.bf16.msra.mxu1 %v12986_v60  ;;  %v13052_v60 = vld [vmem:[#allocation19 + $0xa60] ss:$16 sps:$4 sm:$0xff]  }
 0x958   : > { %8317 = vmatpush1.bf16.msra.mxu0 %v12989_v37  ;;  %8060 = vmatprep.subr.bf16.mxu1 %v12994_v12  ;;  %v13055_v37 = vld [vmem:[#allocation19 + $0xa68] ss:$16 sps:$4 sm:$0xff]   ;;  %v13060_v12 = vld [vmem:[#allocation19 + $0xa84] ss:$16 sps:$4 sm:$0xff]  }
 0x959   : > { %8318 = vmatprep.subr.bf16.mxu0 %v12997_v57  ;;  %v13063_v57 = vld [vmem:[#allocation19 + $0xa8c] ss:$16 sps:$4 sm:$0xff]  }
 0x95b   : > { %8061 = vmatpush1.bf16.msra.mxu1 %v12992_v52  ;;  %v13058_v52 = vld [vmem:[#allocation19 + $0xa80] ss:$16 sps:$4 sm:$0xff]  }
 0x95c   : > { %8319 = vmatpush1.bf16.msra.mxu0 %v12995_v49  ;;  %8062 = vmatprep.subr.bf16.mxu1 %v13000_v63  ;;  %v13061_v49 = vld [vmem:[#allocation19 + $0xa88] ss:$16 sps:$4 sm:$0xff]   ;;  %v13066_v63 = vld [vmem:[#allocation19 + $0xaa4] ss:$16 sps:$4 sm:$0xff]  }
 0x95d   : > { %8320 = vmatprep.subr.bf16.mxu0 %v13003_v39  ;;  %v13069_v39 = vld [vmem:[#allocation19 + $0xaac] ss:$16 sps:$4 sm:$0xff]  }
 0x95f   : > { %8063 = vmatpush1.bf16.msra.mxu1 %v12998_v62  ;;  %v13064_v62 = vld [vmem:[#allocation19 + $0xaa0] ss:$16 sps:$4 sm:$0xff]  }
 0x960   : > { %8321 = vmatpush1.bf16.msra.mxu0 %v13001_v20  ;;  %8064 = vmatprep.subr.bf16.mxu1 %v13006_v53  ;;  %v13067_v20 = vld [vmem:[#allocation19 + $0xaa8] ss:$16 sps:$4 sm:$0xff]   ;;  %v13072_v53 = vld [vmem:[#allocation19 + $0xac4] ss:$16 sps:$4 sm:$0xff]  }
 0x961   : > { %8322 = vmatprep.subr.bf16.mxu0 %v13009_v27  ;;  %v13075_v27 = vld [vmem:[#allocation19 + $0xacc] ss:$16 sps:$4 sm:$0xff]  }
 0x963   : > { %8065 = vmatpush1.bf16.msra.mxu1 %v13004_v2  ;;  %v13070_v2 = vld [vmem:[#allocation19 + $0xac0] ss:$16 sps:$4 sm:$0xff]  }
 0x964   : > { %8323 = vmatpush1.bf16.msra.mxu0 %v13007_v46  ;;  %8066 = vmatprep.subr.bf16.mxu1 %v13012_v21  ;;  %v13073_v46 = vld [vmem:[#allocation19 + $0xac8] ss:$16 sps:$4 sm:$0xff]   ;;  %v13078_v21 = vld [vmem:[#allocation19 + $0xae4] ss:$16 sps:$4 sm:$0xff]  }
 0x965   : > { %8324 = vmatprep.subr.bf16.mxu0 %v13015_v48  ;;  %v13081_v48 = vld [vmem:[#allocation19 + $0xaec] ss:$16 sps:$4 sm:$0xff]  }
 0x967   : > { %8067 = vmatpush1.bf16.msra.mxu1 %v13010_v61  ;;  %v13076_v61 = vld [vmem:[#allocation19 + $0xae0] ss:$16 sps:$4 sm:$0xff]  }
 0x968   : > { %8325 = vmatpush1.bf16.msra.mxu0 %v13013_v36  ;;  %8068 = vmatprep.subr.bf16.mxu1 %v13018_v5  ;;  %v13079_v36 = vld [vmem:[#allocation19 + $0xae8] ss:$16 sps:$4 sm:$0xff]   ;;  %v13084_v5 = vld [vmem:[#allocation19 + $0xb04] ss:$16 sps:$4 sm:$0xff]  }
 0x969   : > { %8326 = vmatprep.subr.bf16.mxu0 %v13021_v7  ;;  %v13087_v7 = vld [vmem:[#allocation19 + $0xb0c] ss:$16 sps:$4 sm:$0xff]  }
 0x96b   : > { %8069 = vmatpush1.bf16.msra.mxu1 %v13016_v9  ;;  %v13082_v9 = vld [vmem:[#allocation19 + $0xb00] ss:$16 sps:$4 sm:$0xff]  }
 0x96c   : > { %8327 = vmatpush1.bf16.msra.mxu0 %v13019_v54  ;;  %8070 = vmatprep.subr.bf16.mxu1 %v13024_v50  ;;  %v13085_v54 = vld [vmem:[#allocation19 + $0xb08] ss:$16 sps:$4 sm:$0xff]   ;;  %v13090_v50 = vld [vmem:[#allocation19 + $0xb24] ss:$16 sps:$4 sm:$0xff]  }
 0x96d   : > { %8328 = vmatprep.subr.bf16.mxu0 %v13027_v3  ;;  %v13093_v3 = vld [vmem:[#allocation19 + $0xb2c] ss:$16 sps:$4 sm:$0xff]  }
 0x96f   : > { %8071 = vmatpush1.bf16.msra.mxu1 %v13022_v47  ;;  %v13096_v47 = vld [vmem:[#allocation19 + $0xb44] ss:$16 sps:$4 sm:$0xff]  }
 0x970   : > { %8329 = vmatpush1.bf16.msra.mxu0 %v13025_v6  ;;  %8072 = vmatprep.subr.bf16.mxu1 %v13030_v41  ;;  %v13094_v6 = vld [vmem:[#allocation19 + $0xb40] ss:$16 sps:$4 sm:$0xff]   ;;  %v13097_v41 = vld [vmem:[#allocation19 + $0xb48] ss:$16 sps:$4 sm:$0xff]  }
 0x971   : > { %8330 = vmatprep.subr.bf16.mxu0 %v13033_v16  ;;  %v13105_v16 = vld [vmem:[#allocation19 + $0xb6c] ss:$16 sps:$4 sm:$0xff]  }
 0x973   : > { %8073 = vmatpush1.bf16.msra.mxu1 %v13028_v28  ;;  %v13111_v28 = vld [vmem:[#allocation19 + $0xb8c] ss:$16 sps:$4 sm:$0xff]  }
 0x974   : > { %8331 = vmatpush1.bf16.msra.mxu0 %v13031_v44  ;;  %8085 = vmatprep.subr.bf16.mxu1 %v13036_v0  ;;  %v13117_v44 = vld [vmem:[#allocation19 + $0xbac] ss:$16 sps:$4 sm:$0xff]   ;;  %v13112_v0 = vld [vmem:[#allocation19 + $0xba0] ss:$16 sps:$4 sm:$0xff]  }
 0x975   : > { %8343 = vmatprep.subr.bf16.mxu0 %v13039_v8  ;;  %v13123_v8 = vld [vmem:[#allocation19 + $0xbcc] ss:$16 sps:$4 sm:$0xff]  }
 0x976   : > { %8075 = vmatmul.mubr.bf16.vlgmr.msra.gmra.mrb[12].mxu1 %v5530_v24 }
 0x977   : > { %8333 = vmatmul.mubr.bf16.vlgmr.msra.gmra.mrb[16].mxu0 %v5530_v24  ;;  %8086 = vmatpush1.bf16.msra.mxu1 %v13034_v26  ;;  %v5454_v26 = vld [vmem:[#allocation3 + $0x10] sm:$0xfc] }
 0x978   : > { %8117 = vmatprep.mubr.bf16.mxu1 %v5539_v40  ;;  %8344 = vmatpush1.bf16.msra.mxu0 %v13037_v23  ;;  %v13121_v23 = vld [vmem:[#allocation19 + $0xbc8] ss:$16 sps:$4 sm:$0xff]   ;;  %v13126_v24 = vld [vmem:[#allocation19 + $0xbe4] ss:$16 sps:$4 sm:$0xff]  }
 0x979   : > { %8375 = vmatprep.mubr.bf16.mxu0 %v5539_v40  ;;  %8087 = vmatprep.subr.bf16.mxu1 %v13042_v25  ;;  %v13129_v25 = vld [vmem:[#allocation19 + $0xbec] ss:$16 sps:$4 sm:$0xff]  }
 0x97a   : > { %8345 = vmatprep.subr.bf16.mxu0 %v13045_v32  ;;  %v13183_v32 = vld [vmem:[#allocation3 + $0x30] sm:$0xff] }
 0x97b   : > { %8088 = vmatpush1.bf16.msra.mxu1 %v13040_v45  ;;  %v5462_v40 = vpack.c.bf16 %v13183_v32, %v5454_v26  ;;  %v5466_v45 = vpack.c.bf16 %v5458_v58, %v5458_v58  ;;  %v8419_v26 = vld [vmem:[#allocation22 + $0x108] sm:$0xff] }
 0x97c   : > { %8346 = vmatpush1.bf16.msra.mxu0 %v13043_v14  ;;  %8089 = vmatprep.subr.bf16.mxu1 %v13048_v1  ;;  %v8387_v14 = vld [vmem:[#allocation22 + $0x8] sm:$0xff] }
 0x97d   : > { %8347 = vmatprep.subr.bf16.mxu0 %v13051_v31  ;;  %v8391_v1 = vld [vmem:[#allocation22 + $0x28] sm:$0xff]  ;;  %v8389_v31 = vld [vmem:[#allocation22 + $0x18] sm:$0xff] }
 0x97e   : > { %v8423_v58 = vld [vmem:[#allocation22 + $0x128] sm:$0xff] }
 0x97f   : > { %8090 = vmatpush1.bf16.msra.mxu1 %v13046_v11  ;;  %v8393_v11 = vld [vmem:[#allocation22 + $0x38] sm:$0xff]  ;;  %v15061_v32 = vpack.c.bf16 %v8423_v58, %v8419_v26  ;;  %v8448_v58 = vld [vmem:[#allocation22 + $0x1f0] sm:$0xff] }
 0x980   : > { %8348 = vmatpush1.bf16.msra.mxu0 %v13049_v42  ;;  %8091 = vmatprep.subr.bf16.mxu1 %v13054_v59  ;;  %v13124_v42 = vld [vmem:[#allocation19 + $0xbe0] ss:$16 sps:$4 sm:$0xff]   ;;  %v13127_v59 = vld [vmem:[#allocation19 + $0xbe8] ss:$16 sps:$4 sm:$0xff]  }
 0x981   : > { %8349 = vmatprep.subr.bf16.mxu0 %v13057_v51  ;;  %v15015_v51 = vpack.c.bf16 %v8391_v1, %v8387_v14  ;;  %v8420_v14 = vld [vmem:[#allocation22 + $0x110] sm:$0xff] }
 0x983   : > { %8092 = vmatpush1.bf16.msra.mxu1 %v13052_v60  ;;  %v8386_v60 = vld [vmem:[#allocation22] sm:$0xff] }
 0x984   : > { %8350 = vmatpush1.bf16.msra.mxu0 %v13055_v37  ;;  %8093 = vmatprep.subr.bf16.mxu1 %v13060_v12  ;;  %v8390_v37 = vld [vmem:[#allocation22 + $0x20] sm:$0xff]  ;;  %v8388_v12 = vld [vmem:[#allocation22 + $0x10] sm:$0xff] }
 0x985   : > { %8351 = vmatprep.subr.bf16.mxu0 %v13063_v57  ;;  %v5534_v57 = vrot.slane %v5462_v40, 1  ;;  %v8418_v40 = vld [vmem:[#allocation22 + $0x100] sm:$0xff] }
 0x987   : > { %8094 = vmatpush1.bf16.msra.mxu1 %v13058_v52  ;;  %v5535_v52 = vrot.slane %v5466_v45, 1  ;;  %v8422_v45 = vld [vmem:[#allocation22 + $0x120] sm:$0xff] }
 0x988   : > { %8352 = vmatpush1.bf16.msra.mxu0 %v13061_v49  ;;  %8095 = vmatprep.subr.bf16.mxu1 %v13066_v63  ;;  %v15017_v49 = vpack.c.bf16 %v8393_v11, %v8389_v31  ;;  %v8392_v63 = vld [vmem:[#allocation22 + $0x30] sm:$0xff]  ;;  %v8427_v11 = vld [vmem:[#allocation22 + $0x148] sm:$0xff] }
 0x989   : > { %8353 = vmatprep.subr.bf16.mxu0 %v13069_v39  ;;  %v8395_v39 = vld [vmem:[#allocation22 + $0x48] sm:$0xff]  ;;  %v8424_v31 = vld [vmem:[#allocation22 + $0x130] sm:$0xff] }
 0x98b   : > { %8096 = vmatpush1.bf16.msra.mxu1 %v13064_v62  ;;  %v8399_v62 = vld [vmem:[#allocation22 + $0x68] sm:$0xff] }
 0x98c   : > { %8354 = vmatpush1.bf16.msra.mxu0 %v13067_v20  ;;  %8097 = vmatprep.subr.bf16.mxu1 %v13072_v53  ;;  %v8397_v20 = vld [vmem:[#allocation22 + $0x58] sm:$0xff] }
 0x98d   : > { %8355 = vmatprep.subr.bf16.mxu0 %v13075_v27  ;;  %v8401_v53 = vld [vmem:[#allocation22 + $0x78] sm:$0xff]  ;;  %v15019_v27 = vpack.c.bf16 %v8390_v37, %v8386_v60  ;;  %v15067_v37 = vpack.c.bf16 %v8422_v45, %v8418_v40 }
 0x98e   : > { %v8433_v60 = vld [vmem:[#allocation22 + $0x178] sm:$0xff] }
 0x98f   : > { %8098 = vmatpush1.bf16.msra.mxu1 %v13070_v2  ;;  %v15022_v2 = vpack.c.bf16 %v8392_v63, %v8388_v12  ;;  %v15071_v12 = vpack.c.bf16 %v8424_v31, %v8420_v14  ;;  %v8430_v63 = vld [vmem:[#allocation22 + $0x160] sm:$0xff]  ;;  %v8453_v40 = vld [vmem:[#allocation22 + $0x218] sm:$0xff] }
 0x990   : > { %8356 = vmatpush1.bf16.msra.mxu0 %v13073_v46  ;;  %8099 = vmatprep.subr.bf16.mxu1 %v13078_v21  ;;  %v15024_v46 = vpack.c.bf16 %v8399_v62, %v8395_v39  ;;  %v8394_v21 = vld [vmem:[#allocation22 + $0x40] sm:$0xff]  ;;  %v8428_v39 = vld [vmem:[#allocation22 + $0x150] sm:$0xff]  ;;  %v8457_v45 = vld [vmem:[#allocation22 + $0x238] sm:$0xff] }
 0x991   : > { %8357 = vmatprep.subr.bf16.mxu0 %v13081_v48  ;;  %v8398_v48 = vld [vmem:[#allocation22 + $0x60] sm:$0xff] }
 0x993   : > { %8100 = vmatpush1.bf16.msra.mxu1 %v13076_v61  ;;  %v8396_v61 = vld [vmem:[#allocation22 + $0x50] sm:$0xff] }
 0x994   : > { %8358 = vmatpush1.bf16.msra.mxu0 %v13079_v36  ;;  %8101 = vmatprep.subr.bf16.mxu1 %v13084_v5  ;;  %v5536_v36 = vsel %vm1460_vm4, %v5534_v57, %v5535_v52  ;;  %v15028_v5 = vpack.c.bf16 %v8401_v53, %v8397_v20  ;;  %v8426_v52 = vld [vmem:[#allocation22 + $0x140] sm:$0xff]  ;;  %v8432_v20 = vld [vmem:[#allocation22 + $0x170] sm:$0xff]  ;;  %v8435_v53 = vld [vmem:[#allocation22 + $0x188] sm:$0xff] }
 0x995   : > { %8359 = vmatprep.subr.bf16.mxu0 %v13087_v7  ;;  %v8400_v7 = vld [vmem:[#allocation22 + $0x70] sm:$0xff] }
 0x997   : > { %8102 = vmatpush1.bf16.msra.mxu1 %v13082_v9  ;;  %v8403_v9 = vld [vmem:[#allocation22 + $0x88] sm:$0xff] }
 0x998   : > { %8360 = vmatpush1.bf16.msra.mxu0 %v13085_v54  ;;  %8103 = vmatprep.subr.bf16.mxu1 %v13090_v50  ;;  %v8407_v54 = vld [vmem:[#allocation22 + $0xa8] sm:$0xff]  ;;  %v8405_v50 = vld [vmem:[#allocation22 + $0x98] sm:$0xff] }
 0x999   : > { %8361 = vmatprep.subr.bf16.mxu0 %v13093_v3  ;;  %v8409_v3 = vld [vmem:[#allocation22 + $0xb8] sm:$0xff] }
 0x99b   : > { %8104 = vmatpush1.bf16.msra.mxu1 %v13088_v35  ;;  %v15031_v35 = vpack.c.bf16 %v8398_v48, %v8394_v21  ;;  %v8439_v21 = vld [vmem:[#allocation22 + $0x1a8] sm:$0xff]  ;;  %v8437_v48 = vld [vmem:[#allocation22 + $0x198] sm:$0xff] }
 0x99c   : > { %8362 = vmatpush1.bf16.msra.mxu0 %v13091_v38  ;;  %8105 = vmatprep.subr.bf16.mxu1 %v13096_v47  ;;  %v15035_v38 = vpack.c.bf16 %v8400_v7, %v8396_v61  ;;  %v15037_v47 = vpack.c.bf16 %v8407_v54, %v8403_v9  ;;  %v8441_v61 = vld [vmem:[#allocation22 + $0x1b8] sm:$0xff]  ;;  %v15083_v7 = vpack.c.bf16 %v8432_v20, %v8428_v39  ;;  %v8434_v54 = vld [vmem:[#allocation22 + $0x180] sm:$0xff]  ;;  %v8459_v39 = vld [vmem:[#allocation22 + $0x248] sm:$0xff] }
 0x99d   : > { %8363 = vmatprep.subr.bf16.mxu0 %v13099_v56  ;;  %v8402_v56 = vld [vmem:[#allocation22 + $0x80] sm:$0xff]  ;;  %v15085_v9 = vpack.c.bf16 %v8439_v21, %v8435_v53  ;;  %v8463_v20 = vld [vmem:[#allocation22 + $0x268] sm:$0xff]  ;;  %v8461_v53 = vld [vmem:[#allocation22 + $0x258] sm:$0xff] }
 0x99e   : > { %v8465_v21 = vld [vmem:[#allocation22 + $0x278] sm:$0xff] }
 0x99f   : > { %8106 = vmatpush1.bf16.msra.mxu1 %v13094_v6  ;;  %v8406_v6 = vld [vmem:[#allocation22 + $0xa0] sm:$0xff] }
 0x9a0   : > { %8364 = vmatpush1.bf16.msra.mxu0 %v13097_v41  ;;  %8107 = vmatprep.subr.bf16.mxu1 %v13102_v10  ;;  %v8404_v41 = vld [vmem:[#allocation22 + $0x90] sm:$0xff]  ;;  %v15040_v10 = vpack.c.bf16 %v8409_v3, %v8405_v50  ;;  %v8438_v50 = vld [vmem:[#allocation22 + $0x1a0] sm:$0xff] }
 0x9a1   : > { %8365 = vmatprep.subr.bf16.mxu0 %v13105_v16  ;;  %v8408_v16 = vld [vmem:[#allocation22 + $0xb0] sm:$0xff] }
 0x9a2   : > { %v8436_v3 = vld [vmem:[#allocation22 + $0x190] sm:$0xff] }
 0x9a3   : > { %8108 = vmatpush1.bf16.msra.mxu1 %v13100_v17  ;;  %v8411_v17 = vld [vmem:[#allocation22 + $0xc8] sm:$0xff] }
 0x9a4   : > { %8366 = vmatpush1.bf16.msra.mxu0 %v13103_v18  ;;  %8109 = vmatprep.subr.bf16.mxu1 %v13108_v22  ;;  %v8415_v18 = vld [vmem:[#allocation22 + $0xe8] sm:$0xff]  ;;  %v8413_v22 = vld [vmem:[#allocation22 + $0xd8] sm:$0xff] }
 0x9a5   : > { %8367 = vmatprep.subr.bf16.mxu0 %v13111_v28  ;;  %v8417_v28 = vld [vmem:[#allocation22 + $0xf8] sm:$0xff] }
 0x9a7   : > { %8110 = vmatpush1.bf16.msra.mxu1 %v13106_v29  ;;  %v15043_v29 = vpack.c.bf16 %v8406_v6, %v8402_v56  ;;  %v15088_v56 = vpack.c.bf16 %v8441_v61, %v8437_v48  ;;  %v8440_v6 = vld [vmem:[#allocation22 + $0x1b0] sm:$0xff] }
 0x9a8   : > { %8368 = vmatpush1.bf16.msra.mxu0 %v13109_v30  ;;  %8111 = vmatprep.subr.bf16.mxu1 %v13114_v34  ;;  %v15047_v30 = vpack.c.bf16 %v8408_v16, %v8404_v41  ;;  %v15049_v34 = vpack.c.bf16 %v8415_v18, %v8411_v17  ;;  %v8443_v41 = vld [vmem:[#allocation22 + $0x1c8] sm:$0xff]  ;;  %v8445_v17 = vld [vmem:[#allocation22 + $0x1d8] sm:$0xff] }
 0x9a9   : > { %8369 = vmatprep.subr.bf16.mxu0 %v13117_v44  ;;  %v8410_v44 = vld [vmem:[#allocation22 + $0xc0] sm:$0xff]  ;;  %v8447_v16 = vld [vmem:[#allocation22 + $0x1e8] sm:$0xff]  ;;  %v8449_v18 = vld [vmem:[#allocation22 + $0x1f8] sm:$0xff] }
 0x9aa   : > { %v15100_v26 = vpack.c.bf16 %v8449_v18, %v8445_v17  ;;  %v8467_v17 = vld [vmem:[#allocation22 + $0x288] sm:$0xff] }
 0x9ab   : > { %8112 = vmatpush1.bf16.msra.mxu1 %v13112_v0  ;;  %v8414_v0 = vld [vmem:[#allocation22 + $0xe0] sm:$0xff]  ;;  %v8471_v18 = vld [vmem:[#allocation22 + $0x2a8] sm:$0xff] }
 0x9ac   : > { %8370 = vmatpush1.bf16.msra.mxu0 %v13115_v19  ;;  %8113 = vmatprep.subr.bf16.mxu1 %v13120_v4  ;;  %v8412_v19 = vld [vmem:[#allocation22 + $0xd0] sm:$0xff]  ;;  %v15052_v4 = vpack.c.bf16 %v8417_v28, %v8413_v22  ;;  %v15091_v22 = vpack.c.bf16 %v8438_v50, %v8434_v54  ;;  %v15095_v28 = vpack.c.bf16 %v8440_v6, %v8436_v3  ;;  %v8458_v50 = vld [vmem:[#allocation22 + $0x240] sm:$0xff] }
 0x9ad   : > { %8371 = vmatprep.subr.bf16.mxu0 %v13123_v8  ;;  %v8416_v8 = vld [vmem:[#allocation22 + $0xf0] sm:$0xff]  ;;  %v15121_v54 = vpack.c.bf16 %v8463_v20, %v8459_v39  ;;  %v8462_v3 = vld [vmem:[#allocation22 + $0x260] sm:$0xff]  ;;  %v8475_v39 = vld [vmem:[#allocation22 + $0x2c8] sm:$0xff] }
 0x9ae   : > { %v8460_v6 = vld [vmem:[#allocation22 + $0x250] sm:$0xff]  ;;  %v8479_v20 = vld [vmem:[#allocation22 + $0x2e8] sm:$0xff] }
 0x9af   : > { %8114 = vmatpush1.bf16.msra.mxu1 %v13118_v43  ;;  %v8421_v43 = vld [vmem:[#allocation22 + $0x118] sm:$0xff]  ;;  %16171 = vst [vmem:[#allocation53_spill] sm:$0xff] %v15121_v54 }
 0x9b0   : > { %8372 = vmatpush1.bf16.msra.mxu0 %v13121_v23  ;;  %8115 = vmatprep.subr.bf16.mxu1 %v13126_v24  ;;  %v8425_v23 = vld [vmem:[#allocation22 + $0x138] sm:$0xff]  ;;  %v15055_v24 = vpack.c.bf16 %v8414_v0, %v8410_v44  ;;  %v15097_v44 = vpack.c.bf16 %v8447_v16, %v8443_v41  ;;  %v8442_v0 = vld [vmem:[#allocation22 + $0x1c0] sm:$0xff]  ;;  %v15124_v41 = vpack.c.bf16 %v8465_v21, %v8461_v53  ;;  %v8464_v16 = vld [vmem:[#allocation22 + $0x270] sm:$0xff] }
 0x9b1   : > { %8373 = vmatprep.subr.bf16.mxu0 %v13129_v25  ;;  %v15059_v25 = vpack.c.bf16 %v8416_v8, %v8412_v19  ;;  %v15064_v1 = vpack.c.bf16 %v8425_v23, %v8421_v43  ;;  %v8446_v19 = vld [vmem:[#allocation22 + $0x1e0] sm:$0xff]  ;;  %v8444_v8 = vld [vmem:[#allocation22 + $0x1d0] sm:$0xff]  ;;  %v8451_v43 = vld [vmem:[#allocation22 + $0x208] sm:$0xff]  ;;  %v15148_v21 = vpack.c.bf16 %v8479_v20, %v8475_v39 }
 0x9b2   : > { %v8455_v23 = vld [vmem:[#allocation22 + $0x228] sm:$0xff]  ;;  %v15103_v14 = vpack.c.bf16 %v8446_v19, %v8442_v0  ;;  %v15107_v31 = vpack.c.bf16 %v8448_v58, %v8444_v8  ;;  %16172 = vst [vmem:[#allocation54_spill] sm:$0xff] %v15124_v41  ;;  %v8469_v0 = vld [vmem:[#allocation22 + $0x298] sm:$0xff]  ;;  %v15127_v8 = vpack.c.bf16 %v8462_v3, %v8458_v50  ;;  %v15131_v58 = vpack.c.bf16 %v8464_v16, %v8460_v6  ;;  %v8474_v3 = vld [vmem:[#allocation22 + $0x2c0] sm:$0xff] }
 0x9b3   : > { %8116 = vmatpush1.bf16.msra.mxu1 %v13124_v42  ;;  %v8431_v42 = vld [vmem:[#allocation22 + $0x168] sm:$0xff]  ;;  %v8473_v19 = vld [vmem:[#allocation22 + $0x2b8] sm:$0xff]  ;;  %16179 = vst [vmem:[#allocation61_spill] sm:$0xff] %v15148_v21  ;;  %v8478_v6 = vld [vmem:[#allocation22 + $0x2e0] sm:$0xff] }
 0x9b4   : > { %8374 = vmatpush1.bf16.msra.mxu0 %v13127_v59  ;;  %11160 = vmatprep.subr.bf16.mxu1 %v15015_v51  ;;  %v8429_v59 = vld [vmem:[#allocation22 + $0x158] sm:$0xff]  ;;  %v15073_v57 = vpack.c.bf16 %v8431_v42, %v8427_v11  ;;  %v15109_v11 = vpack.c.bf16 %v8455_v23, %v8451_v43  ;;  %v8450_v42 = vld [vmem:[#allocation22 + $0x200] sm:$0xff]  ;;  %16173 = vst [vmem:[#allocation55_spill] sm:$0xff] %v15127_v8  ;;  %16174 = vst [vmem:[#allocation56_spill] sm:$0xff] %v15131_v58 }
 0x9b5   : > { %11288 = vmatprep.subr.bf16.mxu0 %v15017_v49  ;;  %v15076_v62 = vpack.c.bf16 %v8433_v60, %v8429_v59  ;;  %v8454_v59 = vld [vmem:[#allocation22 + $0x220] sm:$0xff]  ;;  %v8452_v60 = vld [vmem:[#allocation22 + $0x210] sm:$0xff]  ;;  %v15133_v43 = vpack.c.bf16 %v8471_v18, %v8467_v17  ;;  %v8477_v53 = vld [vmem:[#allocation22 + $0x2d8] sm:$0xff]  ;;  %v15152_v17 = vpack.c.bf16 %v8478_v6, %v8474_v3 }
 0x9b6   : > { %8118 = vmatmul.mubr.bf16.vlgmr.msra.gmra.mrb[12].mxu1 %v5536_v36  ;;  %16167 = vst [vmem:[#allocation49_spill] sm:$0xff] %v15109_v11  ;;  %v15115_v48 = vpack.c.bf16 %v8454_v59, %v8450_v42  ;;  %v8466_v23 = vld [vmem:[#allocation22 + $0x280] sm:$0xff]  ;;  %v8468_v42 = vld [vmem:[#allocation22 + $0x290] sm:$0xff]  ;;  %v8481_v50 = vld [vmem:[#allocation22 + $0x2f8] sm:$0xff] }
 0x9b7   : > { %8376 = vmatmul.mubr.bf16.vlgmr.msra.gmra.mrb[16].mxu0 %v5536_v36  ;;  %11162 = vmatpush1.bf16.msra.mxu1 %v15019_v27  ;;  %v15079_v36 = vpack.c.bf16 %v8430_v63, %v8426_v52  ;;  %v15112_v52 = vpack.c.bf16 %v8457_v45, %v8453_v40  ;;  %v8456_v63 = vld [vmem:[#allocation22 + $0x230] sm:$0xff]  ;;  %16175 = vst [vmem:[#allocation57_spill] sm:$0xff] %v15133_v43  ;;  %v8470_v40 = vld [vmem:[#allocation22 + $0x2a0] sm:$0xff]  ;;  %16181 = vst [vmem:[#allocation63_spill] sm:$0xff] %v15152_v17 }
 0x9b8   : > { %11290 = vmatpush1.bf16.msra.mxu0 %v15022_v2  ;;  %11164 = vmatprep.subr.bf16.mxu1 %v15024_v46  ;;  %16169 = vst [vmem:[#allocation51_spill] sm:$0xff] %v15115_v48  ;;  %v15119_v61 = vpack.c.bf16 %v8456_v63, %v8452_v60  ;;  %v15136_v45 = vpack.c.bf16 %v8473_v19, %v8469_v0  ;;  %v8472_v59 = vld [vmem:[#allocation22 + $0x2b0] sm:$0xff]  ;;  %v8489_v39 = vld [vmem:[#allocation22 + $0x338] sm:$0xff]  ;;  %v8482_v20 = vld [vmem:[#allocation22 + $0x300] sm:$0xff] }
 0x9b9   : > { %11292 = vmatprep.subr.bf16.mxu0 %v15028_v5  ;;  %16168 = vst [vmem:[#allocation50_spill] sm:$0xff] %v15112_v52  ;;  %v15139_v60 = vpack.c.bf16 %v8470_v40, %v8466_v23  ;;  %v15143_v63 = vpack.c.bf16 %v8472_v59, %v8468_v42  ;;  %v15150_v16 = vpack.c.bf16 %v8481_v50, %v8477_v53  ;;  %v8476_v18 = vld [vmem:[#allocation22 + $0x2d0] sm:$0xff]  ;;  %v8483_v23 = vld [vmem:[#allocation22 + $0x308] sm:$0xff]  ;;  %v8485_v42 = vld [vmem:[#allocation22 + $0x318] sm:$0xff] }
 0x9ba   : > { %16170 = vst [vmem:[#allocation52_spill] sm:$0xff] %v15119_v61  ;;  %16176 = vst [vmem:[#allocation58_spill] sm:$0xff] %v15136_v45  ;;  %v8480_v0 = vld [vmem:[#allocation22 + $0x2f0] sm:$0xff]  ;;  %v8487_v40 = vld [vmem:[#allocation22 + $0x328] sm:$0xff]  ;;  %v15162_v50 = vpack.c.bf16 %v8489_v39, %v8485_v42 }
 0x9bb   : > { %11166 = vmatpush1.bf16.msra.mxu1 %v15031_v35  ;;  %16177 = vst [vmem:[#allocation59_spill] sm:$0xff] %v15139_v60  ;;  %16178 = vst [vmem:[#allocation60_spill] sm:$0xff] %v15143_v63  ;;  %v15155_v19 = vpack.c.bf16 %v8480_v0, %v8476_v18  ;;  %v15160_v59 = vpack.c.bf16 %v8487_v40, %v8483_v23  ;;  %v8486_v53 = vld [vmem:[#allocation22 + $0x320] sm:$0xff]  ;;  %v8484_v6 = vld [vmem:[#allocation22 + $0x310] sm:$0xff] }
 0x9bc   : > { %11294 = vmatpush1.bf16.msra.mxu0 %v15035_v38  ;;  %11168 = vmatprep.subr.bf16.mxu1 %v15037_v47  ;;  %16180 = vst [vmem:[#allocation62_spill] sm:$0xff] %v15150_v16  ;;  %16184 = vst [vmem:[#allocation66_spill] sm:$0xff] %v15162_v50  ;;  %v15164_v3 = vpack.c.bf16 %v8486_v53, %v8482_v20  ;;  %v8488_v18 = vld [vmem:[#allocation22 + $0x330] sm:$0xff]  ;;  %v8491_v0 = vld [vmem:[#allocation22 + $0x348] sm:$0xff] }
 0x9bd   : > { %11296 = vmatprep.subr.bf16.mxu0 %v15040_v10  ;;  %16182 = vst [vmem:[#allocation64_spill] sm:$0xff] %v15155_v19  ;;  %16183 = vst [vmem:[#allocation65_spill] sm:$0xff] %v15160_v59  ;;  %v8490_v42 = vld [vmem:[#allocation22 + $0x340] sm:$0xff]  ;;  %v8492_v20 = vld [vmem:[#allocation22 + $0x350] sm:$0xff] }
 0x9be   : > { %16185 = vst [vmem:[#allocation67_spill] sm:$0xff] %v15164_v3  ;;  %v8494_v39 = vld [vmem:[#allocation22 + $0x360] sm:$0xff] }
 0x9bf   : > { %11170 = vmatpush1.bf16.msra.mxu1 %v15043_v29  ;;  %v15176_v53 = vpack.c.bf16 %v8494_v39, %v8490_v42  ;;  %v8504_v42 = vld [vmem:[#allocation22 + $0x3b0] sm:$0xff] }
 0x9c0   : > { %11298 = vmatpush1.bf16.msra.mxu0 %v15047_v30  ;;  %11172 = vmatprep.subr.bf16.mxu1 %v15049_v34 }
 0x9c1   : > { %11300 = vmatprep.subr.bf16.mxu0 %v15052_v4  ;;  %16189 = vst [vmem:[#allocation71_spill] sm:$0xff] %v15176_v53 }
 0x9c3   : > { %11174 = vmatpush1.bf16.msra.mxu1 %v15055_v24 }
 0x9c4   : > { %11302 = vmatpush1.bf16.msra.mxu0 %v15059_v25  ;;  %11176 = vmatprep.subr.bf16.mxu1 %v15061_v32 }
 0x9c5   : > { %11304 = vmatprep.subr.bf16.mxu0 %v15064_v1 }
 0x9c7   : > { %11178 = vmatpush1.bf16.msra.mxu1 %v15067_v37 }
 0x9c8   : > { %11306 = vmatpush1.bf16.msra.mxu0 %v15071_v12  ;;  %11180 = vmatprep.subr.bf16.mxu1 %v15073_v57 }
 0x9c9   : > { %11308 = vmatprep.subr.bf16.mxu0 %v15076_v62 }
 0x9cb   : > { %11182 = vmatpush1.bf16.msra.mxu1 %v15079_v36 }
 0x9cc   : > { %11310 = vmatpush1.bf16.msra.mxu0 %v15083_v7  ;;  %11184 = vmatprep.subr.bf16.mxu1 %v15085_v9 }
 0x9cd   : > { %11312 = vmatprep.subr.bf16.mxu0 %v15088_v56 }
 0x9cf   : > { %11186 = vmatpush1.bf16.msra.mxu1 %v15091_v22 }
 0x9d0   : > { %11314 = vmatpush1.bf16.msra.mxu0 %v15095_v28  ;;  %11188 = vmatprep.subr.bf16.mxu1 %v15097_v44 }
 0x9d1   : > { %11316 = vmatprep.subr.bf16.mxu0 %v15100_v26 }
 0x9d3   : > { %11190 = vmatpush1.bf16.msra.mxu1 %v15103_v14 }
 0x9d4   : > { %11318 = vmatpush1.bf16.msra.mxu0 %v15107_v31  ;;  %11192 = vmatprep.subr.bf16.mxu1 %v15109_v11  ;;  %v8537_v11 = vld [vmem:[#allocation22 + $0x4b8] sm:$0xff] }
 0x9d5   : > { %11320 = vmatprep.subr.bf16.mxu0 %v15112_v52  ;;  %v8533_v52 = vld [vmem:[#allocation22 + $0x498] sm:$0xff] }
 0x9d7   : > { %11194 = vmatpush1.bf16.msra.mxu1 %v15115_v48  ;;  %v8535_v48 = vld [vmem:[#allocation22 + $0x4a8] sm:$0xff] }
 0x9d8   : > { %11322 = vmatpush1.bf16.msra.mxu0 %v15119_v61  ;;  %11196 = vmatprep.subr.bf16.mxu1 %v15121_v54  ;;  %v8523_v54 = vld [vmem:[#allocation22 + $0x448] sm:$0xff] }
 0x9d9   : > { %11324 = vmatprep.subr.bf16.mxu0 %v15124_v41  ;;  %v8520_v41 = vld [vmem:[#allocation22 + $0x430] sm:$0xff] }
 0x9db   : > { %11198 = vmatpush1.bf16.msra.mxu1 %v15127_v8 }
 0x9dc   : > { %11326 = vmatpush1.bf16.msra.mxu0 %v15131_v58  ;;  %11200 = vmatprep.subr.bf16.mxu1 %v15133_v43  ;;  %v8517_v43 = vld [vmem:[#allocation22 + $0x418] sm:$0xff] }
 0x9dd   : > { %11328 = vmatprep.subr.bf16.mxu0 %v15136_v45  ;;  %v8509_v45 = vld [vmem:[#allocation22 + $0x3d8] sm:$0xff] }
 0x9de   : > { %v8521_v58 = vld [vmem:[#allocation22 + $0x438] sm:$0xff] }
 0x9df   : > { %11202 = vmatpush1.bf16.msra.mxu1 %v15139_v60  ;;  %v8507_v60 = vld [vmem:[#allocation22 + $0x3c8] sm:$0xff] }
 0x9e0   : > { %11330 = vmatpush1.bf16.msra.mxu0 %v15143_v63  ;;  %11204 = vmatprep.subr.bf16.mxu1 %v15148_v21  ;;  %v8497_v21 = vld [vmem:[#allocation22 + $0x378] sm:$0xff]  ;;  %v8502_v63 = vld [vmem:[#allocation22 + $0x3a0] sm:$0xff] }
 0x9e1   : > { %11332 = vmatprep.subr.bf16.mxu0 %v15150_v16  ;;  %v8493_v16 = vld [vmem:[#allocation22 + $0x358] sm:$0xff] }
 0x9e2   : > { %v15173_v40 = vpack.c.bf16 %v8497_v21, %v8493_v16  ;;  %v8501_v21 = vld [vmem:[#allocation22 + $0x398] sm:$0xff] }
 0x9e3   : > { %11206 = vmatpush1.bf16.msra.mxu1 %v15152_v17  ;;  %v15167_v17 = vpack.c.bf16 %v8488_v18, %v8484_v6  ;;  %v8496_v6 = vld [vmem:[#allocation22 + $0x370] sm:$0xff]  ;;  %v8499_v18 = vld [vmem:[#allocation22 + $0x388] sm:$0xff]  ;;  %v8505_v16 = vld [vmem:[#allocation22 + $0x3b8] sm:$0xff] }
 0x9e4   : > { %11334 = vmatpush1.bf16.msra.mxu0 %v15155_v19  ;;  %11208 = vmatprep.subr.bf16.mxu1 %v15160_v59  ;;  %v8495_v19 = vld [vmem:[#allocation22 + $0x368] sm:$0xff]  ;;  %16188 = vst [vmem:[#allocation70_spill] sm:$0xff] %v15173_v40 }
 0x9e5   : > { %16186 = vst [vmem:[#allocation68_spill] sm:$0xff] %v15167_v17  ;;  %11336 = vmatprep.subr.bf16.mxu0 %v15162_v50  ;;  %v15171_v23 = vpack.c.bf16 %v8495_v19, %v8491_v0  ;;  %v8503_v59 = vld [vmem:[#allocation22 + $0x3a8] sm:$0xff]  ;;  %v15180_v50 = vpack.c.bf16 %v8496_v6, %v8492_v20  ;;  %v8498_v0 = vld [vmem:[#allocation22 + $0x380] sm:$0xff]  ;;  %v8513_v6 = vld [vmem:[#allocation22 + $0x3f8] sm:$0xff] }
 0x9e6   : > { %v15182_v19 = vpack.c.bf16 %v8503_v59, %v8499_v18  ;;  %v15187_v39 = vpack.c.bf16 %v8502_v63, %v8498_v0  ;;  %v8506_v18 = vld [vmem:[#allocation22 + $0x3c0] sm:$0xff]  ;;  %v8508_v63 = vld [vmem:[#allocation22 + $0x3d0] sm:$0xff] }
 0x9e7   : > { %11210 = vmatpush1.bf16.msra.mxu1 %v15164_v3  ;;  %16187 = vst [vmem:[#allocation69_spill] sm:$0xff] %v15171_v23  ;;  %16190 = vst [vmem:[#allocation72_spill] sm:$0xff] %v15180_v50  ;;  %v15184_v3 = vpack.c.bf16 %v8505_v16, %v8501_v21  ;;  %v8510_v21 = vld [vmem:[#allocation22 + $0x3e0] sm:$0xff]  ;;  %v15196_v16 = vpack.c.bf16 %v8513_v6, %v8509_v45  ;;  %v8512_v0 = vld [vmem:[#allocation22 + $0x3f0] sm:$0xff]  ;;  %v15208_v45 = vpack.c.bf16 %v8521_v58, %v8517_v43 }
 0x9e8   : > { %11338 = vmatpush1.bf16.msra.mxu0 %v15167_v17  ;;  %11212 = vmatprep.subr.bf16.mxu1 %v15171_v23  ;;  %16191 = vst [vmem:[#allocation73_spill] sm:$0xff] %v15182_v19  ;;  %v8500_v17 = vld [vmem:[#allocation22 + $0x390] sm:$0xff]  ;;  %16193 = vst [vmem:[#allocation75_spill] sm:$0xff] %v15187_v39  ;;  %v8511_v23 = vld [vmem:[#allocation22 + $0x3e8] sm:$0xff] }
 0x9e9   : > { %11340 = vmatprep.subr.bf16.mxu0 %v15173_v40  ;;  %16192 = vst [vmem:[#allocation74_spill] sm:$0xff] %v15184_v3  ;;  %v15191_v59 = vpack.c.bf16 %v8504_v42, %v8500_v17  ;;  %v15193_v20 = vpack.c.bf16 %v8511_v23, %v8507_v60  ;;  %16196 = vst [vmem:[#allocation78_spill] sm:$0xff] %v15196_v16  ;;  %v8519_v40 = vld [vmem:[#allocation22 + $0x428] sm:$0xff]  ;;  %v15203_v60 = vpack.c.bf16 %v8512_v0, %v8508_v63  ;;  %v15214_v23 = vld [vmem:[#allocation21] sm:$0xf] }
 0x9ea   : > { %16200 = vst [vmem:[#allocation82_spill] sm:$0xff] %v15208_v45  ;;  %v5933_v42 = vrot.slane %v15214_v23, %v16112_v15  ;;  %v5945_v43 = vrot.slane %v15214_v23, %v16166_v33 }
 0x9eb   : > { %11214 = vmatpush1.bf16.msra.mxu1 %v15176_v53  ;;  %16194 = vst [vmem:[#allocation76_spill] sm:$0xff] %v15191_v59  ;;  %16195 = vst [vmem:[#allocation77_spill] sm:$0xff] %v15193_v20  ;;  %v8515_v53 = vld [vmem:[#allocation22 + $0x408] sm:$0xff] }
 0x9ec   : > { %11342 = vmatpush1.bf16.msra.mxu0 %v15180_v50  ;;  %11216 = vmatprep.subr.bf16.mxu1 %v15182_v19  ;;  %v15199_v19 = vpack.c.bf16 %v8510_v21, %v8506_v18  ;;  %16198 = vst [vmem:[#allocation80_spill] sm:$0xff] %v15203_v60  ;;  %v15205_v17 = vpack.c.bf16 %v8519_v40, %v8515_v53 }
 0x9ed   : > { %11344 = vmatprep.subr.bf16.mxu0 %v15184_v3  ;;  %v5937_v40 = vrot.slane %v15214_v23, %v16165_v13 }
 0x9ee   : > { %16197 = vst [vmem:[#allocation79_spill] sm:$0xff] %v15199_v19  ;;  %16199 = vst [vmem:[#allocation81_spill] sm:$0xff] %v15205_v17 }
 0x9ef   : > { %11218 = vmatpush1.bf16.msra.mxu1 %v15187_v39 }
 0x9f0   : > { %11346 = vmatpush1.bf16.msra.mxu0 %v15191_v59  ;;  %11220 = vmatprep.subr.bf16.mxu1 %v15193_v20 }
 0x9f1   : > { %11348 = vmatprep.subr.bf16.mxu0 %v15196_v16 }
 0x9f3   : > { %11222 = vmatpush1.bf16.msra.mxu1 %v15199_v19 }
 0x9f4   : > { %11350 = vmatpush1.bf16.msra.mxu0 %v15203_v60  ;;  %11224 = vmatprep.subr.bf16.mxu1 %v15205_v17 }
 0x9f5   : > { %11352 = vmatprep.subr.bf16.mxu0 %v15208_v45 }
 0xa89   : > { %v8119_v6 = vpop.f32.mrb[12].mxu1 }
 0xa8a   : > { %v15220_v53 = vpop.f32.mrb[16].mxu0  ;;  %v8121_v58 = vpop.f32.mrb[13].mxu1  ;;  %v15224_v63 = vadd.f32 %v8119_v6, %v5933_v42 }
 0xa8b   : > { %v8379_v18 = vpop.f32.mrb[17].mxu0  ;;  %v8123_v21 = vpop.f32.mrb[14].mxu1  ;;  %v15230_v15 = vadd.f32 %v8121_v58, %v5937_v40 }
 0xa8c   : > { %16201 = vst [vmem:[#allocation86_spill] sm:$0xff] %v15224_v63  ;;  %v15226_v0 = vadd.f32 %v8123_v21, %v5933_v42  ;;  %v15228_v45 = vpop.f32.mrb[18].mxu0  ;;  %v8125_v17 = vpop.f32.mrb[15].mxu1  ;;  %v15234_v19 = vadd.f32 %v8379_v18, %v5945_v43 }
 0xa8d   : > { %16203 = vst [vmem:[#allocation88_spill] sm:$0xff] %v15230_v15  ;;  %v15232_v60 = vadd.f32 %v8125_v17, %v5937_v40  ;;  %v8383_v13 = vpop.f32.mrb[19].mxu0 }
 0xa8e   : > { %16202 = vst [vmem:[#allocation87_spill] sm:$0xff] %v15226_v0  ;;  %16205 = vst [vmem:[#allocation90_spill] sm:$0xff] %v15234_v19  ;;  %v8644_v16 = vadd.f32 %v15226_v0, %v15224_v63  ;;  %v15238_v33 = vadd.f32 %v8383_v13, %v5945_v43  ;;  %v8514_v0 = vld [vmem:[#allocation22 + $0x400] sm:$0xff]  ;;  %v8516_v63 = vld [vmem:[#allocation22 + $0x410] sm:$0xff] }
 0xa8f   : > { %16204 = vst [vmem:[#allocation89_spill] sm:$0xff] %v15232_v60  ;;  %v8651_v6 = vadd.f32 %v15232_v60, %v15230_v15  ;;  %v8518_v43 = vld [vmem:[#allocation22 + $0x420] sm:$0xff] }
 0xa90   : > { %16206 = vst [vmem:[#allocation91_spill] sm:$0xff] %v15238_v33  ;;  %v8645_v42 = vrot.slane %v8644_v16, 4  ;;  %v8665_v21 = vadd.f32 %v15238_v33, %v15234_v19  ;;  %v8527_v33 = vld [vmem:[#allocation22 + $0x468] sm:$0xff]  ;;  %v8525_v19 = vld [vmem:[#allocation22 + $0x458] sm:$0xff] }
 0xa91   : > { %v8652_v20 = vrot.slane %v8651_v6, 4 }
 0xa92   : > { %v8646_v58 = vadd.f32 %v8645_v42, %v8644_v16  ;;  %v8666_v59 = vrot.slane %v8665_v21, 4  ;;  %v8529_v16 = vld [vmem:[#allocation22 + $0x478] sm:$0xff] }
 0xa93   : > { %v8653_v17 = vadd.f32 %v8652_v20, %v8651_v6  ;;  %v15244_v20 = vpack.c.bf16 %v8518_v43, %v8514_v0  ;;  %v8522_v6 = vld [vmem:[#allocation22 + $0x440] sm:$0xff]  ;;  %v8536_v0 = vld [vmem:[#allocation22 + $0x4b0] sm:$0xff]  ;;  %v8545_v43 = vld [vmem:[#allocation22 + $0x4f8] sm:$0xff] }
 0xa94   : > { %v8647_v40 = vrot.slane %v8646_v58, 2  ;;  %v8667_v39 = vadd.f32 %v8666_v59, %v8665_v21  ;;  %v15246_v59 = vpack.c.bf16 %v8520_v41, %v8516_v63  ;;  %v8526_v21 = vld [vmem:[#allocation22 + $0x460] sm:$0xff] }
 0xa95   : > { %v8654_v18 = vrot.slane %v8653_v17, 2  ;;  %v15254_v41 = vpack.c.bf16 %v8526_v21, %v8522_v6  ;;  %v8534_v63 = vld [vmem:[#allocation22 + $0x4a0] sm:$0xff]  ;;  %v8540_v21 = vld [vmem:[#allocation22 + $0x4d0] sm:$0xff] }
 0xa96   : > { %v8648_v3 = vadd.f32 %v8647_v40, %v8646_v58  ;;  %v8668_v50 = vrot.slane %v8667_v39, 2  ;;  %v8528_v40 = vld [vmem:[#allocation22 + $0x470] sm:$0xff] }
 0xa97   : > { %v8655_v8 = vadd.f32 %v8654_v18, %v8653_v17  ;;  %v8524_v17 = vld [vmem:[#allocation22 + $0x450] sm:$0xff]  ;;  %v8531_v18 = vld [vmem:[#allocation22 + $0x488] sm:$0xff] }
 0xa98   : > { %v8649_v13 = vrot.slane %v8648_v3, 1  ;;  %v8669_v60 = vadd.f32 %v8668_v50, %v8667_v39  ;;  %v15248_v50 = vpack.c.bf16 %v8527_v33, %v8523_v54  ;;  %v15250_v39 = vpack.c.bf16 %v8529_v16, %v8525_v19  ;;  %v8532_v19 = vld [vmem:[#allocation22 + $0x490] sm:$0xff] }
 0xa99   : > { %v8656_v15 = vrot.slane %v8655_v8, 1  ;;  %v15258_v33 = vpack.c.bf16 %v8535_v48, %v8531_v18  ;;  %v15260_v54 = vpack.c.bf16 %v8537_v11, %v8533_v52  ;;  %v15268_v48 = vpack.c.bf16 %v8536_v0, %v8532_v19  ;;  %v8538_v11 = vld [vmem:[#allocation22 + $0x4c0] sm:$0xff]  ;;  %v8549_v18 = vld [vmem:[#allocation22 + $0x518] sm:$0xff] }
 0xa9a   : > { %v8670_v61 = vrot.slane %v8669_v60, 1  ;;  %v8650_v58 = vadd.f32 %v8649_v13, %v8648_v3  ;;  %v8530_v3 = vld [vmem:[#allocation22 + $0x480] sm:$0xff]  ;;  %v8539_v13 = vld [vmem:[#allocation22 + $0x4c8] sm:$0xff] }
 0xa9b   : > { %v8657_v42 = vadd.f32 %v8656_v15, %v8655_v8  ;;  %v15256_v8 = vpack.c.bf16 %v8528_v40, %v8524_v17  ;;  %16207 = vst [vmem:[#allocation92_spill] sm:$0xff] %v15258_v33  ;;  %16208 = vst [vmem:[#allocation93_spill] sm:$0xff] %v15260_v54  ;;  %v15266_v16 = vpack.c.bf16 %v8534_v63, %v8530_v3  ;;  %v8542_v52 = vld [vmem:[#allocation22 + $0x4e0] sm:$0xff]  ;;  %v8547_v17 = vld [vmem:[#allocation22 + $0x508] sm:$0xff] }
 0xa9c   : > { %v8671_v15 = vadd.f32 %v8670_v61, %v8669_v60  ;;  %v8543_v61 = vld [vmem:[#allocation22 + $0x4e8] sm:$0xff]  ;;  %v8541_v60 = vld [vmem:[#allocation22 + $0x4d8] sm:$0xff]  ;;  %16210 = vst [vmem:[#allocation95_spill] sm:$0xff] %v15268_v48  ;;  %v15278_v3 = vpack.c.bf16 %v8542_v52, %v8538_v11  ;;  %v8546_v19 = vld [vmem:[#allocation22 + $0x500] sm:$0xff] }
 0xa9d   : > { %8736 = vmatprep.mubr.f32.mxu1 %v8657_v42  ;;  %8878 = vmatprep.mubr.f32.mxu0 %v8657_v42  ;;  %16209 = vst [vmem:[#allocation94_spill] sm:$0xff] %v15266_v16  ;;  %v15272_v42 = vpack.c.bf16 %v8543_v61, %v8539_v13  ;;  %v15274_v6 = vpack.c.bf16 %v8545_v43, %v8541_v60  ;;  %v8551_v40 = vld [vmem:[#allocation22 + $0x528] sm:$0xff]  ;;  %v8550_v0 = vld [vmem:[#allocation22 + $0x520] sm:$0xff]  ;;  %v8548_v60 = vld [vmem:[#allocation22 + $0x510] sm:$0xff] }
 0xa9e   : > { %8737 = vmatmul.mubr.f32.vlgmr.msra.gmra.mrb[16].mxu1 %v8650_v58  ;;  %8879 = vmatmul.mubr.f32.vlgmr.msra.gmra.mrb[14].mxu0 %v8650_v58  ;;  %v8544_v58 = vld [vmem:[#allocation22 + $0x4f0] sm:$0xff]  ;;  %16213 = vst [vmem:[#allocation98_spill] sm:$0xff] %v15278_v3  ;;  %v15284_v13 = vpack.c.bf16 %v8551_v40, %v8547_v17  ;;  %v15290_v11 = vpack.c.bf16 %v8550_v0, %v8546_v19 }
 0xa9f   : > { %11226 = vmatpush1.bf16.msra.mxu1 %v15244_v20  ;;  %11354 = vmatpush1.bf16.msra.mxu0 %v15246_v59  ;;  %16211 = vst [vmem:[#allocation96_spill] sm:$0xff] %v15272_v42  ;;  %16212 = vst [vmem:[#allocation97_spill] sm:$0xff] %v15274_v6  ;;  %v15280_v63 = vpack.c.bf16 %v8544_v58, %v8540_v21  ;;  %v8552_v43 = vld [vmem:[#allocation22 + $0x530] sm:$0xff]  ;;  %v8554_v21 = vld [vmem:[#allocation22 + $0x540] sm:$0xff] }
 0xaa0   : > { %8807 = vmatprep.mubr.f32.mxu1 %v8671_v15  ;;  %8949 = vmatprep.mubr.f32.mxu0 %v8671_v15  ;;  %v8553_v15 = vld [vmem:[#allocation22 + $0x538] sm:$0xff]  ;;  %16215 = vst [vmem:[#allocation100_spill] sm:$0xff] %v15284_v13  ;;  %16217 = vst [vmem:[#allocation102_spill] sm:$0xff] %v15290_v11  ;;  %v15292_v52 = vpack.c.bf16 %v8552_v43, %v8548_v60  ;;  %v8558_v58 = vld [vmem:[#allocation22 + $0x560] sm:$0xff] }
 0xaa1   : > { %11228 = vmatprep.subr.bf16.mxu1 %v15248_v50  ;;  %11356 = vmatprep.subr.bf16.mxu0 %v15250_v39  ;;  %16214 = vst [vmem:[#allocation99_spill] sm:$0xff] %v15280_v63  ;;  %v15286_v61 = vpack.c.bf16 %v8553_v15, %v8549_v18  ;;  %v8556_v18 = vld [vmem:[#allocation22 + $0x550] sm:$0xff]  ;;  %v15302_v19 = vpack.c.bf16 %v8558_v58, %v8554_v21  ;;  %v8562_v60 = vld [vmem:[#allocation22 + $0x580] sm:$0xff] }
 0xaa2   : > { %16218 = vst [vmem:[#allocation103_spill] sm:$0xff] %v15292_v52  ;;  %v8560_v15 = vld [vmem:[#allocation22 + $0x570] sm:$0xff]  ;;  %v8566_v43 = vld [vmem:[#allocation22 + $0x5a0] sm:$0xff] }
 0xaa3   : > { %11230 = vmatpush1.bf16.msra.mxu1 %v15254_v41  ;;  %11358 = vmatpush1.bf16.msra.mxu0 %v15256_v8  ;;  %16216 = vst [vmem:[#allocation101_spill] sm:$0xff] %v15286_v61  ;;  %16221 = vst [vmem:[#allocation106_spill] sm:$0xff] %v15302_v19  ;;  %v15304_v0 = vpack.c.bf16 %v8560_v15, %v8556_v18  ;;  %v15314_v21 = vpack.c.bf16 %v8566_v43, %v8562_v60  ;;  %v8570_v18 = vld [vmem:[#allocation22 + $0x5c0] sm:$0xff] }
 0xaa4   : > { %11232 = vmatprep.subr.bf16.mxu1 %v15258_v33  ;;  %11360 = vmatprep.subr.bf16.mxu0 %v15260_v54  ;;  %v8555_v54 = vld [vmem:[#allocation22 + $0x548] sm:$0xff]  ;;  %v8557_v33 = vld [vmem:[#allocation22 + $0x558] sm:$0xff]  ;;  %v8574_v15 = vld [vmem:[#allocation22 + $0x5e0] sm:$0xff] }
 0xaa5   : > { %16222 = vst [vmem:[#allocation107_spill] sm:$0xff] %v15304_v0  ;;  %16225 = vst [vmem:[#allocation110_spill] sm:$0xff] %v15314_v21  ;;  %v15326_v60 = vpack.c.bf16 %v8574_v15, %v8570_v18 }
 0xaa7   : > { %11234 = vmatpush1.bf16.msra.mxu1 %v15266_v16  ;;  %11362 = vmatpush1.bf16.msra.mxu0 %v15268_v48  ;;  %v8559_v16 = vld [vmem:[#allocation22 + $0x568] sm:$0xff]  ;;  %v8561_v48 = vld [vmem:[#allocation22 + $0x578] sm:$0xff]  ;;  %16229 = vst [vmem:[#allocation114_spill] sm:$0xff] %v15326_v60 }
 0xaa8   : > { %11236 = vmatprep.subr.bf16.mxu1 %v15272_v42  ;;  %11364 = vmatprep.subr.bf16.mxu0 %v15274_v6  ;;  %v15296_v17 = vpack.c.bf16 %v8559_v16, %v8555_v54  ;;  %v15298_v40 = vpack.c.bf16 %v8561_v48, %v8557_v33  ;;  %v8563_v6 = vld [vmem:[#allocation22 + $0x588] sm:$0xff]  ;;  %v8565_v42 = vld [vmem:[#allocation22 + $0x598] sm:$0xff]  ;;  %v8564_v16 = vld [vmem:[#allocation22 + $0x590] sm:$0xff] }
 0xaa9   : > { %v8568_v48 = vld [vmem:[#allocation22 + $0x5b0] sm:$0xff] }
 0xaaa   : > { %16219 = vst [vmem:[#allocation104_spill] sm:$0xff] %v15296_v17  ;;  %16220 = vst [vmem:[#allocation105_spill] sm:$0xff] %v15298_v40  ;;  %v15316_v58 = vpack.c.bf16 %v8568_v48, %v8564_v16  ;;  %v8578_v16 = vld [vmem:[#allocation22 + $0x600] sm:$0xff] }
 0xaab   : > { %11238 = vmatpush1.bf16.msra.mxu1 %v15278_v3  ;;  %11366 = vmatpush1.bf16.msra.mxu0 %v15280_v63  ;;  %v8567_v3 = vld [vmem:[#allocation22 + $0x5a8] sm:$0xff]  ;;  %v8569_v63 = vld [vmem:[#allocation22 + $0x5b8] sm:$0xff]  ;;  %v8582_v48 = vld [vmem:[#allocation22 + $0x620] sm:$0xff] }
 0xaac   : > { %11240 = vmatprep.subr.bf16.mxu1 %v15284_v13  ;;  %11368 = vmatprep.subr.bf16.mxu0 %v15286_v61  ;;  %v15308_v33 = vpack.c.bf16 %v8567_v3, %v8563_v6  ;;  %v15310_v54 = vpack.c.bf16 %v8569_v63, %v8565_v42  ;;  %v8571_v61 = vld [vmem:[#allocation22 + $0x5c8] sm:$0xff]  ;;  %v8573_v13 = vld [vmem:[#allocation22 + $0x5d8] sm:$0xff]  ;;  %16226 = vst [vmem:[#allocation111_spill] sm:$0xff] %v15316_v58  ;;  %v8572_v3 = vld [vmem:[#allocation22 + $0x5d0] sm:$0xff] }
 0xaad   : > { %v8576_v63 = vld [vmem:[#allocation22 + $0x5f0] sm:$0xff]  ;;  %v15338_v18 = vpack.c.bf16 %v8582_v48, %v8578_v16  ;;  %v5941_v16 = vrot.slane %v15214_v23, %v16164_v55 }
 0xaae   : > { %16223 = vst [vmem:[#allocation108_spill] sm:$0xff] %v15308_v33  ;;  %16224 = vst [vmem:[#allocation109_spill] sm:$0xff] %v15310_v54  ;;  %v15328_v43 = vpack.c.bf16 %v8576_v63, %v8572_v3  ;;  %v8586_v3 = vld [vmem:[#allocation22 + $0x640] sm:$0xff]  ;;  %v8600_v55 = vld [vmem:[#allocation22 + $0x6b0] sm:$0xff] }
 0xaaf   : > { %11242 = vmatpush1.bf16.msra.mxu1 %v15290_v11  ;;  %11370 = vmatpush1.bf16.msra.mxu0 %v15292_v52  ;;  %v8575_v11 = vld [vmem:[#allocation22 + $0x5e8] sm:$0xff]  ;;  %v8577_v52 = vld [vmem:[#allocation22 + $0x5f8] sm:$0xff]  ;;  %16233 = vst [vmem:[#allocation119_spill] sm:$0xff] %v15338_v18  ;;  %v8590_v63 = vld [vmem:[#allocation22 + $0x660] sm:$0xff] }
 0xab0   : > { %11244 = vmatprep.subr.bf16.mxu1 %v15296_v17  ;;  %11372 = vmatprep.subr.bf16.mxu0 %v15298_v40  ;;  %v15320_v42 = vpack.c.bf16 %v8575_v11, %v8571_v61  ;;  %v15322_v6 = vpack.c.bf16 %v8577_v52, %v8573_v13  ;;  %v8579_v40 = vld [vmem:[#allocation22 + $0x608] sm:$0xff]  ;;  %v8581_v17 = vld [vmem:[#allocation22 + $0x618] sm:$0xff]  ;;  %16230 = vst [vmem:[#allocation115_spill] sm:$0xff] %v15328_v43  ;;  %v8580_v11 = vld [vmem:[#allocation22 + $0x610] sm:$0xff] }
 0xab1   : > { %v8584_v52 = vld [vmem:[#allocation22 + $0x630] sm:$0xff]  ;;  %v15352_v48 = vpack.c.bf16 %v8590_v63, %v8586_v3  ;;  %v8607_v3 = vld [vmem:[#allocation22 + $0x6e8] sm:$0xff]  ;;  %v8605_v63 = vld [vmem:[#allocation22 + $0x6d8] sm:$0xff] }
 0xab2   : > { %16227 = vst [vmem:[#allocation112_spill] sm:$0xff] %v15320_v42  ;;  %16228 = vst [vmem:[#allocation113_spill] sm:$0xff] %v15322_v6  ;;  %v15340_v15 = vpack.c.bf16 %v8584_v52, %v8580_v11  ;;  %v8596_v52 = vld [vmem:[#allocation22 + $0x690] sm:$0xff] }
 0xab3   : > { %11246 = vmatpush1.bf16.msra.mxu1 %v15302_v19  ;;  %11374 = vmatpush1.bf16.msra.mxu0 %v15304_v0  ;;  %v8583_v19 = vld [vmem:[#allocation22 + $0x628] sm:$0xff]  ;;  %v8585_v0 = vld [vmem:[#allocation22 + $0x638] sm:$0xff]  ;;  %16237 = vst [vmem:[#allocation123_spill] sm:$0xff] %v15352_v48 }
 0xab4   : > { %11248 = vmatprep.subr.bf16.mxu1 %v15308_v33  ;;  %11376 = vmatprep.subr.bf16.mxu0 %v15310_v54  ;;  %v15332_v13 = vpack.c.bf16 %v8583_v19, %v8579_v40  ;;  %v15334_v61 = vpack.c.bf16 %v8585_v0, %v8581_v17  ;;  %v8587_v54 = vld [vmem:[#allocation22 + $0x648] sm:$0xff]  ;;  %v8589_v33 = vld [vmem:[#allocation22 + $0x658] sm:$0xff]  ;;  %16234 = vst [vmem:[#allocation120_spill] sm:$0xff] %v15340_v15  ;;  %v8588_v19 = vld [vmem:[#allocation22 + $0x650] sm:$0xff] }
 0xab5   : > { %v8592_v0 = vld [vmem:[#allocation22 + $0x670] sm:$0xff] }
 0xab6   : > { %16231 = vst [vmem:[#allocation116_spill] sm:$0xff] %v15332_v13  ;;  %16232 = vst [vmem:[#allocation117_spill] sm:$0xff] %v15334_v61  ;;  %v15354_v11 = vpack.c.bf16 %v8592_v0, %v8588_v19  ;;  %v8609_v19 = vld [vmem:[#allocation22 + $0x6f8] sm:$0xff]  ;;  %v15366_v0 = vadd.f32 %v15220_v53, %v5941_v16 }
 0xab7   : > { %11250 = vmatpush1.bf16.msra.mxu1 %v15314_v21  ;;  %11378 = vmatpush1.bf16.msra.mxu0 %v15316_v58  ;;  %v8591_v21 = vld [vmem:[#allocation22 + $0x668] sm:$0xff]  ;;  %v8593_v58 = vld [vmem:[#allocation22 + $0x678] sm:$0xff]  ;;  %v15380_v53 = vpack.c.bf16 %v8609_v19, %v8605_v63  ;;  %v8612_v19 = vld [vmem:[#allocation22 + $0x710] sm:$0xff] }
 0xab8   : > { %11252 = vmatprep.subr.bf16.mxu1 %v15320_v42  ;;  %11380 = vmatprep.subr.bf16.mxu0 %v15322_v6  ;;  %v15344_v17 = vpack.c.bf16 %v8591_v21, %v8587_v54  ;;  %v15346_v40 = vpack.c.bf16 %v8593_v58, %v8589_v33  ;;  %v8595_v6 = vld [vmem:[#allocation22 + $0x688] sm:$0xff]  ;;  %v8597_v42 = vld [vmem:[#allocation22 + $0x698] sm:$0xff]  ;;  %16238 = vst [vmem:[#allocation124_spill] sm:$0xff] %v15354_v11  ;;  %v8594_v54 = vld [vmem:[#allocation22 + $0x680] sm:$0xff] }
 0xab9   : > { %v8598_v33 = vld [vmem:[#allocation22 + $0x6a0] sm:$0xff]  ;;  %v15357_v21 = vadd.f32 %v15228_v45, %v5941_v16  ;;  %16244 = vst [vmem:[#allocation130_spill] sm:$0xff] %v15380_v53  ;;  %v8604_v16 = vld [vmem:[#allocation22 + $0x6d0] sm:$0xff] }
 0xaba   : > { %16235 = vst [vmem:[#allocation121_spill] sm:$0xff] %v15344_v17  ;;  %16236 = vst [vmem:[#allocation122_spill] sm:$0xff] %v15346_v40  ;;  %v15370_v45 = vpack.c.bf16 %v8598_v33, %v8594_v54  ;;  %v8615_v54 = vld [vmem:[#allocation22 + $0x728] sm:$0xff]  ;;  %v8613_v33 = vld [vmem:[#allocation22 + $0x718] sm:$0xff] }
 0xabb   : > { %11254 = vmatpush1.bf16.msra.mxu1 %v15326_v60  ;;  %11382 = vmatpush1.bf16.msra.mxu0 %v15328_v43  ;;  %v8599_v60 = vld [vmem:[#allocation22 + $0x6a8] sm:$0xff]  ;;  %v8601_v43 = vld [vmem:[#allocation22 + $0x6b8] sm:$0xff] }
 0xabc   : > { %11256 = vmatprep.subr.bf16.mxu1 %v15332_v13  ;;  %11384 = vmatprep.subr.bf16.mxu0 %v15334_v61  ;;  %v15361_v58 = vpack.c.bf16 %v8599_v60, %v8595_v6  ;;  %v15363_v23 = vpack.c.bf16 %v8601_v43, %v8597_v42  ;;  %16241 = vst [vmem:[#allocation127_spill] sm:$0xff] %v15370_v45  ;;  %v8602_v6 = vld [vmem:[#allocation22 + $0x6c0] sm:$0xff]  ;;  %v8623_v61 = vld [vmem:[#allocation22 + $0x768] sm:$0xff] }
 0xabd   : > { %v8606_v42 = vld [vmem:[#allocation22 + $0x6e0] sm:$0xff]  ;;  %v8658_v60 = vadd.f32 %v15357_v21, %v15366_v0  ;;  %v8631_v13 = vld [vmem:[#allocation22 + $0x7a8] sm:$0xff] }
 0xabe   : > { %16239 = vst [vmem:[#allocation125_spill] sm:$0xff] %v15361_v58  ;;  %16240 = vst [vmem:[#allocation126_spill] sm:$0xff] %v15363_v23 }
 0xabf   : > { %11258 = vmatpush1.bf16.msra.mxu1 %v15338_v18  ;;  %11386 = vmatpush1.bf16.msra.mxu0 %v15340_v15  ;;  %v8603_v15 = vld [vmem:[#allocation22 + $0x6c8] sm:$0xff]  ;;  %v8616_v18 = vld [vmem:[#allocation22 + $0x730] sm:$0xff] }
 0xac0   : > { %11260 = vmatprep.subr.bf16.mxu1 %v15344_v17  ;;  %11388 = vmatprep.subr.bf16.mxu0 %v15346_v40  ;;  %v15372_v40 = vpack.c.bf16 %v8600_v55, %v8596_v52  ;;  %v15378_v43 = vpack.c.bf16 %v8607_v3, %v8603_v15  ;;  %v8617_v55 = vld [vmem:[#allocation22 + $0x738] sm:$0xff]  ;;  %v15384_v52 = vpack.c.bf16 %v8606_v42, %v8602_v6  ;;  %v8659_v15 = vrot.slane %v8658_v60, 4 }
 0xac1   : > { %v15392_v63 = vpack.c.bf16 %v8617_v55, %v8613_v33  ;;  %v8625_v6 = vld [vmem:[#allocation22 + $0x778] sm:$0xff]  ;;  %v15398_v42 = vpack.c.bf16 %v8616_v18, %v8612_v19  ;;  %v8620_v55 = vld [vmem:[#allocation22 + $0x750] sm:$0xff] }
 0xac2   : > { %16242 = vst [vmem:[#allocation128_spill] sm:$0xff] %v15372_v40  ;;  %16243 = vst [vmem:[#allocation129_spill] sm:$0xff] %v15378_v43  ;;  %v8628_v19 = vld [vmem:[#allocation22 + $0x790] sm:$0xff] }
 0xac3   : > { %11262 = vmatpush1.bf16.msra.mxu1 %v15352_v48  ;;  %11390 = vmatpush1.bf16.msra.mxu0 %v15354_v11  ;;  %v8608_v48 = vld [vmem:[#allocation22 + $0x6f0] sm:$0xff]  ;;  %v8611_v11 = vld [vmem:[#allocation22 + $0x708] sm:$0xff]  ;;  %16245 = vst [vmem:[#allocation131_spill] sm:$0xff] %v15384_v52  ;;  %16247 = vst [vmem:[#allocation133_spill] sm:$0xff] %v15392_v63 }
 0xac4   : > { %11264 = vmatprep.subr.bf16.mxu1 %v15361_v58  ;;  %11392 = vmatprep.subr.bf16.mxu0 %v15363_v23  ;;  %v15386_v17 = vpack.c.bf16 %v8608_v48, %v8604_v16  ;;  %v8610_v58 = vld [vmem:[#allocation22 + $0x700] sm:$0xff]  ;;  %v15390_v3 = vpack.c.bf16 %v8615_v54, %v8611_v11  ;;  %16249 = vst [vmem:[#allocation135_spill] sm:$0xff] %v15398_v42 }
 0xac5   : > { %v8614_v23 = vld [vmem:[#allocation22 + $0x720] sm:$0xff]  ;;  %v8660_v11 = vadd.f32 %v8659_v15, %v8658_v60 }
 0xac6   : > { %16246 = vst [vmem:[#allocation132_spill] sm:$0xff] %v15386_v17  ;;  %v15396_v48 = vpack.c.bf16 %v8614_v23, %v8610_v58  ;;  %v8618_v16 = vld [vmem:[#allocation22 + $0x740] sm:$0xff]  ;;  %v8633_v58 = vld [vmem:[#allocation22 + $0x7b8] sm:$0xff] }
 0xac7   : > { %11266 = vmatpush1.bf16.msra.mxu1 %v15370_v45  ;;  %11394 = vmatpush1.bf16.msra.mxu0 %v15372_v40  ;;  %v8619_v45 = vld [vmem:[#allocation22 + $0x748] sm:$0xff]  ;;  %v8621_v40 = vld [vmem:[#allocation22 + $0x758] sm:$0xff]  ;;  %v8626_v60 = vld [vmem:[#allocation22 + $0x780] sm:$0xff] }
 0xac8   : > { %11268 = vmatprep.subr.bf16.mxu1 %v15378_v43  ;;  %11396 = vmatprep.subr.bf16.mxu0 %v15380_v53  ;;  %16248 = vst [vmem:[#allocation134_spill] sm:$0xff] %v15396_v48  ;;  %v8622_v53 = vld [vmem:[#allocation22 + $0x760] sm:$0xff]  ;;  %v15402_v54 = vpack.c.bf16 %v8623_v61, %v8619_v45  ;;  %v15404_v33 = vpack.c.bf16 %v8625_v6, %v8621_v40  ;;  %v8624_v43 = vld [vmem:[#allocation22 + $0x770] sm:$0xff]  ;;  %v8661_v61 = vrot.slane %v8660_v11, 2 }
 0xac9   : > { %v15408_v18 = vpack.c.bf16 %v8622_v53, %v8618_v16  ;;  %v15410_v23 = vpack.c.bf16 %v8624_v43, %v8620_v55  ;;  %v8630_v15 = vld [vmem:[#allocation22 + $0x7a0] sm:$0xff]  ;;  %v8632_v6 = vld [vmem:[#allocation22 + $0x7b0] sm:$0xff]  ;;  %v8641_v53 = vld [vmem:[#allocation22 + $0x7f8] sm:$0xff] }
 0xaca   : > { %16250 = vst [vmem:[#allocation136_spill] sm:$0xff] %v15402_v54  ;;  %16251 = vst [vmem:[#allocation137_spill] sm:$0xff] %v15404_v33  ;;  %v15420_v43 = vpack.c.bf16 %v8630_v15, %v8626_v60  ;;  %v15422_v16 = vpack.c.bf16 %v8632_v6, %v8628_v19  ;;  %v8634_v55 = vld [vmem:[#allocation22 + $0x7c0] sm:$0xff] }
 0xacb   : > { %11270 = vmatpush1.bf16.msra.mxu1 %v15384_v52  ;;  %11398 = vmatpush1.bf16.msra.mxu0 %v15386_v17  ;;  %v8627_v52 = vld [vmem:[#allocation22 + $0x788] sm:$0xff]  ;;  %v8629_v17 = vld [vmem:[#allocation22 + $0x798] sm:$0xff] }
 0xacc   : > { %11272 = vmatprep.subr.bf16.mxu1 %v15390_v3  ;;  %11400 = vmatprep.subr.bf16.mxu0 %v15392_v63  ;;  %v15414_v40 = vpack.c.bf16 %v8631_v13, %v8627_v52  ;;  %v15416_v45 = vpack.c.bf16 %v8633_v58, %v8629_v17  ;;  %v8639_v63 = vld [vmem:[#allocation22 + $0x7e8] sm:$0xff]  ;;  %v8638_v52 = vld [vmem:[#allocation22 + $0x7e0] sm:$0xff]  ;;  %v8636_v58 = vld [vmem:[#allocation22 + $0x7d0] sm:$0xff] }
 0xacd   : > { %v15432_v60 = vpack.c.bf16 %v8638_v52, %v8634_v55 }
 0xacf   : > { %11274 = vmatpush1.bf16.msra.mxu1 %v15396_v48  ;;  %11402 = vmatpush1.bf16.msra.mxu0 %v15398_v42  ;;  %v8635_v48 = vld [vmem:[#allocation22 + $0x7c8] sm:$0xff]  ;;  %v8637_v42 = vld [vmem:[#allocation22 + $0x7d8] sm:$0xff] }
 0xad0   : > { %11276 = vmatprep.subr.bf16.mxu1 %v15402_v54  ;;  %11404 = vmatprep.subr.bf16.mxu0 %v15404_v33  ;;  %v8662_v33 = vadd.f32 %v8661_v61, %v8660_v11  ;;  %v15426_v13 = vpack.c.bf16 %v8639_v63, %v8635_v48  ;;  %v15428_v17 = vpack.c.bf16 %v8641_v53, %v8637_v42  ;;  %v8640_v54 = vld [vmem:[#allocation22 + $0x7f0] sm:$0xff]  ;;  %v16284_v48 = vld [vmem:[#allocation81_spill] sm:$0xff]  ;;  %v16286_v61 = vld [vmem:[#allocation83_spill] sm:$0xff] }
 0xad1   : > { %v15434_v15 = vpack.c.bf16 %v8640_v54, %v8636_v58  ;;  %v16285_v42 = vld [vmem:[#allocation82_spill] sm:$0xff] }
 0xad2   : > { %v8663_v11 = vrot.slane %v8662_v33, 1  ;;  %v16287_v58 = vld [vmem:[#allocation86_spill] sm:$0xff] }
 0xad3   : > { %11278 = vmatpush1.bf16.msra.mxu1 %v15408_v18  ;;  %11406 = vmatpush1.bf16.msra.mxu0 %v15410_v23 }
 0xad4   : > { %11280 = vmatprep.subr.bf16.mxu1 %v15414_v40  ;;  %11408 = vmatprep.subr.bf16.mxu0 %v15416_v45  ;;  %v8664_v63 = vadd.f32 %v8663_v11, %v8662_v33 }
 0xad7   : > { %11282 = vmatpush1.bf16.msra.mxu1 %v15420_v43  ;;  %11410 = vmatpush1.bf16.msra.mxu0 %v15422_v16 }
 0xad8   : > { %11284 = vmatprep.subr.bf16.mxu1 %v15426_v13  ;;  %11412 = vmatprep.subr.bf16.mxu0 %v15428_v17 }
 0xadb   : > { %11286 = vmatpush1.bf16.msra.mxu1 %v15432_v60  ;;  %11414 = vmatpush1.bf16.msra.mxu0 %v15434_v15 }
 0xadc   : > { %11416 = vmatprep.subr.bf16.mxu1 %v15015_v51  ;;  %11544 = vmatprep.subr.bf16.mxu0 %v15017_v49  ;;  %v16252_v51 = vld [vmem:[#allocation49_spill] sm:$0xff]  ;;  %v16253_v49 = vld [vmem:[#allocation50_spill] sm:$0xff] }
 0xade   : > { %8808 = vmatmul.mubr.f32.vlgmr.msra.gmra.mrb[16].mxu1 %v8664_v63  ;;  %8950 = vmatmul.mubr.f32.vlgmr.msra.gmra.mrb[14].mxu0 %v8664_v63  ;;  %v16288_v63 = vld [vmem:[#allocation87_spill] sm:$0xff] }
 0xadf   : > { %11418 = vmatpush1.bf16.msra.mxu1 %v15019_v27  ;;  %11546 = vmatpush1.bf16.msra.mxu0 %v15022_v2  ;;  %v16254_v27 = vld [vmem:[#allocation51_spill] sm:$0xff]  ;;  %v16255_v2 = vld [vmem:[#allocation52_spill] sm:$0xff] }
 0xae0   : > { %11420 = vmatprep.subr.bf16.mxu1 %v15024_v46  ;;  %11548 = vmatprep.subr.bf16.mxu0 %v15028_v5  ;;  %v16256_v46 = vld [vmem:[#allocation53_spill] sm:$0xff]  ;;  %v16257_v5 = vld [vmem:[#allocation54_spill] sm:$0xff] }
 0xae3   : > { %11422 = vmatpush1.bf16.msra.mxu1 %v15031_v35  ;;  %11550 = vmatpush1.bf16.msra.mxu0 %v15035_v38  ;;  %v16258_v35 = vld [vmem:[#allocation55_spill] sm:$0xff]  ;;  %v16259_v38 = vld [vmem:[#allocation56_spill] sm:$0xff] }
 0xae4   : > { %11424 = vmatprep.subr.bf16.mxu1 %v15037_v47  ;;  %11552 = vmatprep.subr.bf16.mxu0 %v15040_v10  ;;  %v16260_v47 = vld [vmem:[#allocation57_spill] sm:$0xff]  ;;  %v16261_v10 = vld [vmem:[#allocation58_spill] sm:$0xff] }
 0xae7   : > { %11426 = vmatpush1.bf16.msra.mxu1 %v15043_v29  ;;  %11554 = vmatpush1.bf16.msra.mxu0 %v15047_v30  ;;  %v16262_v29 = vld [vmem:[#allocation59_spill] sm:$0xff]  ;;  %v16263_v30 = vld [vmem:[#allocation60_spill] sm:$0xff] }
 0xae8   : > { %11428 = vmatprep.subr.bf16.mxu1 %v15049_v34  ;;  %11556 = vmatprep.subr.bf16.mxu0 %v15052_v4  ;;  %v16264_v34 = vld [vmem:[#allocation61_spill] sm:$0xff]  ;;  %v16265_v4 = vld [vmem:[#allocation62_spill] sm:$0xff] }
 0xaeb   : > { %11430 = vmatpush1.bf16.msra.mxu1 %v15055_v24  ;;  %11558 = vmatpush1.bf16.msra.mxu0 %v15059_v25  ;;  %v16266_v24 = vld [vmem:[#allocation63_spill] sm:$0xff]  ;;  %v16267_v25 = vld [vmem:[#allocation64_spill] sm:$0xff] }
 0xaec   : > { %11432 = vmatprep.subr.bf16.mxu1 %v15061_v32  ;;  %11560 = vmatprep.subr.bf16.mxu0 %v15064_v1  ;;  %v16268_v32 = vld [vmem:[#allocation65_spill] sm:$0xff]  ;;  %v16269_v1 = vld [vmem:[#allocation66_spill] sm:$0xff] }
 0xaef   : > { %11434 = vmatpush1.bf16.msra.mxu1 %v15067_v37  ;;  %11562 = vmatpush1.bf16.msra.mxu0 %v15071_v12  ;;  %v16270_v37 = vld [vmem:[#allocation67_spill] sm:$0xff]  ;;  %v16271_v12 = vld [vmem:[#allocation68_spill] sm:$0xff] }
 0xaf0   : > { %11436 = vmatprep.subr.bf16.mxu1 %v15073_v57  ;;  %11564 = vmatprep.subr.bf16.mxu0 %v15076_v62  ;;  %v16272_v57 = vld [vmem:[#allocation69_spill] sm:$0xff]  ;;  %v16273_v62 = vld [vmem:[#allocation70_spill] sm:$0xff] }
 0xaf3   : > { %11438 = vmatpush1.bf16.msra.mxu1 %v15079_v36  ;;  %11566 = vmatpush1.bf16.msra.mxu0 %v15083_v7  ;;  %v16274_v36 = vld [vmem:[#allocation71_spill] sm:$0xff]  ;;  %v16275_v7 = vld [vmem:[#allocation72_spill] sm:$0xff] }
 0xaf4   : > { %11440 = vmatprep.subr.bf16.mxu1 %v15085_v9  ;;  %11568 = vmatprep.subr.bf16.mxu0 %v15088_v56  ;;  %v16276_v9 = vld [vmem:[#allocation73_spill] sm:$0xff]  ;;  %v16277_v56 = vld [vmem:[#allocation74_spill] sm:$0xff] }
 0xaf7   : > { %11442 = vmatpush1.bf16.msra.mxu1 %v15091_v22  ;;  %11570 = vmatpush1.bf16.msra.mxu0 %v15095_v28  ;;  %v16278_v22 = vld [vmem:[#allocation75_spill] sm:$0xff]  ;;  %v16279_v28 = vld [vmem:[#allocation76_spill] sm:$0xff] }
 0xaf8   : > { %11444 = vmatprep.subr.bf16.mxu1 %v15097_v44  ;;  %11572 = vmatprep.subr.bf16.mxu0 %v15100_v26  ;;  %v16280_v44 = vld [vmem:[#allocation77_spill] sm:$0xff]  ;;  %v16281_v26 = vld [vmem:[#allocation78_spill] sm:$0xff] }
 0xafb   : > { %11446 = vmatpush1.bf16.msra.mxu1 %v15103_v14  ;;  %11574 = vmatpush1.bf16.msra.mxu0 %v15107_v31  ;;  %v16282_v14 = vld [vmem:[#allocation79_spill] sm:$0xff]  ;;  %v16283_v31 = vld [vmem:[#allocation80_spill] sm:$0xff] }
 0xafc   : > { %11448 = vmatprep.subr.bf16.mxu1 %v16252_v51  ;;  %11576 = vmatprep.subr.bf16.mxu0 %v16253_v49  ;;  %v16289_v49 = vld [vmem:[#allocation88_spill] sm:$0xff] }
 0xaff   : > { %11450 = vmatpush1.bf16.msra.mxu1 %v16254_v27  ;;  %11578 = vmatpush1.bf16.msra.mxu0 %v16255_v2  ;;  %v16290_v2 = vld [vmem:[#allocation89_spill] sm:$0xff] }
 0xb00   : > { %11452 = vmatprep.subr.bf16.mxu1 %v16256_v46  ;;  %11580 = vmatprep.subr.bf16.mxu0 %v16257_v5  ;;  %v16291_v5 = vld [vmem:[#allocation90_spill] sm:$0xff] }
 0xb03   : > { %11454 = vmatpush1.bf16.msra.mxu1 %v16258_v35  ;;  %11582 = vmatpush1.bf16.msra.mxu0 %v16259_v38  ;;  %v16292_v38 = vld [vmem:[#allocation91_spill] sm:$0xff] }
 0xb04   : > { %11456 = vmatprep.subr.bf16.mxu1 %v16260_v47  ;;  %11584 = vmatprep.subr.bf16.mxu0 %v16261_v10 }
 0xb07   : > { %11458 = vmatpush1.bf16.msra.mxu1 %v16262_v29  ;;  %11586 = vmatpush1.bf16.msra.mxu0 %v16263_v30 }
 0xb08   : > { %11460 = vmatprep.subr.bf16.mxu1 %v16264_v34  ;;  %11588 = vmatprep.subr.bf16.mxu0 %v16265_v4 }
 0xb0b   : > { %11462 = vmatpush1.bf16.msra.mxu1 %v16266_v24  ;;  %11590 = vmatpush1.bf16.msra.mxu0 %v16267_v25 }
 0xb0c   : > { %11464 = vmatprep.subr.bf16.mxu1 %v16268_v32  ;;  %11592 = vmatprep.subr.bf16.mxu0 %v16269_v1 }
 0xb0f   : > { %11466 = vmatpush1.bf16.msra.mxu1 %v16270_v37  ;;  %11594 = vmatpush1.bf16.msra.mxu0 %v16271_v12 }
 0xb10   : > { %11468 = vmatprep.subr.bf16.mxu1 %v16272_v57  ;;  %11596 = vmatprep.subr.bf16.mxu0 %v16273_v62 }
 0xb13   : > { %11470 = vmatpush1.bf16.msra.mxu1 %v16274_v36  ;;  %11598 = vmatpush1.bf16.msra.mxu0 %v16275_v7 }
 0xb14   : > { %11472 = vmatprep.subr.bf16.mxu1 %v16276_v9  ;;  %11600 = vmatprep.subr.bf16.mxu0 %v16277_v56 }
 0xb17   : > { %11474 = vmatpush1.bf16.msra.mxu1 %v16278_v22  ;;  %11602 = vmatpush1.bf16.msra.mxu0 %v16279_v28 }
 0xb18   : > { %11476 = vmatprep.subr.bf16.mxu1 %v16280_v44  ;;  %11604 = vmatprep.subr.bf16.mxu0 %v16281_v26 }
 0xb1b   : > { %11478 = vmatpush1.bf16.msra.mxu1 %v16282_v14  ;;  %11606 = vmatpush1.bf16.msra.mxu0 %v16283_v31 }
 0xb1c   : > { %11480 = vmatprep.subr.bf16.mxu1 %v16284_v48  ;;  %11608 = vmatprep.subr.bf16.mxu0 %v16285_v42 }
 0xbb1   : > { %v8809_v54 = vpop.f32.mrb[16].mxu1  ;;  %v15506_v33 = vpop.f32.mrb[14].mxu0 }
 0xbb2   : > { %v8959_v19 = vrot.slane %v8809_v54, %v16286_v61  ;;  %v8811_v6 = vpop.f32.mrb[17].mxu1  ;;  %v8953_v53 = vpop.f32.mrb[15].mxu0 }
 0xbb3   : > { %v8963_v55 = vrot.slane %v8811_v6, %v16286_v61  ;;  %v8971_v52 = vrot.slane %v8953_v53, %v16286_v61  ;;  %v16293_v6 = vld [vmem:[#allocation92_spill] sm:$0xff]  ;;  %v16294_v53 = vld [vmem:[#allocation93_spill] sm:$0xff] }
 0xbb4   : > { %v15512_v11 = vsub.f32 %v16287_v58, %v8959_v19  ;;  %v15515_v51 = vsub.f32 %v16288_v63, %v8959_v19  ;;  %v16299_v58 = vld [vmem:[#allocation98_spill] sm:$0xff]  ;;  %v16304_v63 = vld [vmem:[#allocation103_spill] sm:$0xff] }
 0xbb5   : > { %v15518_v27 = vsub.f32 %v16289_v49, %v8963_v55  ;;  %v15521_v46 = vsub.f32 %v16290_v2, %v8963_v55  ;;  %v15524_v35 = vsub.f32 %v16291_v5, %v8971_v52  ;;  %v15527_v47 = vsub.f32 %v16292_v38, %v8971_v52  ;;  %v16295_v55 = vld [vmem:[#allocation94_spill] sm:$0xff]  ;;  %v16296_v52 = vld [vmem:[#allocation95_spill] sm:$0xff]  ;;  %v16305_v49 = vld [vmem:[#allocation104_spill] sm:$0xff] }
 0xbb6   : > { %v8980_v10 = vmul.f32 %v15512_v11, %v15512_v11  ;;  %v8984_v29 = vmul.f32 %v15515_v51, %v15515_v51  ;;  %v16306_v2 = vld [vmem:[#allocation105_spill] sm:$0xff]  ;;  %v16307_v5 = vld [vmem:[#allocation106_spill] sm:$0xff]  ;;  %v16308_v38 = vld [vmem:[#allocation107_spill] sm:$0xff] }
 0xbb7   : > { %v8981_v30 = vmul.f32 %v15518_v27, %v15518_v27  ;;  %v8985_v34 = vmul.f32 %v15521_v46, %v15521_v46  ;;  %v8983_v4 = vmul.f32 %v15524_v35, %v15524_v35  ;;  %v8987_v24 = vmul.f32 %v15527_v47, %v15527_v47 }
 0xbb8   : > { %v8988_v25 = vadd.f32 %v8984_v29, %v8980_v10  ;;  %v16309_v10 = vld [vmem:[#allocation108_spill] sm:$0xff]  ;;  %v16310_v29 = vld [vmem:[#allocation109_spill] sm:$0xff] }
 0xbb9   : > { %v8995_v32 = vadd.f32 %v8985_v34, %v8981_v30  ;;  %v9009_v1 = vadd.f32 %v8987_v24, %v8983_v4  ;;  %v16311_v30 = vld [vmem:[#allocation110_spill] sm:$0xff]  ;;  %v16312_v34 = vld [vmem:[#allocation111_spill] sm:$0xff]  ;;  %v8967_v4 = vrot.slane %v15506_v33, %v16286_v61  ;;  %v16313_v24 = vld [vmem:[#allocation112_spill] sm:$0xff] }
 0xbba   : > { %v8989_v37 = vrot.slane %v8988_v25, 4  ;;  %v16320_v33 = vld [vmem:[#allocation120_spill] sm:$0xff] }
 0xbbb   : > { %v8996_v12 = vrot.slane %v8995_v32, 4  ;;  %v9010_v57 = vrot.slane %v9009_v1, 4 }
 0xbbc   : > { %v8990_v62 = vadd.f32 %v8989_v37, %v8988_v25  ;;  %v16314_v25 = vld [vmem:[#allocation113_spill] sm:$0xff]  ;;  %v15574_v37 = vsub.f32 %v15366_v0, %v8967_v4  ;;  %v16322_v0 = vld [vmem:[#allocation122_spill] sm:$0xff] }
 0xbbd   : > { %v8997_v36 = vadd.f32 %v8996_v12, %v8995_v32  ;;  %v9011_v7 = vadd.f32 %v9010_v57, %v9009_v1  ;;  %v16315_v32 = vld [vmem:[#allocation114_spill] sm:$0xff]  ;;  %v16316_v1 = vld [vmem:[#allocation115_spill] sm:$0xff]  ;;  %v15577_v12 = vsub.f32 %v15357_v21, %v8967_v4  ;;  %v16317_v57 = vld [vmem:[#allocation116_spill] sm:$0xff] }
 0xbbe   : > { %v8991_v9 = vrot.slane %v8990_v62, 2  ;;  %v16323_v21 = vld [vmem:[#allocation123_spill] sm:$0xff]  ;;  %v16339_v4 = vld [vmem:[#allocation84_spill] sm:$0xff] }
 0xbbf   : > { %v8998_v56 = vrot.slane %v8997_v36, 2  ;;  %v9012_v22 = vrot.slane %v9011_v7, 2 }
 0xbc0   : > { %v8992_v28 = vadd.f32 %v8991_v9, %v8990_v62  ;;  %v16318_v62 = vld [vmem:[#allocation117_spill] sm:$0xff]  ;;  %v8986_v9 = vmul.f32 %v15577_v12, %v15577_v12 }
 0xbc1   : > { %v8999_v44 = vadd.f32 %v8998_v56, %v8997_v36  ;;  %v9013_v26 = vadd.f32 %v9012_v22, %v9011_v7  ;;  %v16319_v36 = vld [vmem:[#allocation119_spill] sm:$0xff]  ;;  %v8982_v7 = vmul.f32 %v15574_v37, %v15574_v37  ;;  %v16321_v56 = vld [vmem:[#allocation121_spill] sm:$0xff]  ;;  %v16324_v22 = vld [vmem:[#allocation124_spill] sm:$0xff] }
 0xbc2   : > { %v8993_v14 = vrot.slane %v8992_v28, 1 }
 0xbc3   : > { %v9000_v31 = vrot.slane %v8999_v44, 1  ;;  %v9014_v48 = vrot.slane %v9013_v26, 1 }
 0xbc4   : > { %v8994_v54 = vadd.f32 %v8993_v14, %v8992_v28  ;;  %v9002_v28 = vadd.f32 %v8986_v9, %v8982_v7  ;;  %v16327_v14 = vld [vmem:[#allocation127_spill] sm:$0xff] }
 0xbc5   : > { %v9001_v42 = vadd.f32 %v9000_v31, %v8999_v44  ;;  %v9015_v19 = vadd.f32 %v9014_v48, %v9013_v26  ;;  %v16325_v44 = vld [vmem:[#allocation125_spill] sm:$0xff]  ;;  %v16326_v26 = vld [vmem:[#allocation126_spill] sm:$0xff]  ;;  %v16328_v31 = vld [vmem:[#allocation128_spill] sm:$0xff] }
 0xbc6   : > { %v9003_v48 = vrot.slane %v9002_v28, 4 }
 0xbc7   : > { %9080 = vmatprep.mubr.f32.mxu1 %v9001_v42  ;;  %9222 = vmatprep.mubr.f32.mxu0 %v9001_v42  ;;  %v16329_v42 = vld [vmem:[#allocation129_spill] sm:$0xff] }
 0xbc8   : > { %9081 = vmatmul.mubr.f32.vlgmr.msra.gmra.mrb[18].mxu1 %v8994_v54  ;;  %9223 = vmatmul.mubr.f32.vlgmr.msra.gmra.mrb[20].mxu0 %v8994_v54  ;;  %v16330_v54 = vld [vmem:[#allocation130_spill] sm:$0xff] }
 0xbc9   : > { %11482 = vmatpush1.bf16.msra.mxu1 %v15244_v20  ;;  %11610 = vmatpush1.bf16.msra.mxu0 %v15246_v59  ;;  %v16297_v20 = vld [vmem:[#allocation96_spill] sm:$0xff]  ;;  %v16298_v59 = vld [vmem:[#allocation97_spill] sm:$0xff] }
 0xbca   : > { %9151 = vmatprep.mubr.f32.mxu1 %v9015_v19  ;;  %9293 = vmatprep.mubr.f32.mxu0 %v9015_v19  ;;  %v16331_v19 = vld [vmem:[#allocation131_spill] sm:$0xff] }
 0xbcb   : > { %11484 = vmatprep.subr.bf16.mxu1 %v15248_v50  ;;  %11612 = vmatprep.subr.bf16.mxu0 %v15250_v39  ;;  %v16300_v50 = vld [vmem:[#allocation99_spill] sm:$0xff]  ;;  %v16301_v39 = vld [vmem:[#allocation100_spill] sm:$0xff] }
 0xbcd   : > { %11486 = vmatpush1.bf16.msra.mxu1 %v15254_v41  ;;  %11614 = vmatpush1.bf16.msra.mxu0 %v15256_v8  ;;  %v16302_v41 = vld [vmem:[#allocation101_spill] sm:$0xff]  ;;  %v16303_v8 = vld [vmem:[#allocation102_spill] sm:$0xff] }
 0xbce   : > { %11488 = vmatprep.subr.bf16.mxu1 %v16293_v6  ;;  %11616 = vmatprep.subr.bf16.mxu0 %v16294_v53  ;;  %v16332_v6 = vld [vmem:[#allocation132_spill] sm:$0xff]  ;;  %v9004_v53 = vadd.f32 %v9003_v48, %v9002_v28 }
 0xbd1   : > { %11490 = vmatpush1.bf16.msra.mxu1 %v16295_v55  ;;  %11618 = vmatpush1.bf16.msra.mxu0 %v16296_v52  ;;  %v16333_v55 = vld [vmem:[#allocation133_spill] sm:$0xff]  ;;  %v16334_v52 = vld [vmem:[#allocation134_spill] sm:$0xff] }
 0xbd2   : > { %11492 = vmatprep.subr.bf16.mxu1 %v16297_v20  ;;  %11620 = vmatprep.subr.bf16.mxu0 %v16298_v59  ;;  %v16335_v20 = vld [vmem:[#allocation135_spill] sm:$0xff]  ;;  %v9005_v59 = vrot.slane %v9004_v53, 2 }
 0xbd5   : > { %11494 = vmatpush1.bf16.msra.mxu1 %v16299_v58  ;;  %11622 = vmatpush1.bf16.msra.mxu0 %v16300_v50  ;;  %v16336_v58 = vld [vmem:[#allocation136_spill] sm:$0xff]  ;;  %v16337_v50 = vld [vmem:[#allocation137_spill] sm:$0xff] }
 0xbd6   : > { %11496 = vmatprep.subr.bf16.mxu1 %v16301_v39  ;;  %11624 = vmatprep.subr.bf16.mxu0 %v16302_v41 }
 0xbd9   : > { %11498 = vmatpush1.bf16.msra.mxu1 %v16303_v8  ;;  %11626 = vmatpush1.bf16.msra.mxu0 %v16304_v63 }
 0xbda   : > { %11500 = vmatprep.subr.bf16.mxu1 %v16305_v49  ;;  %11628 = vmatprep.subr.bf16.mxu0 %v16306_v2 }
 0xbdd   : > { %11502 = vmatpush1.bf16.msra.mxu1 %v16307_v5  ;;  %11630 = vmatpush1.bf16.msra.mxu0 %v16308_v38  ;;  %v16338_v38 = vld [vmem:[#allocation118_spill] sm:$0xff] }
 0xbde   : > { %11504 = vmatprep.subr.bf16.mxu1 %v16309_v10  ;;  %11632 = vmatprep.subr.bf16.mxu0 %v16310_v29 }
 0xbe1   : > { %11506 = vmatpush1.bf16.msra.mxu1 %v16311_v30  ;;  %11634 = vmatpush1.bf16.msra.mxu0 %v16312_v34 }
 0xbe2   : > { %11508 = vmatprep.subr.bf16.mxu1 %v16313_v24  ;;  %11636 = vmatprep.subr.bf16.mxu0 %v16314_v25 }
 0xbe5   : > { %11510 = vmatpush1.bf16.msra.mxu1 %v16315_v32  ;;  %11638 = vmatpush1.bf16.msra.mxu0 %v16316_v1 }
 0xbe6   : > { %11512 = vmatprep.subr.bf16.mxu1 %v16317_v57  ;;  %11640 = vmatprep.subr.bf16.mxu0 %v16318_v62 }
 0xbe9   : > { %11514 = vmatpush1.bf16.msra.mxu1 %v16319_v36  ;;  %11642 = vmatpush1.bf16.msra.mxu0 %v16320_v33  ;;  %v16340_v36 = vld [vmem:[#allocation85_spill] sm:$0xff] }
 0xbea   : > { %11516 = vmatprep.subr.bf16.mxu1 %v16321_v56  ;;  %11644 = vmatprep.subr.bf16.mxu0 %v16322_v0 }
 0xbed   : > { %11518 = vmatpush1.bf16.msra.mxu1 %v16323_v21  ;;  %11646 = vmatpush1.bf16.msra.mxu0 %v16324_v22 }
 0xbee   : > { %11520 = vmatprep.subr.bf16.mxu1 %v16325_v44  ;;  %11648 = vmatprep.subr.bf16.mxu0 %v16326_v26 }
 0xbf1   : > { %11522 = vmatpush1.bf16.msra.mxu1 %v16327_v14  ;;  %11650 = vmatpush1.bf16.msra.mxu0 %v16328_v31 }
 0xbf2   : > { %11524 = vmatprep.subr.bf16.mxu1 %v16329_v42  ;;  %11652 = vmatprep.subr.bf16.mxu0 %v16330_v54 }
 0xbf5   : > { %11526 = vmatpush1.bf16.msra.mxu1 %v16331_v19  ;;  %11654 = vmatpush1.bf16.msra.mxu0 %v16332_v6  ;;  %v16342_v6 = vld [vmem:[#allocation45_spill] sm:$0xff] }
 0xbf6   : > { %11528 = vmatprep.subr.bf16.mxu1 %v15390_v3  ;;  %11656 = vmatprep.subr.bf16.mxu0 %v16333_v55  ;;  %v9006_v3 = vadd.f32 %v9005_v59, %v9004_v53 }
 0xbf8   : > { %v9007_v39 = vrot.slane %v9006_v3, 1 }
 0xbf9   : > { %11530 = vmatpush1.bf16.msra.mxu1 %v16334_v52  ;;  %11658 = vmatpush1.bf16.msra.mxu0 %v16335_v20  ;;  %v16343_v52 = vld [vmem:[#allocation42_spill] sm:$0xff] }
 0xbfa   : > { %11532 = vmatprep.subr.bf16.mxu1 %v16336_v58  ;;  %11660 = vmatprep.subr.bf16.mxu0 %v16337_v50  ;;  %v16344_v20 = vld [vmem:[#allocation46_spill] sm:$0xff] }
 0xbfd   : > { %11534 = vmatpush1.bf16.msra.mxu1 %v15408_v18  ;;  %11662 = vmatpush1.bf16.msra.mxu0 %v15410_v23  ;;  %v9008_v18 = vadd.f32 %v9007_v39, %v9006_v3  ;;  %v16345_v3 = vld [vmem:[#allocation43_spill] sm:$0xff] }
 0xbfe   : > { %11536 = vmatprep.subr.bf16.mxu1 %v15414_v40  ;;  %11664 = vmatprep.subr.bf16.mxu0 %v15416_v45 }
 0xc01   : > { %11538 = vmatpush1.bf16.msra.mxu1 %v15420_v43  ;;  %11666 = vmatpush1.bf16.msra.mxu0 %v15422_v16 }
 0xc02   : > { %11540 = vmatprep.subr.bf16.mxu1 %v15426_v13  ;;  %11668 = vmatprep.subr.bf16.mxu0 %v15428_v17  ;;  %v8642_v13 = vld [vmem:[#allocation24] sm:$0xf]  ;;  %v8643_v17 = vld [vmem:[#allocation25] sm:$0xf] }
 0xc03   : > { %v9332_v2 = vrot.slane %v8642_v13, %v16286_v61  ;;  %v9361_v5 = vrot.slane %v8643_v17, %v16286_v61  ;;  %v9340_v10 = vrot.slane %v8642_v13, %v16338_v38  ;;  %v9369_v34 = vrot.slane %v8643_v17, %v16338_v38 }
 0xc04   : > { %v9336_v24 = vrot.slane %v8642_v13, %v16339_v4  ;;  %v9365_v25 = vrot.slane %v8643_v17, %v16339_v4  ;;  %v9344_v33 = vrot.slane %v8642_v13, %v16340_v36  ;;  %v9373_v0 = vrot.slane %v8643_v17, %v16340_v36 }
 0xc05   : > { %11542 = vmatpush1.bf16.msra.mxu1 %v15432_v60  ;;  %11670 = vmatpush1.bf16.msra.mxu0 %v15434_v15 }
 0xc08   : > { %9152 = vmatmul.mubr.f32.vlgmr.msra.gmra.mrb[18].mxu1 %v9008_v18  ;;  %9294 = vmatmul.mubr.f32.vlgmr.msra.gmra.mrb[20].mxu0 %v9008_v18  ;;  %v16346_v18 = vld [vmem:[#allocation47_spill] sm:$0xff] }
 0xcdb   : > { %v9153_v23 = vpop.f32.mrb[18].mxu1  ;;  %v9295_v40 = vpop.f32.mrb[20].mxu0 }
 0xcdc   : > { %v11691_v45 = vadd.f32 1e-05, %v9153_v23  ;;  %v11693_v41 = vadd.f32 1e-05, %v9295_v40  ;;  %v9155_v8 = vpop.f32.mrb[19].mxu1  ;;  %v9297_v43 = vpop.f32.mrb[21].mxu0 }
 0xcdd   : > { %v11692_v16 = vadd.f32 1e-05, %v9155_v8  ;;  %v11694_v63 = vadd.f32 1e-05, %v9297_v43  ;;  %v16348_v40 = vld [vmem:[#allocation44_spill] sm:$0xff] }
 0xcde   : > { %13170 = vrsqrt.f32 %v11691_v45 }
 0xcdf   : > { %13172 = vrsqrt.f32 %v11693_v41  ;;  %v16349_v41 = vld [vmem:[#allocation48_spill] sm:$0xff] }
 0xce0   : > { %13174 = vrsqrt.f32 %v11692_v16 }
 0xce1   : > { %13176 = vrsqrt.f32 %v11694_v63 }
 0xce8   : > { %v13171_v60 = vpop.eup %13170 }
 0xce9   : > { %v13173_v15 = vpop.eup %13172  ;;  %v9307_v49 = vrot.slane %v13171_v60, %v16286_v61 }
 0xcea   : > { %v13175_v29 = vpop.eup %13174  ;;  %v9315_v30 = vrot.slane %v13173_v15, %v16286_v61 }
 0xceb   : > { %v13177_v32 = vpop.eup %13176  ;;  %v9320_v1 = vmul.f32 %v9307_v49, %v15512_v11  ;;  %v9324_v57 = vmul.f32 %v9307_v49, %v15515_v51  ;;  %v9311_v62 = vrot.slane %v13175_v29, %v16286_v61 }
 0xcec   : > { %v9322_v7 = vmul.f32 %v9315_v30, %v15574_v37  ;;  %v9326_v9 = vmul.f32 %v9315_v30, %v15577_v12  ;;  %v9319_v56 = vrot.slane %v13177_v32, %v16286_v61 }
 0xced   : > { %v9349_v21 = vmul.f32 %v9332_v2, %v9320_v1  ;;  %v9353_v22 = vmul.f32 %v9332_v2, %v9324_v57  ;;  %v9321_v11 = vmul.f32 %v9311_v62, %v15518_v27  ;;  %v9325_v51 = vmul.f32 %v9311_v62, %v15521_v46  ;;  %v16341_v27 = vld [vmem:[#allocation41_spill] sm:$0xff] }
 0xcee   : > { %v9351_v28 = vmul.f32 %v9340_v10, %v9322_v7  ;;  %v9355_v44 = vmul.f32 %v9340_v10, %v9326_v9  ;;  %v9323_v26 = vmul.f32 %v9319_v56, %v15524_v35  ;;  %v9327_v37 = vmul.f32 %v9319_v56, %v15527_v47 }
 0xcef   : > { %v9378_v14 = vadd.f32 %v9361_v5, %v9349_v21  ;;  %v9382_v12 = vadd.f32 %v9361_v5, %v9353_v22  ;;  %v9350_v31 = vmul.f32 %v9336_v24, %v9321_v11  ;;  %v9354_v61 = vmul.f32 %v9336_v24, %v9325_v51 }
 0xcf0   : > { %v9380_v48 = vadd.f32 %v9369_v34, %v9351_v28  ;;  %v9384_v42 = vadd.f32 %v9369_v34, %v9355_v44  ;;  %v9352_v54 = vmul.f32 %v9344_v33, %v9323_v26  ;;  %v9356_v19 = vmul.f32 %v9344_v33, %v9327_v37 }
 0xcf1   : > { %v9386_v46 = vadd.f32 %v9378_v14, %v16341_v27  ;;  %v9390_v53 = vadd.f32 %v9382_v12, %v16342_v6  ;;  %v9379_v55 = vadd.f32 %v9365_v25, %v9350_v31  ;;  %v9383_v35 = vadd.f32 %v9365_v25, %v9354_v61 }
 0xcf2   : > { %v9388_v47 = vadd.f32 %v9380_v48, %v16343_v52  ;;  %v9392_v59 = vadd.f32 %v9384_v42, %v16344_v20  ;;  %v9381_v58 = vadd.f32 %v9373_v0, %v9352_v54  ;;  %v9385_v50 = vadd.f32 %v9373_v0, %v9356_v19 }
 0xcf3   : > { %9394 = vst [vmem:[%s711_s29] sm:$0xff] %v9386_v46  ;;  %9398 = vst [vmem:[%s711_s29 + $0x20] sm:$0xff] %v9390_v53  ;;  %v9387_v39 = vadd.f32 %v9379_v55, %v16345_v3  ;;  %v9391_v23 = vadd.f32 %v9383_v35, %v16346_v18 }
 0xcf4   : > { %9396 = vst [vmem:[%s711_s29 + $0x10] sm:$0xff] %v9388_v47  ;;  %9400 = vst [vmem:[%s711_s29 + $0x30] sm:$0xff] %v9392_v59  ;;  %v9389_v45 = vadd.f32 %v9381_v58, %v16348_v40  ;;  %v9393_v8 = vadd.f32 %v9385_v50, %v16349_v41 }
 0xcf5   : > { %9395 = vst [vmem:[%s711_s29 + $0x8] sm:$0xff] %v9387_v39  ;;  %9399 = vst [vmem:[%s711_s29 + $0x28] sm:$0xff] %v9391_v23 }
 0xcf6   : > { %9397 = vst [vmem:[%s711_s29 + $0x18] sm:$0xff] %v9389_v45  ;;  %9401 = vst [vmem:[%s711_s29 + $0x38] sm:$0xff] %v9393_v8 }
 0xcf7   : > { %13593 = shalt.err (!%p13590_p2)
}
 0xcf8   : > { %s13594_s7 = scalar_lea.hbm %s15648_s23, 1024  ;;  %s13598_s3 = scalar_lea.hbm %s16347_s0, 2048 }
 0xcf9   : > { %p13595_p4 = scmp.ne.s32.totalorder %s15648_s23, %s13594_s7  ;;  %p13599_p7 = scmp.lt.u32.totalorder %s15648_s23, %s16347_s0 }
 0xcfa   : > { %p13600_p9 = scmp.lt.u32.totalorder %s13598_s3, %s13594_s7  ;;  %p13602_p11 = scmp.lt.u32.totalorder %s13594_s7, %s15648_s23 }
 0xcfb   : > { %p13596_p10 = pnand %p13595_p4, %p16350_p3 }
 0xcfc   : > { %p13601_p8 = por %p13600_p9, %p13599_p7 }
 0xcfd   : > { %p13597_p5 = pneg %p13596_p10 }
 0xcfe   : > { %p13603_p12 = por %p13602_p11, %p13601_p8 }
 0xd00   : > { %p13604_p1 = pnand %p13603_p12, %p13597_p5 }
 0xd02   : > { %13607 = shalt.err (!%p13604_p1)
}
 0xd03   : > { %s13700_s5 = smov 512   ;;  %s13701_s18 = smov 32  }
 0xd04   : > { %11851 = dma.vmem_to_hbm [thread:$0]  (%p16350_p3), %s15650_s10, 1024, %s15648_s23, %s9403_s9, %s13700_s5, %s13700_s5, %s13701_s18  }
 0xd05 PF: > { %s16351_s1 = sld [smem:[#allocation38_spill]]  ;;  %p16352_p13 = scmp.ne.s32.totalorder %s15957_s17, 0 }
 0xd06   : > { %p16353_p0 = scmp.ge.s32.totalorder %s13678_s21, 2 }
 0xd08   : > { %p11898_p6 = pnand %p16353_p0, %p16352_p13 }
 0xd0b   : > { %s9431_s16 = sand.u32 1, %s16351_s1  }
 0xd0c   : > { %s9432_s30 = scalar_lea.sflag [#allocation6], %s9431_s16 }
 0xd0d   : > { %13661 = dma.done.wait (!%p11898_p6), %s9432_s30, 1024  }
 0xd0e   : > { %13663 = vsyncadd (!%p11898_p6), %s9432_s30, 4294966272  ;;  %p37_p2 = scmp.ge.s32.totalorder %s14112_s2, 4   ;;  %s16354_s18 = smov %s13670_s19 }
 0xd0f   : > { %s16355_s19 = smov %s13674_s20  ;;  %s16356_s20 = smov %s14123_s4 }
 0xd10   : > { %s16357_s21 = smov %s14112_s2  ;;  %39 = sbr.rel (!%p37_p2) target bundleno = 26 (0x1a), region = 188 }
 0xd17   :  { %9437 = vsyncpa [#allocation5], 1 }
 0xd18   :  { %9439 = vsyncpa [#allocation5 + $0x1], 1 }
 0xd19   :  { %9440 = vsyncpa [#allocation8], 1 }
 0xd1a   :  { %9442 = vsyncpa [#allocation8 + $0x1], 1 }
 0xd1b   :  { %9443 = vsyncpa [#allocation11], 1 }
 0xd1c   :  { %9444 = vsyncpa [#allocation14], 1 }
 0xd1d   :  { %9445 = vsyncpa [#allocation17], 1 }
 0xd1e   :  { %9446 = vsyncpa [#allocation20], 1 }
 0xd1f   :  { %9447 = vsyncpa [#allocation23], 1 }
 0xd20   :  { %9448 = vsyncpa [#allocation26], 1 }
 0xd21   :  { %9449 = vsyncpa [#allocation6], 1 }
 0xd22   :  { %9451 = vsyncpa [#allocation6 + $0x1], 1 }

</bundles_post_ra>
